<compile_context>
chip_gen: v5e
topology: v5e:2x2
jax: 0.10.0
libtpu: 0.0.40
codegen_flags: <defaults>
</compile_context>

<pallas_src>
import functools

import jax
import jax.numpy as jnp
from jax.experimental import pallas as pl
from jax.experimental.pallas import tpu as pltpu

BN_EPS = 1e-5
LRELU_SLOPE = 0.2
TM_DEFAULT = 512          # max rows per grid step

_COMPILER_PARAMS = pltpu.CompilerParams(
    dimension_semantics=("parallel",),
    vmem_limit_bytes=48 * 1024 * 1024,
)


def _round_up(x, m):
    return ((x + m - 1) // m) * m


def _tile_m(M):
    """Pick an M tile: as large as possible but with >=2 grid steps whenever M > 8,
    so the 'parallel' grid axis actually shards across v7x's two TensorCores."""
    half = _round_up(max((M + 1) // 2, 8), 8)
    tm = min(TM_DEFAULT, half)
    return tm, _round_up(M, tm)


# ----------------------------------------------------------------------------
# Pallas kernels
# ----------------------------------------------------------------------------
def _gemm_stats_kernel(x_ref, w_ref, y_ref, sum_ref, sq_ref):
    """y = x @ w (bf16 MXU inputs, f32 accumulation), stored bf16.  Also emits
    per-tile per-channel sum and sum-of-squares (for batch-statistics BatchNorm)
    while the f32 tile is still in VMEM (VPU/XLU filler under the MXU)."""
    y = jnp.dot(x_ref[...], w_ref[...], preferred_element_type=jnp.float32)
    y_ref[...] = y.astype(y_ref.dtype)
    sum_ref[...] = jnp.sum(y, axis=0, keepdims=True)[None]       # (1,1,C)
    sq_ref[...] = jnp.sum(y * y, axis=0, keepdims=True)[None]    # (1,1,C)


def _matmul_bias_kernel(x_ref, w_ref, b_ref, o_ref):
    """o = x @ w + b  (f32 output; used for the fused mu|logvar 1x1 conv)."""
    o_ref[...] = (
        jnp.dot(x_ref[...], w_ref[...], preferred_element_type=jnp.float32)
        + b_ref[...]
    )


def _affine_act_kernel(y_ref, s_ref, t_ref, o_ref, *, final_tanh):
    """o = act(y * scale + shift): BN apply + LeakyReLU(0.2) (+ tanh), bf16 store."""
    y = y_ref[...].astype(jnp.float32) * s_ref[...] + t_ref[...]
    y = jnp.where(y > 0, y, LRELU_SLOPE * y)
    if final_tanh:
        y = jnp.tanh(y)
    o_ref[...] = y.astype(o_ref.dtype)


def _reparam_decin_kernel(mlv_ref, eps_ref, w_ref, b_ref, o_ref, *, latent_dim):
    """Fused reparameterize + decoder_input 1x1 conv-transpose.

    mlv holds mu in lanes [0,L) and logvar in lanes [L,2L) (rest zero).  eps is
    packed on the logvar lanes [L,2L), so eps * exp(0.5*mlv) equals eps*std exactly
    on those lanes.  The decoder_input weight has w_decin duplicated on rows [0,L)
    and [L,2L) and zeros elsewhere, so z @ w == (mu + eps*std) @ w_decin without any
    lane realignment."""
    mlv = mlv_ref[...]
    lane = jax.lax.broadcasted_iota(jnp.int32, mlv.shape, 1)
    mu_only = jnp.where(lane < latent_dim, mlv, 0.0)
    lv_safe = jnp.where(lane < latent_dim, 0.0, mlv)     # avoid exp() on mu lanes
    z = eps_ref[...] * jnp.exp(0.5 * lv_safe) + mu_only
    o = (jnp.dot(z.astype(jnp.bfloat16), w_ref[...],
                 preferred_element_type=jnp.float32) + b_ref[...])
    o_ref[...] = o.astype(o_ref.dtype)


# ----------------------------------------------------------------------------
# Tiled pallas_call wrappers
# ----------------------------------------------------------------------------
def gemm_stats(x, w):
    """x:[M,K] bf16 @ w:[K,C] bf16 -> (y bf16 [M,C], sum f32 [C], sumsq f32 [C])."""
    M, K = x.shape
    C = w.shape[1]
    tm, Mp = _tile_m(M)
    T = Mp // tm
    xp = jnp.pad(x, ((0, Mp - M), (0, 0))) if Mp != M else x
    y, s, sq = pl.pallas_call(
        _gemm_stats_kernel,
        out_shape=[jax.ShapeDtypeStruct((Mp, C), jnp.bfloat16),
                   jax.ShapeDtypeStruct((T, 1, C), jnp.float32),
                   jax.ShapeDtypeStruct((T, 1, C), jnp.float32)],
        grid_spec=pltpu.PrefetchScalarGridSpec(
            num_scalar_prefetch=0,
            grid=(T,),
            in_specs=[pl.BlockSpec((tm, K), lambda i: (i, 0)),
                      pl.BlockSpec((K, C), lambda i: (0, 0))],
            out_specs=[pl.BlockSpec((tm, C), lambda i: (i, 0)),
                       pl.BlockSpec((1, 1, C), lambda i: (i, 0, 0)),
                       pl.BlockSpec((1, 1, C), lambda i: (i, 0, 0))]),
        compiler_params=_COMPILER_PARAMS,
    )(xp, w)
    y = y[:M] if Mp != M else y
    # zero-padded rows contribute nothing (no bias in these GEMMs), so the tiny
    # cross-tile reduction below is exact.
    return y, jnp.sum(s[:, 0, :], axis=0), jnp.sum(sq[:, 0, :], axis=0)


def matmul_bias(x, w, b):
    """x:[M,K] bf16 @ w:[K,C] bf16 + b -> [M,C] f32 (fused mu|logvar head)."""
    M, K = x.shape
    C = w.shape[1]
    tm, Mp = _tile_m(M)
    xp = jnp.pad(x, ((0, Mp - M), (0, 0))) if Mp != M else x
    out = pl.pallas_call(
        _matmul_bias_kernel,
        out_shape=jax.ShapeDtypeStruct((Mp, C), jnp.float32),
        grid_spec=pltpu.PrefetchScalarGridSpec(
            num_scalar_prefetch=0,
            grid=(Mp // tm,),
            in_specs=[pl.BlockSpec((tm, K), lambda i: (i, 0)),
                      pl.BlockSpec((K, C), lambda i: (0, 0)),
                      pl.BlockSpec((1, C), lambda i: (0, 0))],
            out_specs=pl.BlockSpec((tm, C), lambda i: (i, 0))),
        compiler_params=_COMPILER_PARAMS,
    )(xp, w, b.reshape(1, C).astype(jnp.float32))
    return out[:M] if Mp != M else out


def affine_act(y, scale, shift, *, final_tanh):
    """Per-channel affine (BN apply) + LeakyReLU(0.2) (+ tanh) on y:[M,C], bf16 out."""
    M, C = y.shape
    tm, Mp = _tile_m(M)
    yp = jnp.pad(y, ((0, Mp - M), (0, 0))) if Mp != M else y
    kernel = functools.partial(_affine_act_kernel, final_tanh=final_tanh)
    out = pl.pallas_call(
        kernel,
        out_shape=jax.ShapeDtypeStruct((Mp, C), jnp.bfloat16),
        grid_spec=pltpu.PrefetchScalarGridSpec(
            num_scalar_prefetch=0,
            grid=(Mp // tm,),
            in_specs=[pl.BlockSpec((tm, C), lambda i: (i, 0)),
                      pl.BlockSpec((1, C), lambda i: (0, 0)),
                      pl.BlockSpec((1, C), lambda i: (0, 0))],
            out_specs=pl.BlockSpec((tm, C), lambda i: (i, 0))),
        compiler_params=_COMPILER_PARAMS,
    )(yp,
      scale.reshape(1, C).astype(jnp.float32),
      shift.reshape(1, C).astype(jnp.float32))
    return out[:M] if Mp != M else out


def reparam_decoder_input(mlv, eps_pack, w, b, latent_dim):
    """Fused reparameterize + decoder_input GEMM.  mlv:[M,128] f32, eps_pack:[M,128]
    (eps on lanes [L,2L)), w:[128,256] bf16 (w_decin duplicated on mu/logvar rows)."""
    M = mlv.shape[0]
    C = w.shape[1]
    tm, Mp = _tile_m(M)

    def padM(a):
        return jnp.pad(a, ((0, Mp - M), (0, 0))) if Mp != M else a

    kernel = functools.partial(_reparam_decin_kernel, latent_dim=latent_dim)
    out = pl.pallas_call(
        kernel,
        out_shape=jax.ShapeDtypeStruct((Mp, C), jnp.bfloat16),
        grid_spec=pltpu.PrefetchScalarGridSpec(
            num_scalar_prefetch=0,
            grid=(Mp // tm,),
            in_specs=[pl.BlockSpec((tm, 128), lambda i: (i, 0)),
                      pl.BlockSpec((tm, 128), lambda i: (i, 0)),
                      pl.BlockSpec((128, C), lambda i: (0, 0)),
                      pl.BlockSpec((1, C), lambda i: (0, 0))],
            out_specs=pl.BlockSpec((tm, C), lambda i: (i, 0))),
        compiler_params=_COMPILER_PARAMS,
    )(padM(mlv.astype(jnp.float32)), padM(eps_pack.astype(jnp.float32)),
      w, b.reshape(1, C).astype(jnp.float32))
    return out[:M] if Mp != M else out


# ----------------------------------------------------------------------------
# JAX glue: im2col, BN coefficient finish, per-layer wrappers
# ----------------------------------------------------------------------------
def _extract_patches(x_pad, kh, kw, stride, Ho, Wo):
    """x_pad: [N, Hp, Wp, C] -> [N*Ho*Wo, kh*kw*C] (tap order ky, kx, channel)."""
    N, _, _, C = x_pad.shape
    cols = []
    for ky in range(kh):
        for kx in range(kw):
            sl = x_pad[:, ky:ky + (Ho - 1) * stride + 1:stride,
                          kx:kx + (Wo - 1) * stride + 1:stride, :]
            cols.append(sl)
    patches = jnp.stack(cols, axis=3)          # [N, Ho, Wo, kh*kw, C]
    return patches.reshape(N * Ho * Wo, kh * kw * C)


def _bn_coeffs(sums, sqs, count, gamma, beta):
    """Training-mode (batch-statistics, biased-variance) BatchNorm scale/shift."""
    mean = sums / count
    var = jnp.maximum(sqs / count - mean * mean, 0.0)
    scale = gamma * jax.lax.rsqrt(var + BN_EPS)
    shift = beta - mean * scale
    return scale, shift


def conv_block(x, w, gamma, beta):
    """Conv2d(k=3, s=2, p=1; bias dropped — cancels in batch-stat BN) + BatchNorm2d
    + LeakyReLU(0.2).  x NHWC bf16; w [9*Cin, Cp] bf16, Cp lane-padded to 128."""
    N, H, W, Cin = x.shape
    Cp = w.shape[1]
    cout = gamma.shape[0]
    Ho, Wo = (H - 1) // 2 + 1, (W - 1) // 2 + 1
    x_pad = jnp.pad(x, ((0, 0), (1, 1), (1, 1), (0, 0)))
    patches = _extract_patches(x_pad, 3, 3, 2, Ho, Wo)          # [M, 9*Cin] bf16
    M = N * Ho * Wo
    y, sums, sqs = gemm_stats(patches, w)                       # bf16 y + f32 stats
    gamma_p = jnp.pad(gamma, (0, Cp - cout))
    beta_p = jnp.pad(beta, (0, Cp - cout))
    scale, shift = _bn_coeffs(sums, sqs, float(M), gamma_p, beta_p)
    o = affine_act(y, scale, shift, final_tanh=False)           # [M, Cp] bf16
    if Cp != cout:
        o = o[:, :cout]
    return o.reshape(N, Ho, Wo, cout)


def conv_transpose_block(x, w, gamma, beta, *, final_tanh):
    """ConvTranspose2d(k=3, s=2, p=1, output_padding=1; bias dropped) + BN +
    LeakyReLU(0.2) (+ tanh) via subpixel decomposition: one GEMM over the 2x2 input
    neighbourhood emits all four output phases at once.  NHWC bf16 in/out.
    w: [4*Cin, Pp] bf16 with Pp = 4*Cout lane-padded to a multiple of 128."""
    N, H, W, Cin = x.shape
    Pp = w.shape[1]
    cout = gamma.shape[0]
    x_pad = jnp.pad(x, ((0, 0), (0, 1), (0, 1), (0, 0)))        # high-side zeros
    patches = _extract_patches(x_pad, 2, 2, 1, H, W)            # [M, 4*Cin] bf16
    M = N * H * W
    y, sums, sqs = gemm_stats(patches, w)                       # [M, Pp]
    sums_c = sums[:4 * cout].reshape(4, cout).sum(axis=0)       # combine 4 phases
    sqs_c = sqs[:4 * cout].reshape(4, cout).sum(axis=0)
    scale, shift = _bn_coeffs(sums_c, sqs_c, float(4 * M), gamma, beta)
    scale_p = jnp.pad(jnp.tile(scale, 4), (0, Pp - 4 * cout))
    shift_p = jnp.pad(jnp.tile(shift, 4), (0, Pp - 4 * cout))
    o = affine_act(y, scale_p, shift_p, final_tanh=final_tanh)  # [M, Pp] bf16
    o = o[:, :4 * cout]
    # interleave phases: out[n, 2i+a, 2j+b, c] = o[n, i, j, phase(a,b), c]
    o = o.reshape(N, H, W, 2, 2, cout).transpose(0, 1, 3, 2, 4, 5)
    return o.reshape(N, 2 * H, 2 * W, cout)


# ----------------------------------------------------------------------------
# Parameters: PyTorch-layout init + one-time GEMM-layout preparation
# ----------------------------------------------------------------------------
def init_params(key, in_channels=3, latent_dim=4):
    cnt = [0]

    def nk():
        cnt[0] += 1
        return jax.random.fold_in(key, cnt[0])

    def w(shape, scale=0.05):
        return (scale * jax.random.normal(nk(), shape)).astype(jnp.float32)

    enc_dims = [(in_channels, 64), (64, 128), (128, 256)]
    # conv/convT biases are created for PyTorch parity but dropped in prepare_params
    # (they cancel exactly under batch-statistics BatchNorm).
    encoder = [dict(W=w((co, ci, 3, 3)), b=w((co,), 0.01),
                    gamma=jnp.ones((co,), jnp.float32),
                    beta=jnp.zeros((co,), jnp.float32)) for ci, co in enc_dims]

    fc_mu = dict(W=w((latent_dim, 256, 1, 1)), b=w((latent_dim,), 0.01))
    fc_var = dict(W=w((latent_dim, 256, 1, 1)), b=w((latent_dim,), 0.01))
    dec_in = dict(W=w((latent_dim, 256, 1, 1)), b=w((256,), 0.01))

    dec_dims = [(256, 128), (128, 64), (64, in_channels)]
    decoder = [dict(W=w((ci, co, 3, 3)), b=w((co,), 0.01),
                    gamma=jnp.ones((co,), jnp.float32),
                    beta=jnp.zeros((co,), jnp.float32)) for ci, co in dec_dims]

    return dict(encoder=encoder, fc_mu=fc_mu, fc_var=fc_var,
                dec_in=dec_in, decoder=decoder)


def _make_subpixel_weight(W_pt):
    """PyTorch ConvTranspose2d weight (Cin, Cout, 3, 3) -> combined subpixel GEMM
    weight [4*Cin (tap di,dj major), 4*Cout (phase a,b major)].
    Derived from out[2i+a, 2j+b] = sum of x[i+di, j+dj] * W[:,:,ky,kx] contributions
    (stride=2, padding=1, output_padding=1)."""
    Cin, Cout = W_pt.shape[0], W_pt.shape[1]
    Wc = jnp.zeros((2, 2, Cin, 2, 2, Cout), jnp.float32)   # (di, dj, cin, a, b, cout)
    # phase (0,0)
    Wc = Wc.at[0, 0, :, 0, 0, :].set(W_pt[:, :, 1, 1])
    # phase (0,1)
    Wc = Wc.at[0, 0, :, 0, 1, :].set(W_pt[:, :, 1, 2])
    Wc = Wc.at[0, 1, :, 0, 1, :].set(W_pt[:, :, 1, 0])
    # phase (1,0)
    Wc = Wc.at[0, 0, :, 1, 0, :].set(W_pt[:, :, 2, 1])
    Wc = Wc.at[1, 0, :, 1, 0, :].set(W_pt[:, :, 0, 1])
    # phase (1,1)
    Wc = Wc.at[0, 0, :, 1, 1, :].set(W_pt[:, :, 2, 2])
    Wc = Wc.at[0, 1, :, 1, 1, :].set(W_pt[:, :, 2, 0])
    Wc = Wc.at[1, 0, :, 1, 1, :].set(W_pt[:, :, 0, 2])
    Wc = Wc.at[1, 1, :, 1, 1, :].set(W_pt[:, :, 0, 0])
    return Wc.reshape(4 * Cin, 4 * Cout)


def prepare_params(params, latent_dim):
    """One-time weight pre-transformation to GEMM-ready (bf16, lane-padded) layouts."""
    L = latent_dim
    assert 2 * L <= 128, "latent_dim too large for 128-lane packing"
    prep = {}

    enc = []
    for l in params["encoder"]:
        cout = l["W"].shape[0]
        wmat = jnp.transpose(l["W"], (2, 3, 1, 0)).reshape(-1, cout)
        cp = max(_round_up(cout, 128), 128)
        if cp != cout:
            wmat = jnp.pad(wmat, ((0, 0), (0, cp - cout)))     # lane-dense output
        enc.append(dict(w=wmat.astype(jnp.bfloat16),
                        gamma=l["gamma"], beta=l["beta"]))
    prep["encoder"] = enc

    # fused mu|logvar 1x1 conv, output lanes padded to 128 (lane-dense stores)
    w_mu = params["fc_mu"]["W"][:, :, 0, 0]                    # (L, 256)
    w_var = params["fc_var"]["W"][:, :, 0, 0]
    w_cat = jnp.concatenate([w_mu, w_var], axis=0).T           # (256, 2L)
    prep["w_mulogvar"] = jnp.pad(
        w_cat, ((0, 0), (0, 128 - 2 * L))).astype(jnp.bfloat16)
    prep["b_mulogvar"] = jnp.pad(
        jnp.concatenate([params["fc_mu"]["b"], params["fc_var"]["b"]]),
        (0, 128 - 2 * L)).astype(jnp.float32)

    # decoder_input 1x1 conv-transpose: duplicate w_decin on the mu rows [0,L) and
    # the logvar rows [L,2L) so (mu + eps*std) @ w_decin comes out of one GEMM.
    w_di = params["dec_in"]["W"][:, :, 0, 0]                   # (L, 256)
    w_pad = jnp.zeros((128, w_di.shape[1]), jnp.float32)
    w_pad = w_pad.at[0:L].set(w_di).at[L:2 * L].set(w_di)
    prep["w_decin"] = w_pad.astype(jnp.bfloat16)
    prep["b_decin"] = params["dec_in"]["b"].astype(jnp.float32)

    dec = []
    for l in params["decoder"]:
        cout = l["W"].shape[1]
        wmat = _make_subpixel_weight(l["W"])                   # (4*Cin, 4*Cout)
        pp = max(_round_up(4 * cout, 128), 128)
        if pp != 4 * cout:
            wmat = jnp.pad(wmat, ((0, 0), (0, pp - 4 * cout)))
        dec.append(dict(w=wmat.astype(jnp.bfloat16),
                        gamma=l["gamma"], beta=l["beta"]))
    prep["decoder"] = dec
    return prep


# ----------------------------------------------------------------------------
# Full forward
# ----------------------------------------------------------------------------
@functools.partial(jax.jit, static_argnames=("latent_dim",))
def vae_forward(prep, x_nchw, eps, *, latent_dim):
    """Returns (reconstruction, input, mu, log_var) — all NCHW like PyTorch."""
    N = x_nchw.shape[0]
    L = latent_dim

    # ---- encode ----
    h = jnp.transpose(x_nchw, (0, 2, 3, 1)).astype(jnp.bfloat16)   # NHWC bf16
    for layer in prep["encoder"]:
        h = conv_block(h, layer["w"], layer["gamma"], layer["beta"])
    _, Hl, Wl, Cf = h.shape
    M = N * Hl * Wl
    h_flat = h.reshape(M, Cf)

    # fused mu|logvar GEMM (output padded to 128 lanes: mu in [0,L), logvar in [L,2L))
    mlv = matmul_bias(h_flat, prep["w_mulogvar"], prep["b_mulogvar"])  # (M, 128) f32

    # ---- reparameterize + decoder_input (single fused kernel) ----
    eps_pack = jnp.pad(eps.reshape(M, L).astype(jnp.float32),
                       ((0, 0), (L, 128 - 2 * L)))                 # eps on logvar lanes
    d = reparam_decoder_input(mlv, eps_pack,
                              prep["w_decin"], prep["b_decin"], L)  # (M, 256) bf16
    d = d.reshape(N, Hl, Wl, 256)

    # ---- decode ----
    n_dec = len(prep["decoder"])
    for i, layer in enumerate(prep["decoder"]):
        d = conv_transpose_block(d, layer["w"], layer["gamma"], layer["beta"],
                                 final_tanh=(i == n_dec - 1))

    recon = jnp.transpose(d, (0, 3, 1, 2)).astype(jnp.float32)      # NCHW f32
    mu = jnp.transpose(mlv[:, :L].reshape(N, Hl, Wl, L), (0, 3, 1, 2))
    log_var = jnp.transpose(mlv[:, L:2 * L].reshape(N, Hl, Wl, L), (0, 3, 1, 2))
    return recon, x_nchw, mu, log_var


# ----------------------------------------------------------------------------
if __name__ == "__main__":
    N, C_IN, IMG, LATENT = 2, 3, 16, 4   # small synthetic shapes

    root = jax.random.PRNGKey(0)
    kx, kp, ke = jax.random.split(root, 3)

    x = jax.random.normal(kx, (N, C_IN, IMG, IMG), jnp.float32)
    params = init_params(kp, in_channels=C_IN, latent_dim=LATENT)
    prep = prepare_params(params, latent_dim=LATENT)

    Hl = IMG // 8
    eps = jax.random.normal(ke, (N * Hl * Hl, LATENT), jnp.float32)

    recon, inp, mu, log_var = vae_forward(prep, x, eps, latent_dim=LATENT)
    jax.block_until_ready((recon, inp, mu, log_var))

    assert recon.shape == (N, C_IN, IMG, IMG)
    assert inp.shape == (N, C_IN, IMG, IMG)
    assert mu.shape == (N, LATENT, Hl, Hl)
    assert log_var.shape == (N, LATENT, Hl, Hl)
    assert bool(jnp.all(jnp.isfinite(recon)))
    assert bool(jnp.all(jnp.isfinite(mu)))
    assert bool(jnp.all(jnp.isfinite(log_var)))

    print("KERNEL_OK")
</pallas_src>

<mosaic_0001>
module attributes {stable_mosaic.version = 11 : i64} {
  func.func @_gemm_stats_kernel(%arg0: i32, %arg1: memref<64x27xbf16, #tpu.memory_space<vmem>>, %arg2: memref<27x128xbf16, #tpu.memory_space<vmem>>, %arg3: memref<64x128xbf16, #tpu.memory_space<vmem>>, %arg4: memref<1x1x128xf32, #tpu.memory_space<vmem>>, %arg5: memref<1x1x128xf32, #tpu.memory_space<vmem>>) attributes {dimension_semantics = [#tpu.dimension_semantics<parallel>], iteration_bounds = array<i64: 2>, scalar_prefetch = 0 : i64, scratch_operands = 0 : i64, tpu.core_type = #tpu.core_type<tc>, window_params = [{transform_indices = @transform_0, window_bounds = array<i64: 64, 27>}, {pipeline_mode = #tpu.pipeline_mode<synchronous>, transform_indices = @transform_1, window_bounds = array<i64: 27, 128>}, {transform_indices = @transform_2, window_bounds = array<i64: 64, 128>}, {transform_indices = @transform_3, window_bounds = array<i64: 1, 1, 128>}, {transform_indices = @transform_4, window_bounds = array<i64: 1, 1, 128>}]} {
    %c0 = arith.constant 0 : index
    %c0_0 = arith.constant 0 : index
    %0 = vector.load %arg1[%c0, %c0_0] : memref<64x27xbf16, #tpu.memory_space<vmem>>, vector<64x27xbf16>
    %c0_1 = arith.constant 0 : index
    %c0_2 = arith.constant 0 : index
    %1 = vector.load %arg2[%c0_1, %c0_2] : memref<27x128xbf16, #tpu.memory_space<vmem>>, vector<27x128xbf16>
    %cst = arith.constant dense<0.000000e+00> : vector<64x128xf32>
    %2 = tpu.matmul %0, %1, %cst {dimension_numbers = #tpu.dot_dimension_numbers<[1], [0], [0], [1], [0, 0, 1, 1], [], []>} : vector<64x27xbf16>, vector<27x128xbf16>, vector<64x128xf32> -> vector<64x128xf32>
    %3 = arith.truncf %2 : vector<64x128xf32> to vector<64x128xbf16>
    %c0_3 = arith.constant 0 : index
    %c0_4 = arith.constant 0 : index
    %4 = vector.load %arg3[%c0_3, %c0_4] : memref<64x128xbf16, #tpu.memory_space<vmem>>, vector<64x128xbf16>
    tpu.vector_store %arg3[%c0_3, %c0_4], %3 {strides = array<i32>} : memref<64x128xbf16, #tpu.memory_space<vmem>>, vector<64x128xbf16>,
    %cst_5 = arith.constant dense<0.000000e+00> : vector<128xf32>
    %5 = vector.multi_reduction <add>, %2, %cst_5 [0] : vector<64x128xf32> to vector<128xf32>
    %6 = vector.shape_cast %5 : vector<128xf32> to vector<1x128xf32>
    %7 = vector.shape_cast %6 : vector<1x128xf32> to vector<1x1x128xf32>
    %c0_6 = arith.constant 0 : index
    %c0_7 = arith.constant 0 : index
    %c0_8 = arith.constant 0 : index
    %8 = vector.load %arg4[%c0_6, %c0_7, %c0_8] : memref<1x1x128xf32, #tpu.memory_space<vmem>>, vector<1x1x128xf32>
    tpu.vector_store %arg4[%c0_6, %c0_7, %c0_8], %7 {strides = array<i32>} : memref<1x1x128xf32, #tpu.memory_space<vmem>>, vector<1x1x128xf32>,
    %9 = arith.mulf %2, %2 : vector<64x128xf32>
    %cst_9 = arith.constant dense<0.000000e+00> : vector<128xf32>
    %10 = vector.multi_reduction <add>, %9, %cst_9 [0] : vector<64x128xf32> to vector<128xf32>
    %11 = vector.shape_cast %10 : vector<128xf32> to vector<1x128xf32>
    %12 = vector.shape_cast %11 : vector<1x128xf32> to vector<1x1x128xf32>
    %c0_10 = arith.constant 0 : index
    %c0_11 = arith.constant 0 : index
    %c0_12 = arith.constant 0 : index
    %13 = vector.load %arg5[%c0_10, %c0_11, %c0_12] : memref<1x1x128xf32, #tpu.memory_space<vmem>>, vector<1x1x128xf32>
    tpu.vector_store %arg5[%c0_10, %c0_11, %c0_12], %12 {strides = array<i32>} : memref<1x1x128xf32, #tpu.memory_space<vmem>>, vector<1x1x128xf32>,
    return
  }
  func.func @transform_0(%arg0: i32) -> (i32, i32) {
    %c0_i32 = arith.constant 0 : i32
    %c0_i32_0 = arith.constant 0 : i32
    return %arg0, %c0_i32 : i32, i32
  }
  func.func @transform_1(%arg0: i32) -> (i32, i32) {
    %c0_i32 = arith.constant 0 : i32
    %c0_i32_0 = arith.constant 0 : i32
    %c0_i32_1 = arith.constant 0 : i32
    return %c0_i32, %c0_i32_0 : i32, i32
  }
  func.func @transform_2(%arg0: i32) -> (i32, i32) {
    %c0_i32 = arith.constant 0 : i32
    %c0_i32_0 = arith.constant 0 : i32
    return %arg0, %c0_i32 : i32, i32
  }
  func.func @transform_3(%arg0: i32) -> (i32, i32, i32) {
    %c0_i32 = arith.constant 0 : i32
    %c0_i32_0 = arith.constant 0 : i32
    %c0_i32_1 = arith.constant 0 : i32
    return %arg0, %c0_i32, %c0_i32_0 : i32, i32, i32
  }
  func.func @transform_4(%arg0: i32) -> (i32, i32, i32) {
    %c0_i32 = arith.constant 0 : i32
    %c0_i32_0 = arith.constant 0 : i32
    %c0_i32_1 = arith.constant 0 : i32
    return %arg0, %c0_i32, %c0_i32_0 : i32, i32, i32
  }
}

module attributes {stable_mosaic.version = 11 : i64} {
  func.func @_affine_act_kernel(%arg0: i32, %arg1: memref<64x128xbf16, #tpu.memory_space<vmem>>, %arg2: memref<1x128xf32, #tpu.memory_space<vmem>>, %arg3: memref<1x128xf32, #tpu.memory_space<vmem>>, %arg4: memref<64x128xbf16, #tpu.memory_space<vmem>>) attributes {dimension_semantics = [#tpu.dimension_semantics<parallel>], iteration_bounds = array<i64: 2>, scalar_prefetch = 0 : i64, scratch_operands = 0 : i64, tpu.core_type = #tpu.core_type<tc>, window_params = [{transform_indices = @transform_0, window_bounds = array<i64: 64, 128>}, {pipeline_mode = #tpu.pipeline_mode<synchronous>, transform_indices = @transform_1, window_bounds = array<i64: 1, 128>}, {pipeline_mode = #tpu.pipeline_mode<synchronous>, transform_indices = @transform_2, window_bounds = array<i64: 1, 128>}, {transform_indices = @transform_3, window_bounds = array<i64: 64, 128>}]} {
    %c0 = arith.constant 0 : index
    %c0_0 = arith.constant 0 : index
    %0 = vector.load %arg1[%c0, %c0_0] : memref<64x128xbf16, #tpu.memory_space<vmem>>, vector<64x128xbf16>
    %1 = arith.extf %0 : vector<64x128xbf16> to vector<64x128xf32>
    %c0_1 = arith.constant 0 : index
    %c0_2 = arith.constant 0 : index
    %2 = vector.load %arg2[%c0_1, %c0_2] : memref<1x128xf32, #tpu.memory_space<vmem>>, vector<1x128xf32>
    %3 = vector.broadcast %2 : vector<1x128xf32> to vector<64x128xf32>
    %4 = arith.mulf %1, %3 : vector<64x128xf32>
    %c0_3 = arith.constant 0 : index
    %c0_4 = arith.constant 0 : index
    %5 = vector.load %arg3[%c0_3, %c0_4] : memref<1x128xf32, #tpu.memory_space<vmem>>, vector<1x128xf32>
    %6 = vector.broadcast %5 : vector<1x128xf32> to vector<64x128xf32>
    %7 = arith.addf %4, %6 : vector<64x128xf32>
    %cst = arith.constant 0.000000e+00 : f32
    %8 = vector.broadcast %cst : f32 to vector<64x128xf32>
    %9 = arith.cmpf ogt, %7, %8 : vector<64x128xf32>
    %cst_5 = arith.constant 2.000000e-01 : f32
    %10 = vector.broadcast %cst_5 : f32 to vector<64x128xf32>
    %11 = arith.mulf %10, %7 : vector<64x128xf32>
    %12 = arith.select %9, %7, %11 : vector<64x128xi1>, vector<64x128xf32>
    %13 = arith.truncf %12 : vector<64x128xf32> to vector<64x128xbf16>
    %c0_6 = arith.constant 0 : index
    %c0_7 = arith.constant 0 : index
    %14 = vector.load %arg4[%c0_6, %c0_7] : memref<64x128xbf16, #tpu.memory_space<vmem>>, vector<64x128xbf16>
    tpu.vector_store %arg4[%c0_6, %c0_7], %13 {strides = array<i32>} : memref<64x128xbf16, #tpu.memory_space<vmem>>, vector<64x128xbf16>,
    return
  }
  func.func @transform_0(%arg0: i32) -> (i32, i32) {
    %c0_i32 = arith.constant 0 : i32
    %c0_i32_0 = arith.constant 0 : i32
    return %arg0, %c0_i32 : i32, i32
  }
  func.func @transform_1(%arg0: i32) -> (i32, i32) {
    %c0_i32 = arith.constant 0 : i32
    %c0_i32_0 = arith.constant 0 : i32
    %c0_i32_1 = arith.constant 0 : i32
    return %c0_i32, %c0_i32_0 : i32, i32
  }
  func.func @transform_2(%arg0: i32) -> (i32, i32) {
    %c0_i32 = arith.constant 0 : i32
    %c0_i32_0 = arith.constant 0 : i32
    %c0_i32_1 = arith.constant 0 : i32
    return %c0_i32, %c0_i32_0 : i32, i32
  }
  func.func @transform_3(%arg0: i32) -> (i32, i32) {
    %c0_i32 = arith.constant 0 : i32
    %c0_i32_0 = arith.constant 0 : i32
    return %arg0, %c0_i32 : i32, i32
  }
}

module attributes {stable_mosaic.version = 11 : i64} {
  func.func @_gemm_stats_kernel(%arg0: i32, %arg1: memref<16x576xbf16, #tpu.memory_space<vmem>>, %arg2: memref<576x128xbf16, #tpu.memory_space<vmem>>, %arg3: memref<16x128xbf16, #tpu.memory_space<vmem>>, %arg4: memref<1x1x128xf32, #tpu.memory_space<vmem>>, %arg5: memref<1x1x128xf32, #tpu.memory_space<vmem>>) attributes {dimension_semantics = [#tpu.dimension_semantics<parallel>], iteration_bounds = array<i64: 2>, scalar_prefetch = 0 : i64, scratch_operands = 0 : i64, tpu.core_type = #tpu.core_type<tc>, window_params = [{transform_indices = @transform_0, window_bounds = array<i64: 16, 576>}, {pipeline_mode = #tpu.pipeline_mode<synchronous>, transform_indices = @transform_1, window_bounds = array<i64: 576, 128>}, {transform_indices = @transform_2, window_bounds = array<i64: 16, 128>}, {transform_indices = @transform_3, window_bounds = array<i64: 1, 1, 128>}, {transform_indices = @transform_4, window_bounds = array<i64: 1, 1, 128>}]} {
    %c0 = arith.constant 0 : index
    %c0_0 = arith.constant 0 : index
    %0 = vector.load %arg1[%c0, %c0_0] : memref<16x576xbf16, #tpu.memory_space<vmem>>, vector<16x576xbf16>
    %c0_1 = arith.constant 0 : index
    %c0_2 = arith.constant 0 : index
    %1 = vector.load %arg2[%c0_1, %c0_2] : memref<576x128xbf16, #tpu.memory_space<vmem>>, vector<576x128xbf16>
    %cst = arith.constant dense<0.000000e+00> : vector<16x128xf32>
    %2 = tpu.matmul %0, %1, %cst {dimension_numbers = #tpu.dot_dimension_numbers<[1], [0], [0], [1], [0, 0, 1, 1], [], []>} : vector<16x576xbf16>, vector<576x128xbf16>, vector<16x128xf32> -> vector<16x128xf32>
    %3 = arith.truncf %2 : vector<16x128xf32> to vector<16x128xbf16>
    %c0_3 = arith.constant 0 : index
    %c0_4 = arith.constant 0 : index
    %4 = vector.load %arg3[%c0_3, %c0_4] : memref<16x128xbf16, #tpu.memory_space<vmem>>, vector<16x128xbf16>
    tpu.vector_store %arg3[%c0_3, %c0_4], %3 {strides = array<i32>} : memref<16x128xbf16, #tpu.memory_space<vmem>>, vector<16x128xbf16>,
    %cst_5 = arith.constant dense<0.000000e+00> : vector<128xf32>
    %5 = vector.multi_reduction <add>, %2, %cst_5 [0] : vector<16x128xf32> to vector<128xf32>
    %6 = vector.shape_cast %5 : vector<128xf32> to vector<1x128xf32>
    %7 = vector.shape_cast %6 : vector<1x128xf32> to vector<1x1x128xf32>
    %c0_6 = arith.constant 0 : index
    %c0_7 = arith.constant 0 : index
    %c0_8 = arith.constant 0 : index
    %8 = vector.load %arg4[%c0_6, %c0_7, %c0_8] : memref<1x1x128xf32, #tpu.memory_space<vmem>>, vector<1x1x128xf32>
    tpu.vector_store %arg4[%c0_6, %c0_7, %c0_8], %7 {strides = array<i32>} : memref<1x1x128xf32, #tpu.memory_space<vmem>>, vector<1x1x128xf32>,
    %9 = arith.mulf %2, %2 : vector<16x128xf32>
    %cst_9 = arith.constant dense<0.000000e+00> : vector<128xf32>
    %10 = vector.multi_reduction <add>, %9, %cst_9 [0] : vector<16x128xf32> to vector<128xf32>
    %11 = vector.shape_cast %10 : vector<128xf32> to vector<1x128xf32>
    %12 = vector.shape_cast %11 : vector<1x128xf32> to vector<1x1x128xf32>
    %c0_10 = arith.constant 0 : index
    %c0_11 = arith.constant 0 : index
    %c0_12 = arith.constant 0 : index
    %13 = vector.load %arg5[%c0_10, %c0_11, %c0_12] : memref<1x1x128xf32, #tpu.memory_space<vmem>>, vector<1x1x128xf32>
    tpu.vector_store %arg5[%c0_10, %c0_11, %c0_12], %12 {strides = array<i32>} : memref<1x1x128xf32, #tpu.memory_space<vmem>>, vector<1x1x128xf32>,
    return
  }
  func.func @transform_0(%arg0: i32) -> (i32, i32) {
    %c0_i32 = arith.constant 0 : i32
    %c0_i32_0 = arith.constant 0 : i32
    return %arg0, %c0_i32 : i32, i32
  }
  func.func @transform_1(%arg0: i32) -> (i32, i32) {
    %c0_i32 = arith.constant 0 : i32
    %c0_i32_0 = arith.constant 0 : i32
    %c0_i32_1 = arith.constant 0 : i32
    return %c0_i32, %c0_i32_0 : i32, i32
  }
  func.func @transform_2(%arg0: i32) -> (i32, i32) {
    %c0_i32 = arith.constant 0 : i32
    %c0_i32_0 = arith.constant 0 : i32
    return %arg0, %c0_i32 : i32, i32
  }
  func.func @transform_3(%arg0: i32) -> (i32, i32, i32) {
    %c0_i32 = arith.constant 0 : i32
    %c0_i32_0 = arith.constant 0 : i32
    %c0_i32_1 = arith.constant 0 : i32
    return %arg0, %c0_i32, %c0_i32_0 : i32, i32, i32
  }
  func.func @transform_4(%arg0: i32) -> (i32, i32, i32) {
    %c0_i32 = arith.constant 0 : i32
    %c0_i32_0 = arith.constant 0 : i32
    %c0_i32_1 = arith.constant 0 : i32
    return %arg0, %c0_i32, %c0_i32_0 : i32, i32, i32
  }
}

module attributes {stable_mosaic.version = 11 : i64} {
  func.func @_affine_act_kernel(%arg0: i32, %arg1: memref<16x128xbf16, #tpu.memory_space<vmem>>, %arg2: memref<1x128xf32, #tpu.memory_space<vmem>>, %arg3: memref<1x128xf32, #tpu.memory_space<vmem>>, %arg4: memref<16x128xbf16, #tpu.memory_space<vmem>>) attributes {dimension_semantics = [#tpu.dimension_semantics<parallel>], iteration_bounds = array<i64: 2>, scalar_prefetch = 0 : i64, scratch_operands = 0 : i64, tpu.core_type = #tpu.core_type<tc>, window_params = [{transform_indices = @transform_0, window_bounds = array<i64: 16, 128>}, {pipeline_mode = #tpu.pipeline_mode<synchronous>, transform_indices = @transform_1, window_bounds = array<i64: 1, 128>}, {pipeline_mode = #tpu.pipeline_mode<synchronous>, transform_indices = @transform_2, window_bounds = array<i64: 1, 128>}, {transform_indices = @transform_3, window_bounds = array<i64: 16, 128>}]} {
    %c0 = arith.constant 0 : index
    %c0_0 = arith.constant 0 : index
    %0 = vector.load %arg1[%c0, %c0_0] : memref<16x128xbf16, #tpu.memory_space<vmem>>, vector<16x128xbf16>
    %1 = arith.extf %0 : vector<16x128xbf16> to vector<16x128xf32>
    %c0_1 = arith.constant 0 : index
    %c0_2 = arith.constant 0 : index
    %2 = vector.load %arg2[%c0_1, %c0_2] : memref<1x128xf32, #tpu.memory_space<vmem>>, vector<1x128xf32>
    %3 = vector.broadcast %2 : vector<1x128xf32> to vector<16x128xf32>
    %4 = arith.mulf %1, %3 : vector<16x128xf32>
    %c0_3 = arith.constant 0 : index
    %c0_4 = arith.constant 0 : index
    %5 = vector.load %arg3[%c0_3, %c0_4] : memref<1x128xf32, #tpu.memory_space<vmem>>, vector<1x128xf32>
    %6 = vector.broadcast %5 : vector<1x128xf32> to vector<16x128xf32>
    %7 = arith.addf %4, %6 : vector<16x128xf32>
    %cst = arith.constant 0.000000e+00 : f32
    %8 = vector.broadcast %cst : f32 to vector<16x128xf32>
    %9 = arith.cmpf ogt, %7, %8 : vector<16x128xf32>
    %cst_5 = arith.constant 2.000000e-01 : f32
    %10 = vector.broadcast %cst_5 : f32 to vector<16x128xf32>
    %11 = arith.mulf %10, %7 : vector<16x128xf32>
    %12 = arith.select %9, %7, %11 : vector<16x128xi1>, vector<16x128xf32>
    %13 = arith.truncf %12 : vector<16x128xf32> to vector<16x128xbf16>
    %c0_6 = arith.constant 0 : index
    %c0_7 = arith.constant 0 : index
    %14 = vector.load %arg4[%c0_6, %c0_7] : memref<16x128xbf16, #tpu.memory_space<vmem>>, vector<16x128xbf16>
    tpu.vector_store %arg4[%c0_6, %c0_7], %13 {strides = array<i32>} : memref<16x128xbf16, #tpu.memory_space<vmem>>, vector<16x128xbf16>,
    return
  }
  func.func @transform_0(%arg0: i32) -> (i32, i32) {
    %c0_i32 = arith.constant 0 : i32
    %c0_i32_0 = arith.constant 0 : i32
    return %arg0, %c0_i32 : i32, i32
  }
  func.func @transform_1(%arg0: i32) -> (i32, i32) {
    %c0_i32 = arith.constant 0 : i32
    %c0_i32_0 = arith.constant 0 : i32
    %c0_i32_1 = arith.constant 0 : i32
    return %c0_i32, %c0_i32_0 : i32, i32
  }
  func.func @transform_2(%arg0: i32) -> (i32, i32) {
    %c0_i32 = arith.constant 0 : i32
    %c0_i32_0 = arith.constant 0 : i32
    %c0_i32_1 = arith.constant 0 : i32
    return %c0_i32, %c0_i32_0 : i32, i32
  }
  func.func @transform_3(%arg0: i32) -> (i32, i32) {
    %c0_i32 = arith.constant 0 : i32
    %c0_i32_0 = arith.constant 0 : i32
    return %arg0, %c0_i32 : i32, i32
  }
}

module attributes {stable_mosaic.version = 11 : i64} {
  func.func @_gemm_stats_kernel(%arg0: i32, %arg1: memref<8x1152xbf16, #tpu.memory_space<vmem>>, %arg2: memref<1152x256xbf16, #tpu.memory_space<vmem>>, %arg3: memref<8x256xbf16, #tpu.memory_space<vmem>>, %arg4: memref<1x1x256xf32, #tpu.memory_space<vmem>>, %arg5: memref<1x1x256xf32, #tpu.memory_space<vmem>>) attributes {dimension_semantics = [#tpu.dimension_semantics<parallel>], iteration_bounds = array<i64: 1>, scalar_prefetch = 0 : i64, scratch_operands = 0 : i64, tpu.core_type = #tpu.core_type<tc>, window_params = [{transform_indices = @transform_0, window_bounds = array<i64: 8, 1152>}, {pipeline_mode = #tpu.pipeline_mode<synchronous>, transform_indices = @transform_1, window_bounds = array<i64: 1152, 256>}, {transform_indices = @transform_2, window_bounds = array<i64: 8, 256>}, {transform_indices = @transform_3, window_bounds = array<i64: 1, 1, 256>}, {transform_indices = @transform_4, window_bounds = array<i64: 1, 1, 256>}]} {
    %c0 = arith.constant 0 : index
    %c0_0 = arith.constant 0 : index
    %0 = vector.load %arg1[%c0, %c0_0] : memref<8x1152xbf16, #tpu.memory_space<vmem>>, vector<8x1152xbf16>
    %c0_1 = arith.constant 0 : index
    %c0_2 = arith.constant 0 : index
    %1 = vector.load %arg2[%c0_1, %c0_2] : memref<1152x256xbf16, #tpu.memory_space<vmem>>, vector<1152x256xbf16>
    %cst = arith.constant dense<0.000000e+00> : vector<8x256xf32>
    %2 = tpu.matmul %0, %1, %cst {dimension_numbers = #tpu.dot_dimension_numbers<[1], [0], [0], [1], [0, 0, 1, 1], [], []>} : vector<8x1152xbf16>, vector<1152x256xbf16>, vector<8x256xf32> -> vector<8x256xf32>
    %3 = arith.truncf %2 : vector<8x256xf32> to vector<8x256xbf16>
    %c0_3 = arith.constant 0 : index
    %c0_4 = arith.constant 0 : index
    %4 = vector.load %arg3[%c0_3, %c0_4] : memref<8x256xbf16, #tpu.memory_space<vmem>>, vector<8x256xbf16>
    tpu.vector_store %arg3[%c0_3, %c0_4], %3 {strides = array<i32>} : memref<8x256xbf16, #tpu.memory_space<vmem>>, vector<8x256xbf16>,
    %cst_5 = arith.constant dense<0.000000e+00> : vector<256xf32>
    %5 = vector.multi_reduction <add>, %2, %cst_5 [0] : vector<8x256xf32> to vector<256xf32>
    %6 = vector.shape_cast %5 : vector<256xf32> to vector<1x256xf32>
    %7 = vector.shape_cast %6 : vector<1x256xf32> to vector<1x1x256xf32>
    %c0_6 = arith.constant 0 : index
    %c0_7 = arith.constant 0 : index
    %c0_8 = arith.constant 0 : index
    %8 = vector.load %arg4[%c0_6, %c0_7, %c0_8] : memref<1x1x256xf32, #tpu.memory_space<vmem>>, vector<1x1x256xf32>
    tpu.vector_store %arg4[%c0_6, %c0_7, %c0_8], %7 {strides = array<i32>} : memref<1x1x256xf32, #tpu.memory_space<vmem>>, vector<1x1x256xf32>,
    %9 = arith.mulf %2, %2 : vector<8x256xf32>
    %cst_9 = arith.constant dense<0.000000e+00> : vector<256xf32>
    %10 = vector.multi_reduction <add>, %9, %cst_9 [0] : vector<8x256xf32> to vector<256xf32>
    %11 = vector.shape_cast %10 : vector<256xf32> to vector<1x256xf32>
    %12 = vector.shape_cast %11 : vector<1x256xf32> to vector<1x1x256xf32>
    %c0_10 = arith.constant 0 : index
    %c0_11 = arith.constant 0 : index
    %c0_12 = arith.constant 0 : index
    %13 = vector.load %arg5[%c0_10, %c0_11, %c0_12] : memref<1x1x256xf32, #tpu.memory_space<vmem>>, vector<1x1x256xf32>
    tpu.vector_store %arg5[%c0_10, %c0_11, %c0_12], %12 {strides = array<i32>} : memref<1x1x256xf32, #tpu.memory_space<vmem>>, vector<1x1x256xf32>,
    return
  }
  func.func @transform_0(%arg0: i32) -> (i32, i32) {
    %c0_i32 = arith.constant 0 : i32
    %c0_i32_0 = arith.constant 0 : i32
    return %arg0, %c0_i32 : i32, i32
  }
  func.func @transform_1(%arg0: i32) -> (i32, i32) {
    %c0_i32 = arith.constant 0 : i32
    %c0_i32_0 = arith.constant 0 : i32
    %c0_i32_1 = arith.constant 0 : i32
    return %c0_i32, %c0_i32_0 : i32, i32
  }
  func.func @transform_2(%arg0: i32) -> (i32, i32) {
    %c0_i32 = arith.constant 0 : i32
    %c0_i32_0 = arith.constant 0 : i32
    return %arg0, %c0_i32 : i32, i32
  }
  func.func @transform_3(%arg0: i32) -> (i32, i32, i32) {
    %c0_i32 = arith.constant 0 : i32
    %c0_i32_0 = arith.constant 0 : i32
    %c0_i32_1 = arith.constant 0 : i32
    return %arg0, %c0_i32, %c0_i32_0 : i32, i32, i32
  }
  func.func @transform_4(%arg0: i32) -> (i32, i32, i32) {
    %c0_i32 = arith.constant 0 : i32
    %c0_i32_0 = arith.constant 0 : i32
    %c0_i32_1 = arith.constant 0 : i32
    return %arg0, %c0_i32, %c0_i32_0 : i32, i32, i32
  }
}

module attributes {stable_mosaic.version = 11 : i64} {
  func.func @_matmul_bias_kernel(%arg0: i32, %arg1: memref<8x256xbf16, #tpu.memory_space<vmem>>, %arg2: memref<256x128xbf16, #tpu.memory_space<vmem>>, %arg3: memref<1x128xf32, #tpu.memory_space<vmem>>, %arg4: memref<8x128xf32, #tpu.memory_space<vmem>>) attributes {dimension_semantics = [#tpu.dimension_semantics<parallel>], iteration_bounds = array<i64: 1>, scalar_prefetch = 0 : i64, scratch_operands = 0 : i64, tpu.core_type = #tpu.core_type<tc>, window_params = [{transform_indices = @transform_0, window_bounds = array<i64: 8, 256>}, {pipeline_mode = #tpu.pipeline_mode<synchronous>, transform_indices = @transform_1, window_bounds = array<i64: 256, 128>}, {pipeline_mode = #tpu.pipeline_mode<synchronous>, transform_indices = @transform_2, window_bounds = array<i64: 1, 128>}, {transform_indices = @transform_3, window_bounds = array<i64: 8, 128>}]} {
    %c0 = arith.constant 0 : index
    %c0_0 = arith.constant 0 : index
    %0 = vector.load %arg1[%c0, %c0_0] : memref<8x256xbf16, #tpu.memory_space<vmem>>, vector<8x256xbf16>
    %c0_1 = arith.constant 0 : index
    %c0_2 = arith.constant 0 : index
    %1 = vector.load %arg2[%c0_1, %c0_2] : memref<256x128xbf16, #tpu.memory_space<vmem>>, vector<256x128xbf16>
    %cst = arith.constant dense<0.000000e+00> : vector<8x128xf32>
    %2 = tpu.matmul %0, %1, %cst {dimension_numbers = #tpu.dot_dimension_numbers<[1], [0], [0], [1], [0, 0, 1, 1], [], []>} : vector<8x256xbf16>, vector<256x128xbf16>, vector<8x128xf32> -> vector<8x128xf32>
    %c0_3 = arith.constant 0 : index
    %c0_4 = arith.constant 0 : index
    %3 = vector.load %arg3[%c0_3, %c0_4] : memref<1x128xf32, #tpu.memory_space<vmem>>, vector<1x128xf32>
    %4 = vector.broadcast %3 : vector<1x128xf32> to vector<8x128xf32>
    %5 = arith.addf %2, %4 : vector<8x128xf32>
    %c0_5 = arith.constant 0 : index
    %c0_6 = arith.constant 0 : index
    %6 = vector.load %arg4[%c0_5, %c0_6] : memref<8x128xf32, #tpu.memory_space<vmem>>, vector<8x128xf32>
    tpu.vector_store %arg4[%c0_5, %c0_6], %5 {strides = array<i32>} : memref<8x128xf32, #tpu.memory_space<vmem>>, vector<8x128xf32>,
    return
  }
  func.func @transform_0(%arg0: i32) -> (i32, i32) {
    %c0_i32 = arith.constant 0 : i32
    %c0_i32_0 = arith.constant 0 : i32
    return %arg0, %c0_i32 : i32, i32
  }
  func.func @transform_1(%arg0: i32) -> (i32, i32) {
    %c0_i32 = arith.constant 0 : i32
    %c0_i32_0 = arith.constant 0 : i32
    %c0_i32_1 = arith.constant 0 : i32
    return %c0_i32, %c0_i32_0 : i32, i32
  }
  func.func @transform_2(%arg0: i32) -> (i32, i32) {
    %c0_i32 = arith.constant 0 : i32
    %c0_i32_0 = arith.constant 0 : i32
    %c0_i32_1 = arith.constant 0 : i32
    return %c0_i32, %c0_i32_0 : i32, i32
  }
  func.func @transform_3(%arg0: i32) -> (i32, i32) {
    %c0_i32 = arith.constant 0 : i32
    %c0_i32_0 = arith.constant 0 : i32
    return %arg0, %c0_i32 : i32, i32
  }
}

module attributes {stable_mosaic.version = 11 : i64} {
  func.func @_affine_act_kernel(%arg0: i32, %arg1: memref<8x256xbf16, #tpu.memory_space<vmem>>, %arg2: memref<1x256xf32, #tpu.memory_space<vmem>>, %arg3: memref<1x256xf32, #tpu.memory_space<vmem>>, %arg4: memref<8x256xbf16, #tpu.memory_space<vmem>>) attributes {dimension_semantics = [#tpu.dimension_semantics<parallel>], iteration_bounds = array<i64: 1>, scalar_prefetch = 0 : i64, scratch_operands = 0 : i64, tpu.core_type = #tpu.core_type<tc>, window_params = [{transform_indices = @transform_0, window_bounds = array<i64: 8, 256>}, {pipeline_mode = #tpu.pipeline_mode<synchronous>, transform_indices = @transform_1, window_bounds = array<i64: 1, 256>}, {pipeline_mode = #tpu.pipeline_mode<synchronous>, transform_indices = @transform_2, window_bounds = array<i64: 1, 256>}, {transform_indices = @transform_3, window_bounds = array<i64: 8, 256>}]} {
    %c0 = arith.constant 0 : index
    %c0_0 = arith.constant 0 : index
    %0 = vector.load %arg1[%c0, %c0_0] : memref<8x256xbf16, #tpu.memory_space<vmem>>, vector<8x256xbf16>
    %1 = arith.extf %0 : vector<8x256xbf16> to vector<8x256xf32>
    %c0_1 = arith.constant 0 : index
    %c0_2 = arith.constant 0 : index
    %2 = vector.load %arg2[%c0_1, %c0_2] : memref<1x256xf32, #tpu.memory_space<vmem>>, vector<1x256xf32>
    %3 = vector.broadcast %2 : vector<1x256xf32> to vector<8x256xf32>
    %4 = arith.mulf %1, %3 : vector<8x256xf32>
    %c0_3 = arith.constant 0 : index
    %c0_4 = arith.constant 0 : index
    %5 = vector.load %arg3[%c0_3, %c0_4] : memref<1x256xf32, #tpu.memory_space<vmem>>, vector<1x256xf32>
    %6 = vector.broadcast %5 : vector<1x256xf32> to vector<8x256xf32>
    %7 = arith.addf %4, %6 : vector<8x256xf32>
    %cst = arith.constant 0.000000e+00 : f32
    %8 = vector.broadcast %cst : f32 to vector<8x256xf32>
    %9 = arith.cmpf ogt, %7, %8 : vector<8x256xf32>
    %cst_5 = arith.constant 2.000000e-01 : f32
    %10 = vector.broadcast %cst_5 : f32 to vector<8x256xf32>
    %11 = arith.mulf %10, %7 : vector<8x256xf32>
    %12 = arith.select %9, %7, %11 : vector<8x256xi1>, vector<8x256xf32>
    %13 = arith.truncf %12 : vector<8x256xf32> to vector<8x256xbf16>
    %c0_6 = arith.constant 0 : index
    %c0_7 = arith.constant 0 : index
    %14 = vector.load %arg4[%c0_6, %c0_7] : memref<8x256xbf16, #tpu.memory_space<vmem>>, vector<8x256xbf16>
    tpu.vector_store %arg4[%c0_6, %c0_7], %13 {strides = array<i32>} : memref<8x256xbf16, #tpu.memory_space<vmem>>, vector<8x256xbf16>,
    return
  }
  func.func @transform_0(%arg0: i32) -> (i32, i32) {
    %c0_i32 = arith.constant 0 : i32
    %c0_i32_0 = arith.constant 0 : i32
    return %arg0, %c0_i32 : i32, i32
  }
  func.func @transform_1(%arg0: i32) -> (i32, i32) {
    %c0_i32 = arith.constant 0 : i32
    %c0_i32_0 = arith.constant 0 : i32
    %c0_i32_1 = arith.constant 0 : i32
    return %c0_i32, %c0_i32_0 : i32, i32
  }
  func.func @transform_2(%arg0: i32) -> (i32, i32) {
    %c0_i32 = arith.constant 0 : i32
    %c0_i32_0 = arith.constant 0 : i32
    %c0_i32_1 = arith.constant 0 : i32
    return %c0_i32, %c0_i32_0 : i32, i32
  }
  func.func @transform_3(%arg0: i32) -> (i32, i32) {
    %c0_i32 = arith.constant 0 : i32
    %c0_i32_0 = arith.constant 0 : i32
    return %arg0, %c0_i32 : i32, i32
  }
}

module attributes {stable_mosaic.version = 11 : i64} {
  func.func @_reparam_decin_kernel(%arg0: i32, %arg1: memref<8x128xf32, #tpu.memory_space<vmem>>, %arg2: memref<8x128xf32, #tpu.memory_space<vmem>>, %arg3: memref<128x256xbf16, #tpu.memory_space<vmem>>, %arg4: memref<1x256xf32, #tpu.memory_space<vmem>>, %arg5: memref<8x256xbf16, #tpu.memory_space<vmem>>) attributes {dimension_semantics = [#tpu.dimension_semantics<parallel>], iteration_bounds = array<i64: 1>, scalar_prefetch = 0 : i64, scratch_operands = 0 : i64, tpu.core_type = #tpu.core_type<tc>, window_params = [{transform_indices = @transform_0, window_bounds = array<i64: 8, 128>}, {transform_indices = @transform_1, window_bounds = array<i64: 8, 128>}, {pipeline_mode = #tpu.pipeline_mode<synchronous>, transform_indices = @transform_2, window_bounds = array<i64: 128, 256>}, {pipeline_mode = #tpu.pipeline_mode<synchronous>, transform_indices = @transform_3, window_bounds = array<i64: 1, 256>}, {transform_indices = @transform_4, window_bounds = array<i64: 8, 256>}]} {
    %c0 = arith.constant 0 : index
    %c0_0 = arith.constant 0 : index
    %0 = vector.load %arg1[%c0, %c0_0] : memref<8x128xf32, #tpu.memory_space<vmem>>, vector<8x128xf32>
    %1 = tpu.iota {dimensions = array<i32: 1>} : vector<8x128xi32>
    %c4_i32 = arith.constant 4 : i32
    %2 = vector.broadcast %c4_i32 : i32 to vector<8x128xi32>
    %3 = arith.cmpi slt, %1, %2 : vector<8x128xi32>
    %cst = arith.constant 0.000000e+00 : f32
    %4 = vector.broadcast %cst : f32 to vector<8x128xf32>
    %5 = arith.select %3, %0, %4 : vector<8x128xi1>, vector<8x128xf32>
    %c4_i32_1 = arith.constant 4 : i32
    %6 = vector.broadcast %c4_i32_1 : i32 to vector<8x128xi32>
    %7 = arith.cmpi slt, %1, %6 : vector<8x128xi32>
    %cst_2 = arith.constant 0.000000e+00 : f32
    %8 = vector.broadcast %cst_2 : f32 to vector<8x128xf32>
    %9 = arith.select %7, %8, %0 : vector<8x128xi1>, vector<8x128xf32>
    %c0_3 = arith.constant 0 : index
    %c0_4 = arith.constant 0 : index
    %10 = vector.load %arg2[%c0_3, %c0_4] : memref<8x128xf32, #tpu.memory_space<vmem>>, vector<8x128xf32>
    %cst_5 = arith.constant 5.000000e-01 : f32
    %11 = vector.broadcast %cst_5 : f32 to vector<8x128xf32>
    %12 = arith.mulf %11, %9 : vector<8x128xf32>
    %13 = math.exp %12 : vector<8x128xf32>
    %14 = arith.mulf %10, %13 : vector<8x128xf32>
    %15 = arith.addf %14, %5 : vector<8x128xf32>
    %16 = arith.truncf %15 : vector<8x128xf32> to vector<8x128xbf16>
    %c0_6 = arith.constant 0 : index
    %c0_7 = arith.constant 0 : index
    %17 = vector.load %arg3[%c0_6, %c0_7] : memref<128x256xbf16, #tpu.memory_space<vmem>>, vector<128x256xbf16>
    %cst_8 = arith.constant dense<0.000000e+00> : vector<8x256xf32>
    %18 = tpu.matmul %16, %17, %cst_8 {dimension_numbers = #tpu.dot_dimension_numbers<[1], [0], [0], [1], [0, 0, 1, 1], [], []>} : vector<8x128xbf16>, vector<128x256xbf16>, vector<8x256xf32> -> vector<8x256xf32>
    %c0_9 = arith.constant 0 : index
    %c0_10 = arith.constant 0 : index
    %19 = vector.load %arg4[%c0_9, %c0_10] : memref<1x256xf32, #tpu.memory_space<vmem>>, vector<1x256xf32>
    %20 = vector.broadcast %19 : vector<1x256xf32> to vector<8x256xf32>
    %21 = arith.addf %18, %20 : vector<8x256xf32>
    %22 = arith.truncf %21 : vector<8x256xf32> to vector<8x256xbf16>
    %c0_11 = arith.constant 0 : index
    %c0_12 = arith.constant 0 : index
    %23 = vector.load %arg5[%c0_11, %c0_12] : memref<8x256xbf16, #tpu.memory_space<vmem>>, vector<8x256xbf16>
    tpu.vector_store %arg5[%c0_11, %c0_12], %22 {strides = array<i32>} : memref<8x256xbf16, #tpu.memory_space<vmem>>, vector<8x256xbf16>,
    return
  }
  func.func @transform_0(%arg0: i32) -> (i32, i32) {
    %c0_i32 = arith.constant 0 : i32
    %c0_i32_0 = arith.constant 0 : i32
    return %arg0, %c0_i32 : i32, i32
  }
  func.func @transform_1(%arg0: i32) -> (i32, i32) {
    %c0_i32 = arith.constant 0 : i32
    %c0_i32_0 = arith.constant 0 : i32
    return %arg0, %c0_i32 : i32, i32
  }
  func.func @transform_2(%arg0: i32) -> (i32, i32) {
    %c0_i32 = arith.constant 0 : i32
    %c0_i32_0 = arith.constant 0 : i32
    %c0_i32_1 = arith.constant 0 : i32
    return %c0_i32, %c0_i32_0 : i32, i32
  }
  func.func @transform_3(%arg0: i32) -> (i32, i32) {
    %c0_i32 = arith.constant 0 : i32
    %c0_i32_0 = arith.constant 0 : i32
    %c0_i32_1 = arith.constant 0 : i32
    return %c0_i32, %c0_i32_0 : i32, i32
  }
  func.func @transform_4(%arg0: i32) -> (i32, i32) {
    %c0_i32 = arith.constant 0 : i32
    %c0_i32_0 = arith.constant 0 : i32
    return %arg0, %c0_i32 : i32, i32
  }
}

module attributes {stable_mosaic.version = 11 : i64} {
  func.func @_gemm_stats_kernel(%arg0: i32, %arg1: memref<8x1024xbf16, #tpu.memory_space<vmem>>, %arg2: memref<1024x512xbf16, #tpu.memory_space<vmem>>, %arg3: memref<8x512xbf16, #tpu.memory_space<vmem>>, %arg4: memref<1x1x512xf32, #tpu.memory_space<vmem>>, %arg5: memref<1x1x512xf32, #tpu.memory_space<vmem>>) attributes {dimension_semantics = [#tpu.dimension_semantics<parallel>], iteration_bounds = array<i64: 1>, scalar_prefetch = 0 : i64, scratch_operands = 0 : i64, tpu.core_type = #tpu.core_type<tc>, window_params = [{transform_indices = @transform_0, window_bounds = array<i64: 8, 1024>}, {pipeline_mode = #tpu.pipeline_mode<synchronous>, transform_indices = @transform_1, window_bounds = array<i64: 1024, 512>}, {transform_indices = @transform_2, window_bounds = array<i64: 8, 512>}, {transform_indices = @transform_3, window_bounds = array<i64: 1, 1, 512>}, {transform_indices = @transform_4, window_bounds = array<i64: 1, 1, 512>}]} {
    %c0 = arith.constant 0 : index
    %c0_0 = arith.constant 0 : index
    %0 = vector.load %arg1[%c0, %c0_0] : memref<8x1024xbf16, #tpu.memory_space<vmem>>, vector<8x1024xbf16>
    %c0_1 = arith.constant 0 : index
    %c0_2 = arith.constant 0 : index
    %1 = vector.load %arg2[%c0_1, %c0_2] : memref<1024x512xbf16, #tpu.memory_space<vmem>>, vector<1024x512xbf16>
    %cst = arith.constant dense<0.000000e+00> : vector<8x512xf32>
    %2 = tpu.matmul %0, %1, %cst {dimension_numbers = #tpu.dot_dimension_numbers<[1], [0], [0], [1], [0, 0, 1, 1], [], []>} : vector<8x1024xbf16>, vector<1024x512xbf16>, vector<8x512xf32> -> vector<8x512xf32>
    %3 = arith.truncf %2 : vector<8x512xf32> to vector<8x512xbf16>
    %c0_3 = arith.constant 0 : index
    %c0_4 = arith.constant 0 : index
    %4 = vector.load %arg3[%c0_3, %c0_4] : memref<8x512xbf16, #tpu.memory_space<vmem>>, vector<8x512xbf16>
    tpu.vector_store %arg3[%c0_3, %c0_4], %3 {strides = array<i32>} : memref<8x512xbf16, #tpu.memory_space<vmem>>, vector<8x512xbf16>,
    %cst_5 = arith.constant dense<0.000000e+00> : vector<512xf32>
    %5 = vector.multi_reduction <add>, %2, %cst_5 [0] : vector<8x512xf32> to vector<512xf32>
    %6 = vector.shape_cast %5 : vector<512xf32> to vector<1x512xf32>
    %7 = vector.shape_cast %6 : vector<1x512xf32> to vector<1x1x512xf32>
    %c0_6 = arith.constant 0 : index
    %c0_7 = arith.constant 0 : index
    %c0_8 = arith.constant 0 : index
    %8 = vector.load %arg4[%c0_6, %c0_7, %c0_8] : memref<1x1x512xf32, #tpu.memory_space<vmem>>, vector<1x1x512xf32>
    tpu.vector_store %arg4[%c0_6, %c0_7, %c0_8], %7 {strides = array<i32>} : memref<1x1x512xf32, #tpu.memory_space<vmem>>, vector<1x1x512xf32>,
    %9 = arith.mulf %2, %2 : vector<8x512xf32>
    %cst_9 = arith.constant dense<0.000000e+00> : vector<512xf32>
    %10 = vector.multi_reduction <add>, %9, %cst_9 [0] : vector<8x512xf32> to vector<512xf32>
    %11 = vector.shape_cast %10 : vector<512xf32> to vector<1x512xf32>
    %12 = vector.shape_cast %11 : vector<1x512xf32> to vector<1x1x512xf32>
    %c0_10 = arith.constant 0 : index
    %c0_11 = arith.constant 0 : index
    %c0_12 = arith.constant 0 : index
    %13 = vector.load %arg5[%c0_10, %c0_11, %c0_12] : memref<1x1x512xf32, #tpu.memory_space<vmem>>, vector<1x1x512xf32>
    tpu.vector_store %arg5[%c0_10, %c0_11, %c0_12], %12 {strides = array<i32>} : memref<1x1x512xf32, #tpu.memory_space<vmem>>, vector<1x1x512xf32>,
    return
  }
  func.func @transform_0(%arg0: i32) -> (i32, i32) {
    %c0_i32 = arith.constant 0 : i32
    %c0_i32_0 = arith.constant 0 : i32
    return %arg0, %c0_i32 : i32, i32
  }
  func.func @transform_1(%arg0: i32) -> (i32, i32) {
    %c0_i32 = arith.constant 0 : i32
    %c0_i32_0 = arith.constant 0 : i32
    %c0_i32_1 = arith.constant 0 : i32
    return %c0_i32, %c0_i32_0 : i32, i32
  }
  func.func @transform_2(%arg0: i32) -> (i32, i32) {
    %c0_i32 = arith.constant 0 : i32
    %c0_i32_0 = arith.constant 0 : i32
    return %arg0, %c0_i32 : i32, i32
  }
  func.func @transform_3(%arg0: i32) -> (i32, i32, i32) {
    %c0_i32 = arith.constant 0 : i32
    %c0_i32_0 = arith.constant 0 : i32
    %c0_i32_1 = arith.constant 0 : i32
    return %arg0, %c0_i32, %c0_i32_0 : i32, i32, i32
  }
  func.func @transform_4(%arg0: i32) -> (i32, i32, i32) {
    %c0_i32 = arith.constant 0 : i32
    %c0_i32_0 = arith.constant 0 : i32
    %c0_i32_1 = arith.constant 0 : i32
    return %arg0, %c0_i32, %c0_i32_0 : i32, i32, i32
  }
}

module attributes {stable_mosaic.version = 11 : i64} {
  func.func @_affine_act_kernel(%arg0: i32, %arg1: memref<8x512xbf16, #tpu.memory_space<vmem>>, %arg2: memref<1x512xf32, #tpu.memory_space<vmem>>, %arg3: memref<1x512xf32, #tpu.memory_space<vmem>>, %arg4: memref<8x512xbf16, #tpu.memory_space<vmem>>) attributes {dimension_semantics = [#tpu.dimension_semantics<parallel>], iteration_bounds = array<i64: 1>, scalar_prefetch = 0 : i64, scratch_operands = 0 : i64, tpu.core_type = #tpu.core_type<tc>, window_params = [{transform_indices = @transform_0, window_bounds = array<i64: 8, 512>}, {pipeline_mode = #tpu.pipeline_mode<synchronous>, transform_indices = @transform_1, window_bounds = array<i64: 1, 512>}, {pipeline_mode = #tpu.pipeline_mode<synchronous>, transform_indices = @transform_2, window_bounds = array<i64: 1, 512>}, {transform_indices = @transform_3, window_bounds = array<i64: 8, 512>}]} {
    %c0 = arith.constant 0 : index
    %c0_0 = arith.constant 0 : index
    %0 = vector.load %arg1[%c0, %c0_0] : memref<8x512xbf16, #tpu.memory_space<vmem>>, vector<8x512xbf16>
    %1 = arith.extf %0 : vector<8x512xbf16> to vector<8x512xf32>
    %c0_1 = arith.constant 0 : index
    %c0_2 = arith.constant 0 : index
    %2 = vector.load %arg2[%c0_1, %c0_2] : memref<1x512xf32, #tpu.memory_space<vmem>>, vector<1x512xf32>
    %3 = vector.broadcast %2 : vector<1x512xf32> to vector<8x512xf32>
    %4 = arith.mulf %1, %3 : vector<8x512xf32>
    %c0_3 = arith.constant 0 : index
    %c0_4 = arith.constant 0 : index
    %5 = vector.load %arg3[%c0_3, %c0_4] : memref<1x512xf32, #tpu.memory_space<vmem>>, vector<1x512xf32>
    %6 = vector.broadcast %5 : vector<1x512xf32> to vector<8x512xf32>
    %7 = arith.addf %4, %6 : vector<8x512xf32>
    %cst = arith.constant 0.000000e+00 : f32
    %8 = vector.broadcast %cst : f32 to vector<8x512xf32>
    %9 = arith.cmpf ogt, %7, %8 : vector<8x512xf32>
    %cst_5 = arith.constant 2.000000e-01 : f32
    %10 = vector.broadcast %cst_5 : f32 to vector<8x512xf32>
    %11 = arith.mulf %10, %7 : vector<8x512xf32>
    %12 = arith.select %9, %7, %11 : vector<8x512xi1>, vector<8x512xf32>
    %13 = arith.truncf %12 : vector<8x512xf32> to vector<8x512xbf16>
    %c0_6 = arith.constant 0 : index
    %c0_7 = arith.constant 0 : index
    %14 = vector.load %arg4[%c0_6, %c0_7] : memref<8x512xbf16, #tpu.memory_space<vmem>>, vector<8x512xbf16>
    tpu.vector_store %arg4[%c0_6, %c0_7], %13 {strides = array<i32>} : memref<8x512xbf16, #tpu.memory_space<vmem>>, vector<8x512xbf16>,
    return
  }
  func.func @transform_0(%arg0: i32) -> (i32, i32) {
    %c0_i32 = arith.constant 0 : i32
    %c0_i32_0 = arith.constant 0 : i32
    return %arg0, %c0_i32 : i32, i32
  }
  func.func @transform_1(%arg0: i32) -> (i32, i32) {
    %c0_i32 = arith.constant 0 : i32
    %c0_i32_0 = arith.constant 0 : i32
    %c0_i32_1 = arith.constant 0 : i32
    return %c0_i32, %c0_i32_0 : i32, i32
  }
  func.func @transform_2(%arg0: i32) -> (i32, i32) {
    %c0_i32 = arith.constant 0 : i32
    %c0_i32_0 = arith.constant 0 : i32
    %c0_i32_1 = arith.constant 0 : i32
    return %c0_i32, %c0_i32_0 : i32, i32
  }
  func.func @transform_3(%arg0: i32) -> (i32, i32) {
    %c0_i32 = arith.constant 0 : i32
    %c0_i32_0 = arith.constant 0 : i32
    return %arg0, %c0_i32 : i32, i32
  }
}

module attributes {stable_mosaic.version = 11 : i64} {
  func.func @_gemm_stats_kernel(%arg0: i32, %arg1: memref<16x512xbf16, #tpu.memory_space<vmem>>, %arg2: memref<512x256xbf16, #tpu.memory_space<vmem>>, %arg3: memref<16x256xbf16, #tpu.memory_space<vmem>>, %arg4: memref<1x1x256xf32, #tpu.memory_space<vmem>>, %arg5: memref<1x1x256xf32, #tpu.memory_space<vmem>>) attributes {dimension_semantics = [#tpu.dimension_semantics<parallel>], iteration_bounds = array<i64: 2>, scalar_prefetch = 0 : i64, scratch_operands = 0 : i64, tpu.core_type = #tpu.core_type<tc>, window_params = [{transform_indices = @transform_0, window_bounds = array<i64: 16, 512>}, {pipeline_mode = #tpu.pipeline_mode<synchronous>, transform_indices = @transform_1, window_bounds = array<i64: 512, 256>}, {transform_indices = @transform_2, window_bounds = array<i64: 16, 256>}, {transform_indices = @transform_3, window_bounds = array<i64: 1, 1, 256>}, {transform_indices = @transform_4, window_bounds = array<i64: 1, 1, 256>}]} {
    %c0 = arith.constant 0 : index
    %c0_0 = arith.constant 0 : index
    %0 = vector.load %arg1[%c0, %c0_0] : memref<16x512xbf16, #tpu.memory_space<vmem>>, vector<16x512xbf16>
    %c0_1 = arith.constant 0 : index
    %c0_2 = arith.constant 0 : index
    %1 = vector.load %arg2[%c0_1, %c0_2] : memref<512x256xbf16, #tpu.memory_space<vmem>>, vector<512x256xbf16>
    %cst = arith.constant dense<0.000000e+00> : vector<16x256xf32>
    %2 = tpu.matmul %0, %1, %cst {dimension_numbers = #tpu.dot_dimension_numbers<[1], [0], [0], [1], [0, 0, 1, 1], [], []>} : vector<16x512xbf16>, vector<512x256xbf16>, vector<16x256xf32> -> vector<16x256xf32>
    %3 = arith.truncf %2 : vector<16x256xf32> to vector<16x256xbf16>
    %c0_3 = arith.constant 0 : index
    %c0_4 = arith.constant 0 : index
    %4 = vector.load %arg3[%c0_3, %c0_4] : memref<16x256xbf16, #tpu.memory_space<vmem>>, vector<16x256xbf16>
    tpu.vector_store %arg3[%c0_3, %c0_4], %3 {strides = array<i32>} : memref<16x256xbf16, #tpu.memory_space<vmem>>, vector<16x256xbf16>,
    %cst_5 = arith.constant dense<0.000000e+00> : vector<256xf32>
    %5 = vector.multi_reduction <add>, %2, %cst_5 [0] : vector<16x256xf32> to vector<256xf32>
    %6 = vector.shape_cast %5 : vector<256xf32> to vector<1x256xf32>
    %7 = vector.shape_cast %6 : vector<1x256xf32> to vector<1x1x256xf32>
    %c0_6 = arith.constant 0 : index
    %c0_7 = arith.constant 0 : index
    %c0_8 = arith.constant 0 : index
    %8 = vector.load %arg4[%c0_6, %c0_7, %c0_8] : memref<1x1x256xf32, #tpu.memory_space<vmem>>, vector<1x1x256xf32>
    tpu.vector_store %arg4[%c0_6, %c0_7, %c0_8], %7 {strides = array<i32>} : memref<1x1x256xf32, #tpu.memory_space<vmem>>, vector<1x1x256xf32>,
    %9 = arith.mulf %2, %2 : vector<16x256xf32>
    %cst_9 = arith.constant dense<0.000000e+00> : vector<256xf32>
    %10 = vector.multi_reduction <add>, %9, %cst_9 [0] : vector<16x256xf32> to vector<256xf32>
    %11 = vector.shape_cast %10 : vector<256xf32> to vector<1x256xf32>
    %12 = vector.shape_cast %11 : vector<1x256xf32> to vector<1x1x256xf32>
    %c0_10 = arith.constant 0 : index
    %c0_11 = arith.constant 0 : index
    %c0_12 = arith.constant 0 : index
    %13 = vector.load %arg5[%c0_10, %c0_11, %c0_12] : memref<1x1x256xf32, #tpu.memory_space<vmem>>, vector<1x1x256xf32>
    tpu.vector_store %arg5[%c0_10, %c0_11, %c0_12], %12 {strides = array<i32>} : memref<1x1x256xf32, #tpu.memory_space<vmem>>, vector<1x1x256xf32>,
    return
  }
  func.func @transform_0(%arg0: i32) -> (i32, i32) {
    %c0_i32 = arith.constant 0 : i32
    %c0_i32_0 = arith.constant 0 : i32
    return %arg0, %c0_i32 : i32, i32
  }
  func.func @transform_1(%arg0: i32) -> (i32, i32) {
    %c0_i32 = arith.constant 0 : i32
    %c0_i32_0 = arith.constant 0 : i32
    %c0_i32_1 = arith.constant 0 : i32
    return %c0_i32, %c0_i32_0 : i32, i32
  }
  func.func @transform_2(%arg0: i32) -> (i32, i32) {
    %c0_i32 = arith.constant 0 : i32
    %c0_i32_0 = arith.constant 0 : i32
    return %arg0, %c0_i32 : i32, i32
  }
  func.func @transform_3(%arg0: i32) -> (i32, i32, i32) {
    %c0_i32 = arith.constant 0 : i32
    %c0_i32_0 = arith.constant 0 : i32
    %c0_i32_1 = arith.constant 0 : i32
    return %arg0, %c0_i32, %c0_i32_0 : i32, i32, i32
  }
  func.func @transform_4(%arg0: i32) -> (i32, i32, i32) {
    %c0_i32 = arith.constant 0 : i32
    %c0_i32_0 = arith.constant 0 : i32
    %c0_i32_1 = arith.constant 0 : i32
    return %arg0, %c0_i32, %c0_i32_0 : i32, i32, i32
  }
}

module attributes {stable_mosaic.version = 11 : i64} {
  func.func @_affine_act_kernel(%arg0: i32, %arg1: memref<16x256xbf16, #tpu.memory_space<vmem>>, %arg2: memref<1x256xf32, #tpu.memory_space<vmem>>, %arg3: memref<1x256xf32, #tpu.memory_space<vmem>>, %arg4: memref<16x256xbf16, #tpu.memory_space<vmem>>) attributes {dimension_semantics = [#tpu.dimension_semantics<parallel>], iteration_bounds = array<i64: 2>, scalar_prefetch = 0 : i64, scratch_operands = 0 : i64, tpu.core_type = #tpu.core_type<tc>, window_params = [{transform_indices = @transform_0, window_bounds = array<i64: 16, 256>}, {pipeline_mode = #tpu.pipeline_mode<synchronous>, transform_indices = @transform_1, window_bounds = array<i64: 1, 256>}, {pipeline_mode = #tpu.pipeline_mode<synchronous>, transform_indices = @transform_2, window_bounds = array<i64: 1, 256>}, {transform_indices = @transform_3, window_bounds = array<i64: 16, 256>}]} {
    %c0 = arith.constant 0 : index
    %c0_0 = arith.constant 0 : index
    %0 = vector.load %arg1[%c0, %c0_0] : memref<16x256xbf16, #tpu.memory_space<vmem>>, vector<16x256xbf16>
    %1 = arith.extf %0 : vector<16x256xbf16> to vector<16x256xf32>
    %c0_1 = arith.constant 0 : index
    %c0_2 = arith.constant 0 : index
    %2 = vector.load %arg2[%c0_1, %c0_2] : memref<1x256xf32, #tpu.memory_space<vmem>>, vector<1x256xf32>
    %3 = vector.broadcast %2 : vector<1x256xf32> to vector<16x256xf32>
    %4 = arith.mulf %1, %3 : vector<16x256xf32>
    %c0_3 = arith.constant 0 : index
    %c0_4 = arith.constant 0 : index
    %5 = vector.load %arg3[%c0_3, %c0_4] : memref<1x256xf32, #tpu.memory_space<vmem>>, vector<1x256xf32>
    %6 = vector.broadcast %5 : vector<1x256xf32> to vector<16x256xf32>
    %7 = arith.addf %4, %6 : vector<16x256xf32>
    %cst = arith.constant 0.000000e+00 : f32
    %8 = vector.broadcast %cst : f32 to vector<16x256xf32>
    %9 = arith.cmpf ogt, %7, %8 : vector<16x256xf32>
    %cst_5 = arith.constant 2.000000e-01 : f32
    %10 = vector.broadcast %cst_5 : f32 to vector<16x256xf32>
    %11 = arith.mulf %10, %7 : vector<16x256xf32>
    %12 = arith.select %9, %7, %11 : vector<16x256xi1>, vector<16x256xf32>
    %13 = arith.truncf %12 : vector<16x256xf32> to vector<16x256xbf16>
    %c0_6 = arith.constant 0 : index
    %c0_7 = arith.constant 0 : index
    %14 = vector.load %arg4[%c0_6, %c0_7] : memref<16x256xbf16, #tpu.memory_space<vmem>>, vector<16x256xbf16>
    tpu.vector_store %arg4[%c0_6, %c0_7], %13 {strides = array<i32>} : memref<16x256xbf16, #tpu.memory_space<vmem>>, vector<16x256xbf16>,
    return
  }
  func.func @transform_0(%arg0: i32) -> (i32, i32) {
    %c0_i32 = arith.constant 0 : i32
    %c0_i32_0 = arith.constant 0 : i32
    return %arg0, %c0_i32 : i32, i32
  }
  func.func @transform_1(%arg0: i32) -> (i32, i32) {
    %c0_i32 = arith.constant 0 : i32
    %c0_i32_0 = arith.constant 0 : i32
    %c0_i32_1 = arith.constant 0 : i32
    return %c0_i32, %c0_i32_0 : i32, i32
  }
  func.func @transform_2(%arg0: i32) -> (i32, i32) {
    %c0_i32 = arith.constant 0 : i32
    %c0_i32_0 = arith.constant 0 : i32
    %c0_i32_1 = arith.constant 0 : i32
    return %c0_i32, %c0_i32_0 : i32, i32
  }
  func.func @transform_3(%arg0: i32) -> (i32, i32) {
    %c0_i32 = arith.constant 0 : i32
    %c0_i32_0 = arith.constant 0 : i32
    return %arg0, %c0_i32 : i32, i32
  }
}

module attributes {stable_mosaic.version = 11 : i64} {
  func.func @_gemm_stats_kernel(%arg0: i32, %arg1: memref<64x256xbf16, #tpu.memory_space<vmem>>, %arg2: memref<256x128xbf16, #tpu.memory_space<vmem>>, %arg3: memref<64x128xbf16, #tpu.memory_space<vmem>>, %arg4: memref<1x1x128xf32, #tpu.memory_space<vmem>>, %arg5: memref<1x1x128xf32, #tpu.memory_space<vmem>>) attributes {dimension_semantics = [#tpu.dimension_semantics<parallel>], iteration_bounds = array<i64: 2>, scalar_prefetch = 0 : i64, scratch_operands = 0 : i64, tpu.core_type = #tpu.core_type<tc>, window_params = [{transform_indices = @transform_0, window_bounds = array<i64: 64, 256>}, {pipeline_mode = #tpu.pipeline_mode<synchronous>, transform_indices = @transform_1, window_bounds = array<i64: 256, 128>}, {transform_indices = @transform_2, window_bounds = array<i64: 64, 128>}, {transform_indices = @transform_3, window_bounds = array<i64: 1, 1, 128>}, {transform_indices = @transform_4, window_bounds = array<i64: 1, 1, 128>}]} {
    %c0 = arith.constant 0 : index
    %c0_0 = arith.constant 0 : index
    %0 = vector.load %arg1[%c0, %c0_0] : memref<64x256xbf16, #tpu.memory_space<vmem>>, vector<64x256xbf16>
    %c0_1 = arith.constant 0 : index
    %c0_2 = arith.constant 0 : index
    %1 = vector.load %arg2[%c0_1, %c0_2] : memref<256x128xbf16, #tpu.memory_space<vmem>>, vector<256x128xbf16>
    %cst = arith.constant dense<0.000000e+00> : vector<64x128xf32>
    %2 = tpu.matmul %0, %1, %cst {dimension_numbers = #tpu.dot_dimension_numbers<[1], [0], [0], [1], [0, 0, 1, 1], [], []>} : vector<64x256xbf16>, vector<256x128xbf16>, vector<64x128xf32> -> vector<64x128xf32>
    %3 = arith.truncf %2 : vector<64x128xf32> to vector<64x128xbf16>
    %c0_3 = arith.constant 0 : index
    %c0_4 = arith.constant 0 : index
    %4 = vector.load %arg3[%c0_3, %c0_4] : memref<64x128xbf16, #tpu.memory_space<vmem>>, vector<64x128xbf16>
    tpu.vector_store %arg3[%c0_3, %c0_4], %3 {strides = array<i32>} : memref<64x128xbf16, #tpu.memory_space<vmem>>, vector<64x128xbf16>,
    %cst_5 = arith.constant dense<0.000000e+00> : vector<128xf32>
    %5 = vector.multi_reduction <add>, %2, %cst_5 [0] : vector<64x128xf32> to vector<128xf32>
    %6 = vector.shape_cast %5 : vector<128xf32> to vector<1x128xf32>
    %7 = vector.shape_cast %6 : vector<1x128xf32> to vector<1x1x128xf32>
    %c0_6 = arith.constant 0 : index
    %c0_7 = arith.constant 0 : index
    %c0_8 = arith.constant 0 : index
    %8 = vector.load %arg4[%c0_6, %c0_7, %c0_8] : memref<1x1x128xf32, #tpu.memory_space<vmem>>, vector<1x1x128xf32>
    tpu.vector_store %arg4[%c0_6, %c0_7, %c0_8], %7 {strides = array<i32>} : memref<1x1x128xf32, #tpu.memory_space<vmem>>, vector<1x1x128xf32>,
    %9 = arith.mulf %2, %2 : vector<64x128xf32>
    %cst_9 = arith.constant dense<0.000000e+00> : vector<128xf32>
    %10 = vector.multi_reduction <add>, %9, %cst_9 [0] : vector<64x128xf32> to vector<128xf32>
    %11 = vector.shape_cast %10 : vector<128xf32> to vector<1x128xf32>
    %12 = vector.shape_cast %11 : vector<1x128xf32> to vector<1x1x128xf32>
    %c0_10 = arith.constant 0 : index
    %c0_11 = arith.constant 0 : index
    %c0_12 = arith.constant 0 : index
    %13 = vector.load %arg5[%c0_10, %c0_11, %c0_12] : memref<1x1x128xf32, #tpu.memory_space<vmem>>, vector<1x1x128xf32>
    tpu.vector_store %arg5[%c0_10, %c0_11, %c0_12], %12 {strides = array<i32>} : memref<1x1x128xf32, #tpu.memory_space<vmem>>, vector<1x1x128xf32>,
    return
  }
  func.func @transform_0(%arg0: i32) -> (i32, i32) {
    %c0_i32 = arith.constant 0 : i32
    %c0_i32_0 = arith.constant 0 : i32
    return %arg0, %c0_i32 : i32, i32
  }
  func.func @transform_1(%arg0: i32) -> (i32, i32) {
    %c0_i32 = arith.constant 0 : i32
    %c0_i32_0 = arith.constant 0 : i32
    %c0_i32_1 = arith.constant 0 : i32
    return %c0_i32, %c0_i32_0 : i32, i32
  }
  func.func @transform_2(%arg0: i32) -> (i32, i32) {
    %c0_i32 = arith.constant 0 : i32
    %c0_i32_0 = arith.constant 0 : i32
    return %arg0, %c0_i32 : i32, i32
  }
  func.func @transform_3(%arg0: i32) -> (i32, i32, i32) {
    %c0_i32 = arith.constant 0 : i32
    %c0_i32_0 = arith.constant 0 : i32
    %c0_i32_1 = arith.constant 0 : i32
    return %arg0, %c0_i32, %c0_i32_0 : i32, i32, i32
  }
  func.func @transform_4(%arg0: i32) -> (i32, i32, i32) {
    %c0_i32 = arith.constant 0 : i32
    %c0_i32_0 = arith.constant 0 : i32
    %c0_i32_1 = arith.constant 0 : i32
    return %arg0, %c0_i32, %c0_i32_0 : i32, i32, i32
  }
}

module attributes {stable_mosaic.version = 11 : i64} {
  func.func @_affine_act_kernel(%arg0: i32, %arg1: memref<64x128xbf16, #tpu.memory_space<vmem>>, %arg2: memref<1x128xf32, #tpu.memory_space<vmem>>, %arg3: memref<1x128xf32, #tpu.memory_space<vmem>>, %arg4: memref<64x128xbf16, #tpu.memory_space<vmem>>) attributes {dimension_semantics = [#tpu.dimension_semantics<parallel>], iteration_bounds = array<i64: 2>, scalar_prefetch = 0 : i64, scratch_operands = 0 : i64, tpu.core_type = #tpu.core_type<tc>, window_params = [{transform_indices = @transform_0, window_bounds = array<i64: 64, 128>}, {pipeline_mode = #tpu.pipeline_mode<synchronous>, transform_indices = @transform_1, window_bounds = array<i64: 1, 128>}, {pipeline_mode = #tpu.pipeline_mode<synchronous>, transform_indices = @transform_2, window_bounds = array<i64: 1, 128>}, {transform_indices = @transform_3, window_bounds = array<i64: 64, 128>}]} {
    %c0 = arith.constant 0 : index
    %c0_0 = arith.constant 0 : index
    %0 = vector.load %arg1[%c0, %c0_0] : memref<64x128xbf16, #tpu.memory_space<vmem>>, vector<64x128xbf16>
    %1 = arith.extf %0 : vector<64x128xbf16> to vector<64x128xf32>
    %c0_1 = arith.constant 0 : index
    %c0_2 = arith.constant 0 : index
    %2 = vector.load %arg2[%c0_1, %c0_2] : memref<1x128xf32, #tpu.memory_space<vmem>>, vector<1x128xf32>
    %3 = vector.broadcast %2 : vector<1x128xf32> to vector<64x128xf32>
    %4 = arith.mulf %1, %3 : vector<64x128xf32>
    %c0_3 = arith.constant 0 : index
    %c0_4 = arith.constant 0 : index
    %5 = vector.load %arg3[%c0_3, %c0_4] : memref<1x128xf32, #tpu.memory_space<vmem>>, vector<1x128xf32>
    %6 = vector.broadcast %5 : vector<1x128xf32> to vector<64x128xf32>
    %7 = arith.addf %4, %6 : vector<64x128xf32>
    %cst = arith.constant 0.000000e+00 : f32
    %8 = vector.broadcast %cst : f32 to vector<64x128xf32>
    %9 = arith.cmpf ogt, %7, %8 : vector<64x128xf32>
    %cst_5 = arith.constant 2.000000e-01 : f32
    %10 = vector.broadcast %cst_5 : f32 to vector<64x128xf32>
    %11 = arith.mulf %10, %7 : vector<64x128xf32>
    %12 = arith.select %9, %7, %11 : vector<64x128xi1>, vector<64x128xf32>
    %13 = math.tanh %12 : vector<64x128xf32>
    %14 = arith.truncf %13 : vector<64x128xf32> to vector<64x128xbf16>
    %c0_6 = arith.constant 0 : index
    %c0_7 = arith.constant 0 : index
    %15 = vector.load %arg4[%c0_6, %c0_7] : memref<64x128xbf16, #tpu.memory_space<vmem>>, vector<64x128xbf16>
    tpu.vector_store %arg4[%c0_6, %c0_7], %14 {strides = array<i32>} : memref<64x128xbf16, #tpu.memory_space<vmem>>, vector<64x128xbf16>,
    return
  }
  func.func @transform_0(%arg0: i32) -> (i32, i32) {
    %c0_i32 = arith.constant 0 : i32
    %c0_i32_0 = arith.constant 0 : i32
    return %arg0, %c0_i32 : i32, i32
  }
  func.func @transform_1(%arg0: i32) -> (i32, i32) {
    %c0_i32 = arith.constant 0 : i32
    %c0_i32_0 = arith.constant 0 : i32
    %c0_i32_1 = arith.constant 0 : i32
    return %c0_i32, %c0_i32_0 : i32, i32
  }
  func.func @transform_2(%arg0: i32) -> (i32, i32) {
    %c0_i32 = arith.constant 0 : i32
    %c0_i32_0 = arith.constant 0 : i32
    %c0_i32_1 = arith.constant 0 : i32
    return %c0_i32, %c0_i32_0 : i32, i32
  }
  func.func @transform_3(%arg0: i32) -> (i32, i32) {
    %c0_i32 = arith.constant 0 : i32
    %c0_i32_0 = arith.constant 0 : i32
    return %arg0, %c0_i32 : i32, i32
  }
}

</mosaic_0001>

<bundles_post_ra>
// kernel: vae_forward.14
= control target key start
LH: loop header
LB: loop body
LE: loop exit
PB: predicated region body
PF: predicated region fallthrough
CT: control target
= control target key end

     0   :  { %s586_s15 = smov 0   ;;  %s623_s0 = inlined_call_operand.vmem [shape: bf16[128,27], index: 0, kind: input, shape index: {}]   ;;  %s624_s1 = inlined_call_operand.vmem [shape: bf16[27,128], index: 1, kind: input, shape index: {}]   ;;  %s625_s2 = inlined_call_operand.vmem [shape: bf16[128,128], index: 2, kind: output, shape index: {0}]   ;;  %s626_s3 = inlined_call_operand.vmem [shape: f32[2,1,128], index: 3, kind: output, shape index: {1}]   ;;  %s627_s4 = inlined_call_operand.vmem [shape: f32[2,1,128], index: 4, kind: output, shape index: {2}]  }
   0x1 LB: > { %s592_s16 = sadd.s32 4294967295, %s558_s15   ;;  %p473_p0 = scmp.ge.s32.totalorder %s558_s15, 1  ;;  %s558_s15 = sphi %s586_s15, %s15_s15  }
   0x2   : > { %p168_p1 = scmp.lt.s32.totalorder %s558_s15, 3 }
   0x4   : > { %p169_p2 = pnand %p473_p0, %p168_p1 }
   0x5   : > { %s474_s21 = sshll.u32 (!%p169_p2), %s592_s16, 3  ;;  %p212_p4 = scmp.lt.s32.totalorder (!%p169_p2), %s592_s16, 1 }
   0x6   : > { %172 = sbr.rel (%p169_p2) target bundleno = 187 (0xbb), region = 28  ;;  %p201_p3 = scmp.lt.s32.totalorder (!%p169_p2), %s474_s21, 15 }
   0xb   : > { %v500_v0 = vld [vmem:[%s624_s1 + $0x8] sm:$0xf]  ;;  %v513_v1 = vld [vmem:[%s624_s1 + $0x8] sm:$0x30]  ;;  %vm275_vm0 = vcmask 1044480   ;;  %vm276_vm1 = vcmask 1045504  }
   0xc   : > { %v501_v2 = vor.u32 %v513_v1, %v500_v0  ;;  %v560_v3 = vmov 65535   ;;  %s629_s21 = smov (!%p201_p3, %s474_s21), 15  ;;  %v512_v7 = vld [vmem:[%s624_s1] sm:$0xff]  ;;  %vm262_vm2 = vcmask 220160   ;;  %s631_s16 = smov (!%p212_p4, %s592_s16), 1 }
   0xd   : > { %v277_v4 = vsel %vm275_vm0, 4294967295, %v560_v3  ;;  %s475_s24 = sshll.u32 %s629_s21, 2  ;;  %s214_s7 = scalar_lea.vmem %s626_s3, %s631_s16 }
   0xe   : > { %v278_v5 = vsel %vm276_vm1, %v277_v4, 0  ;;  %s204_s27 = scalar_lea.vmem %s623_s0, %s475_s24  ;;  %s210_s30 = scalar_lea.vmem %s625_s2, %s475_s24 }
   0xf   : > { %v280_v6 = vand.u32 %v501_v2, %v278_v5  ;;  %v508_v8 = vld [vmem:[%s204_s27] sm:$0xff]  ;;  %v509_v9 = vld [vmem:[%s204_s27 + $0x8] sm:$0xff]  ;;  %v510_v10 = vld [vmem:[%s204_s27 + $0x10] sm:$0xff]  ;;  %s217_s10 = scalar_lea.vmem %s627_s4, %s631_s16 }
  0x10   : > { %v511_v11 = vld [vmem:[%s204_s27 + $0x18] sm:$0xff] }
  0x11   : > { %288 = vmatpush.bf16.msra.mxu0 %v280_v6  ;;  %537 = vmatpush.bf16.msra.mxu1 %v280_v6 }
  0x12   : > { %538 = vmatpush.bf16.msra.mxu2 %v280_v6  ;;  %539 = vmatpush.bf16.msra.mxu3 %v280_v6 }
  0x15   : > { %289 = vmatpush.bf16.msra.mxu0 %v512_v7  ;;  %540 = vmatpush.bf16.msra.mxu1 %v512_v7 }
  0x16   : > { %541 = vmatpush.bf16.msra.mxu2 %v512_v7  ;;  %542 = vmatpush.bf16.msra.mxu3 %v512_v7 }
  0x18   : > { %502 = vmatmul.msk.bf16.vlgmr.msra.gmra.mxu0 %vm262_vm2, %v508_v8  ;;  %503 = vmatmul.msk.bf16.vlgmr.msra.gmra.mxu1 %vm262_vm2, %v509_v9 }
  0x19   : > { %504 = vmatmul.msk.bf16.vlgmr.msra.gmra.mxu2 %vm262_vm2, %v510_v10  ;;  %505 = vmatmul.msk.bf16.vlgmr.msra.gmra.mxu3 %vm262_vm2, %v511_v11 }
  0x95   : > { %v291_v12 = vpop.f32.mrf.mxu0  ;;  %v296_v13 = vpop.f32.mrf.mxu1 }
  0x96   : > { %v341_v16 = vmul.f32 %v291_v12, %v291_v12  ;;  %v343_v23 = vmul.f32 %v296_v13, %v296_v13 }
  0x9c   : > { %v301_v14 = vpop.f32.mrf.mxu2  ;;  %v306_v15 = vpop.f32.mrf.mxu3 }
  0x9d   : > { %v293_v17 = vpop.f32.mrf.mxu0  ;;  %v298_v18 = vpop.f32.mrf.mxu1  ;;  %v345_v29 = vmul.f32 %v301_v14, %v301_v14  ;;  %v347_v39 = vmul.f32 %v306_v15, %v306_v15 }
  0x9e   : > { %v517_v19 = vpack.c.bf16 %v293_v17, %v291_v12  ;;  %v327_v20 = vadd.f32 %v293_v17, %v291_v12  ;;  %v342_v21 = vmul.f32 %v293_v17, %v293_v17  ;;  %v522_v22 = vpack.c.bf16 %v298_v18, %v296_v13 }
  0x9f   : > { %v344_v27 = vmul.f32 %v298_v18, %v298_v18 }
  0xa0   : > { %518 = vst [vmem:[%s210_s30] sm:$0xff] %v517_v19   ;;  %v349_v24 = vadd.f32 %v342_v21, %v341_v16  ;;  %v328_v25 = vadd.f32 %v327_v20, %v296_v13 }
  0xa1   : > { %534 = vst [vmem:[%s210_s30 + $0x8] sm:$0xff] %v522_v22  }
  0xa2   : > { %v329_v26 = vadd.f32 %v328_v25, %v298_v18  ;;  %v350_v28 = vadd.f32 %v349_v24, %v343_v23 }
  0xa4   : > { %v351_v30 = vadd.f32 %v350_v28, %v344_v27  ;;  %v303_v31 = vpop.f32.mrf.mxu2  ;;  %v330_v32 = vadd.f32 %v329_v26, %v301_v14  ;;  %v308_v33 = vpop.f32.mrf.mxu3 }
  0xa5   : > { %v527_v34 = vpack.c.bf16 %v303_v31, %v301_v14  ;;  %v532_v35 = vpack.c.bf16 %v308_v33, %v306_v15  ;;  %v346_v37 = vmul.f32 %v303_v31, %v303_v31  ;;  %v348_v43 = vmul.f32 %v308_v33, %v308_v33 }
  0xa6   : > { %v331_v36 = vadd.f32 %v330_v32, %v303_v31  ;;  %v352_v38 = vadd.f32 %v351_v30, %v345_v29 }
  0xa7   : > { %535 = vst [vmem:[%s210_s30 + $0x10] sm:$0xff] %v527_v34  }
  0xa8   : > { %v353_v40 = vadd.f32 %v352_v38, %v346_v37  ;;  %536 = vst [vmem:[%s210_s30 + $0x18] sm:$0xff] %v532_v35   ;;  %v332_v41 = vadd.f32 %v331_v36, %v306_v15 }
  0xaa   : > { %v333_v42 = vadd.f32 %v332_v41, %v308_v33  ;;  %v354_v44 = vadd.f32 %v353_v40, %v347_v39 }
  0xac   : > { %v334_v45 = vrot.slane %v333_v42, 4  ;;  %v355_v46 = vadd.f32 %v354_v44, %v348_v43 }
  0xae   : > { %v335_v47 = vadd.f32 %v334_v45, %v333_v42  ;;  %v356_v48 = vrot.slane %v355_v46, 4 }
  0xb0   : > { %v336_v49 = vrot.slane %v335_v47, 2  ;;  %v357_v50 = vadd.f32 %v356_v48, %v355_v46 }
  0xb2   : > { %v337_v51 = vadd.f32 %v336_v49, %v335_v47  ;;  %v358_v52 = vrot.slane %v357_v50, 2 }
  0xb4   : > { %v338_v53 = vrot.slane %v337_v51, 1  ;;  %v359_v54 = vadd.f32 %v358_v52, %v357_v50 }
  0xb6   : > { %v339_v55 = vadd.f32 %v338_v53, %v337_v51  ;;  %v360_v56 = vrot.slane %v359_v54, 1 }
  0xb8   : > { %340 = vst [vmem:[%s214_s7] sm:$0x1] %v339_v55  ;;  %v361_v57 = vadd.f32 %v360_v56, %v359_v54 }
  0xba   : > { %362 = vst [vmem:[%s217_s10] sm:$0x1] %v361_v57 }
  0xbb PF: > { %s15_s15 = sadd.s32 1, %s558_s15  }
  0xbc   : > { %p12_p5 = scmp.ge.s32.totalorder %s15_s15, 4  }
  0xbe   :  { %14 = sbr.rel (!%p12_p5) target bundleno = 1 (0x1), region = 82 }

// kernel: vae_forward.15
= control target key start
LH: loop header
LB: loop body
LE: loop exit
PB: predicated region body
PF: predicated region fallthrough
CT: control target
= control target key end

     0   :  { %s401_s12 = smov 0   ;;  %s431_s0 = inlined_call_operand.vmem [shape: bf16[128,128], index: 0, kind: input, shape index: {}]   ;;  %s432_s1 = inlined_call_operand.vmem [shape: f32[1,128], index: 1, kind: input, shape index: {}]   ;;  %s433_s2 = inlined_call_operand.vmem [shape: f32[1,128], index: 2, kind: input, shape index: {}]   ;;  %s434_s3 = inlined_call_operand.vmem [shape: bf16[128,128], index: 3, kind: output, shape index: {}]  }
   0x1 LB: > { %s310_s13 = sadd.s32 4294967295, %s379_s12   ;;  %p314_p0 = scmp.ge.s32.totalorder %s379_s12, 1  ;;  %s379_s12 = sphi %s401_s12, %s13_s12  }
   0x2   : > { %p138_p1 = scmp.lt.s32.totalorder %s379_s12, 3 }
   0x4   : > { %p139_p2 = pnand %p314_p0, %p138_p1 }
   0x5   : > { %s315_s14 = sshll.u32 (!%p139_p2), %s310_s13, 3 }
   0x6   : > { %142 = sbr.rel (%p139_p2) target bundleno = 32 (0x20), region = 32  ;;  %p163_p3 = scmp.lt.s32.totalorder (!%p139_p2), %s315_s14, 15 }
   0xb   : > { %s436_s14 = smov (!%p163_p3, %s315_s14), 15  ;;  %v371_v0 = vld [vmem:[%s432_s1] ss:$0 sm:$0xff] }
   0xc   : > { %s316_s15 = sshll.u32 %s436_s14, 2  ;;  %v372_v9 = vld [vmem:[%s433_s2] ss:$0 sm:$0xff] }
   0xd   : > { %s166_s18 = scalar_lea.vmem %s431_s0, %s316_s15  ;;  %s172_s25 = scalar_lea.vmem %s434_s3, %s316_s15 }
   0xe   : > { %v322_v1 = vld [vmem:[%s166_s18] sm:$0xff]   ;;  %v357_v2 = vld [vmem:[%s166_s18 + $0x8] sm:$0xff]   ;;  %v358_v3 = vld [vmem:[%s166_s18 + $0x10] sm:$0xff]  }
   0xf   : > { %v323_v4 = vunpack.c.l.bf16 %v322_v1  ;;  %v324_v5 = vunpack.c.h.bf16 %v322_v1  ;;  %v327_v6 = vunpack.c.l.bf16 %v357_v2  ;;  %v328_v7 = vunpack.c.h.bf16 %v357_v2  ;;  %v359_v8 = vld [vmem:[%s166_s18 + $0x18] sm:$0xff]  }
  0x10   : > { %v331_v10 = vunpack.c.l.bf16 %v358_v3  ;;  %v332_v11 = vunpack.c.h.bf16 %v358_v3  ;;  %v335_v12 = vunpack.c.l.bf16 %v359_v8  ;;  %v336_v13 = vunpack.c.h.bf16 %v359_v8 }
  0x11   : > { %v194_v14 = vmul.f32 %v371_v0, %v323_v4  ;;  %v195_v15 = vmul.f32 %v371_v0, %v324_v5  ;;  %v196_v16 = vmul.f32 %v371_v0, %v327_v6  ;;  %v197_v17 = vmul.f32 %v371_v0, %v328_v7 }
  0x12   : > { %v198_v18 = vmul.f32 %v371_v0, %v331_v10  ;;  %v199_v19 = vmul.f32 %v371_v0, %v332_v11  ;;  %v200_v20 = vmul.f32 %v371_v0, %v335_v12  ;;  %v201_v21 = vmul.f32 %v371_v0, %v336_v13 }
  0x13   : > { %v206_v22 = vadd.f32 %v372_v9, %v194_v14  ;;  %v207_v23 = vadd.f32 %v372_v9, %v195_v15  ;;  %v208_v24 = vadd.f32 %v372_v9, %v196_v16  ;;  %v209_v25 = vadd.f32 %v372_v9, %v197_v17 }
  0x14   : > { %v210_v26 = vadd.f32 %v372_v9, %v198_v18  ;;  %v211_v27 = vadd.f32 %v372_v9, %v199_v19  ;;  %v212_v28 = vadd.f32 %v372_v9, %v200_v20  ;;  %v213_v29 = vadd.f32 %v372_v9, %v201_v21 }
  0x15   : > { %vm214_vm0 = vcmp.gt.f32.partialorder %v206_v22, 0.0  ;;  %vm215_vm1 = vcmp.gt.f32.partialorder %v207_v23, 0.0  ;;  %v222_v30 = vmul.f32 0.2, %v206_v22  ;;  %v223_v31 = vmul.f32 0.2, %v207_v23 }
  0x16   : > { %vm216_vm2 = vcmp.gt.f32.partialorder %v208_v24, 0.0  ;;  %vm217_vm3 = vcmp.gt.f32.partialorder %v209_v25, 0.0  ;;  %v224_v32 = vmul.f32 0.2, %v208_v24  ;;  %v225_v33 = vmul.f32 0.2, %v209_v25 }
  0x17   : > { %v230_v34 = vsel %vm214_vm0, %v206_v22, %v222_v30  ;;  %v231_v35 = vsel %vm215_vm1, %v207_v23, %v223_v31  ;;  %vm218_vm4 = vcmp.gt.f32.partialorder %v210_v26, 0.0  ;;  %vm219_vm5 = vcmp.gt.f32.partialorder %v211_v27, 0.0 }
  0x18   : > { %v340_v36 = vpack.c.bf16 %v231_v35, %v230_v34  ;;  %v232_v37 = vsel %vm216_vm2, %v208_v24, %v224_v32  ;;  %v233_v38 = vsel %vm217_vm3, %v209_v25, %v225_v33  ;;  %v226_v39 = vmul.f32 0.2, %v210_v26 }
  0x19   : > { %v345_v40 = vpack.c.bf16 %v233_v38, %v232_v37  ;;  %v227_v41 = vmul.f32 0.2, %v211_v27  ;;  %vm220_vm6 = vcmp.gt.f32.partialorder %v212_v28, 0.0  ;;  %vm221_vm7 = vcmp.gt.f32.partialorder %v213_v29, 0.0 }
  0x1a   : > { %341 = vst [vmem:[%s172_s25] sm:$0xff] %v340_v36   ;;  %v234_v42 = vsel %vm218_vm4, %v210_v26, %v226_v39  ;;  %v228_v43 = vmul.f32 0.2, %v212_v28  ;;  %v229_v44 = vmul.f32 0.2, %v213_v29 }
  0x1b   : > { %360 = vst [vmem:[%s172_s25 + $0x8] sm:$0xff] %v345_v40   ;;  %v235_v45 = vsel %vm219_vm5, %v211_v27, %v227_v41 }
  0x1c   : > { %v350_v46 = vpack.c.bf16 %v235_v45, %v234_v42  ;;  %v236_v47 = vsel %vm220_vm6, %v212_v28, %v228_v43  ;;  %v237_v48 = vsel %vm221_vm7, %v213_v29, %v229_v44 }
  0x1d   : > { %v355_v49 = vpack.c.bf16 %v237_v48, %v236_v47 }
  0x1e   : > { %361 = vst [vmem:[%s172_s25 + $0x10] sm:$0xff] %v350_v46  }
  0x1f   : > { %362 = vst [vmem:[%s172_s25 + $0x18] sm:$0xff] %v355_v49  }
  0x20 PF: > { %s13_s12 = sadd.s32 1, %s379_s12  }
  0x21   : > { %p10_p4 = scmp.ge.s32.totalorder %s13_s12, 4  }
  0x23   :  { %12 = sbr.rel (!%p10_p4) target bundleno = 1 (0x1), region = 62 }

// kernel: vae_forward.17
= control target key start
LH: loop header
LB: loop body
LE: loop exit
PB: predicated region body
PF: predicated region fallthrough
CT: control target
= control target key end

     0   :  { %s314_s12 = smov 0   ;;  %s337_s0 = inlined_call_operand.vmem [shape: bf16[32,128], index: 0, kind: input, shape index: {}]   ;;  %s338_s1 = inlined_call_operand.vmem [shape: f32[1,128], index: 1, kind: input, shape index: {}]   ;;  %s339_s2 = inlined_call_operand.vmem [shape: f32[1,128], index: 2, kind: input, shape index: {}]   ;;  %s340_s3 = inlined_call_operand.vmem [shape: bf16[32,128], index: 3, kind: output, shape index: {}]  }
   0x1 LB: > { %s256_s13 = sadd.s32 4294967295, %s292_s12   ;;  %p260_p0 = scmp.ge.s32.totalorder %s292_s12, 1  ;;  %s292_s12 = sphi %s314_s12, %s13_s12  }
   0x2   : > { %p138_p1 = scmp.lt.s32.totalorder %s292_s12, 3 }
   0x4   : > { %p139_p2 = pnand %p260_p0, %p138_p1 }
   0x5   : > { %s261_s14 = sshll.u32 (!%p139_p2), %s256_s13, 1 }
   0x6   : > { %142 = sbr.rel (%p139_p2) target bundleno = 27 (0x1b), region = 32  ;;  %p163_p3 = scmp.lt.s32.totalorder (!%p139_p2), %s261_s14, 3 }
   0xb   : > { %s342_s14 = smov (!%p163_p3, %s261_s14), 3  ;;  %v284_v0 = vld [vmem:[%s338_s1] ss:$0 sm:$0xff] }
   0xc   : > { %s262_s15 = sshll.u32 %s342_s14, 2  ;;  %v285_v4 = vld [vmem:[%s339_s2] ss:$0 sm:$0xff] }
   0xd   : > { %s166_s18 = scalar_lea.vmem %s337_s0, %s262_s15  ;;  %s172_s25 = scalar_lea.vmem %s340_s3, %s262_s15 }
   0xe   : > { %v268_v1 = vld [vmem:[%s166_s18] sm:$0xff]  }
   0xf   : > { %v269_v2 = vunpack.c.l.bf16 %v268_v1  ;;  %v270_v3 = vunpack.c.h.bf16 %v268_v1 }
  0x11   : > { %v182_v5 = vmul.f32 %v284_v0, %v269_v2  ;;  %v183_v6 = vmul.f32 %v284_v0, %v270_v3 }
  0x13   : > { %v188_v7 = vadd.f32 %v285_v4, %v182_v5  ;;  %v189_v8 = vadd.f32 %v285_v4, %v183_v6 }
  0x15   : > { %vm190_vm0 = vcmp.gt.f32.partialorder %v188_v7, 0.0  ;;  %vm191_vm1 = vcmp.gt.f32.partialorder %v189_v8, 0.0  ;;  %v192_v9 = vmul.f32 0.2, %v188_v7  ;;  %v193_v10 = vmul.f32 0.2, %v189_v8 }
  0x17   : > { %v194_v11 = vsel %vm190_vm0, %v188_v7, %v192_v9  ;;  %v195_v12 = vsel %vm191_vm1, %v189_v8, %v193_v10 }
  0x18   : > { %v274_v13 = vpack.c.bf16 %v195_v12, %v194_v11 }
  0x1a   : > { %275 = vst [vmem:[%s172_s25] sm:$0xff] %v274_v13  }
  0x1b PF: > { %s13_s12 = sadd.s32 1, %s292_s12  }
  0x1c   : > { %p10_p4 = scmp.ge.s32.totalorder %s13_s12, 4  }
  0x1e   :  { %12 = sbr.rel (!%p10_p4) target bundleno = 1 (0x1), region = 62 }

// kernel: vae_forward.16
= control target key start
LH: loop header
LB: loop body
LE: loop exit
PB: predicated region body
PF: predicated region fallthrough
CT: control target
= control target key end

     0   :  { %s1007_s15 = smov 0   ;;  %s1159_s0 = inlined_call_operand.vmem [shape: bf16[32,576], index: 0, kind: input, shape index: {}]   ;;  %s1160_s1 = inlined_call_operand.vmem [shape: bf16[576,128], index: 1, kind: input, shape index: {}]   ;;  %s1161_s2 = inlined_call_operand.vmem [shape: bf16[32,128], index: 2, kind: output, shape index: {0}]   ;;  %s1162_s3 = inlined_call_operand.vmem [shape: f32[2,1,128], index: 3, kind: output, shape index: {1}]   ;;  %s1163_s4 = inlined_call_operand.vmem [shape: f32[2,1,128], index: 4, kind: output, shape index: {2}]  }
   0x1 LB: > { %s1013_s16 = sadd.s32 4294967295, %s980_s15   ;;  %p747_p0 = scmp.ge.s32.totalorder %s980_s15, 1  ;;  %s980_s15 = sphi %s1007_s15, %s15_s15  }
   0x2   : > { %p169_p1 = scmp.lt.s32.totalorder %s980_s15, 3 }
   0x4   : > { %p170_p2 = pnand %p747_p0, %p169_p1 }
   0x5   : > { %s748_s17 = sshll.u32 (!%p170_p2), %s1013_s16, 1  ;;  %p215_p4 = scmp.lt.s32.totalorder (!%p170_p2), %s1013_s16, 1 }
   0x6   : > { %173 = sbr.rel (%p170_p2) target bundleno = 212 (0xd4), region = 28  ;;  %p203_p3 = scmp.lt.s32.totalorder (!%p170_p2), %s748_s17, 3 }
   0xb   : > { %v931_v0 = vld [vmem:[%s1160_s1 + $0x38] sm:$0xff]  ;;  %v930_v4 = vld [vmem:[%s1160_s1 + $0x30] sm:$0xff]  ;;  %v929_v8 = vld [vmem:[%s1160_s1 + $0x28] sm:$0xff]  ;;  %s1165_s17 = smov (!%p203_p3, %s748_s17), 3  ;;  %vm541_vm0 = vcmask 523264   ;;  %s1167_s16 = smov (!%p215_p4, %s1013_s16), 1 }
   0xc   : > { %v939_v1 = vld [vmem:[%s1160_s1 + $0x78] sm:$0xff]  ;;  %545 = vmatpush.bf16.msra.mxu0 %v931_v0  ;;  %v938_v5 = vld [vmem:[%s1160_s1 + $0x70] sm:$0xff]  ;;  %v937_v9 = vld [vmem:[%s1160_s1 + $0x68] sm:$0xff]  ;;  %s965_s12 = smul.u32 20, %s1165_s17  ;;  %s751_s24 = sshll.u32 %s1165_s17, 2 }
   0xd   : > { %v947_v2 = vld [vmem:[%s1160_s1 + $0xb8] sm:$0xff]  ;;  %559 = vmatpush.bf16.msra.mxu1 %v939_v1  ;;  %v946_v6 = vld [vmem:[%s1160_s1 + $0xb0] sm:$0xff]  ;;  %v945_v10 = vld [vmem:[%s1160_s1 + $0xa8] sm:$0xff]  ;;  %s213_s27 = scalar_lea.vmem %s1161_s2, %s751_s24  ;;  %s217_s29 = scalar_lea.vmem %s1162_s3, %s1167_s16 }
   0xe   : > { %v955_v3 = vld [vmem:[%s1160_s1 + $0xf8] sm:$0xff]  ;;  %573 = vmatpush.bf16.msra.mxu2 %v947_v2  ;;  %v954_v7 = vld [vmem:[%s1160_s1 + $0xf0] sm:$0xff]  ;;  %v953_v11 = vld [vmem:[%s1160_s1 + $0xe8] sm:$0xff]  ;;  %s1102_s26 = scalar_lea.vmem %s1159_s0, %s965_s12  ;;  %s220_s6 = scalar_lea.vmem %s1163_s4, %s1167_s16 }
   0xf   : > { %587 = vmatpush.bf16.msra.mxu3 %v955_v3  ;;  %v928_v12 = vld [vmem:[%s1160_s1 + $0x20] sm:$0xff]  ;;  %v927_v16 = vld [vmem:[%s1160_s1 + $0x18] sm:$0xff]  ;;  %v926_v20 = vld [vmem:[%s1160_s1 + $0x10] sm:$0xff] }
  0x10   : > { %546 = vmatpush.bf16.msra.mxu0 %v930_v4  ;;  %v936_v13 = vld [vmem:[%s1160_s1 + $0x60] sm:$0xff]  ;;  %v935_v17 = vld [vmem:[%s1160_s1 + $0x58] sm:$0xff]  ;;  %v934_v21 = vld [vmem:[%s1160_s1 + $0x50] sm:$0xff] }
  0x11   : > { %560 = vmatpush.bf16.msra.mxu1 %v938_v5  ;;  %v944_v14 = vld [vmem:[%s1160_s1 + $0xa0] sm:$0xff]  ;;  %v943_v18 = vld [vmem:[%s1160_s1 + $0x98] sm:$0xff]  ;;  %v942_v22 = vld [vmem:[%s1160_s1 + $0x90] sm:$0xff] }
  0x12   : > { %574 = vmatpush.bf16.msra.mxu2 %v946_v6  ;;  %v952_v15 = vld [vmem:[%s1160_s1 + $0xe0] sm:$0xff]  ;;  %v951_v19 = vld [vmem:[%s1160_s1 + $0xd8] sm:$0xff]  ;;  %v950_v23 = vld [vmem:[%s1160_s1 + $0xd0] sm:$0xff] }
  0x13   : > { %588 = vmatpush.bf16.msra.mxu3 %v954_v7  ;;  %v925_v24 = vld [vmem:[%s1160_s1 + $0x8] sm:$0xff]  ;;  %v924_v28 = vld [vmem:[%s1160_s1] sm:$0xff]  ;;  %v921_v33 = vld [vmem:[%s1102_s26 + $0x10] sm:$0xf0] }
  0x14   : > { %547 = vmatpush.bf16.msra.mxu0 %v929_v8  ;;  %v933_v25 = vld [vmem:[%s1160_s1 + $0x48] sm:$0xff]  ;;  %v932_v29 = vld [vmem:[%s1160_s1 + $0x40] sm:$0xff]  ;;  %v756_v35 = vld [vmem:[%s1102_s26 + $0x14] sm:$0xf0] }
  0x15   : > { %561 = vmatpush.bf16.msra.mxu1 %v937_v9  ;;  %v941_v26 = vld [vmem:[%s1160_s1 + $0x88] sm:$0xff]  ;;  %v940_v30 = vld [vmem:[%s1160_s1 + $0x80] sm:$0xff]  ;;  %v922_v37 = vld [vmem:[%s1102_s26 + $0x18] sm:$0xf0] }
  0x16   : > { %575 = vmatpush.bf16.msra.mxu2 %v945_v10  ;;  %v949_v27 = vld [vmem:[%s1160_s1 + $0xc8] sm:$0xff]  ;;  %v948_v31 = vld [vmem:[%s1160_s1 + $0xc0] sm:$0xff]  ;;  %v959_v40 = vld [vmem:[%s1160_s1 + $0x118] sm:$0xff] }
  0x17   : > { %589 = vmatpush.bf16.msra.mxu3 %v953_v11  ;;  %v754_v32 = vld [vmem:[%s1102_s26] sm:$0xf]  ;;  %v919_v34 = vld [vmem:[%s1102_s26 + $0x4] sm:$0xf]  ;;  %v762_v36 = vld [vmem:[%s1102_s26 + $0x8] sm:$0xf] }
  0x18   : > { %548 = vmatpush.bf16.msra.mxu0 %v928_v12  ;;  %v920_v38 = vld [vmem:[%s1102_s26 + $0xc] sm:$0xf]  ;;  %v764_v39 = vld [vmem:[%s1102_s26 + $0x1c] sm:$0xf0]  ;;  %v755_v41 = vor.u32 %v921_v33, %v754_v32  ;;  %v759_v42 = vor.u32 %v919_v34, %v756_v35  ;;  %v763_v43 = vor.u32 %v922_v37, %v762_v36  ;;  %v958_v45 = vld [vmem:[%s1160_s1 + $0x110] sm:$0xff] }
  0x19   : > { %562 = vmatpush.bf16.msra.mxu1 %v936_v13  ;;  %v767_v44 = vor.u32 %v920_v38, %v764_v39  ;;  %v957_v46 = vld [vmem:[%s1160_s1 + $0x108] sm:$0xff]  ;;  %v956_v47 = vld [vmem:[%s1160_s1 + $0x100] sm:$0xff]  ;;  %v770_v48 = vld [vmem:[%s1102_s26 + $0x10] sm:$0xf] }
  0x1a   : > { %576 = vmatpush.bf16.msra.mxu2 %v944_v14  ;;  %v923_v49 = vld [vmem:[%s1102_s26 + $0x20] sm:$0xf0] }
  0x1b   : > { %590 = vmatpush.bf16.msra.mxu3 %v952_v15  ;;  %v771_v50 = vor.u32 %v923_v49, %v770_v48 }
  0x1c   : > { %549 = vmatpush.bf16.msra.mxu0 %v927_v16 }
  0x1d   : > { %563 = vmatpush.bf16.msra.mxu1 %v935_v17 }
  0x1e   : > { %577 = vmatpush.bf16.msra.mxu2 %v943_v18 }
  0x1f   : > { %591 = vmatpush.bf16.msra.mxu3 %v951_v19 }
  0x20   : > { %550 = vmatpush.bf16.msra.mxu0 %v926_v20 }
  0x21   : > { %564 = vmatpush.bf16.msra.mxu1 %v934_v21 }
  0x22   : > { %578 = vmatpush.bf16.msra.mxu2 %v942_v22 }
  0x23   : > { %592 = vmatpush.bf16.msra.mxu3 %v950_v23 }
  0x24   : > { %551 = vmatpush.bf16.msra.mxu0 %v925_v24 }
  0x25   : > { %565 = vmatpush.bf16.msra.mxu1 %v933_v25 }
  0x26   : > { %579 = vmatpush.bf16.msra.mxu2 %v941_v26 }
  0x27   : > { %593 = vmatpush.bf16.msra.mxu3 %v949_v27 }
  0x28   : > { %552 = vmatpush.bf16.msra.mxu0 %v924_v28 }
  0x29   : > { %566 = vmatpush.bf16.msra.mxu1 %v932_v29 }
  0x2a   : > { %580 = vmatpush.bf16.msra.mxu2 %v940_v30 }
  0x2b   : > { %594 = vmatpush.bf16.msra.mxu3 %v948_v31  ;;  %553 = vmatmul.bf16.vlgmr.msra.gmra.mxu0 %v755_v41 }
  0x2c   : > { %605 = vmatpush.bf16.msrb.mxu0 %v959_v40  ;;  %567 = vmatmul.bf16.vlgmr.msra.gmra.mxu1 %v759_v42 }
  0x2d   : > { %581 = vmatmul.bf16.vlgmr.msra.gmra.mxu2 %v763_v43 }
  0x2e   : > { %595 = vmatmul.bf16.vlgmr.msra.gmra.mxu3 %v767_v44 }
  0x30   : > { %606 = vmatpush.bf16.msrb.mxu0 %v958_v45 }
  0x34   : > { %607 = vmatpush.bf16.msrb.mxu0 %v957_v46 }
  0x38   : > { %608 = vmatpush.bf16.msrb.mxu0 %v956_v47 }
  0x3b   : > { %916 = vmatmul.msk.bf16.vlgmr.msrb.gmra.mxu0 %vm541_vm0, %v771_v50 }
  0xa8   : > { %v554_v51 = vpop.f32.mrf.mxu0 }
  0xa9   : > { %v568_v52 = vpop.f32.mrf.mxu1 }
  0xaa   : > { %v569_v57 = vadd.f32 %v568_v52, %v554_v51 }
  0xb0   : > { %v582_v53 = vpop.f32.mrf.mxu2  ;;  %v556_v54 = vpop.f32.mrf.mxu0 }
  0xb1   : > { %v596_v55 = vpop.f32.mrf.mxu3  ;;  %v570_v56 = vpop.f32.mrf.mxu1  ;;  %v583_v60 = vadd.f32 %v582_v53, %v569_v57 }
  0xb2   : > { %v571_v61 = vadd.f32 %v570_v56, %v556_v54 }
  0xb3   : > { %v597_v63 = vadd.f32 %v596_v55, %v583_v60 }
  0xb8   : > { %v584_v58 = vpop.f32.mrf.mxu2  ;;  %v610_v59 = vpop.f32.mrf.mxu0 }
  0xb9   : > { %v585_v62 = vadd.f32 %v584_v58, %v571_v61  ;;  %v598_v0 = vpop.f32.mrf.mxu3  ;;  %v611_v2 = vadd.f32 %v610_v59, %v597_v63 }
  0xbb   : > { %v599_v1 = vadd.f32 %v598_v0, %v585_v62  ;;  %v627_v5 = vmul.f32 %v611_v2, %v611_v2 }
  0xc0   : > { %v612_v3 = vpop.f32.mrf.mxu0 }
  0xc1   : > { %v613_v4 = vadd.f32 %v612_v3, %v599_v1 }
  0xc3   : > { %v963_v6 = vpack.c.bf16 %v613_v4, %v611_v2  ;;  %v619_v7 = vadd.f32 %v613_v4, %v611_v2  ;;  %v628_v8 = vmul.f32 %v613_v4, %v613_v4 }
  0xc5   : > { %964 = vst [vmem:[%s213_s27] sm:$0xff] %v963_v6   ;;  %v620_v9 = vrot.slane %v619_v7, 4  ;;  %v629_v10 = vadd.f32 %v628_v8, %v627_v5 }
  0xc7   : > { %v621_v11 = vadd.f32 %v620_v9, %v619_v7  ;;  %v630_v12 = vrot.slane %v629_v10, 4 }
  0xc9   : > { %v622_v13 = vrot.slane %v621_v11, 2  ;;  %v631_v14 = vadd.f32 %v630_v12, %v629_v10 }
  0xcb   : > { %v623_v15 = vadd.f32 %v622_v13, %v621_v11  ;;  %v632_v16 = vrot.slane %v631_v14, 2 }
  0xcd   : > { %v624_v17 = vrot.slane %v623_v15, 1  ;;  %v633_v18 = vadd.f32 %v632_v16, %v631_v14 }
  0xcf   : > { %v625_v19 = vadd.f32 %v624_v17, %v623_v15  ;;  %v634_v20 = vrot.slane %v633_v18, 1 }
  0xd1   : > { %626 = vst [vmem:[%s217_s29] sm:$0x1] %v625_v19  ;;  %v635_v21 = vadd.f32 %v634_v20, %v633_v18 }
  0xd3   : > { %636 = vst [vmem:[%s220_s6] sm:$0x1] %v635_v21 }
  0xd4 PF: > { %s15_s15 = sadd.s32 1, %s980_s15  }
  0xd5   : > { %p12_p5 = scmp.ge.s32.totalorder %s15_s15, 4  }
  0xd7   :  { %14 = sbr.rel (!%p12_p5) target bundleno = 1 (0x1), region = 82 }

// kernel: vae_forward.19
= control target key start
LH: loop header
LB: loop body
LE: loop exit
PB: predicated region body
PF: predicated region fallthrough
CT: control target
= control target key end

     0   :  { %s77_s0 = inlined_call_operand.vmem [shape: bf16[8,256], index: 0, kind: input, shape index: {}]   ;;  %s78_s1 = inlined_call_operand.vmem [shape: f32[1,256], index: 1, kind: input, shape index: {}]   ;;  %s79_s2 = inlined_call_operand.vmem [shape: f32[1,256], index: 2, kind: input, shape index: {}]   ;;  %s80_s3 = inlined_call_operand.vmem [shape: bf16[8,256], index: 3, kind: output, shape index: {}]  }
   0x1   :  { %v14_v0 = vld [vmem:[%s77_s0] sm:$0xff] }
   0x2   :  { %v17_v1 = vld [vmem:[%s78_s1] sm:$0x3]  ;;  %v15_v3 = vunpack.c.l.bf16 %v14_v0  ;;  %v16_v4 = vunpack.c.h.bf16 %v14_v0 }
   0x3   :  { %v25_v2 = vld [vmem:[%s79_s2] sm:$0x3]  ;;  %v19_v5 = vperm.slane %v17_v1, 0  ;;  %v20_v6 = vperm.slane %v17_v1, 1 }
   0x4   :  { %v27_v7 = vperm.slane %v25_v2, 0  ;;  %v28_v8 = vperm.slane %v25_v2, 1 }
   0x5   :  { %v23_v9 = vmul.f32 %v19_v5, %v15_v3  ;;  %v24_v10 = vmul.f32 %v20_v6, %v16_v4 }
   0x7   :  { %v31_v11 = vadd.f32 %v27_v7, %v23_v9  ;;  %v32_v12 = vadd.f32 %v28_v8, %v24_v10 }
   0x9   :  { %vm33_vm0 = vcmp.gt.f32.partialorder %v31_v11, 0.0  ;;  %vm34_vm1 = vcmp.gt.f32.partialorder %v32_v12, 0.0  ;;  %v35_v13 = vmul.f32 0.2, %v31_v11  ;;  %v36_v14 = vmul.f32 0.2, %v32_v12 }
   0xb   :  { %v37_v15 = vsel %vm33_vm0, %v31_v11, %v35_v13  ;;  %v38_v16 = vsel %vm34_vm1, %v32_v12, %v36_v14 }
   0xc   :  { %v39_v17 = vpack.c.bf16 %v38_v16, %v37_v15 }
   0xe   :  { %40 = vst [vmem:[%s80_s3] sm:$0xff] %v39_v17 }

// kernel: vae_forward.20
= control target key start
LH: loop header
LB: loop body
LE: loop exit
PB: predicated region body
PF: predicated region fallthrough
CT: control target
= control target key end

     0   :  { %s343_s1 = inlined_call_operand.vmem [shape: bf16[256,128], index: 1, kind: input, shape index: {}]   ;;  %s344_s2 = inlined_call_operand.vmem [shape: f32[1,128], index: 2, kind: input, shape index: {}]   ;;  %s345_s0 = inlined_call_operand.vmem [shape: bf16[8,256], index: 0, kind: input, shape index: {}]   ;;  %s346_s3 = inlined_call_operand.vmem [shape: f32[8,128], index: 3, kind: output, shape index: {}]  }
   0x1   :  { %v256_v0 = vld [vmem:[%s343_s1 + $0x38] sm:$0xff]  ;;  %v255_v2 = vld [vmem:[%s343_s1 + $0x30] sm:$0xff]  ;;  %v254_v4 = vld [vmem:[%s343_s1 + $0x28] sm:$0xff] }
   0x2   :  { %v264_v1 = vld [vmem:[%s343_s1 + $0x78] sm:$0xff]  ;;  %154 = vmatpush.bf16.msra.mxu0 %v256_v0  ;;  %v263_v3 = vld [vmem:[%s343_s1 + $0x70] sm:$0xff]  ;;  %v262_v5 = vld [vmem:[%s343_s1 + $0x68] sm:$0xff] }
   0x3   :  { %167 = vmatpush.bf16.msra.mxu1 %v264_v1  ;;  %v253_v6 = vld [vmem:[%s343_s1 + $0x20] sm:$0xff]  ;;  %v252_v8 = vld [vmem:[%s343_s1 + $0x18] sm:$0xff]  ;;  %v251_v10 = vld [vmem:[%s343_s1 + $0x10] sm:$0xff] }
   0x4   :  { %v261_v7 = vld [vmem:[%s343_s1 + $0x60] sm:$0xff]  ;;  %v260_v9 = vld [vmem:[%s343_s1 + $0x58] sm:$0xff]  ;;  %v259_v11 = vld [vmem:[%s343_s1 + $0x50] sm:$0xff] }
   0x5   :  { %v250_v12 = vld [vmem:[%s343_s1 + $0x8] sm:$0xff]  ;;  %v14_v14 = vld [vmem:[%s345_s0] sm:$0xff] }
   0x6   :  { %155 = vmatpush.bf16.msra.mxu0 %v255_v2  ;;  %v258_v13 = vld [vmem:[%s343_s1 + $0x48] sm:$0xff]  ;;  %v52_v15 = vunpack.c.l.b16 %v14_v14  ;;  %v53_v16 = vunpack.c.h.b16 %v14_v14  ;;  %v249_v17 = vld [vmem:[%s343_s1] sm:$0xff] }
   0x7   :  { %168 = vmatpush.bf16.msra.mxu1 %v263_v3  ;;  %v257_v18 = vld [vmem:[%s343_s1 + $0x40] sm:$0xff] }
   0x8   :  { %v54_v19 = vpack.c.b16 %v52_v15, %v52_v15  ;;  %v55_v20 = vpack.c.b16 %v53_v16, %v53_v16  ;;  %v265_v21 = vld [vmem:[%s344_s2] ss:$0 sm:$0xff] }
   0xa   :  { %156 = vmatpush.bf16.msra.mxu0 %v254_v4 }
   0xb   :  { %169 = vmatpush.bf16.msra.mxu1 %v262_v5 }
   0xe   :  { %157 = vmatpush.bf16.msra.mxu0 %v253_v6 }
   0xf   :  { %170 = vmatpush.bf16.msra.mxu1 %v261_v7 }
  0x12   :  { %158 = vmatpush.bf16.msra.mxu0 %v252_v8 }
  0x13   :  { %171 = vmatpush.bf16.msra.mxu1 %v260_v9 }
  0x16   :  { %159 = vmatpush.bf16.msra.mxu0 %v251_v10 }
  0x17   :  { %172 = vmatpush.bf16.msra.mxu1 %v259_v11 }
  0x1a   :  { %160 = vmatpush.bf16.msra.mxu0 %v250_v12 }
  0x1b   :  { %173 = vmatpush.bf16.msra.mxu1 %v258_v13 }
  0x1e   :  { %161 = vmatpush.bf16.msra.mxu0 %v249_v17 }
  0x1f   :  { %174 = vmatpush.bf16.msra.mxu1 %v257_v18 }
  0x21   :  { %162 = vmatmul.bf16.vlgmr.msra.gmra.mxu0 %v54_v19 }
  0x22   :  { %175 = vmatmul.bf16.vlgmr.msra.gmra.mxu1 %v55_v20 }
  0x9e   :  { %v163_v22 = vpop.f32.mrf.mxu0 }
  0x9f   :  { %v176_v23 = vpop.f32.mrf.mxu1  ;;  %v164_v24 = vadd.f32 %v265_v21, %v163_v22 }
  0xa1   :  { %v177_v25 = vadd.f32 %v176_v23, %v164_v24 }
  0xa3   :  { %180 = vst [vmem:[%s346_s3] sm:$0xff] %v177_v25 }
  0xa6   :  { %v165_v26 = vpop.f32.mrf.mxu0 }
  0xa7   :  { %v178_v27 = vpop.f32.mrf.mxu1 }

// kernel: vae_forward.21
= control target key start
LH: loop header
LB: loop body
LE: loop exit
PB: predicated region body
PF: predicated region fallthrough
CT: control target
= control target key end

     0   :  { %v18_v16 = vlaneseq  ;;  %s381_s2 = inlined_call_operand.vmem [shape: bf16[128,256], index: 2, kind: input, shape index: {}]   ;;  %s382_s0 = inlined_call_operand.vmem [shape: f32[8,128], index: 0, kind: input, shape index: {}]   ;;  %s383_s1 = inlined_call_operand.vmem [shape: f32[8,128], index: 1, kind: input, shape index: {}]   ;;  %s384_s3 = inlined_call_operand.vmem [shape: f32[1,256], index: 3, kind: input, shape index: {}]   ;;  %s385_s4 = inlined_call_operand.vmem [shape: bf16[8,256], index: 4, kind: output, shape index: {}]  }
   0x1   :  { %v222_v0 = vld [vmem:[%s381_s2 + $0x70] sm:$0xf]  ;;  %v243_v1 = vld [vmem:[%s381_s2 + $0x74] sm:$0xf0]  ;;  %v242_v2 = vld [vmem:[%s381_s2 + $0x74] sm:$0xf] }
   0x2   :  { %v223_v3 = vor.u32 %v243_v1, %v222_v0  ;;  %v224_v4 = vld [vmem:[%s381_s2 + $0x78] sm:$0xf0]  ;;  %v214_v5 = vld [vmem:[%s381_s2 + $0x60] sm:$0xf]  ;;  %v241_v6 = vld [vmem:[%s381_s2 + $0x64] sm:$0xf0] }
   0x3   :  { %v227_v7 = vor.u32 %v242_v2, %v224_v4  ;;  %v240_v8 = vld [vmem:[%s381_s2 + $0x64] sm:$0xf]  ;;  %v216_v9 = vld [vmem:[%s381_s2 + $0x68] sm:$0xf0]  ;;  %v215_v10 = vor.u32 %v241_v6, %v214_v5  ;;  %v206_v12 = vld [vmem:[%s381_s2 + $0x50] sm:$0xf] }
   0x4   :  { %132 = vmatpush.bf16.msra.mxu0 %v223_v3  ;;  %v219_v11 = vor.u32 %v240_v8, %v216_v9  ;;  %v239_v13 = vld [vmem:[%s381_s2 + $0x54] sm:$0xf0]  ;;  %v238_v14 = vld [vmem:[%s381_s2 + $0x54] sm:$0xf]  ;;  %v208_v15 = vld [vmem:[%s381_s2 + $0x58] sm:$0xf0] }
   0x5   :  { %145 = vmatpush.bf16.msra.mxu1 %v227_v7  ;;  %v207_v17 = vor.u32 %v239_v13, %v206_v12  ;;  %v211_v18 = vor.u32 %v238_v14, %v208_v15  ;;  %v198_v19 = vld [vmem:[%s381_s2 + $0x40] sm:$0xf]  ;;  %v237_v20 = vld [vmem:[%s381_s2 + $0x44] sm:$0xf0]  ;;  %v236_v21 = vld [vmem:[%s381_s2 + $0x44] sm:$0xf] }
   0x6   :  { %v200_v22 = vld [vmem:[%s381_s2 + $0x48] sm:$0xf0]  ;;  %v17_v23 = vld [vmem:[%s382_s0] sm:$0xff]  ;;  %v19_v24 = vand.u32 127, %v18_v16  ;;  %v199_v25 = vor.u32 %v237_v20, %v198_v19  ;;  %v190_v27 = vld [vmem:[%s381_s2 + $0x30] sm:$0xf] }
   0x7   :  { %v203_v26 = vor.u32 %v236_v21, %v200_v22  ;;  %v235_v28 = vld [vmem:[%s381_s2 + $0x34] sm:$0xf0]  ;;  %v234_v29 = vld [vmem:[%s381_s2 + $0x34] sm:$0xf]  ;;  %v192_v30 = vld [vmem:[%s381_s2 + $0x38] sm:$0xf0] }
   0x8   :  { %133 = vmatpush.bf16.msra.mxu0 %v215_v10  ;;  %vm20_vm0 = vcmp.lt.s32.totalorder %v19_v24, 4  ;;  %v191_v33 = vor.u32 %v235_v28, %v190_v27  ;;  %v195_v34 = vor.u32 %v234_v29, %v192_v30  ;;  %v182_v35 = vld [vmem:[%s381_s2 + $0x20] sm:$0xf]  ;;  %v233_v36 = vld [vmem:[%s381_s2 + $0x24] sm:$0xf0] }
   0x9   :  { %146 = vmatpush.bf16.msra.mxu1 %v219_v11  ;;  %v22_v31 = vsel %vm20_vm0, 0.0, %v17_v23  ;;  %v232_v38 = vld [vmem:[%s381_s2 + $0x24] sm:$0xf]  ;;  %v184_v39 = vld [vmem:[%s381_s2 + $0x28] sm:$0xf0]  ;;  %v183_v40 = vor.u32 %v233_v36, %v182_v35  ;;  %v21_v52 = vsel %vm20_vm0, %v17_v23, 0.0 }
   0xa   :  { %v24_v32 = vmul.f32 0.5, %v22_v31  ;;  %v187_v41 = vor.u32 %v232_v38, %v184_v39  ;;  %v174_v42 = vld [vmem:[%s381_s2 + $0x10] sm:$0xf]  ;;  %v231_v43 = vld [vmem:[%s381_s2 + $0x14] sm:$0xf0]  ;;  %v23_v46 = vld [vmem:[%s383_s1] sm:$0xff] }
   0xb   :  { %v230_v44 = vld [vmem:[%s381_s2 + $0x14] sm:$0xf]  ;;  %v176_v45 = vld [vmem:[%s381_s2 + $0x18] sm:$0xf0]  ;;  %v175_v47 = vor.u32 %v231_v43, %v174_v42  ;;  %v166_v50 = vld [vmem:[%s381_s2] sm:$0xf] }
   0xc   :  { %134 = vmatpush.bf16.msra.mxu0 %v207_v17  ;;  %v25_v37 = vmul.f32 1.442695, %v24_v32  ;;  %v179_v49 = vor.u32 %v230_v44, %v176_v45  ;;  %v229_v51 = vld [vmem:[%s381_s2 + $0x4] sm:$0xf0]  ;;  %v228_v53 = vld [vmem:[%s381_s2 + $0x4] sm:$0xf] }
   0xd   :  { %147 = vmatpush.bf16.msra.mxu1 %v211_v18  ;;  %v168_v54 = vld [vmem:[%s381_s2 + $0x8] sm:$0xf0]  ;;  %v167_v56 = vor.u32 %v229_v51, %v166_v50  ;;  %v46_v60 = vld [vmem:[%s384_s3] sm:$0x3] }
   0xe   :  { %244 = vpow2.f32 %v25_v37  ;;  %v171_v58 = vor.u32 %v228_v53, %v168_v54  ;;  %v48_v61 = vperm.slane %v46_v60, 0  ;;  %v49_v62 = vperm.slane %v46_v60, 1 }
  0x10   :  { %135 = vmatpush.bf16.msra.mxu0 %v199_v25 }
  0x11   :  { %148 = vmatpush.bf16.msra.mxu1 %v203_v26 }
  0x14   :  { %136 = vmatpush.bf16.msra.mxu0 %v191_v33  ;;  %v245_v48 = vpop.eup %244 }
  0x15   :  { %149 = vmatpush.bf16.msra.mxu1 %v195_v34  ;;  %v27_v55 = vmul.f32 %v245_v48, %v23_v46 }
  0x17   :  { %v28_v57 = vadd.f32 %v27_v55, %v21_v52 }
  0x18   :  { %137 = vmatpush.bf16.msra.mxu0 %v183_v40 }
  0x19   :  { %150 = vmatpush.bf16.msra.mxu1 %v187_v41  ;;  %v29_v59 = vpack.c.bf16 %v28_v57, %v28_v57 }
  0x1c   :  { %138 = vmatpush.bf16.msra.mxu0 %v175_v47 }
  0x1d   :  { %151 = vmatpush.bf16.msra.mxu1 %v179_v49 }
  0x20   :  { %139 = vmatpush.bf16.msra.mxu0 %v167_v56 }
  0x21   :  { %152 = vmatpush.bf16.msra.mxu1 %v171_v58 }
  0x23   :  { %140 = vmatmul.bf16.vlgmr.msra.gmra.mxu0 %v29_v59 }
  0x24   :  { %153 = vmatmul.bf16.vlgmr.msra.gmra.mxu1 %v29_v59 }
  0xa0   :  { %v141_v63 = vpop.f32.mrf.mxu0 }
  0xa1   :  { %v142_v0 = vadd.f32 %v141_v63, %v48_v61  ;;  %v154_v1 = vpop.f32.mrf.mxu1 }
  0xa2   :  { %v155_v2 = vadd.f32 %v154_v1, %v49_v62 }
  0xa4   :  { %v158_v3 = vpack.c.bf16 %v155_v2, %v142_v0 }
  0xa6   :  { %159 = vst [vmem:[%s385_s4] sm:$0xff] %v158_v3 }
  0xa8   :  { %v143_v4 = vpop.f32.mrf.mxu0 }
  0xa9   :  { %v156_v5 = vpop.f32.mrf.mxu1 }

// kernel: tile.33
= control target key start
LH: loop header
LB: loop body
LE: loop exit
PB: predicated region body
PF: predicated region fallthrough
CT: control target
= control target key end

     0   :  { %s22_s0 = inlined_call_operand.vmem [shape: f32[128], index: 0, kind: input, shape index: {}]   ;;  %s23_s1 = inlined_call_operand.vmem [shape: f32[4,128], index: 1, kind: output, shape index: {}]  }
   0x1   :  { %v4_v0 = vld [vmem:[%s22_s0] ss:$0 sm:$0xff] }
   0x2   :  { %5 = vst [vmem:[%s23_s1] sm:$0xf] %v4_v0 }

// kernel: vae_forward.18
= control target key start
LH: loop header
LB: loop body
LE: loop exit
PB: predicated region body
PF: predicated region fallthrough
CT: control target
= control target key end

     0   :  { %vm1166_vm0 = vcmask 1040384   ;;  %s2875_s1 = inlined_call_operand.vmem [shape: bf16[1152,256], index: 1, kind: input, shape index: {}]   ;;  %s2876_s0 = inlined_call_operand.vmem [shape: bf16[8,1152], index: 0, kind: input, shape index: {}]   ;;  %s2877_s2 = inlined_call_operand.vmem [shape: bf16[8,256], index: 2, kind: output, shape index: {0}]   ;;  %s2878_s3 = inlined_call_operand.vmem [shape: f32[1,1,256], index: 3, kind: output, shape index: {1}]   ;;  %s2879_s4 = inlined_call_operand.vmem [shape: f32[1,1,256], index: 4, kind: output, shape index: {2}]  }
   0x1   :  { %v1264_v0 = vld [vmem:[%s2875_s1 + $0x70] sm:$0xf]  ;;  %v1797_v1 = vld [vmem:[%s2875_s1 + $0x74] sm:$0xf0]  ;;  %v1256_v11 = vld [vmem:[%s2875_s1 + $0x60] sm:$0xf] }
   0x2   :  { %v1328_v2 = vld [vmem:[%s2875_s1 + $0xf0] sm:$0xf]  ;;  %v1265_v3 = vor.u32 %v1797_v1, %v1264_v0  ;;  %v1813_v4 = vld [vmem:[%s2875_s1 + $0xf4] sm:$0xf0]  ;;  %v1795_v13 = vld [vmem:[%s2875_s1 + $0x64] sm:$0xf0] }
   0x3   :  { %v1392_v5 = vld [vmem:[%s2875_s1 + $0x170] sm:$0xf]  ;;  %v1829_v6 = vld [vmem:[%s2875_s1 + $0x174] sm:$0xf0]  ;;  %v1329_v7 = vor.u32 %v1813_v4, %v1328_v2  ;;  %v1320_v14 = vld [vmem:[%s2875_s1 + $0xe0] sm:$0xf]  ;;  %v1257_v16 = vor.u32 %v1795_v13, %v1256_v11 }
   0x4   :  { %v1393_v8 = vor.u32 %v1829_v6, %v1392_v5  ;;  %v1456_v9 = vld [vmem:[%s2875_s1 + $0x1f0] sm:$0xf]  ;;  %v1845_v10 = vld [vmem:[%s2875_s1 + $0x1f4] sm:$0xf0]  ;;  %915 = vmatpush.bf16.msra.mxu0 %v1265_v3  ;;  %v1811_v15 = vld [vmem:[%s2875_s1 + $0xe4] sm:$0xf0] }
   0x5   :  { %v1457_v12 = vor.u32 %v1845_v10, %v1456_v9  ;;  %928 = vmatpush.bf16.msra.mxu1 %v1329_v7  ;;  %v1321_v17 = vor.u32 %v1811_v15, %v1320_v14  ;;  %v1384_v18 = vld [vmem:[%s2875_s1 + $0x160] sm:$0xf]  ;;  %v1827_v19 = vld [vmem:[%s2875_s1 + $0x164] sm:$0xf0]  ;;  %v1248_v23 = vld [vmem:[%s2875_s1 + $0x50] sm:$0xf] }
   0x6   :  { %941 = vmatpush.bf16.msra.mxu2 %v1393_v8  ;;  %v1448_v20 = vld [vmem:[%s2875_s1 + $0x1e0] sm:$0xf]  ;;  %v1385_v21 = vor.u32 %v1827_v19, %v1384_v18  ;;  %v1843_v22 = vld [vmem:[%s2875_s1 + $0x1e4] sm:$0xf0]  ;;  %v1793_v24 = vld [vmem:[%s2875_s1 + $0x54] sm:$0xf0] }
   0x7   :  { %954 = vmatpush.bf16.msra.mxu3 %v1457_v12  ;;  %v1449_v25 = vor.u32 %v1843_v22, %v1448_v20  ;;  %v1312_v26 = vld [vmem:[%s2875_s1 + $0xd0] sm:$0xf]  ;;  %v1809_v27 = vld [vmem:[%s2875_s1 + $0xd4] sm:$0xf0]  ;;  %v1249_v29 = vor.u32 %v1793_v24, %v1248_v23  ;;  %v1240_v35 = vld [vmem:[%s2875_s1 + $0x40] sm:$0xf] }
   0x8   :  { %v1376_v28 = vld [vmem:[%s2875_s1 + $0x150] sm:$0xf]  ;;  %916 = vmatpush.bf16.msra.mxu0 %v1257_v16  ;;  %v1825_v30 = vld [vmem:[%s2875_s1 + $0x154] sm:$0xf0]  ;;  %v1313_v33 = vor.u32 %v1809_v27, %v1312_v26  ;;  %v1791_v36 = vld [vmem:[%s2875_s1 + $0x44] sm:$0xf0] }
   0x9   :  { %v1440_v31 = vld [vmem:[%s2875_s1 + $0x1d0] sm:$0xf]  ;;  %v1841_v32 = vld [vmem:[%s2875_s1 + $0x1d4] sm:$0xf0]  ;;  %929 = vmatpush.bf16.msra.mxu1 %v1321_v17  ;;  %v1377_v34 = vor.u32 %v1825_v30, %v1376_v28  ;;  %v1304_v37 = vld [vmem:[%s2875_s1 + $0xc0] sm:$0xf]  ;;  %v1241_v44 = vor.u32 %v1791_v36, %v1240_v35 }
   0xa   :  { %942 = vmatpush.bf16.msra.mxu2 %v1385_v21  ;;  %v1441_v38 = vor.u32 %v1841_v32, %v1440_v31  ;;  %v1807_v39 = vld [vmem:[%s2875_s1 + $0xc4] sm:$0xf0]  ;;  %v1368_v40 = vld [vmem:[%s2875_s1 + $0x140] sm:$0xf]  ;;  %v1232_v47 = vld [vmem:[%s2875_s1 + $0x30] sm:$0xf] }
   0xb   :  { %955 = vmatpush.bf16.msra.mxu3 %v1449_v25  ;;  %v1823_v41 = vld [vmem:[%s2875_s1 + $0x144] sm:$0xf0]  ;;  %v1432_v42 = vld [vmem:[%s2875_s1 + $0x1c0] sm:$0xf]  ;;  %v1305_v45 = vor.u32 %v1807_v39, %v1304_v37  ;;  %v1789_v48 = vld [vmem:[%s2875_s1 + $0x34] sm:$0xf0] }
   0xc   :  { %v1839_v43 = vld [vmem:[%s2875_s1 + $0x1c4] sm:$0xf0]  ;;  %917 = vmatpush.bf16.msra.mxu0 %v1249_v29  ;;  %v1369_v46 = vor.u32 %v1823_v41, %v1368_v40  ;;  %v1296_v49 = vld [vmem:[%s2875_s1 + $0xb0] sm:$0xf]  ;;  %v1805_v51 = vld [vmem:[%s2875_s1 + $0xb4] sm:$0xf0]  ;;  %v1233_v56 = vor.u32 %v1789_v48, %v1232_v47 }
   0xd   :  { %930 = vmatpush.bf16.msra.mxu1 %v1313_v33  ;;  %v1433_v50 = vor.u32 %v1839_v43, %v1432_v42  ;;  %v1360_v52 = vld [vmem:[%s2875_s1 + $0x130] sm:$0xf]  ;;  %v1821_v53 = vld [vmem:[%s2875_s1 + $0x134] sm:$0xf0]  ;;  %v1297_v57 = vor.u32 %v1805_v51, %v1296_v49  ;;  %v1224_v59 = vld [vmem:[%s2875_s1 + $0x20] sm:$0xf] }
   0xe   :  { %943 = vmatpush.bf16.msra.mxu2 %v1377_v34  ;;  %v1424_v54 = vld [vmem:[%s2875_s1 + $0x1b0] sm:$0xf]  ;;  %v1837_v55 = vld [vmem:[%s2875_s1 + $0x1b4] sm:$0xf0]  ;;  %v1361_v58 = vor.u32 %v1821_v53, %v1360_v52  ;;  %v1787_v60 = vld [vmem:[%s2875_s1 + $0x24] sm:$0xf0] }
   0xf   :  { %956 = vmatpush.bf16.msra.mxu3 %v1441_v38  ;;  %v1288_v61 = vld [vmem:[%s2875_s1 + $0xa0] sm:$0xf]  ;;  %v1425_v62 = vor.u32 %v1837_v55, %v1424_v54  ;;  %v1803_v63 = vld [vmem:[%s2875_s1 + $0xa4] sm:$0xf0]  ;;  %v1225_v4 = vor.u32 %v1787_v60, %v1224_v59  ;;  %v1216_v7 = vld [vmem:[%s2875_s1 + $0x10] sm:$0xf] }
  0x10   :  { %918 = vmatpush.bf16.msra.mxu0 %v1241_v44  ;;  %v1352_v0 = vld [vmem:[%s2875_s1 + $0x120] sm:$0xf]  ;;  %v1819_v1 = vld [vmem:[%s2875_s1 + $0x124] sm:$0xf0]  ;;  %v1289_v5 = vor.u32 %v1803_v63, %v1288_v61  ;;  %v1785_v8 = vld [vmem:[%s2875_s1 + $0x14] sm:$0xf0] }
  0x11   :  { %931 = vmatpush.bf16.msra.mxu1 %v1305_v45  ;;  %v1416_v2 = vld [vmem:[%s2875_s1 + $0x1a0] sm:$0xf]  ;;  %v1835_v3 = vld [vmem:[%s2875_s1 + $0x1a4] sm:$0xf0]  ;;  %v1353_v6 = vor.u32 %v1819_v1, %v1352_v0  ;;  %v1280_v9 = vld [vmem:[%s2875_s1 + $0x90] sm:$0xf]  ;;  %v1217_v16 = vor.u32 %v1785_v8, %v1216_v7 }
  0x12   :  { %944 = vmatpush.bf16.msra.mxu2 %v1369_v46  ;;  %v1417_v10 = vor.u32 %v1835_v3, %v1416_v2  ;;  %v1801_v11 = vld [vmem:[%s2875_s1 + $0x94] sm:$0xf0]  ;;  %v1344_v12 = vld [vmem:[%s2875_s1 + $0x110] sm:$0xf]  ;;  %v1208_v17 = vld [vmem:[%s2875_s1] sm:$0xf] }
  0x13   :  { %957 = vmatpush.bf16.msra.mxu3 %v1433_v50  ;;  %v1817_v13 = vld [vmem:[%s2875_s1 + $0x114] sm:$0xf0]  ;;  %v1408_v14 = vld [vmem:[%s2875_s1 + $0x190] sm:$0xf]  ;;  %v1783_v18 = vld [vmem:[%s2875_s1 + $0x4] sm:$0xf0]  ;;  %v1281_v19 = vor.u32 %v1801_v11, %v1280_v9 }
  0x14   :  { %919 = vmatpush.bf16.msra.mxu0 %v1233_v56  ;;  %v1833_v15 = vld [vmem:[%s2875_s1 + $0x194] sm:$0xf0]  ;;  %v1345_v20 = vor.u32 %v1817_v13, %v1344_v12  ;;  %v1272_v21 = vld [vmem:[%s2875_s1 + $0x80] sm:$0xf]  ;;  %v1799_v22 = vld [vmem:[%s2875_s1 + $0x84] sm:$0xf0]  ;;  %v1209_v31 = vor.u32 %v1783_v18, %v1208_v17 }
  0x15   :  { %932 = vmatpush.bf16.msra.mxu1 %v1297_v57  ;;  %v1336_v23 = vld [vmem:[%s2875_s1 + $0x100] sm:$0xf]  ;;  %v1409_v24 = vor.u32 %v1833_v15, %v1408_v14  ;;  %v1815_v25 = vld [vmem:[%s2875_s1 + $0x104] sm:$0xf0]  ;;  %v1520_v26 = vld [vmem:[%s2875_s1 + $0x270] sm:$0xf]  ;;  %v1273_v35 = vor.u32 %v1799_v22, %v1272_v21 }
  0x16   :  { %945 = vmatpush.bf16.msra.mxu2 %v1361_v58  ;;  %v1861_v27 = vld [vmem:[%s2875_s1 + $0x274] sm:$0xf0]  ;;  %v1584_v28 = vld [vmem:[%s2875_s1 + $0x2f0] sm:$0xf]  ;;  %v1400_v33 = vld [vmem:[%s2875_s1 + $0x180] sm:$0xf]  ;;  %v1337_v36 = vor.u32 %v1815_v25, %v1336_v23 }
  0x17   :  { %958 = vmatpush.bf16.msra.mxu3 %v1425_v62  ;;  %v1877_v29 = vld [vmem:[%s2875_s1 + $0x2f4] sm:$0xf0]  ;;  %v1648_v30 = vld [vmem:[%s2875_s1 + $0x370] sm:$0xf]  ;;  %v1831_v34 = vld [vmem:[%s2875_s1 + $0x184] sm:$0xf0]  ;;  %v1521_v39 = vor.u32 %v1861_v27, %v1520_v26 }
  0x18   :  { %920 = vmatpush.bf16.msra.mxu0 %v1225_v4  ;;  %v1893_v32 = vld [vmem:[%s2875_s1 + $0x374] sm:$0xf0]  ;;  %v1712_v37 = vld [vmem:[%s2875_s1 + $0x3f0] sm:$0xf]  ;;  %v1585_v40 = vor.u32 %v1877_v29, %v1584_v28  ;;  %v1512_v41 = vld [vmem:[%s2875_s1 + $0x260] sm:$0xf]  ;;  %v1401_v43 = vor.u32 %v1831_v34, %v1400_v33 }
  0x19   :  { %933 = vmatpush.bf16.msra.mxu1 %v1289_v5  ;;  %v1909_v38 = vld [vmem:[%s2875_s1 + $0x3f4] sm:$0xf0]  ;;  %v1649_v42 = vor.u32 %v1893_v32, %v1648_v30  ;;  %v1859_v44 = vld [vmem:[%s2875_s1 + $0x264] sm:$0xf0]  ;;  %v1576_v45 = vld [vmem:[%s2875_s1 + $0x2e0] sm:$0xf] }
  0x1a   :  { %946 = vmatpush.bf16.msra.mxu2 %v1353_v6  ;;  %v1875_v46 = vld [vmem:[%s2875_s1 + $0x2e4] sm:$0xf0]  ;;  %v1713_v47 = vor.u32 %v1909_v38, %v1712_v37  ;;  %v1640_v48 = vld [vmem:[%s2875_s1 + $0x360] sm:$0xf]  ;;  %v1513_v52 = vor.u32 %v1859_v44, %v1512_v41  ;;  %v1504_v54 = vld [vmem:[%s2875_s1 + $0x250] sm:$0xf] }
  0x1b   :  { %959 = vmatpush.bf16.msra.mxu3 %v1417_v10  ;;  %v1891_v49 = vld [vmem:[%s2875_s1 + $0x364] sm:$0xf0]  ;;  %v1704_v50 = vld [vmem:[%s2875_s1 + $0x3e0] sm:$0xf]  ;;  %v1577_v53 = vor.u32 %v1875_v46, %v1576_v45  ;;  %v1857_v55 = vld [vmem:[%s2875_s1 + $0x254] sm:$0xf0] }
  0x1c   :  { %921 = vmatpush.bf16.msra.mxu0 %v1217_v16  ;;  %v1907_v51 = vld [vmem:[%s2875_s1 + $0x3e4] sm:$0xf0]  ;;  %v1641_v57 = vor.u32 %v1891_v49, %v1640_v48  ;;  %v1568_v58 = vld [vmem:[%s2875_s1 + $0x2d0] sm:$0xf]  ;;  %v1873_v59 = vld [vmem:[%s2875_s1 + $0x2d4] sm:$0xf0]  ;;  %v1505_v4 = vor.u32 %v1857_v55, %v1504_v54 }
  0x1d   :  { %934 = vmatpush.bf16.msra.mxu1 %v1281_v19  ;;  %v15_v56 = vld [vmem:[%s2876_s0 + $0x8] sm:$0xff]  ;;  %v14_v61 = vld [vmem:[%s2876_s0] sm:$0xff]  ;;  %v1705_v63 = vor.u32 %v1907_v51, %v1704_v50  ;;  %v1632_v0 = vld [vmem:[%s2875_s1 + $0x350] sm:$0xf]  ;;  %v1569_v9 = vor.u32 %v1873_v59, %v1568_v58 }
  0x1e   :  { %947 = vmatpush.bf16.msra.mxu2 %v1345_v20  ;;  %v170_v60 = vunpack.c.l.b16 %v15_v56  ;;  %v171_v62 = vunpack.c.h.b16 %v15_v56  ;;  %v1889_v1 = vld [vmem:[%s2875_s1 + $0x354] sm:$0xf0]  ;;  %v168_v2 = vunpack.c.l.b16 %v14_v61  ;;  %v169_v3 = vunpack.c.h.b16 %v14_v61  ;;  %v1696_v5 = vld [vmem:[%s2875_s1 + $0x3d0] sm:$0xf]  ;;  %v1496_v10 = vld [vmem:[%s2875_s1 + $0x240] sm:$0xf] }
  0x1f   :  { %960 = vmatpush.bf16.msra.mxu3 %v1409_v24  ;;  %v1905_v6 = vld [vmem:[%s2875_s1 + $0x3d4] sm:$0xf0]  ;;  %v1633_v13 = vor.u32 %v1889_v1, %v1632_v0  ;;  %v1855_v14 = vld [vmem:[%s2875_s1 + $0x244] sm:$0xf0]  ;;  %v1560_v15 = vld [vmem:[%s2875_s1 + $0x2c0] sm:$0xf] }
  0x20   :  { %922 = vmatpush.bf16.msra.mxu0 %v1209_v31  ;;  %v2221_v7 = vpack.c.b16 %v170_v60, %v170_v60  ;;  %v2223_v8 = vpack.c.b16 %v171_v62, %v171_v62  ;;  %v2228_v11 = vpack.c.b16 %v168_v2, %v168_v2  ;;  %v2230_v12 = vpack.c.b16 %v169_v3, %v169_v3  ;;  %v1871_v16 = vld [vmem:[%s2875_s1 + $0x2c4] sm:$0xf0]  ;;  %v1624_v18 = vld [vmem:[%s2875_s1 + $0x340] sm:$0xf]  ;;  %v1488_v24 = vld [vmem:[%s2875_s1 + $0x230] sm:$0xf] }
  0x21   :  { %935 = vmatpush.bf16.msra.mxu1 %v1273_v35  ;;  %v1697_v17 = vor.u32 %v1905_v6, %v1696_v5  ;;  %v1887_v19 = vld [vmem:[%s2875_s1 + $0x344] sm:$0xf0]  ;;  %v1688_v20 = vld [vmem:[%s2875_s1 + $0x3c0] sm:$0xf]  ;;  %v1497_v22 = vor.u32 %v1855_v14, %v1496_v10  ;;  %v1561_v23 = vor.u32 %v1871_v16, %v1560_v15  ;;  %v1853_v26 = vld [vmem:[%s2875_s1 + $0x234] sm:$0xf0] }
  0x22   :  { %948 = vmatpush.bf16.msra.mxu2 %v1337_v36  ;;  %v1903_v21 = vld [vmem:[%s2875_s1 + $0x3c4] sm:$0xf0]  ;;  %v1625_v25 = vor.u32 %v1887_v19, %v1624_v18  ;;  %v1552_v27 = vld [vmem:[%s2875_s1 + $0x2b0] sm:$0xf]  ;;  %v1869_v28 = vld [vmem:[%s2875_s1 + $0x2b4] sm:$0xf0]  ;;  %v1489_v34 = vor.u32 %v1853_v26, %v1488_v24 }
  0x23   :  { %961 = vmatpush.bf16.msra.mxu3 %v1401_v43  ;;  %923 = vmatmul.bf16.vlgmr.msra.gmra.mxu0 %v2228_v11  ;;  %v1689_v29 = vor.u32 %v1903_v21, %v1688_v20  ;;  %v1616_v30 = vld [vmem:[%s2875_s1 + $0x330] sm:$0xf]  ;;  %v1885_v31 = vld [vmem:[%s2875_s1 + $0x334] sm:$0xf0]  ;;  %v1553_v35 = vor.u32 %v1869_v28, %v1552_v27  ;;  %v1480_v36 = vld [vmem:[%s2875_s1 + $0x220] sm:$0xf] }
  0x24   :  { %967 = vmatpush.bf16.msrb.mxu0 %v1521_v39  ;;  %936 = vmatmul.bf16.vlgmr.msra.gmra.mxu1 %v2230_v12  ;;  %v1680_v32 = vld [vmem:[%s2875_s1 + $0x3b0] sm:$0xf]  ;;  %v1901_v33 = vld [vmem:[%s2875_s1 + $0x3b4] sm:$0xf0]  ;;  %v1617_v37 = vor.u32 %v1885_v31, %v1616_v30  ;;  %v1851_v38 = vld [vmem:[%s2875_s1 + $0x224] sm:$0xf0] }
  0x25   :  { %980 = vmatpush.bf16.msrb.mxu1 %v1585_v40  ;;  %949 = vmatmul.bf16.vlgmr.msra.gmra.mxu2 %v2221_v7  ;;  %v1544_v39 = vld [vmem:[%s2875_s1 + $0x2a0] sm:$0xf]  ;;  %v1867_v40 = vld [vmem:[%s2875_s1 + $0x2a4] sm:$0xf0]  ;;  %v1681_v41 = vor.u32 %v1901_v33, %v1680_v32  ;;  %v1481_v46 = vor.u32 %v1851_v38, %v1480_v36  ;;  %v1472_v48 = vld [vmem:[%s2875_s1 + $0x210] sm:$0xf] }
  0x26   :  { %993 = vmatpush.bf16.msrb.mxu2 %v1649_v42  ;;  %962 = vmatmul.bf16.vlgmr.msra.gmra.mxu3 %v2223_v8  ;;  %v1608_v42 = vld [vmem:[%s2875_s1 + $0x320] sm:$0xf]  ;;  %v1883_v43 = vld [vmem:[%s2875_s1 + $0x324] sm:$0xf0]  ;;  %v1849_v50 = vld [vmem:[%s2875_s1 + $0x214] sm:$0xf0] }
  0x27   :  { %1006 = vmatpush.bf16.msrb.mxu3 %v1713_v47  ;;  %v1672_v44 = vld [vmem:[%s2875_s1 + $0x3a0] sm:$0xf]  ;;  %v1899_v45 = vld [vmem:[%s2875_s1 + $0x3a4] sm:$0xf0]  ;;  %v1545_v47 = vor.u32 %v1867_v40, %v1544_v39  ;;  %v1609_v49 = vor.u32 %v1883_v43, %v1608_v42  ;;  %v1536_v51 = vld [vmem:[%s2875_s1 + $0x290] sm:$0xf]  ;;  %v1473_v60 = vor.u32 %v1849_v50, %v1472_v48 }
  0x28   :  { %968 = vmatpush.bf16.msrb.mxu0 %v1513_v52  ;;  %v1865_v52 = vld [vmem:[%s2875_s1 + $0x294] sm:$0xf0]  ;;  %v1600_v54 = vld [vmem:[%s2875_s1 + $0x310] sm:$0xf]  ;;  %v1464_v58 = vld [vmem:[%s2875_s1 + $0x200] sm:$0xf] }
  0x29   :  { %981 = vmatpush.bf16.msrb.mxu1 %v1577_v53  ;;  %v1673_v53 = vor.u32 %v1899_v45, %v1672_v44  ;;  %v1881_v55 = vld [vmem:[%s2875_s1 + $0x314] sm:$0xf0]  ;;  %v1664_v56 = vld [vmem:[%s2875_s1 + $0x390] sm:$0xf]  ;;  %v1847_v59 = vld [vmem:[%s2875_s1 + $0x204] sm:$0xf0]  ;;  %v1537_v61 = vor.u32 %v1865_v52, %v1536_v51 }
  0x2a   :  { %994 = vmatpush.bf16.msrb.mxu2 %v1641_v57  ;;  %v1897_v57 = vld [vmem:[%s2875_s1 + $0x394] sm:$0xf0]  ;;  %v1528_v62 = vld [vmem:[%s2875_s1 + $0x280] sm:$0xf]  ;;  %v16_v0 = vld [vmem:[%s2876_s0 + $0x10] sm:$0xff]  ;;  %v1601_v1 = vor.u32 %v1881_v55, %v1600_v54 }
  0x2b   :  { %1007 = vmatpush.bf16.msrb.mxu3 %v1705_v63  ;;  %v1863_v63 = vld [vmem:[%s2875_s1 + $0x284] sm:$0xf0]  ;;  %v1592_v2 = vld [vmem:[%s2875_s1 + $0x300] sm:$0xf]  ;;  %v1665_v5 = vor.u32 %v1897_v57, %v1664_v56  ;;  %v1776_v6 = vld [vmem:[%s2875_s1 + $0x470] sm:$0xf]  ;;  %v172_v16 = vunpack.c.l.b16 %v16_v0  ;;  %v173_v26 = vunpack.c.h.b16 %v16_v0 }
  0x2c   :  { %969 = vmatpush.bf16.msrb.mxu0 %v1505_v4  ;;  %v1879_v3 = vld [vmem:[%s2875_s1 + $0x304] sm:$0xf0]  ;;  %v17_v4 = vld [vmem:[%s2876_s0 + $0x18] sm:$0xff]  ;;  %v1796_v10 = vld [vmem:[%s2875_s1 + $0x74] sm:$0xf]  ;;  %v1529_v18 = vor.u32 %v1863_v63, %v1528_v62 }
  0x2d   :  { %982 = vmatpush.bf16.msrb.mxu1 %v1569_v9  ;;  %v1925_v9 = vld [vmem:[%s2875_s1 + $0x474] sm:$0xf0]  ;;  %v1812_v14 = vld [vmem:[%s2875_s1 + $0xf4] sm:$0xf]  ;;  %v1330_v15 = vld [vmem:[%s2875_s1 + $0xf8] sm:$0xf0]  ;;  %v174_v21 = vunpack.c.l.b16 %v17_v4  ;;  %v2401_v36 = vpack.c.b16 %v172_v16, %v172_v16  ;;  %v2411_v43 = vpack.c.b16 %v173_v26, %v173_v26 }
  0x2e   :  { %995 = vmatpush.bf16.msrb.mxu2 %v1633_v13  ;;  %v1266_v13 = vld [vmem:[%s2875_s1 + $0x78] sm:$0xf0]  ;;  %v1656_v19 = vld [vmem:[%s2875_s1 + $0x380] sm:$0xf]  ;;  %v1895_v20 = vld [vmem:[%s2875_s1 + $0x384] sm:$0xf0]  ;;  %v1333_v28 = vor.u32 %v1812_v14, %v1330_v15 }
  0x2f   :  { %1008 = vmatpush.bf16.msrb.mxu3 %v1697_v17  ;;  %v1465_v17 = vor.u32 %v1847_v59, %v1464_v58  ;;  %v1828_v24 = vld [vmem:[%s2875_s1 + $0x174] sm:$0xf]  ;;  %v1269_v27 = vor.u32 %v1796_v10, %v1266_v13  ;;  %v1923_v30 = vld [vmem:[%s2875_s1 + $0x464] sm:$0xf0]  ;;  %v1794_v31 = vld [vmem:[%s2875_s1 + $0x64] sm:$0xf]  ;;  %v1657_v32 = vor.u32 %v1895_v20, %v1656_v19  ;;  %v2403_v39 = vpack.c.b16 %v174_v21, %v174_v21 }
  0x30   :  { %970 = vmatpush.bf16.msrb.mxu0 %v1497_v22  ;;  %v1593_v22 = vor.u32 %v1879_v3, %v1592_v2  ;;  %v1258_v33 = vld [vmem:[%s2875_s1 + $0x68] sm:$0xf0]  ;;  %v1792_v48 = vld [vmem:[%s2875_s1 + $0x54] sm:$0xf]  ;;  %v1250_v50 = vld [vmem:[%s2875_s1 + $0x58] sm:$0xf0] }
  0x31   :  { %983 = vmatpush.bf16.msrb.mxu1 %v1561_v23  ;;  %v1777_v23 = vor.u32 %v1925_v9, %v1776_v6  ;;  %v1386_v42 = vld [vmem:[%s2875_s1 + $0x168] sm:$0xf0]  ;;  %v1261_v44 = vor.u32 %v1794_v31, %v1258_v33  ;;  %v1808_v51 = vld [vmem:[%s2875_s1 + $0xd4] sm:$0xf]  ;;  %v1314_v52 = vld [vmem:[%s2875_s1 + $0xd8] sm:$0xf0]  ;;  %v1253_v57 = vor.u32 %v1792_v48, %v1250_v50 }
  0x32   :  { %996 = vmatpush.bf16.msrb.mxu2 %v1625_v25  ;;  %v1394_v25 = vld [vmem:[%s2875_s1 + $0x178] sm:$0xf0]  ;;  %v1824_v55 = vld [vmem:[%s2875_s1 + $0x154] sm:$0xf]  ;;  %v1317_v58 = vor.u32 %v1808_v51, %v1314_v52  ;;  %v1752_v59 = vld [vmem:[%s2875_s1 + $0x440] sm:$0xf] }
  0x33   :  { %1009 = vmatpush.bf16.msrb.mxu3 %v1689_v29  ;;  %v1768_v29 = vld [vmem:[%s2875_s1 + $0x460] sm:$0xf]  ;;  %v1397_v38 = vor.u32 %v1828_v24, %v1394_v25  ;;  %v1378_v56 = vld [vmem:[%s2875_s1 + $0x158] sm:$0xf0]  ;;  %v1242_v62 = vld [vmem:[%s2875_s1 + $0x48] sm:$0xf0] }
  0x34   :  { %971 = vmatpush.bf16.msrb.mxu0 %v1489_v34  ;;  %v1810_v34 = vld [vmem:[%s2875_s1 + $0xe4] sm:$0xf]  ;;  %v1769_v40 = vor.u32 %v1923_v30, %v1768_v29  ;;  %v1306_v0 = vld [vmem:[%s2875_s1 + $0xc8] sm:$0xf0]  ;;  %v1744_v9 = vld [vmem:[%s2875_s1 + $0x430] sm:$0xf] }
  0x35   :  { %984 = vmatpush.bf16.msrb.mxu1 %v1553_v35  ;;  %v1322_v35 = vld [vmem:[%s2875_s1 + $0xe8] sm:$0xf0]  ;;  %v1806_v63 = vld [vmem:[%s2875_s1 + $0xc4] sm:$0xf]  ;;  %v1917_v10 = vld [vmem:[%s2875_s1 + $0x434] sm:$0xf0] }
  0x36   :  { %997 = vmatpush.bf16.msrb.mxu2 %v1617_v37  ;;  %v175_v37 = vunpack.c.h.b16 %v17_v4  ;;  %v1325_v45 = vor.u32 %v1810_v34, %v1322_v35  ;;  %v1822_v3 = vld [vmem:[%s2875_s1 + $0x144] sm:$0xf]  ;;  %v1370_v4 = vld [vmem:[%s2875_s1 + $0x148] sm:$0xf0]  ;;  %v1309_v6 = vor.u32 %v1806_v63, %v1306_v0  ;;  %v1788_v13 = vld [vmem:[%s2875_s1 + $0x34] sm:$0xf] }
  0x37   :  { %1010 = vmatpush.bf16.msrb.mxu3 %v1681_v41  ;;  %v1826_v41 = vld [vmem:[%s2875_s1 + $0x164] sm:$0xf]  ;;  %v1234_v14 = vld [vmem:[%s2875_s1 + $0x38] sm:$0xf0]  ;;  %v1804_v15 = vld [vmem:[%s2875_s1 + $0xb4] sm:$0xf] }
  0x38   :  { %972 = vmatpush.bf16.msrb.mxu0 %v1481_v46  ;;  %v1760_v46 = vld [vmem:[%s2875_s1 + $0x450] sm:$0xf]  ;;  %v1298_v16 = vld [vmem:[%s2875_s1 + $0xb8] sm:$0xf0]  ;;  %v1820_v19 = vld [vmem:[%s2875_s1 + $0x134] sm:$0xf]  ;;  %v1237_v21 = vor.u32 %v1788_v13, %v1234_v14 }
  0x39   :  { %985 = vmatpush.bf16.msrb.mxu1 %v1545_v47  ;;  %v1921_v47 = vld [vmem:[%s2875_s1 + $0x454] sm:$0xf0]  ;;  %v1362_v20 = vld [vmem:[%s2875_s1 + $0x138] sm:$0xf0]  ;;  %v1915_v24 = vld [vmem:[%s2875_s1 + $0x424] sm:$0xf0] }
  0x3a   :  { %998 = vmatpush.bf16.msrb.mxu2 %v1609_v49  ;;  %v2423_v49 = vpack.c.b16 %v175_v37, %v175_v37  ;;  %v1761_v54 = vor.u32 %v1921_v47, %v1760_v46  ;;  %v1786_v25 = vld [vmem:[%s2875_s1 + $0x24] sm:$0xf]  ;;  %v1226_v26 = vld [vmem:[%s2875_s1 + $0x28] sm:$0xf0]  ;;  %v1365_v29 = vor.u32 %v1820_v19, %v1362_v20  ;;  %v1728_v35 = vld [vmem:[%s2875_s1 + $0x410] sm:$0xf] }
  0x3b   :  { %1011 = vmatpush.bf16.msrb.mxu3 %v1673_v53  ;;  %v1389_v53 = vor.u32 %v1826_v41, %v1386_v42  ;;  %v1818_v31 = vld [vmem:[%s2875_s1 + $0x124] sm:$0xf]  ;;  %v1229_v33 = vor.u32 %v1786_v25, %v1226_v26  ;;  %v1913_v37 = vld [vmem:[%s2875_s1 + $0x414] sm:$0xf0]  ;;  %v1800_v41 = vld [vmem:[%s2875_s1 + $0x94] sm:$0xf] }
  0x3c   :  { %973 = vmatpush.bf16.msrb.mxu0 %v1473_v60  ;;  %v1919_v60 = vld [vmem:[%s2875_s1 + $0x444] sm:$0xf0]  ;;  %v1282_v42 = vld [vmem:[%s2875_s1 + $0x98] sm:$0xf0]  ;;  %v1729_v46 = vor.u32 %v1913_v37, %v1728_v35  ;;  %v1720_v48 = vld [vmem:[%s2875_s1 + $0x400] sm:$0xf] }
  0x3d   :  { %986 = vmatpush.bf16.msrb.mxu1 %v1537_v61  ;;  %v1790_v61 = vld [vmem:[%s2875_s1 + $0x44] sm:$0xf]  ;;  %v1753_v2 = vor.u32 %v1919_v60, %v1752_v59  ;;  %v1346_v47 = vld [vmem:[%s2875_s1 + $0x118] sm:$0xf0]  ;;  %v18_v50 = vld [vmem:[%s2876_s0 + $0x20] sm:$0xf]  ;;  %v1285_v52 = vor.u32 %v1800_v41, %v1282_v42 }
  0x3e   :  { %999 = vmatpush.bf16.msrb.mxu2 %v1601_v1  ;;  %v1381_v1 = vor.u32 %v1824_v55, %v1378_v56  ;;  %v1210_v55 = vld [vmem:[%s2875_s1 + $0x8] sm:$0xf0]  ;;  %v1798_v56 = vld [vmem:[%s2875_s1 + $0x84] sm:$0xf]  ;;  %v1458_v60 = vld [vmem:[%s2875_s1 + $0x1f8] sm:$0xf0]  ;;  %v176_v63 = vunpack.c.l.b16 %v18_v50 }
  0x3f   :  { %1012 = vmatpush.bf16.msrb.mxu3 %v1665_v5  ;;  %v1245_v5 = vor.u32 %v1790_v61, %v1242_v62  ;;  %v1860_v61 = vld [vmem:[%s2875_s1 + $0x274] sm:$0xf]  ;;  %v1522_v62 = vld [vmem:[%s2875_s1 + $0x278] sm:$0xf0]  ;;  %v1858_v19 = vld [vmem:[%s2875_s1 + $0x264] sm:$0xf] }
  0x40   :  { %974 = vmatpush.bf16.msrb.mxu0 %v1465_v17  ;;  %v1373_v17 = vor.u32 %v1822_v3, %v1370_v4  ;;  %v1892_v13 = vld [vmem:[%s2875_s1 + $0x374] sm:$0xf]  ;;  %v1650_v14 = vld [vmem:[%s2875_s1 + $0x378] sm:$0xf0]  ;;  %v1514_v20 = vld [vmem:[%s2875_s1 + $0x268] sm:$0xf0] }
  0x41   :  { %987 = vmatpush.bf16.msrb.mxu1 %v1529_v18  ;;  %v1745_v18 = vor.u32 %v1917_v10, %v1744_v9  ;;  %v1525_v10 = vor.u32 %v1860_v61, %v1522_v62  ;;  %v1517_v26 = vor.u32 %v1858_v19, %v1514_v20  ;;  %v1570_v35 = vld [vmem:[%s2875_s1 + $0x2d8] sm:$0xf0]  ;;  %v1888_v41 = vld [vmem:[%s2875_s1 + $0x354] sm:$0xf] }
  0x42   :  { %1000 = vmatpush.bf16.msrb.mxu2 %v1593_v22  ;;  %v1301_v22 = vor.u32 %v1804_v15, %v1298_v16  ;;  %v1842_v15 = vld [vmem:[%s2875_s1 + $0x1e4] sm:$0xf]  ;;  %v1634_v42 = vld [vmem:[%s2875_s1 + $0x358] sm:$0xf0]  ;;  %v1832_v19 = vld [vmem:[%s2875_s1 + $0x194] sm:$0xf] }
  0x43   :  { %1013 = vmatpush.bf16.msrb.mxu3 %v1657_v32  ;;  %975 = vmatmul.bf16.vlgmr.msrb.gmra.mxu0 %v2401_v36  ;;  %v1354_v32 = vld [vmem:[%s2875_s1 + $0x128] sm:$0xf0]  ;;  %v1637_v50 = vor.u32 %v1888_v41, %v1634_v42  ;;  %v1714_v41 = vld [vmem:[%s2875_s1 + $0x3f8] sm:$0xf0] }
  0x44   :  { %1019 = vmatpush.bf16.msra.mxu0 %v1777_v23  ;;  %988 = vmatmul.bf16.vlgmr.msrb.gmra.mxu1 %v2411_v43  ;;  %v1736_v23 = vld [vmem:[%s2875_s1 + $0x420] sm:$0xf] }
  0x45   :  { %1032 = vmatpush.bf16.msra.mxu1 %v1269_v27  ;;  %1001 = vmatmul.bf16.vlgmr.msrb.gmra.mxu2 %v2403_v39  ;;  %v1802_v27 = vld [vmem:[%s2875_s1 + $0xa4] sm:$0xf]  ;;  %v1737_v30 = vor.u32 %v1915_v24, %v1736_v23  ;;  %v1578_v23 = vld [vmem:[%s2875_s1 + $0x2e8] sm:$0xf0]  ;;  %v1653_v24 = vor.u32 %v1892_v13, %v1650_v14 }
  0x46   :  { %1045 = vmatpush.bf16.msra.mxu2 %v1333_v28  ;;  %1014 = vmatmul.bf16.vlgmr.msrb.gmra.mxu3 %v2423_v49  ;;  %v1290_v28 = vld [vmem:[%s2875_s1 + $0xa8] sm:$0xf0] }
  0x47   :  { %1058 = vmatpush.bf16.msra.mxu3 %v1397_v38  ;;  %v1293_v34 = vor.u32 %v1802_v27, %v1290_v28  ;;  %v1784_v38 = vld [vmem:[%s2875_s1 + $0x14] sm:$0xf]  ;;  %v1890_v27 = vld [vmem:[%s2875_s1 + $0x364] sm:$0xf]  ;;  %v1642_v28 = vld [vmem:[%s2875_s1 + $0x368] sm:$0xf0] }
  0x48   :  { %1020 = vmatpush.bf16.msra.mxu0 %v1769_v40  ;;  %v1218_v40 = vld [vmem:[%s2875_s1 + $0x18] sm:$0xf0]  ;;  %v1645_v37 = vor.u32 %v1890_v27, %v1642_v28  ;;  %v1880_v27 = vld [vmem:[%s2875_s1 + $0x314] sm:$0xf] }
  0x49   :  { %1033 = vmatpush.bf16.msra.mxu1 %v1261_v44  ;;  %v1357_v44 = vor.u32 %v1818_v31, %v1354_v32  ;;  %v1221_v51 = vor.u32 %v1784_v38, %v1218_v40  ;;  %v1442_v31 = vld [vmem:[%s2875_s1 + $0x1d8] sm:$0xf0]  ;;  %v1856_v32 = vld [vmem:[%s2875_s1 + $0x254] sm:$0xf] }
  0x4a   :  { %1046 = vmatpush.bf16.msra.mxu2 %v1325_v45  ;;  %v1816_v45 = vld [vmem:[%s2875_s1 + $0x114] sm:$0xf] }
  0x4b   :  { %1059 = vmatpush.bf16.msra.mxu3 %v1389_v53  ;;  %v1911_v53 = vld [vmem:[%s2875_s1 + $0x404] sm:$0xf0]  ;;  %v1349_v59 = vor.u32 %v1816_v45, %v1346_v47  ;;  %v1854_v45 = vld [vmem:[%s2875_s1 + $0x244] sm:$0xf] }
  0x4c   :  { %1021 = vmatpush.bf16.msra.mxu0 %v1761_v54  ;;  %v1782_v54 = vld [vmem:[%s2875_s1 + $0x4] sm:$0xf]  ;;  %v1721_v0 = vor.u32 %v1911_v53, %v1720_v48  ;;  %v1562_v48 = vld [vmem:[%s2875_s1 + $0x2c8] sm:$0xf0] }
  0x4d   :  { %1034 = vmatpush.bf16.msra.mxu1 %v1253_v57  ;;  %v1274_v57 = vld [vmem:[%s2875_s1 + $0x88] sm:$0xf0]  ;;  %v1213_v3 = vor.u32 %v1782_v54, %v1210_v55  ;;  %v1870_v47 = vld [vmem:[%s2875_s1 + $0x2c4] sm:$0xf]  ;;  %v1836_v54 = vld [vmem:[%s2875_s1 + $0x1b4] sm:$0xf] }
  0x4e   :  { %1047 = vmatpush.bf16.msra.mxu2 %v1317_v58  ;;  %v1844_v58 = vld [vmem:[%s2875_s1 + $0x1f4] sm:$0xf]  ;;  %v1277_v4 = vor.u32 %v1798_v56, %v1274_v57  ;;  %v1886_v53 = vld [vmem:[%s2875_s1 + $0x344] sm:$0xf]  ;;  %v1565_v55 = vor.u32 %v1870_v47, %v1562_v48  ;;  %v1426_v56 = vld [vmem:[%s2875_s1 + $0x1b8] sm:$0xf0] }
  0x4f   :  { %1060 = vmatpush.bf16.msra.mxu3 %v1381_v1  ;;  %v1876_v1 = vld [vmem:[%s2875_s1 + $0x2f4] sm:$0xf]  ;;  %v1461_v9 = vor.u32 %v1844_v58, %v1458_v60  ;;  %v1490_v58 = vld [vmem:[%s2875_s1 + $0x238] sm:$0xf0]  ;;  %v1429_v62 = vor.u32 %v1836_v54, %v1426_v56  ;;  %v1594_v47 = vld [vmem:[%s2875_s1 + $0x308] sm:$0xf0] }
  0x50   :  { %1022 = vmatpush.bf16.msra.mxu0 %v1753_v2  ;;  %v1586_v2 = vld [vmem:[%s2875_s1 + $0x2f8] sm:$0xf0]  ;;  %v1852_v57 = vld [vmem:[%s2875_s1 + $0x234] sm:$0xf]  ;;  %v1922_v54 = vld [vmem:[%s2875_s1 + $0x464] sm:$0xf] }
  0x51   :  { %1035 = vmatpush.bf16.msra.mxu1 %v1245_v5  ;;  %v1814_v5 = vld [vmem:[%s2875_s1 + $0x104] sm:$0xf]  ;;  %v1589_v16 = vor.u32 %v1876_v1, %v1586_v2  ;;  %v1554_v60 = vld [vmem:[%s2875_s1 + $0x2b8] sm:$0xf0] }
  0x52   :  { %1048 = vmatpush.bf16.msra.mxu2 %v1309_v6  ;;  %v1338_v6 = vld [vmem:[%s2875_s1 + $0x108] sm:$0xf0]  ;;  %v1618_v1 = vld [vmem:[%s2875_s1 + $0x338] sm:$0xf0]  ;;  %v1834_v2 = vld [vmem:[%s2875_s1 + $0x1a4] sm:$0xf] }
  0x53   :  { %1061 = vmatpush.bf16.msra.mxu3 %v1373_v17  ;;  %v2593_v17 = vpack.c.b16 %v176_v63, %v176_v63  ;;  %v1493_v63 = vor.u32 %v1852_v57, %v1490_v58  ;;  %v1904_v58 = vld [vmem:[%s2875_s1 + $0x3d4] sm:$0xf] }
  0x54   :  { %1023 = vmatpush.bf16.msra.mxu0 %v1745_v18  ;;  %v1450_v18 = vld [vmem:[%s2875_s1 + $0x1e8] sm:$0xf0] }
  0x55   :  { %1036 = vmatpush.bf16.msra.mxu1 %v1237_v21  ;;  %v1341_v21 = vor.u32 %v1814_v5, %v1338_v6  ;;  %v1453_v25 = vor.u32 %v1842_v15, %v1450_v18  ;;  %v1850_v5 = vld [vmem:[%s2875_s1 + $0x224] sm:$0xf]  ;;  %v1482_v6 = vld [vmem:[%s2875_s1 + $0x228] sm:$0xf0] }
  0x56   :  { %1049 = vmatpush.bf16.msra.mxu2 %v1301_v22  ;;  %v1874_v22 = vld [vmem:[%s2875_s1 + $0x2e4] sm:$0xf]  ;;  %v1485_v15 = vor.u32 %v1850_v5, %v1482_v6  ;;  %v1610_v18 = vld [vmem:[%s2875_s1 + $0x328] sm:$0xf0]  ;;  %v1746_v5 = vld [vmem:[%s2875_s1 + $0x438] sm:$0xf0] }
  0x57   :  { %1062 = vmatpush.bf16.msra.mxu3 %v1365_v29  ;;  %v1840_v29 = vld [vmem:[%s2875_s1 + $0x1d4] sm:$0xf] }
  0x58   :  { %1024 = vmatpush.bf16.msra.mxu0 %v1737_v30  ;;  %v1581_v30 = vor.u32 %v1874_v22, %v1578_v23  ;;  %v1445_v38 = vor.u32 %v1840_v29, %v1442_v31  ;;  %v1848_v22 = vld [vmem:[%s2875_s1 + $0x214] sm:$0xf]  ;;  %v1474_v23 = vld [vmem:[%s2875_s1 + $0x218] sm:$0xf0]  ;;  %v1830_v31 = vld [vmem:[%s2875_s1 + $0x184] sm:$0xf] }
  0x59   :  { %1037 = vmatpush.bf16.msra.mxu1 %v1229_v33  ;;  %v1506_v33 = vld [vmem:[%s2875_s1 + $0x258] sm:$0xf0]  ;;  %v1477_v29 = vor.u32 %v1848_v22, %v1474_v23 }
  0x5a   :  { %1050 = vmatpush.bf16.msra.mxu2 %v1293_v34  ;;  %v1872_v34 = vld [vmem:[%s2875_s1 + $0x2d4] sm:$0xf]  ;;  %v1509_v40 = vor.u32 %v1856_v32, %v1506_v33  ;;  %v1402_v32 = vld [vmem:[%s2875_s1 + $0x188] sm:$0xf0]  ;;  %v1730_v22 = vld [vmem:[%s2875_s1 + $0x418] sm:$0xf0] }
  0x5b   :  { %1063 = vmatpush.bf16.msra.mxu3 %v1357_v44  ;;  %v1573_v44 = vor.u32 %v1872_v34, %v1570_v35  ;;  %v1846_v34 = vld [vmem:[%s2875_s1 + $0x204] sm:$0xf]  ;;  %v1466_v35 = vld [vmem:[%s2875_s1 + $0x208] sm:$0xf0] }
  0x5c   :  { %1025 = vmatpush.bf16.msra.mxu0 %v1729_v46  ;;  %v1498_v46 = vld [vmem:[%s2875_s1 + $0x248] sm:$0xf0] }
  0x5d   :  { %1038 = vmatpush.bf16.msra.mxu1 %v1221_v51 }
  0x5e   :  { %1051 = vmatpush.bf16.msra.mxu2 %v1285_v52  ;;  %v1501_v52 = vor.u32 %v1854_v45, %v1498_v46  ;;  %v1469_v45 = vor.u32 %v1846_v34, %v1466_v35  ;;  %v1878_v46 = vld [vmem:[%s2875_s1 + $0x304] sm:$0xf] }
  0x5f   :  { %1064 = vmatpush.bf16.msra.mxu3 %v1349_v59  ;;  %v1868_v59 = vld [vmem:[%s2875_s1 + $0x2b4] sm:$0xf] }
  0x60   :  { %1026 = vmatpush.bf16.msra.mxu0 %v1721_v0  ;;  %v1884_v0 = vld [vmem:[%s2875_s1 + $0x334] sm:$0xf] }
  0x61   :  { %1039 = vmatpush.bf16.msra.mxu1 %v1213_v3  ;;  %v1557_v3 = vor.u32 %v1868_v59, %v1554_v60  ;;  %v1621_v13 = vor.u32 %v1884_v0, %v1618_v1  ;;  %v1698_v59 = vld [vmem:[%s2875_s1 + $0x3d8] sm:$0xf0]  ;;  %v1920_v60 = vld [vmem:[%s2875_s1 + $0x454] sm:$0xf]  ;;  %v1690_v0 = vld [vmem:[%s2875_s1 + $0x3c8] sm:$0xf0] }
  0x62   :  { %1052 = vmatpush.bf16.msra.mxu2 %v1277_v4  ;;  %v1418_v4 = vld [vmem:[%s2875_s1 + $0x1a8] sm:$0xf0] }
  0x63   :  { %1027 = vmatmul.bf16.vlgmr.msra.gmra.mxu0 %v2593_v17  ;;  %1065 = vmatpush.bf16.msra.mxu3 %v1341_v21  ;;  %v1421_v14 = vor.u32 %v1834_v2, %v1418_v4  ;;  %v1410_v21 = vld [vmem:[%s2875_s1 + $0x198] sm:$0xf0]  ;;  %v1900_v2 = vld [vmem:[%s2875_s1 + $0x3b4] sm:$0xf] }
  0x64   :  { %1071 = vmatpush.bf16.msrb.mxu0 %v1461_v9  ;;  %1040 = vmatmul.bf16.vlgmr.msra.gmra.mxu1 %v2228_v11  ;;  %v1434_v11 = vld [vmem:[%s2875_s1 + $0x1c8] sm:$0xf0]  ;;  %v1866_v9 = vld [vmem:[%s2875_s1 + $0x2a4] sm:$0xf]  ;;  %v1413_v28 = vor.u32 %v1832_v19, %v1410_v21  ;;  %v1916_v4 = vld [vmem:[%s2875_s1 + $0x434] sm:$0xf] }
  0x65   :  { %1084 = vmatpush.bf16.msrb.mxu1 %v1525_v10  ;;  %1053 = vmatmul.bf16.vlgmr.msra.gmra.mxu2 %v2230_v12  ;;  %v1838_v12 = vld [vmem:[%s2875_s1 + $0x1c4] sm:$0xf]  ;;  %v1546_v10 = vld [vmem:[%s2875_s1 + $0x2a8] sm:$0xf0]  ;;  %v1896_v19 = vld [vmem:[%s2875_s1 + $0x394] sm:$0xf] }
  0x66   :  { %1097 = vmatpush.bf16.msrb.mxu2 %v1589_v16  ;;  %1066 = vmatmul.bf16.vlgmr.msra.gmra.mxu3 %v2221_v7  ;;  %v1437_v51 = vor.u32 %v1838_v12, %v1434_v11  ;;  %v1626_v7 = vld [vmem:[%s2875_s1 + $0x348] sm:$0xf0]  ;;  %v1882_v16 = vld [vmem:[%s2875_s1 + $0x324] sm:$0xf]  ;;  %v1549_v20 = vor.u32 %v1866_v9, %v1546_v10  ;;  %v1924_v12 = vld [vmem:[%s2875_s1 + $0x474] sm:$0xf]  ;;  %v1405_v11 = vor.u32 %v1830_v31, %v1402_v32 }
  0x67   :  { %1110 = vmatpush.bf16.msrb.mxu3 %v1653_v24  ;;  %v1629_v61 = vor.u32 %v1886_v53, %v1626_v7  ;;  %v1864_v24 = vld [vmem:[%s2875_s1 + $0x294] sm:$0xf]  ;;  %v1706_v53 = vld [vmem:[%s2875_s1 + $0x3e8] sm:$0xf0]  ;;  %v1597_v7 = vor.u32 %v1878_v46, %v1594_v47  ;;  %v1749_v9 = vor.u32 %v1916_v4, %v1746_v5  ;;  %v1898_v10 = vld [vmem:[%s2875_s1 + $0x3a4] sm:$0xf] }
  0x68   :  { %1072 = vmatpush.bf16.msrb.mxu0 %v1453_v25  ;;  %v1538_v25 = vld [vmem:[%s2875_s1 + $0x298] sm:$0xf0]  ;;  %v1912_v21 = vld [vmem:[%s2875_s1 + $0x414] sm:$0xf] }
  0x69   :  { %1085 = vmatpush.bf16.msrb.mxu1 %v1517_v26  ;;  %v1613_v26 = vor.u32 %v1882_v16, %v1610_v18  ;;  %v1541_v33 = vor.u32 %v1864_v24, %v1538_v25  ;;  %v1733_v24 = vor.u32 %v1912_v21, %v1730_v22  ;;  %v1894_v25 = vld [vmem:[%s2875_s1 + $0x384] sm:$0xf] }
  0x6a   :  { %1098 = vmatpush.bf16.msrb.mxu2 %v1581_v30  ;;  %v1602_v30 = vld [vmem:[%s2875_s1 + $0x318] sm:$0xf0] }
  0x6b   :  { %1111 = vmatpush.bf16.msrb.mxu3 %v1645_v37  ;;  %v1862_v37 = vld [vmem:[%s2875_s1 + $0x284] sm:$0xf]  ;;  %v1605_v42 = vor.u32 %v1880_v27, %v1602_v30 }
  0x6c   :  { %1073 = vmatpush.bf16.msrb.mxu0 %v1445_v38  ;;  %v1530_v38 = vld [vmem:[%s2875_s1 + $0x288] sm:$0xf0]  ;;  %v1910_v27 = vld [vmem:[%s2875_s1 + $0x404] sm:$0xf] }
  0x6d   :  { %1086 = vmatpush.bf16.msrb.mxu1 %v1509_v40  ;;  %v1908_v40 = vld [vmem:[%s2875_s1 + $0x3f4] sm:$0xf]  ;;  %v1533_v48 = vor.u32 %v1862_v37, %v1530_v38 }
  0x6e   :  { %1099 = vmatpush.bf16.msrb.mxu2 %v1573_v44  ;;  %v1778_v44 = vld [vmem:[%s2875_s1 + $0x478] sm:$0xf0] }
  0x6f   :  { %1112 = vmatpush.bf16.msrb.mxu3 %v1637_v50  ;;  %v1717_v50 = vor.u32 %v1908_v40, %v1714_v41 }
  0x70   :  { %1074 = vmatpush.bf16.msrb.mxu0 %v1437_v51  ;;  %v1781_v51 = vor.u32 %v1924_v12, %v1778_v44 }
  0x71   :  { %1087 = vmatpush.bf16.msrb.mxu1 %v1501_v52  ;;  %v1906_v52 = vld [vmem:[%s2875_s1 + $0x3e4] sm:$0xf] }
  0x72   :  { %1100 = vmatpush.bf16.msrb.mxu2 %v1565_v55  ;;  %v1770_v55 = vld [vmem:[%s2875_s1 + $0x468] sm:$0xf0]  ;;  %v1709_v56 = vor.u32 %v1906_v52, %v1706_v53 }
  0x73   :  { %1113 = vmatpush.bf16.msrb.mxu3 %v1629_v61  ;;  %v1773_v57 = vor.u32 %v1922_v54, %v1770_v55  ;;  %v1762_v61 = vld [vmem:[%s2875_s1 + $0x458] sm:$0xf0] }
  0x74   :  { %1075 = vmatpush.bf16.msrb.mxu0 %v1429_v62  ;;  %v1701_v62 = vor.u32 %v1904_v58, %v1698_v59 }
  0x75   :  { %1088 = vmatpush.bf16.msrb.mxu1 %v1493_v63  ;;  %v1765_v63 = vor.u32 %v1920_v60, %v1762_v61 }
  0x76   :  { %1101 = vmatpush.bf16.msrb.mxu2 %v1557_v3  ;;  %v1682_v3 = vld [vmem:[%s2875_s1 + $0x3b8] sm:$0xf0] }
  0x77   :  { %1114 = vmatpush.bf16.msrb.mxu3 %v1621_v13  ;;  %v1685_v6 = vor.u32 %v1900_v2, %v1682_v3  ;;  %v1674_v13 = vld [vmem:[%s2875_s1 + $0x3a8] sm:$0xf0] }
  0x78   :  { %1076 = vmatpush.bf16.msrb.mxu0 %v1421_v14  ;;  %v1914_v14 = vld [vmem:[%s2875_s1 + $0x424] sm:$0xf]  ;;  %v1677_v16 = vor.u32 %v1898_v10, %v1674_v13 }
  0x79   :  { %1089 = vmatpush.bf16.msrb.mxu1 %v1485_v15  ;;  %v1738_v15 = vld [vmem:[%s2875_s1 + $0x428] sm:$0xf0] }
  0x7a   :  { %1102 = vmatpush.bf16.msrb.mxu2 %v1549_v20  ;;  %v1741_v18 = vor.u32 %v1914_v14, %v1738_v15  ;;  %v1666_v20 = vld [vmem:[%s2875_s1 + $0x398] sm:$0xf0] }
  0x7b   :  { %1115 = vmatpush.bf16.msrb.mxu3 %v1613_v26  ;;  %v1669_v23 = vor.u32 %v1896_v19, %v1666_v20  ;;  %v1658_v26 = vld [vmem:[%s2875_s1 + $0x388] sm:$0xf0] }
  0x7c   :  { %1077 = vmatpush.bf16.msrb.mxu0 %v1413_v28  ;;  %v1722_v28 = vld [vmem:[%s2875_s1 + $0x408] sm:$0xf0] }
  0x7d   :  { %1090 = vmatpush.bf16.msrb.mxu1 %v1477_v29  ;;  %v1661_v29 = vor.u32 %v1894_v25, %v1658_v26  ;;  %v1725_v30 = vor.u32 %v1910_v27, %v1722_v28 }
  0x7e   :  { %1103 = vmatpush.bf16.msrb.mxu2 %v1541_v33 }
  0x7f   :  { %1116 = vmatpush.bf16.msrb.mxu3 %v1605_v42 }
  0x80   :  { %1078 = vmatpush.bf16.msrb.mxu0 %v1405_v11 }
  0x81   :  { %1091 = vmatpush.bf16.msrb.mxu1 %v1469_v45 }
  0x82   :  { %1104 = vmatpush.bf16.msrb.mxu2 %v1533_v48 }
  0x83   :  { %1117 = vmatpush.bf16.msrb.mxu3 %v1597_v7  ;;  %1079 = vmatmul.bf16.vlgmr.msrb.gmra.mxu0 %v2223_v8  ;;  %v1902_v8 = vld [vmem:[%s2875_s1 + $0x3c4] sm:$0xf] }
  0x84   :  { %1123 = vmatpush.bf16.msra.mxu0 %v1717_v50  ;;  %1092 = vmatmul.bf16.vlgmr.msrb.gmra.mxu1 %v2401_v36  ;;  %v1754_v36 = vld [vmem:[%s2875_s1 + $0x448] sm:$0xf0]  ;;  %v1693_v1 = vor.u32 %v1902_v8, %v1690_v0 }
  0x85   :  { %1136 = vmatpush.bf16.msra.mxu1 %v1781_v51  ;;  %1105 = vmatmul.bf16.vlgmr.msrb.gmra.mxu2 %v2411_v43  ;;  %v1918_v43 = vld [vmem:[%s2875_s1 + $0x444] sm:$0xf] }
  0x86   :  { %1118 = vmatmul.bf16.vlgmr.msrb.gmra.mxu3 %v2403_v39  ;;  %v1757_v39 = vor.u32 %v1918_v43, %v1754_v36 }
  0x88   :  { %1124 = vmatpush.bf16.msra.mxu0 %v1709_v56 }
  0x89   :  { %1137 = vmatpush.bf16.msra.mxu1 %v1773_v57 }
  0x8c   :  { %1125 = vmatpush.bf16.msra.mxu0 %v1701_v62 }
  0x8d   :  { %1138 = vmatpush.bf16.msra.mxu1 %v1765_v63 }
  0x90   :  { %1126 = vmatpush.bf16.msra.mxu0 %v1693_v1 }
  0x91   :  { %1139 = vmatpush.bf16.msra.mxu1 %v1757_v39 }
  0x94   :  { %1127 = vmatpush.bf16.msra.mxu0 %v1685_v6 }
  0x95   :  { %1140 = vmatpush.bf16.msra.mxu1 %v1749_v9 }
  0x98   :  { %1128 = vmatpush.bf16.msra.mxu0 %v1677_v16 }
  0x99   :  { %1141 = vmatpush.bf16.msra.mxu1 %v1741_v18 }
  0x9c   :  { %1129 = vmatpush.bf16.msra.mxu0 %v1669_v23 }
  0x9d   :  { %1142 = vmatpush.bf16.msra.mxu1 %v1733_v24 }
  0xa0   :  { %1130 = vmatpush.bf16.msra.mxu0 %v1661_v29  ;;  %v924_v31 = vpop.f32.mrf.mxu0 }
  0xa1   :  { %1143 = vmatpush.bf16.msra.mxu1 %v1725_v30  ;;  %v937_v32 = vpop.f32.mrf.mxu1 }
  0xa2   :  { %v938_v33 = vadd.f32 %v937_v32, %v924_v31 }
  0xa3   :  { %1131 = vmatmul.bf16.vlgmr.msra.gmra.mxu0 %v2423_v49 }
  0xa4   :  { %1144 = vmatmul.bf16.vlgmr.msra.gmra.mxu1 %v2593_v17 }
  0xa8   :  { %v950_v35 = vpop.f32.mrf.mxu2  ;;  %v926_v40 = vpop.f32.mrf.mxu0 }
  0xa9   :  { %v963_v34 = vpop.f32.mrf.mxu3  ;;  %v951_v37 = vadd.f32 %v950_v35, %v938_v33  ;;  %v939_v41 = vpop.f32.mrf.mxu1 }
  0xaa   :  { %v1169_v41 = vlaneseq }
  0xab   :  { %v964_v38 = vadd.f32 %v963_v34, %v951_v37 }
  0xac   :  { %vm1171_vm1 = vcmp.lt.s32.totalorder %v1169_v41, 256 }
  0xb0   :  { %v952_v12 = vpop.f32.mrf.mxu2 }
  0xb1   :  { %v965_v42 = vpop.f32.mrf.mxu3 }
  0xc0   :  { %v976_v44 = vpop.f32.mrf.mxu0 }
  0xc1   :  { %v977_v11 = vadd.f32 %v976_v44, %v964_v38  ;;  %v989_v45 = vpop.f32.mrf.mxu1 }
  0xc3   :  { %v990_v46 = vadd.f32 %v989_v45, %v977_v11 }
  0xc8   :  { %v1002_v47 = vpop.f32.mrf.mxu2  ;;  %v978_v49 = vpop.f32.mrf.mxu0 }
  0xc9   :  { %v1003_v48 = vadd.f32 %v1002_v47, %v990_v46  ;;  %v1015_v50 = vpop.f32.mrf.mxu3  ;;  %v991_v17 = vpop.f32.mrf.mxu1 }
  0xcb   :  { %v1016_v51 = vadd.f32 %v1015_v50, %v1003_v48 }
  0xd0   :  { %v1004_v52 = vpop.f32.mrf.mxu2 }
  0xd1   :  { %v1017_v53 = vpop.f32.mrf.mxu3 }
  0xe0   :  { %v1028_v7 = vpop.f32.mrf.mxu0 }
  0xe1   :  { %v1041_v54 = vpop.f32.mrf.mxu1  ;;  %v1029_v4 = vadd.f32 %v1028_v7, %v1016_v51 }
  0xe3   :  { %v1174_v6 = vmul.f32 %v1029_v4, %v1029_v4  ;;  %v1151_v10 = vrot.slane %v1029_v4, 4 }
  0xe5   :  { %v1176_v13 = vrot.slane %v1174_v6, 4  ;;  %v1152_v16 = vadd.f32 %v1151_v10, %v1029_v4 }
  0xe7   :  { %v1177_v20 = vadd.f32 %v1176_v13, %v1174_v6  ;;  %v1153_v22 = vrot.slane %v1152_v16, 2 }
  0xe8   :  { %v1054_v55 = vpop.f32.mrf.mxu2  ;;  %v1030_v56 = vpop.f32.mrf.mxu0 }
  0xe9   :  { %v1067_v57 = vpop.f32.mrf.mxu3  ;;  %v1043_v58 = vpop.f32.mrf.mxu1  ;;  %v1055_v8 = vadd.f32 %v1054_v55, %v1041_v54  ;;  %v1178_v26 = vrot.slane %v1177_v20, 2  ;;  %v1154_v30 = vadd.f32 %v1153_v22, %v1152_v16 }
  0xeb   :  { %v1068_v1 = vadd.f32 %v1067_v57, %v1055_v8  ;;  %v1179_v34 = vadd.f32 %v1178_v26, %v1177_v20  ;;  %v1155_v38 = vrot.slane %v1154_v30, 1 }
  0xed   :  { %v1180_v12 = vrot.slane %v1179_v34, 1  ;;  %v1156_v45 = vadd.f32 %v1155_v38, %v1154_v30 }
  0xef   :  { %v1181_v48 = vadd.f32 %v1180_v12, %v1179_v34 }
  0xf0   :  { %v1056_v59 = vpop.f32.mrf.mxu2 }
  0xf1   :  { %v1069_v60 = vpop.f32.mrf.mxu3 }
 0x100   :  { %v1080_v61 = vpop.f32.mrf.mxu0 }
 0x101   :  { %v1093_v62 = vpop.f32.mrf.mxu1  ;;  %v1081_v2 = vadd.f32 %v1080_v61, %v1068_v1 }
 0x103   :  { %v1094_v5 = vadd.f32 %v1093_v62, %v1081_v2 }
 0x108   :  { %v1106_v63 = vpop.f32.mrf.mxu2  ;;  %v1082_v0 = vpop.f32.mrf.mxu0 }
 0x109   :  { %v1119_v43 = vpop.f32.mrf.mxu3  ;;  %v1095_v36 = vpop.f32.mrf.mxu1  ;;  %v1107_v9 = vadd.f32 %v1106_v63, %v1094_v5 }
 0x10b   :  { %v1120_v14 = vadd.f32 %v1119_v43, %v1107_v9 }
 0x110   :  { %v1108_v39 = vpop.f32.mrf.mxu2 }
 0x111   :  { %v1121_v3 = vpop.f32.mrf.mxu3 }
 0x120   :  { %v1132_v15 = vpop.f32.mrf.mxu0 }
 0x121   :  { %v1133_v18 = vadd.f32 %v1132_v15, %v1120_v14  ;;  %v1145_v19 = vpop.f32.mrf.mxu1 }
 0x123   :  { %v1146_v21 = vadd.f32 %v1145_v19, %v1133_v18 }
 0x125   :  { %v1149_v23 = vpack.c.bf16 %v1146_v21, %v1029_v4  ;;  %v1157_v24 = vrot.slane %v1146_v21, 4  ;;  %v1175_v25 = vmul.f32 %v1146_v21, %v1146_v21 }
 0x127   :  { %1150 = vst [vmem:[%s2877_s2] sm:$0xff] %v1149_v23  ;;  %v1158_v27 = vadd.f32 %v1157_v24, %v1146_v21  ;;  %v1182_v28 = vrot.slane %v1175_v25, 4 }
 0x128   :  { %v1134_v29 = vpop.f32.mrf.mxu0 }
 0x129   :  { %v1159_v31 = vrot.slane %v1158_v27, 2  ;;  %v1183_v32 = vadd.f32 %v1182_v28, %v1175_v25  ;;  %v1147_v33 = vpop.f32.mrf.mxu1 }
 0x12b   :  { %v1160_v35 = vadd.f32 %v1159_v31, %v1158_v27  ;;  %v1184_v37 = vrot.slane %v1183_v32, 2 }
 0x12d   :  { %v1161_v40 = vrot.slane %v1160_v35, 1  ;;  %v1185_v42 = vadd.f32 %v1184_v37, %v1183_v32 }
 0x12f   :  { %v1162_v44 = vadd.f32 %v1161_v40, %v1160_v35  ;;  %v1186_v11 = vrot.slane %v1185_v42, 1 }
 0x131   :  { %v1165_v46 = vrot.slane %v1162_v44, 7  ;;  %v1187_v47 = vadd.f32 %v1186_v11, %v1185_v42 }
 0x133   :  { %v1167_v49 = vsel %vm1166_vm0, %v1156_v45, %v1165_v46  ;;  %v1190_v50 = vrot.slane %v1187_v47, 7 }
 0x134   :  { %1173 = vst.msk [vmem:[%s2878_s3] sm:$0x3] %vm1171_vm1, %v1167_v49 }
 0x135   :  { %v1191_v17 = vsel %vm1166_vm0, %v1181_v48, %v1190_v50 }
 0x136   :  { %1193 = vst.msk [vmem:[%s2879_s4] sm:$0x3] %vm1171_vm1, %v1191_v17 }

// kernel: vae_forward.23
= control target key start
LH: loop header
LB: loop body
LE: loop exit
PB: predicated region body
PF: predicated region fallthrough
CT: control target
= control target key end

     0   :  { %s106_s0 = inlined_call_operand.vmem [shape: bf16[8,512], index: 0, kind: input, shape index: {}]   ;;  %s107_s1 = inlined_call_operand.vmem [shape: f32[1,512], index: 1, kind: input, shape index: {}]   ;;  %s108_s2 = inlined_call_operand.vmem [shape: f32[1,512], index: 2, kind: input, shape index: {}]   ;;  %s109_s3 = inlined_call_operand.vmem [shape: bf16[8,512], index: 3, kind: output, shape index: {}]  }
   0x1   :  { %v14_v0 = vld [vmem:[%s106_s0] sm:$0xff]  ;;  %v15_v7 = vld [vmem:[%s106_s0 + $0x8] sm:$0xff] }
   0x2   :  { %v20_v1 = vld [vmem:[%s107_s1] sm:$0xf]  ;;  %v16_v3 = vunpack.c.l.bf16 %v14_v0  ;;  %v17_v4 = vunpack.c.h.bf16 %v14_v0  ;;  %v18_v10 = vunpack.c.l.bf16 %v15_v7  ;;  %v19_v11 = vunpack.c.h.bf16 %v15_v7 }
   0x3   :  { %v34_v2 = vld [vmem:[%s108_s2] sm:$0xf]  ;;  %v22_v5 = vperm.slane %v20_v1, 0  ;;  %v23_v6 = vperm.slane %v20_v1, 1  ;;  %v24_v14 = vperm.slane %v20_v1, 2  ;;  %v25_v15 = vperm.slane %v20_v1, 3 }
   0x4   :  { %v36_v8 = vperm.slane %v34_v2, 0  ;;  %v37_v9 = vperm.slane %v34_v2, 1  ;;  %v38_v16 = vperm.slane %v34_v2, 2  ;;  %v39_v17 = vperm.slane %v34_v2, 3 }
   0x5   :  { %v30_v12 = vmul.f32 %v22_v5, %v16_v3  ;;  %v31_v13 = vmul.f32 %v23_v6, %v17_v4  ;;  %v32_v20 = vmul.f32 %v24_v14, %v18_v10  ;;  %v33_v21 = vmul.f32 %v25_v15, %v19_v11 }
   0x7   :  { %v44_v18 = vadd.f32 %v36_v8, %v30_v12  ;;  %v45_v19 = vadd.f32 %v37_v9, %v31_v13  ;;  %v46_v24 = vadd.f32 %v38_v16, %v32_v20  ;;  %v47_v25 = vadd.f32 %v39_v17, %v33_v21 }
   0x9   :  { %vm48_vm0 = vcmp.gt.f32.partialorder %v44_v18, 0.0  ;;  %vm49_vm1 = vcmp.gt.f32.partialorder %v45_v19, 0.0  ;;  %v52_v22 = vmul.f32 0.2, %v44_v18  ;;  %v53_v23 = vmul.f32 0.2, %v45_v19 }
   0xa   :  { %vm50_vm2 = vcmp.gt.f32.partialorder %v46_v24, 0.0  ;;  %vm51_vm3 = vcmp.gt.f32.partialorder %v47_v25, 0.0  ;;  %v54_v29 = vmul.f32 0.2, %v46_v24  ;;  %v55_v30 = vmul.f32 0.2, %v47_v25 }
   0xb   :  { %v56_v26 = vsel %vm48_vm0, %v44_v18, %v52_v22  ;;  %v57_v27 = vsel %vm49_vm1, %v45_v19, %v53_v23 }
   0xc   :  { %v60_v28 = vpack.c.bf16 %v57_v27, %v56_v26  ;;  %v58_v31 = vsel %vm50_vm2, %v46_v24, %v54_v29  ;;  %v59_v32 = vsel %vm51_vm3, %v47_v25, %v55_v30 }
   0xd   :  { %v61_v33 = vpack.c.bf16 %v59_v32, %v58_v31 }
   0xe   :  { %62 = vst [vmem:[%s109_s3] sm:$0xff] %v60_v28 }
   0xf   :  { %63 = vst [vmem:[%s109_s3 + $0x8] sm:$0xff] %v61_v33 }

// kernel: tile.43
= control target key start
LH: loop header
LB: loop body
LE: loop exit
PB: predicated region body
PF: predicated region fallthrough
CT: control target
= control target key end

     0   :  { %s22_s0 = inlined_call_operand.vmem [shape: f32[64], index: 0, kind: input, shape index: {}]   ;;  %s23_s1 = inlined_call_operand.vmem [shape: f32[4,64], index: 1, kind: output, shape index: {}]  }
   0x1   :  { %v4_v0 = vld [vmem:[%s22_s0] ss:$0 sm:$0xff] }
   0x2   :  { %5 = vst [vmem:[%s23_s1] sm:$0xf] %v4_v0 }

// kernel: vae_forward.24
= control target key start
LH: loop header
LB: loop body
LE: loop exit
PB: predicated region body
PF: predicated region fallthrough
CT: control target
= control target key end

     0   :  { %s1318_s15 = smov 0   ;;  %s1750_s0 = inlined_call_operand.vmem [shape: bf16[32,512], index: 0, kind: input, shape index: {}]   ;;  %s1751_s1 = inlined_call_operand.vmem [shape: bf16[512,256], index: 1, kind: input, shape index: {}]   ;;  %s1752_s2 = inlined_call_operand.vmem [shape: bf16[32,256], index: 2, kind: output, shape index: {0}]   ;;  %s1753_s3 = inlined_call_operand.vmem [shape: f32[2,1,256], index: 3, kind: output, shape index: {1}]   ;;  %s1754_s4 = inlined_call_operand.vmem [shape: f32[2,1,256], index: 4, kind: output, shape index: {2}]  }
   0x1 LB: > { %s1324_s16 = sadd.s32 4294967295, %s1291_s15   ;;  %p924_p0 = scmp.ge.s32.totalorder %s1291_s15, 1  ;;  %s1291_s15 = sphi %s1318_s15, %s15_s15  }
   0x2   : > { %p169_p1 = scmp.lt.s32.totalorder %s1291_s15, 3 }
   0x4   : > { %p170_p2 = pnand %p924_p0, %p169_p1 }
   0x5   : > { %s925_s25 = sshll.u32 (!%p170_p2), %s1324_s16, 1  ;;  %p219_p4 = scmp.lt.s32.totalorder (!%p170_p2), %s1324_s16, 1 }
   0x6   : > { %173 = sbr.rel (%p170_p2) target bundleno = 243 (0xf3), region = 28  ;;  %p206_p3 = scmp.lt.s32.totalorder (!%p170_p2), %s925_s25, 3 }
   0xb   : > { %v1007_v0 = vld [vmem:[%s1751_s1 + $0x70] sm:$0xf]  ;;  %v1228_v1 = vld [vmem:[%s1751_s1 + $0x74] sm:$0xf0]  ;;  %v999_v11 = vld [vmem:[%s1751_s1 + $0x60] sm:$0xf] }
   0xc   : > { %v1071_v2 = vld [vmem:[%s1751_s1 + $0xf0] sm:$0xf]  ;;  %v1008_v3 = vor.u32 %v1228_v1, %v1007_v0  ;;  %v1244_v4 = vld [vmem:[%s1751_s1 + $0xf4] sm:$0xf0]  ;;  %v1226_v13 = vld [vmem:[%s1751_s1 + $0x64] sm:$0xf0] }
   0xd   : > { %v1135_v5 = vld [vmem:[%s1751_s1 + $0x170] sm:$0xf]  ;;  %v1260_v6 = vld [vmem:[%s1751_s1 + $0x174] sm:$0xf0]  ;;  %v1072_v7 = vor.u32 %v1244_v4, %v1071_v2  ;;  %v1063_v14 = vld [vmem:[%s1751_s1 + $0xe0] sm:$0xf]  ;;  %v1000_v16 = vor.u32 %v1226_v13, %v999_v11 }
   0xe   : > { %v1136_v8 = vor.u32 %v1260_v6, %v1135_v5  ;;  %v1199_v9 = vld [vmem:[%s1751_s1 + $0x1f0] sm:$0xf]  ;;  %v1276_v10 = vld [vmem:[%s1751_s1 + $0x1f4] sm:$0xf0]  ;;  %635 = vmatpush.bf16.msra.mxu0 %v1008_v3  ;;  %v1242_v15 = vld [vmem:[%s1751_s1 + $0xe4] sm:$0xf0] }
   0xf   : > { %v1200_v12 = vor.u32 %v1276_v10, %v1199_v9  ;;  %649 = vmatpush.bf16.msra.mxu1 %v1072_v7  ;;  %v1064_v17 = vor.u32 %v1242_v15, %v1063_v14  ;;  %v1127_v18 = vld [vmem:[%s1751_s1 + $0x160] sm:$0xf]  ;;  %v1258_v19 = vld [vmem:[%s1751_s1 + $0x164] sm:$0xf0]  ;;  %v991_v23 = vld [vmem:[%s1751_s1 + $0x50] sm:$0xf] }
  0x10   : > { %663 = vmatpush.bf16.msra.mxu2 %v1136_v8  ;;  %v1191_v20 = vld [vmem:[%s1751_s1 + $0x1e0] sm:$0xf]  ;;  %v1128_v21 = vor.u32 %v1258_v19, %v1127_v18  ;;  %v1274_v22 = vld [vmem:[%s1751_s1 + $0x1e4] sm:$0xf0]  ;;  %v1224_v24 = vld [vmem:[%s1751_s1 + $0x54] sm:$0xf0] }
  0x11   : > { %677 = vmatpush.bf16.msra.mxu3 %v1200_v12  ;;  %v1192_v25 = vor.u32 %v1274_v22, %v1191_v20  ;;  %v1055_v26 = vld [vmem:[%s1751_s1 + $0xd0] sm:$0xf]  ;;  %v1240_v27 = vld [vmem:[%s1751_s1 + $0xd4] sm:$0xf0]  ;;  %v992_v29 = vor.u32 %v1224_v24, %v991_v23  ;;  %v983_v35 = vld [vmem:[%s1751_s1 + $0x40] sm:$0xf] }
  0x12   : > { %v1119_v28 = vld [vmem:[%s1751_s1 + $0x150] sm:$0xf]  ;;  %636 = vmatpush.bf16.msra.mxu0 %v1000_v16  ;;  %v1256_v30 = vld [vmem:[%s1751_s1 + $0x154] sm:$0xf0]  ;;  %v1056_v33 = vor.u32 %v1240_v27, %v1055_v26  ;;  %v1222_v36 = vld [vmem:[%s1751_s1 + $0x44] sm:$0xf0] }
  0x13   : > { %v1183_v31 = vld [vmem:[%s1751_s1 + $0x1d0] sm:$0xf]  ;;  %v1272_v32 = vld [vmem:[%s1751_s1 + $0x1d4] sm:$0xf0]  ;;  %650 = vmatpush.bf16.msra.mxu1 %v1064_v17  ;;  %v1120_v34 = vor.u32 %v1256_v30, %v1119_v28  ;;  %v1047_v37 = vld [vmem:[%s1751_s1 + $0xc0] sm:$0xf]  ;;  %v984_v44 = vor.u32 %v1222_v36, %v983_v35 }
  0x14   : > { %664 = vmatpush.bf16.msra.mxu2 %v1128_v21  ;;  %v1184_v38 = vor.u32 %v1272_v32, %v1183_v31  ;;  %v1238_v39 = vld [vmem:[%s1751_s1 + $0xc4] sm:$0xf0]  ;;  %v1111_v40 = vld [vmem:[%s1751_s1 + $0x140] sm:$0xf]  ;;  %v975_v47 = vld [vmem:[%s1751_s1 + $0x30] sm:$0xf] }
  0x15   : > { %678 = vmatpush.bf16.msra.mxu3 %v1192_v25  ;;  %v1254_v41 = vld [vmem:[%s1751_s1 + $0x144] sm:$0xf0]  ;;  %v1175_v42 = vld [vmem:[%s1751_s1 + $0x1c0] sm:$0xf]  ;;  %v1048_v45 = vor.u32 %v1238_v39, %v1047_v37  ;;  %v1220_v48 = vld [vmem:[%s1751_s1 + $0x34] sm:$0xf0] }
  0x16   : > { %v1270_v43 = vld [vmem:[%s1751_s1 + $0x1c4] sm:$0xf0]  ;;  %637 = vmatpush.bf16.msra.mxu0 %v992_v29  ;;  %v1112_v46 = vor.u32 %v1254_v41, %v1111_v40  ;;  %v1039_v49 = vld [vmem:[%s1751_s1 + $0xb0] sm:$0xf]  ;;  %v1236_v51 = vld [vmem:[%s1751_s1 + $0xb4] sm:$0xf0]  ;;  %v976_v56 = vor.u32 %v1220_v48, %v975_v47 }
  0x17   : > { %651 = vmatpush.bf16.msra.mxu1 %v1056_v33  ;;  %v1176_v50 = vor.u32 %v1270_v43, %v1175_v42  ;;  %v1103_v52 = vld [vmem:[%s1751_s1 + $0x130] sm:$0xf]  ;;  %v1252_v53 = vld [vmem:[%s1751_s1 + $0x134] sm:$0xf0]  ;;  %v1040_v57 = vor.u32 %v1236_v51, %v1039_v49  ;;  %v967_v59 = vld [vmem:[%s1751_s1 + $0x20] sm:$0xf] }
  0x18   : > { %665 = vmatpush.bf16.msra.mxu2 %v1120_v34  ;;  %v1167_v54 = vld [vmem:[%s1751_s1 + $0x1b0] sm:$0xf]  ;;  %v1268_v55 = vld [vmem:[%s1751_s1 + $0x1b4] sm:$0xf0]  ;;  %v1104_v58 = vor.u32 %v1252_v53, %v1103_v52  ;;  %v1218_v60 = vld [vmem:[%s1751_s1 + $0x24] sm:$0xf0] }
  0x19   : > { %679 = vmatpush.bf16.msra.mxu3 %v1184_v38  ;;  %v1031_v61 = vld [vmem:[%s1751_s1 + $0xa0] sm:$0xf]  ;;  %v1168_v62 = vor.u32 %v1268_v55, %v1167_v54  ;;  %v1234_v63 = vld [vmem:[%s1751_s1 + $0xa4] sm:$0xf0]  ;;  %v968_v4 = vor.u32 %v1218_v60, %v967_v59  ;;  %v959_v5 = vld [vmem:[%s1751_s1 + $0x10] sm:$0xf] }
  0x1a   : > { %638 = vmatpush.bf16.msra.mxu0 %v984_v44  ;;  %v1095_v0 = vld [vmem:[%s1751_s1 + $0x120] sm:$0xf]  ;;  %v1250_v1 = vld [vmem:[%s1751_s1 + $0x124] sm:$0xf0]  ;;  %v1032_v6 = vor.u32 %v1234_v63, %v1031_v61  ;;  %v1216_v8 = vld [vmem:[%s1751_s1 + $0x14] sm:$0xf0] }
  0x1b   : > { %652 = vmatpush.bf16.msra.mxu1 %v1048_v45  ;;  %v1159_v2 = vld [vmem:[%s1751_s1 + $0x1a0] sm:$0xf]  ;;  %v1266_v3 = vld [vmem:[%s1751_s1 + $0x1a4] sm:$0xf0]  ;;  %v1096_v7 = vor.u32 %v1250_v1, %v1095_v0  ;;  %v1023_v9 = vld [vmem:[%s1751_s1 + $0x90] sm:$0xf]  ;;  %v960_v18 = vor.u32 %v1216_v8, %v959_v5 }
  0x1c   : > { %666 = vmatpush.bf16.msra.mxu2 %v1112_v46  ;;  %v1232_v10 = vld [vmem:[%s1751_s1 + $0x94] sm:$0xf0]  ;;  %v1160_v11 = vor.u32 %v1266_v3, %v1159_v2  ;;  %v1087_v12 = vld [vmem:[%s1751_s1 + $0x110] sm:$0xf]  ;;  %v951_v16 = vld [vmem:[%s1751_s1] sm:$0xf] }
  0x1d   : > { %680 = vmatpush.bf16.msra.mxu3 %v1176_v50  ;;  %v1248_v13 = vld [vmem:[%s1751_s1 + $0x114] sm:$0xf0]  ;;  %v1151_v14 = vld [vmem:[%s1751_s1 + $0x190] sm:$0xf]  ;;  %v1214_v17 = vld [vmem:[%s1751_s1 + $0x4] sm:$0xf0]  ;;  %v1024_v23 = vor.u32 %v1232_v10, %v1023_v9 }
  0x1e   : > { %639 = vmatpush.bf16.msra.mxu0 %v976_v56  ;;  %v1264_v15 = vld [vmem:[%s1751_s1 + $0x194] sm:$0xf0]  ;;  %v1015_v19 = vld [vmem:[%s1751_s1 + $0x80] sm:$0xf]  ;;  %v1230_v20 = vld [vmem:[%s1751_s1 + $0x84] sm:$0xf0]  ;;  %v1088_v24 = vor.u32 %v1248_v13, %v1087_v12  ;;  %v952_v33 = vor.u32 %v1214_v17, %v951_v16 }
  0x1f   : > { %653 = vmatpush.bf16.msra.mxu1 %v1040_v57  ;;  %v1079_v21 = vld [vmem:[%s1751_s1 + $0x100] sm:$0xf]  ;;  %v1246_v22 = vld [vmem:[%s1751_s1 + $0x104] sm:$0xf0]  ;;  %v1152_v27 = vor.u32 %v1264_v15, %v1151_v14  ;;  %v1227_v28 = vld [vmem:[%s1751_s1 + $0x74] sm:$0xf]  ;;  %v1016_v36 = vor.u32 %v1230_v20, %v1015_v19 }
  0x20   : > { %667 = vmatpush.bf16.msra.mxu2 %v1104_v58  ;;  %v1143_v25 = vld [vmem:[%s1751_s1 + $0x180] sm:$0xf]  ;;  %v1262_v26 = vld [vmem:[%s1751_s1 + $0x184] sm:$0xf0]  ;;  %v1009_v29 = vld [vmem:[%s1751_s1 + $0x78] sm:$0xf0]  ;;  %v1080_v37 = vor.u32 %v1246_v22, %v1079_v21 }
  0x21   : > { %681 = vmatpush.bf16.msra.mxu3 %v1168_v62  ;;  %v1243_v30 = vld [vmem:[%s1751_s1 + $0xf4] sm:$0xf]  ;;  %v1073_v31 = vld [vmem:[%s1751_s1 + $0xf8] sm:$0xf0]  ;;  %s1756_s25 = smov (!%p206_p3, %s925_s25), 3  ;;  %v1144_v41 = vor.u32 %v1262_v26, %v1143_v25  ;;  %v1012_v42 = vor.u32 %v1227_v28, %v1009_v29  ;;  %s1758_s16 = smov (!%p219_p4, %s1324_s16), 1 }
  0x22   : > { %640 = vmatpush.bf16.msra.mxu0 %v968_v4  ;;  %v1259_v32 = vld [vmem:[%s1751_s1 + $0x174] sm:$0xf]  ;;  %v1137_v34 = vld [vmem:[%s1751_s1 + $0x178] sm:$0xf0]  ;;  %v1225_v39 = vld [vmem:[%s1751_s1 + $0x64] sm:$0xf]  ;;  %v1076_v46 = vor.u32 %v1243_v30, %v1073_v31 }
  0x23   : > { %654 = vmatpush.bf16.msra.mxu1 %v1032_v6  ;;  %v1275_v35 = vld [vmem:[%s1751_s1 + $0x1f4] sm:$0xf]  ;;  %v1201_v38 = vld [vmem:[%s1751_s1 + $0x1f8] sm:$0xf0]  ;;  %v1001_v40 = vld [vmem:[%s1751_s1 + $0x68] sm:$0xf0]  ;;  %v1140_v47 = vor.u32 %v1259_v32, %v1137_v34 }
  0x24   : > { %668 = vmatpush.bf16.msra.mxu2 %v1096_v7  ;;  %s1207_s22 = sshll.u32 %s1756_s25, 4  ;;  %v1241_v43 = vld [vmem:[%s1751_s1 + $0xe4] sm:$0xf]  ;;  %v1065_v44 = vld [vmem:[%s1751_s1 + $0xe8] sm:$0xf0]  ;;  %v1204_v51 = vor.u32 %v1275_v35, %v1201_v38  ;;  %v1004_v60 = vor.u32 %v1225_v39, %v1001_v40  ;;  %s1208_s19 = sshll.u32 %s1756_s25, 3 }
  0x25   : > { %682 = vmatpush.bf16.msra.mxu3 %v1160_v11  ;;  %v1257_v45 = vld [vmem:[%s1751_s1 + $0x164] sm:$0xf]  ;;  %s210_s6 = scalar_lea.vmem %s1750_s0, %s1207_s22  ;;  %v1129_v48 = vld [vmem:[%s1751_s1 + $0x168] sm:$0xf0]  ;;  %v1068_v0 = vor.u32 %v1241_v43, %v1065_v44  ;;  %v1223_v3 = vld [vmem:[%s1751_s1 + $0x54] sm:$0xf]  ;;  %s217_s22 = scalar_lea.vmem %s1752_s2, %s1208_s19 }
  0x26   : > { %641 = vmatpush.bf16.msra.mxu0 %v960_v18  ;;  %v1273_v49 = vld [vmem:[%s1751_s1 + $0x1e4] sm:$0xf]  ;;  %v1193_v50 = vld [vmem:[%s1751_s1 + $0x1e8] sm:$0xf0]  ;;  %v943_v52 = vld [vmem:[%s210_s6 + $0x8] sm:$0xf]  ;;  %v1132_v1 = vor.u32 %v1257_v45, %v1129_v48 }
  0x27   : > { %655 = vmatpush.bf16.msra.mxu1 %v1024_v23  ;;  %v1212_v53 = vld [vmem:[%s210_s6 + $0x14] sm:$0xf0]  ;;  %v1210_v54 = vld [vmem:[%s210_s6 + $0xc] sm:$0xf]  ;;  %v945_v56 = vld [vmem:[%s210_s6 + $0x18] sm:$0xf0]  ;;  %v1196_v6 = vor.u32 %v1273_v49, %v1193_v50 }
  0x28   : > { %669 = vmatpush.bf16.msra.mxu2 %v1088_v24  ;;  %v1575_v55 = vor.u32 %v1212_v53, %v943_v52  ;;  %v935_v57 = vld [vmem:[%s210_s6] sm:$0xf]  ;;  %v1211_v58 = vld [vmem:[%s210_s6 + $0xc] sm:$0xf0]  ;;  %v1577_v59 = vor.u32 %v1210_v54, %v945_v56  ;;  %v1209_v62 = vld [vmem:[%s210_s6 + $0x4] sm:$0xf] }
  0x29   : > { %683 = vmatpush.bf16.msra.mxu3 %v1152_v27  ;;  %v1579_v61 = vor.u32 %v1211_v58, %v935_v57  ;;  %v937_v63 = vld [vmem:[%s210_s6 + $0x10] sm:$0xf0]  ;;  %v993_v4 = vld [vmem:[%s1751_s1 + $0x58] sm:$0xf0]  ;;  %v1221_v15 = vld [vmem:[%s1751_s1 + $0x44] sm:$0xf] }
  0x2a   : > { %642 = vmatpush.bf16.msra.mxu0 %v952_v33  ;;  %v1581_v2 = vor.u32 %v1209_v62, %v937_v63  ;;  %v1239_v5 = vld [vmem:[%s1751_s1 + $0xd4] sm:$0xf]  ;;  %v1057_v7 = vld [vmem:[%s1751_s1 + $0xd8] sm:$0xf0]  ;;  %v996_v12 = vor.u32 %v1223_v3, %v993_v4  ;;  %v985_v16 = vld [vmem:[%s1751_s1 + $0x48] sm:$0xf0] }
  0x2b   : > { %656 = vmatpush.bf16.msra.mxu1 %v1016_v36  ;;  %v1255_v8 = vld [vmem:[%s1751_s1 + $0x154] sm:$0xf]  ;;  %v1121_v9 = vld [vmem:[%s1751_s1 + $0x158] sm:$0xf0]  ;;  %v1060_v13 = vor.u32 %v1239_v5, %v1057_v7  ;;  %v1237_v17 = vld [vmem:[%s1751_s1 + $0xc4] sm:$0xf]  ;;  %v988_v24 = vor.u32 %v1221_v15, %v985_v16 }
  0x2c   : > { %670 = vmatpush.bf16.msra.mxu2 %v1080_v37  ;;  %v1271_v10 = vld [vmem:[%s1751_s1 + $0x1d4] sm:$0xf]  ;;  %v1185_v11 = vld [vmem:[%s1751_s1 + $0x1d8] sm:$0xf0]  ;;  %v1124_v14 = vor.u32 %v1255_v8, %v1121_v9  ;;  %v1049_v19 = vld [vmem:[%s1751_s1 + $0xc8] sm:$0xf0] }
  0x2d   : > { %684 = vmatpush.bf16.msra.mxu3 %v1144_v41  ;;  %643 = vmatmul.bf16.vlgmr.msra.gmra.mxu0 %v1579_v61  ;;  %v1188_v18 = vor.u32 %v1271_v10, %v1185_v11  ;;  %v1253_v20 = vld [vmem:[%s1751_s1 + $0x144] sm:$0xf]  ;;  %v1113_v21 = vld [vmem:[%s1751_s1 + $0x148] sm:$0xf0]  ;;  %v1052_v25 = vor.u32 %v1237_v17, %v1049_v19  ;;  %v1219_v27 = vld [vmem:[%s1751_s1 + $0x34] sm:$0xf] }
  0x2e   : > { %691 = vmatpush.bf16.msrb.mxu0 %v1012_v42  ;;  %657 = vmatmul.bf16.vlgmr.msra.gmra.mxu1 %v1581_v2  ;;  %v1269_v22 = vld [vmem:[%s1751_s1 + $0x1c4] sm:$0xf]  ;;  %v1177_v23 = vld [vmem:[%s1751_s1 + $0x1c8] sm:$0xf0]  ;;  %v1116_v26 = vor.u32 %v1253_v20, %v1113_v21  ;;  %v977_v28 = vld [vmem:[%s1751_s1 + $0x38] sm:$0xf0] }
  0x2f   : > { %705 = vmatpush.bf16.msrb.mxu1 %v1076_v46  ;;  %671 = vmatmul.bf16.vlgmr.msra.gmra.mxu2 %v1575_v55  ;;  %v1235_v29 = vld [vmem:[%s1751_s1 + $0xb4] sm:$0xf]  ;;  %v1180_v30 = vor.u32 %v1269_v22, %v1177_v23  ;;  %v1041_v31 = vld [vmem:[%s1751_s1 + $0xb8] sm:$0xf0]  ;;  %v980_v36 = vor.u32 %v1219_v27, %v977_v28  ;;  %v1217_v39 = vld [vmem:[%s1751_s1 + $0x24] sm:$0xf] }
  0x30   : > { %719 = vmatpush.bf16.msrb.mxu2 %v1140_v47  ;;  %685 = vmatmul.bf16.vlgmr.msra.gmra.mxu3 %v1577_v59  ;;  %v1251_v32 = vld [vmem:[%s1751_s1 + $0x134] sm:$0xf]  ;;  %v1105_v33 = vld [vmem:[%s1751_s1 + $0x138] sm:$0xf0]  ;;  %v1044_v37 = vor.u32 %v1235_v29, %v1041_v31  ;;  %v969_v40 = vld [vmem:[%s1751_s1 + $0x28] sm:$0xf0] }
  0x31   : > { %733 = vmatpush.bf16.msrb.mxu3 %v1204_v51  ;;  %v1267_v34 = vld [vmem:[%s1751_s1 + $0x1b4] sm:$0xf]  ;;  %v1169_v35 = vld [vmem:[%s1751_s1 + $0x1b8] sm:$0xf0]  ;;  %v1108_v38 = vor.u32 %v1251_v32, %v1105_v33  ;;  %v1233_v41 = vld [vmem:[%s1751_s1 + $0xa4] sm:$0xf]  ;;  %v972_v48 = vor.u32 %v1217_v39, %v969_v40 }
  0x32   : > { %692 = vmatpush.bf16.msrb.mxu0 %v1004_v60  ;;  %v1172_v42 = vor.u32 %v1267_v34, %v1169_v35  ;;  %v1033_v43 = vld [vmem:[%s1751_s1 + $0xa8] sm:$0xf0]  ;;  %v1249_v44 = vld [vmem:[%s1751_s1 + $0x124] sm:$0xf]  ;;  %v1215_v51 = vld [vmem:[%s1751_s1 + $0x14] sm:$0xf] }
  0x33   : > { %706 = vmatpush.bf16.msrb.mxu1 %v1068_v0  ;;  %v1097_v45 = vld [vmem:[%s1751_s1 + $0x128] sm:$0xf0]  ;;  %v1265_v46 = vld [vmem:[%s1751_s1 + $0x1a4] sm:$0xf]  ;;  %v1036_v49 = vor.u32 %v1233_v41, %v1033_v43  ;;  %v961_v52 = vld [vmem:[%s1751_s1 + $0x18] sm:$0xf0] }
  0x34   : > { %720 = vmatpush.bf16.msrb.mxu2 %v1132_v1  ;;  %v1161_v47 = vld [vmem:[%s1751_s1 + $0x1a8] sm:$0xf0]  ;;  %v1100_v50 = vor.u32 %v1249_v44, %v1097_v45  ;;  %v1231_v53 = vld [vmem:[%s1751_s1 + $0x94] sm:$0xf]  ;;  %v1025_v56 = vld [vmem:[%s1751_s1 + $0x98] sm:$0xf0]  ;;  %v964_v63 = vor.u32 %v1215_v51, %v961_v52 }
  0x35   : > { %734 = vmatpush.bf16.msrb.mxu3 %v1196_v6  ;;  %v1164_v54 = vor.u32 %v1265_v46, %v1161_v47  ;;  %v1247_v57 = vld [vmem:[%s1751_s1 + $0x114] sm:$0xf]  ;;  %v1089_v58 = vld [vmem:[%s1751_s1 + $0x118] sm:$0xf0]  ;;  %v1028_v0 = vor.u32 %v1231_v53, %v1025_v56  ;;  %v1213_v3 = vld [vmem:[%s1751_s1 + $0x4] sm:$0xf] }
  0x36   : > { %693 = vmatpush.bf16.msrb.mxu0 %v996_v12  ;;  %v1263_v60 = vld [vmem:[%s1751_s1 + $0x194] sm:$0xf]  ;;  %v1153_v62 = vld [vmem:[%s1751_s1 + $0x198] sm:$0xf0]  ;;  %v1092_v1 = vor.u32 %v1247_v57, %v1089_v58  ;;  %v953_v4 = vld [vmem:[%s1751_s1 + $0x8] sm:$0xf0] }
  0x37   : > { %707 = vmatpush.bf16.msrb.mxu1 %v1060_v13  ;;  %v1229_v5 = vld [vmem:[%s1751_s1 + $0x84] sm:$0xf]  ;;  %v1156_v6 = vor.u32 %v1263_v60, %v1153_v62  ;;  %v1017_v7 = vld [vmem:[%s1751_s1 + $0x88] sm:$0xf0]  ;;  %v956_v12 = vor.u32 %v1213_v3, %v953_v4  ;;  %s931_s25 = sshll.u32 %s1758_s16, 1  ;;  %vm768_vm0 = vcmask 1040384  }
  0x38   : > { %721 = vmatpush.bf16.msrb.mxu2 %v1124_v14  ;;  %v1245_v8 = vld [vmem:[%s1751_s1 + $0x104] sm:$0xf]  ;;  %v1081_v9 = vld [vmem:[%s1751_s1 + $0x108] sm:$0xf0]  ;;  %v1020_v13 = vor.u32 %v1229_v5, %v1017_v7  ;;  %v771_v7 = vlaneseq  ;;  %s222_s26 = scalar_lea.vmem %s1753_s3, %s931_s25  ;;  %s226_s29 = scalar_lea.vmem %s1754_s4, %s931_s25 }
  0x39   : > { %735 = vmatpush.bf16.msrb.mxu3 %v1188_v18  ;;  %v1261_v10 = vld [vmem:[%s1751_s1 + $0x184] sm:$0xf]  ;;  %v1145_v11 = vld [vmem:[%s1751_s1 + $0x188] sm:$0xf0]  ;;  %v1084_v14 = vor.u32 %v1245_v8, %v1081_v9 }
  0x3a   : > { %694 = vmatpush.bf16.msrb.mxu0 %v988_v24  ;;  %v1148_v15 = vor.u32 %v1261_v10, %v1145_v11  ;;  %vm773_vm1 = vcmp.lt.s32.totalorder %v771_v7, 256 }
  0x3b   : > { %708 = vmatpush.bf16.msrb.mxu1 %v1052_v25 }
  0x3c   : > { %722 = vmatpush.bf16.msrb.mxu2 %v1116_v26 }
  0x3d   : > { %736 = vmatpush.bf16.msrb.mxu3 %v1180_v30 }
  0x3e   : > { %695 = vmatpush.bf16.msrb.mxu0 %v980_v36 }
  0x3f   : > { %709 = vmatpush.bf16.msrb.mxu1 %v1044_v37 }
  0x40   : > { %723 = vmatpush.bf16.msrb.mxu2 %v1108_v38 }
  0x41   : > { %737 = vmatpush.bf16.msrb.mxu3 %v1172_v42 }
  0x42   : > { %696 = vmatpush.bf16.msrb.mxu0 %v972_v48 }
  0x43   : > { %710 = vmatpush.bf16.msrb.mxu1 %v1036_v49 }
  0x44   : > { %724 = vmatpush.bf16.msrb.mxu2 %v1100_v50 }
  0x45   : > { %738 = vmatpush.bf16.msrb.mxu3 %v1164_v54 }
  0x46   : > { %697 = vmatpush.bf16.msrb.mxu0 %v964_v63 }
  0x47   : > { %711 = vmatpush.bf16.msrb.mxu1 %v1028_v0 }
  0x48   : > { %725 = vmatpush.bf16.msrb.mxu2 %v1092_v1 }
  0x49   : > { %739 = vmatpush.bf16.msrb.mxu3 %v1156_v6 }
  0x4a   : > { %698 = vmatpush.bf16.msrb.mxu0 %v956_v12 }
  0x4b   : > { %712 = vmatpush.bf16.msrb.mxu1 %v1020_v13 }
  0x4c   : > { %726 = vmatpush.bf16.msrb.mxu2 %v1084_v14 }
  0x4d   : > { %740 = vmatpush.bf16.msrb.mxu3 %v1148_v15  ;;  %699 = vmatmul.bf16.vlgmr.msrb.gmra.mxu0 %v1579_v61 }
  0x4e   : > { %713 = vmatmul.bf16.vlgmr.msrb.gmra.mxu1 %v1581_v2 }
  0x4f   : > { %727 = vmatmul.bf16.vlgmr.msrb.gmra.mxu2 %v1575_v55 }
  0x50   : > { %741 = vmatmul.bf16.vlgmr.msrb.gmra.mxu3 %v1577_v59 }
  0xaa   : > { %v644_v16 = vpop.f32.mrf.mxu0 }
  0xab   : > { %v658_v17 = vpop.f32.mrf.mxu1 }
  0xac   : > { %v659_v22 = vadd.f32 %v658_v17, %v644_v16 }
  0xb2   : > { %v672_v18 = vpop.f32.mrf.mxu2  ;;  %v646_v20 = vpop.f32.mrf.mxu0 }
  0xb3   : > { %v686_v19 = vpop.f32.mrf.mxu3  ;;  %v660_v21 = vpop.f32.mrf.mxu1  ;;  %v673_v25 = vadd.f32 %v672_v18, %v659_v22 }
  0xb4   : > { %v661_v23 = vadd.f32 %v660_v21, %v646_v20 }
  0xb5   : > { %v687_v2 = vadd.f32 %v686_v19, %v673_v25 }
  0xb7   : > { %v776_v30 = vmul.f32 %v687_v2, %v687_v2 }
  0xba   : > { %v674_v24 = vpop.f32.mrf.mxu2 }
  0xbb   : > { %v675_v26 = vadd.f32 %v674_v24, %v661_v23  ;;  %v688_v27 = vpop.f32.mrf.mxu3 }
  0xbd   : > { %v689_v29 = vadd.f32 %v688_v27, %v675_v26 }
  0xbf   : > { %v778_v59 = vmul.f32 %v689_v29, %v689_v29  ;;  %v751_v34 = vadd.f32 %v689_v29, %v687_v2 }
  0xc1   : > { %v780_v36 = vadd.f32 %v778_v59, %v776_v30  ;;  %v752_v40 = vrot.slane %v751_v34, 4 }
  0xc3   : > { %v781_v42 = vrot.slane %v780_v36, 4  ;;  %v753_v46 = vadd.f32 %v752_v40, %v751_v34 }
  0xc5   : > { %v782_v48 = vadd.f32 %v781_v42, %v780_v36  ;;  %v754_v53 = vrot.slane %v753_v46, 2 }
  0xc7   : > { %v783_v57 = vrot.slane %v782_v48, 2  ;;  %v755_v62 = vadd.f32 %v754_v53, %v753_v46 }
  0xc9   : > { %v784_v1 = vadd.f32 %v783_v57, %v782_v48  ;;  %v756_v5 = vrot.slane %v755_v62, 1 }
  0xca   : > { %v700_v61 = vpop.f32.mrf.mxu0 }
  0xcb   : > { %v714_v28 = vpop.f32.mrf.mxu1  ;;  %v785_v9 = vrot.slane %v784_v1, 1  ;;  %v757_v12 = vadd.f32 %v756_v5, %v755_v62 }
  0xcc   : > { %v715_v55 = vadd.f32 %v714_v28, %v700_v61 }
  0xcd   : > { %v786_v15 = vadd.f32 %v785_v9, %v784_v1 }
  0xd2   : > { %v728_v31 = vpop.f32.mrf.mxu2  ;;  %v702_v37 = vpop.f32.mrf.mxu0 }
  0xd3   : > { %v729_v32 = vadd.f32 %v728_v31, %v715_v55  ;;  %v742_v33 = vpop.f32.mrf.mxu3  ;;  %v716_v38 = vpop.f32.mrf.mxu1 }
  0xd4   : > { %v717_v41 = vadd.f32 %v716_v38, %v702_v37 }
  0xd5   : > { %v743_v35 = vadd.f32 %v742_v33, %v729_v32 }
  0xd7   : > { %v747_v39 = vpack.c.bf16 %v743_v35, %v687_v2  ;;  %v777_v49 = vmul.f32 %v743_v35, %v743_v35 }
  0xd9   : > { %749 = vst [vmem:[%s217_s22] sm:$0xff] %v747_v39 }
  0xda   : > { %v730_v43 = vpop.f32.mrf.mxu2 }
  0xdb   : > { %v731_v44 = vadd.f32 %v730_v43, %v717_v41  ;;  %v744_v45 = vpop.f32.mrf.mxu3 }
  0xdd   : > { %v745_v47 = vadd.f32 %v744_v45, %v731_v44 }
  0xdf   : > { %v748_v50 = vpack.c.bf16 %v745_v47, %v689_v29  ;;  %v758_v51 = vadd.f32 %v745_v47, %v743_v35  ;;  %v779_v52 = vmul.f32 %v745_v47, %v745_v47 }
  0xe1   : > { %750 = vst [vmem:[%s217_s22 + $0x8] sm:$0xff] %v748_v50  ;;  %v759_v54 = vrot.slane %v758_v51, 4  ;;  %v787_v56 = vadd.f32 %v779_v52, %v777_v49 }
  0xe3   : > { %v760_v58 = vadd.f32 %v759_v54, %v758_v51  ;;  %v788_v60 = vrot.slane %v787_v56, 4 }
  0xe5   : > { %v761_v63 = vrot.slane %v760_v58, 2  ;;  %v789_v0 = vadd.f32 %v788_v60, %v787_v56 }
  0xe7   : > { %v762_v3 = vadd.f32 %v761_v63, %v760_v58  ;;  %v790_v4 = vrot.slane %v789_v0, 2 }
  0xe9   : > { %v763_v6 = vrot.slane %v762_v3, 1  ;;  %v791_v8 = vadd.f32 %v790_v4, %v789_v0 }
  0xeb   : > { %v764_v10 = vadd.f32 %v763_v6, %v762_v3  ;;  %v792_v11 = vrot.slane %v791_v8, 1 }
  0xed   : > { %v767_v13 = vrot.slane %v764_v10, 7  ;;  %v793_v14 = vadd.f32 %v792_v11, %v791_v8 }
  0xef   : > { %v769_v16 = vsel %vm768_vm0, %v757_v12, %v767_v13  ;;  %v796_v17 = vrot.slane %v793_v14, 7 }
  0xf0   : > { %775 = vst.msk [vmem:[%s222_s26] sm:$0x3] %vm773_vm1, %v769_v16 }
  0xf1   : > { %v797_v18 = vsel %vm768_vm0, %v786_v15, %v796_v17 }
  0xf2   : > { %799 = vst.msk [vmem:[%s226_s29] sm:$0x3] %vm773_vm1, %v797_v18 }
  0xf3 PF: > { %s15_s15 = sadd.s32 1, %s1291_s15  }
  0xf4   : > { %p12_p5 = scmp.ge.s32.totalorder %s15_s15, 4  }
  0xf6   :  { %14 = sbr.rel (!%p12_p5) target bundleno = 1 (0x1), region = 82 }

// kernel: vae_forward.25
= control target key start
LH: loop header
LB: loop body
LE: loop exit
PB: predicated region body
PF: predicated region fallthrough
CT: control target
= control target key end

     0   :  { %s330_s12 = smov 0   ;;  %s356_s0 = inlined_call_operand.vmem [shape: bf16[32,256], index: 0, kind: input, shape index: {}]   ;;  %s357_s1 = inlined_call_operand.vmem [shape: f32[1,256], index: 1, kind: input, shape index: {}]   ;;  %s358_s2 = inlined_call_operand.vmem [shape: f32[1,256], index: 2, kind: input, shape index: {}]   ;;  %s359_s3 = inlined_call_operand.vmem [shape: bf16[32,256], index: 3, kind: output, shape index: {}]  }
   0x1 LB: > { %s279_s13 = sadd.s32 4294967295, %s308_s12   ;;  %p283_p0 = scmp.ge.s32.totalorder %s308_s12, 1  ;;  %s308_s12 = sphi %s330_s12, %s13_s12  }
   0x2   : > { %p139_p1 = scmp.lt.s32.totalorder %s308_s12, 3 }
   0x4   : > { %p140_p2 = pnand %p283_p0, %p139_p1 }
   0x5   : > { %s284_s14 = sshll.u32 (!%p140_p2), %s279_s13, 1 }
   0x6   : > { %143 = sbr.rel (%p140_p2) target bundleno = 28 (0x1c), region = 32  ;;  %p166_p3 = scmp.lt.s32.totalorder (!%p140_p2), %s284_s14, 3 }
   0xb   : > { %s361_s14 = smov (!%p166_p3, %s284_s14), 3  ;;  %v185_v0 = vld [vmem:[%s357_s1] sm:$0x3] }
   0xc   : > { %v195_v1 = vld [vmem:[%s358_s2] sm:$0x3]  ;;  %s292_s19 = sshll.u32 %s361_s14, 3  ;;  %v187_v2 = vperm.slane %v185_v0, 0  ;;  %v188_v3 = vperm.slane %v185_v0, 1 }
   0xd   : > { %s170_s22 = scalar_lea.vmem %s356_s0, %s292_s19  ;;  %v197_v6 = vperm.slane %v195_v1, 0  ;;  %v198_v7 = vperm.slane %v195_v1, 1  ;;  %s177_s25 = scalar_lea.vmem %s359_s3, %s292_s19 }
   0xe   : > { %v179_v4 = vld [vmem:[%s170_s22] sm:$0xff]  ;;  %v180_v5 = vld [vmem:[%s170_s22 + $0x8] sm:$0xff] }
   0xf   : > { %v181_v8 = vunpack.c.l.bf16 %v179_v4  ;;  %v182_v9 = vunpack.c.h.bf16 %v179_v4  ;;  %v183_v10 = vunpack.c.l.bf16 %v180_v5  ;;  %v184_v11 = vunpack.c.h.bf16 %v180_v5 }
  0x11   : > { %v191_v12 = vmul.f32 %v187_v2, %v181_v8  ;;  %v192_v13 = vmul.f32 %v188_v3, %v182_v9  ;;  %v193_v14 = vmul.f32 %v187_v2, %v183_v10  ;;  %v194_v15 = vmul.f32 %v188_v3, %v184_v11 }
  0x13   : > { %v201_v16 = vadd.f32 %v197_v6, %v191_v12  ;;  %v202_v17 = vadd.f32 %v198_v7, %v192_v13  ;;  %v203_v18 = vadd.f32 %v197_v6, %v193_v14  ;;  %v204_v19 = vadd.f32 %v198_v7, %v194_v15 }
  0x15   : > { %vm205_vm0 = vcmp.gt.f32.partialorder %v201_v16, 0.0  ;;  %vm206_vm1 = vcmp.gt.f32.partialorder %v202_v17, 0.0  ;;  %v209_v20 = vmul.f32 0.2, %v201_v16  ;;  %v210_v21 = vmul.f32 0.2, %v202_v17 }
  0x16   : > { %vm207_vm2 = vcmp.gt.f32.partialorder %v203_v18, 0.0  ;;  %vm208_vm3 = vcmp.gt.f32.partialorder %v204_v19, 0.0  ;;  %v211_v22 = vmul.f32 0.2, %v203_v18  ;;  %v212_v23 = vmul.f32 0.2, %v204_v19 }
  0x17   : > { %v213_v24 = vsel %vm205_vm0, %v201_v16, %v209_v20  ;;  %v214_v25 = vsel %vm206_vm1, %v202_v17, %v210_v21 }
  0x18   : > { %v217_v26 = vpack.c.bf16 %v214_v25, %v213_v24  ;;  %v215_v27 = vsel %vm207_vm2, %v203_v18, %v211_v22  ;;  %v216_v28 = vsel %vm208_vm3, %v204_v19, %v212_v23 }
  0x19   : > { %v218_v29 = vpack.c.bf16 %v216_v28, %v215_v27 }
  0x1a   : > { %219 = vst [vmem:[%s177_s25] sm:$0xff] %v217_v26 }
  0x1b   : > { %220 = vst [vmem:[%s177_s25 + $0x8] sm:$0xff] %v218_v29 }
  0x1c PF: > { %s13_s12 = sadd.s32 1, %s308_s12  }
  0x1d   : > { %p10_p4 = scmp.ge.s32.totalorder %s13_s12, 4  }
  0x1f   :  { %12 = sbr.rel (!%p10_p4) target bundleno = 1 (0x1), region = 62 }

// kernel: vae_forward.22
= control target key start
LH: loop header
LB: loop body
LE: loop exit
PB: predicated region body
PF: predicated region fallthrough
CT: control target
= control target key end

     0   :  { %10 = vsyncpa [#allocation3], 0  ;;  %s3423_s18 = smov [#allocation2]   ;;  %s3424_s20 = smov 256   ;;  %s3553_s0 = inlined_call_operand.vmem [shape: bf16[8,1024], index: 0, kind: input, shape index: {}]   ;;  %s3554_s1 = inlined_call_operand.hbm [shape: bf16[1024,512], index: 1, kind: input, shape index: {}]   ;;  %s3555_s2 = inlined_call_operand.vmem [shape: bf16[8,512], index: 2, kind: output, shape index: {0}]   ;;  %s3556_s3 = inlined_call_operand.vmem [shape: f32[1,1,512], index: 3, kind: output, shape index: {1}]   ;;  %s3557_s4 = inlined_call_operand.vmem [shape: f32[1,1,512], index: 4, kind: output, shape index: {2}]  }
   0x1   :  { %s17_s17 = sshll.u32 %s3554_s1, 4  ;;  %s19_s19 = sshll.u32 %s3423_s18, 4  ;;  %s18_s17 = int_to_ptr.hbm [resolvable:$true] %s17_s17  ;;  %s20_s19 = int_to_ptr.vmem [resolvable:$true] %s19_s19 }
   0x2   :  { %s3425_s21 = smov 16  }
   0x3   :  { %25 = dma.hbm_to_vmem [thread:$0]  %s18_s17, 32768, %s20_s19, [#allocation3], %s3424_s20, %s3424_s20, %s3425_s21  }
   0x4   :  { %3421 = dma.done.wait [#allocation3], 32768  }
   0x5   :  { %3422 = vsyncadd [#allocation3], 4294934528  ;;  %v2228_v0 = vld [vmem:[#allocation2 + $0xe0] sm:$0xf]  ;;  %v3168_v1 = vld [vmem:[#allocation2 + $0xec] sm:$0xf0] }
   0x6   :  { %v2356_v2 = vld [vmem:[#allocation2 + $0x1e0] sm:$0xf]  ;;  %v2229_v3 = vor.u32 %v3168_v1, %v2228_v0  ;;  %v3200_v4 = vld [vmem:[#allocation2 + $0x1ec] sm:$0xf0]  ;;  %vm2049_vm0 = vcmask 1040384   ;;  %vm2051_vm1 = vcmask 1042434  }
   0x7   :  { %v2484_v5 = vld [vmem:[#allocation2 + $0x2e0] sm:$0xf]  ;;  %v3232_v6 = vld [vmem:[#allocation2 + $0x2ec] sm:$0xf0]  ;;  %v2357_v7 = vor.u32 %v3200_v4, %v2356_v2  ;;  %vm2053_vm2 = vcmask 1041408  }
   0x8   :  { %v2485_v8 = vor.u32 %v3232_v6, %v2484_v5  ;;  %v2612_v9 = vld [vmem:[#allocation2 + $0x3e0] sm:$0xf]  ;;  %v3264_v10 = vld [vmem:[#allocation2 + $0x3ec] sm:$0xf0]  ;;  %1598 = vmatpush.bf16.msra.mxu0 %v2229_v3 }
   0x9   :  { %v2212_v11 = vld [vmem:[#allocation2 + $0xc0] sm:$0xf]  ;;  %v2613_v12 = vor.u32 %v3264_v10, %v2612_v9  ;;  %v3164_v13 = vld [vmem:[#allocation2 + $0xcc] sm:$0xf0]  ;;  %1611 = vmatpush.bf16.msra.mxu1 %v2357_v7 }
   0xa   :  { %v2340_v14 = vld [vmem:[#allocation2 + $0x1c0] sm:$0xf]  ;;  %v3196_v15 = vld [vmem:[#allocation2 + $0x1cc] sm:$0xf0]  ;;  %1624 = vmatpush.bf16.msra.mxu2 %v2485_v8  ;;  %v2213_v16 = vor.u32 %v3164_v13, %v2212_v11 }
   0xb   :  { %v2341_v17 = vor.u32 %v3196_v15, %v2340_v14  ;;  %v2468_v18 = vld [vmem:[#allocation2 + $0x2c0] sm:$0xf]  ;;  %v3228_v19 = vld [vmem:[#allocation2 + $0x2cc] sm:$0xf0]  ;;  %1637 = vmatpush.bf16.msra.mxu3 %v2613_v12 }
   0xc   :  { %v2596_v20 = vld [vmem:[#allocation2 + $0x3c0] sm:$0xf]  ;;  %v2469_v21 = vor.u32 %v3228_v19, %v2468_v18  ;;  %v3260_v22 = vld [vmem:[#allocation2 + $0x3cc] sm:$0xf0]  ;;  %1599 = vmatpush.bf16.msra.mxu0 %v2213_v16 }
   0xd   :  { %v2196_v23 = vld [vmem:[#allocation2 + $0xa0] sm:$0xf]  ;;  %v3160_v24 = vld [vmem:[#allocation2 + $0xac] sm:$0xf0]  ;;  %v2597_v25 = vor.u32 %v3260_v22, %v2596_v20  ;;  %1612 = vmatpush.bf16.msra.mxu1 %v2341_v17 }
   0xe   :  { %v2324_v26 = vld [vmem:[#allocation2 + $0x1a0] sm:$0xf]  ;;  %v3192_v27 = vld [vmem:[#allocation2 + $0x1ac] sm:$0xf0]  ;;  %v2197_v29 = vor.u32 %v3160_v24, %v2196_v23  ;;  %1625 = vmatpush.bf16.msra.mxu2 %v2469_v21 }
   0xf   :  { %v2452_v28 = vld [vmem:[#allocation2 + $0x2a0] sm:$0xf]  ;;  %v3224_v30 = vld [vmem:[#allocation2 + $0x2ac] sm:$0xf0]  ;;  %v2325_v33 = vor.u32 %v3192_v27, %v2324_v26  ;;  %1638 = vmatpush.bf16.msra.mxu3 %v2597_v25 }
  0x10   :  { %v2580_v31 = vld [vmem:[#allocation2 + $0x3a0] sm:$0xf]  ;;  %v3256_v32 = vld [vmem:[#allocation2 + $0x3ac] sm:$0xf0]  ;;  %v2453_v34 = vor.u32 %v3224_v30, %v2452_v28  ;;  %1600 = vmatpush.bf16.msra.mxu0 %v2197_v29 }
  0x11   :  { %v2180_v35 = vld [vmem:[#allocation2 + $0x80] sm:$0xf]  ;;  %v3156_v36 = vld [vmem:[#allocation2 + $0x8c] sm:$0xf0]  ;;  %v2581_v38 = vor.u32 %v3256_v32, %v2580_v31  ;;  %1613 = vmatpush.bf16.msra.mxu1 %v2325_v33 }
  0x12   :  { %v2308_v37 = vld [vmem:[#allocation2 + $0x180] sm:$0xf]  ;;  %v3188_v39 = vld [vmem:[#allocation2 + $0x18c] sm:$0xf0]  ;;  %v2181_v44 = vor.u32 %v3156_v36, %v2180_v35  ;;  %1626 = vmatpush.bf16.msra.mxu2 %v2453_v34 }
  0x13   :  { %v2436_v40 = vld [vmem:[#allocation2 + $0x280] sm:$0xf]  ;;  %v3220_v41 = vld [vmem:[#allocation2 + $0x28c] sm:$0xf0]  ;;  %v2309_v45 = vor.u32 %v3188_v39, %v2308_v37  ;;  %1639 = vmatpush.bf16.msra.mxu3 %v2581_v38 }
  0x14   :  { %v2564_v42 = vld [vmem:[#allocation2 + $0x380] sm:$0xf]  ;;  %v3252_v43 = vld [vmem:[#allocation2 + $0x38c] sm:$0xf0]  ;;  %v2437_v46 = vor.u32 %v3220_v41, %v2436_v40  ;;  %1601 = vmatpush.bf16.msra.mxu0 %v2181_v44 }
  0x15   :  { %v2164_v47 = vld [vmem:[#allocation2 + $0x60] sm:$0xf]  ;;  %v3152_v48 = vld [vmem:[#allocation2 + $0x6c] sm:$0xf0]  ;;  %v2565_v50 = vor.u32 %v3252_v43, %v2564_v42  ;;  %1614 = vmatpush.bf16.msra.mxu1 %v2309_v45 }
  0x16   :  { %v2292_v49 = vld [vmem:[#allocation2 + $0x160] sm:$0xf]  ;;  %v3184_v51 = vld [vmem:[#allocation2 + $0x16c] sm:$0xf0]  ;;  %v2165_v56 = vor.u32 %v3152_v48, %v2164_v47  ;;  %1627 = vmatpush.bf16.msra.mxu2 %v2437_v46 }
  0x17   :  { %v2420_v52 = vld [vmem:[#allocation2 + $0x260] sm:$0xf]  ;;  %v3216_v53 = vld [vmem:[#allocation2 + $0x26c] sm:$0xf0]  ;;  %v2293_v57 = vor.u32 %v3184_v51, %v2292_v49  ;;  %1640 = vmatpush.bf16.msra.mxu3 %v2565_v50 }
  0x18   :  { %v2548_v54 = vld [vmem:[#allocation2 + $0x360] sm:$0xf]  ;;  %v3248_v55 = vld [vmem:[#allocation2 + $0x36c] sm:$0xf0]  ;;  %v2421_v58 = vor.u32 %v3216_v53, %v2420_v52  ;;  %1602 = vmatpush.bf16.msra.mxu0 %v2165_v56  ;;  %v31_v52 = vld [vmem:[%s3553_s0 + $0x8] sm:$0xff] }
  0x19   :  { %v2148_v59 = vld [vmem:[#allocation2 + $0x40] sm:$0xf]  ;;  %v3148_v60 = vld [vmem:[#allocation2 + $0x4c] sm:$0xf0]  ;;  %v2549_v62 = vor.u32 %v3248_v55, %v2548_v54  ;;  %1615 = vmatpush.bf16.msra.mxu1 %v2293_v57  ;;  %v296_v55 = vunpack.c.l.b16 %v31_v52  ;;  %v297_v56 = vunpack.c.h.b16 %v31_v52 }
  0x1a   :  { %v2276_v61 = vld [vmem:[#allocation2 + $0x140] sm:$0xf]  ;;  %v3180_v63 = vld [vmem:[#allocation2 + $0x14c] sm:$0xf0]  ;;  %v2149_v4 = vor.u32 %v3148_v60, %v2148_v59  ;;  %1628 = vmatpush.bf16.msra.mxu2 %v2421_v58 }
  0x1b   :  { %v2404_v0 = vld [vmem:[#allocation2 + $0x240] sm:$0xf]  ;;  %v3212_v1 = vld [vmem:[#allocation2 + $0x24c] sm:$0xf0]  ;;  %v2277_v5 = vor.u32 %v3180_v63, %v2276_v61  ;;  %1641 = vmatpush.bf16.msra.mxu3 %v2549_v62 }
  0x1c   :  { %v2532_v2 = vld [vmem:[#allocation2 + $0x340] sm:$0xf]  ;;  %v3244_v3 = vld [vmem:[#allocation2 + $0x34c] sm:$0xf0]  ;;  %v2405_v6 = vor.u32 %v3212_v1, %v2404_v0  ;;  %1603 = vmatpush.bf16.msra.mxu0 %v2149_v4  ;;  %v3457_v1 = vpack.c.b16 %v296_v55, %v296_v55 }
  0x1d   :  { %v2132_v7 = vld [vmem:[#allocation2 + $0x20] sm:$0xf]  ;;  %v3144_v8 = vld [vmem:[#allocation2 + $0x2c] sm:$0xf0]  ;;  %v2533_v10 = vor.u32 %v3244_v3, %v2532_v2  ;;  %1616 = vmatpush.bf16.msra.mxu1 %v2277_v5 }
  0x1e   :  { %v2260_v9 = vld [vmem:[#allocation2 + $0x120] sm:$0xf]  ;;  %v3176_v11 = vld [vmem:[#allocation2 + $0x12c] sm:$0xf0]  ;;  %v2133_v16 = vor.u32 %v3144_v8, %v2132_v7  ;;  %1629 = vmatpush.bf16.msra.mxu2 %v2405_v6  ;;  %v3462_v6 = vpack.c.b16 %v297_v56, %v297_v56 }
  0x1f   :  { %v2388_v12 = vld [vmem:[#allocation2 + $0x220] sm:$0xf]  ;;  %v3208_v13 = vld [vmem:[#allocation2 + $0x22c] sm:$0xf0]  ;;  %v2261_v19 = vor.u32 %v3176_v11, %v2260_v9  ;;  %1642 = vmatpush.bf16.msra.mxu3 %v2533_v10 }
  0x20   :  { %v2516_v14 = vld [vmem:[#allocation2 + $0x320] sm:$0xf]  ;;  %v3240_v15 = vld [vmem:[#allocation2 + $0x32c] sm:$0xf0]  ;;  %v2389_v20 = vor.u32 %v3208_v13, %v2388_v12  ;;  %1604 = vmatpush.bf16.msra.mxu0 %v2133_v16 }
  0x21   :  { %v2116_v17 = vld [vmem:[#allocation2] sm:$0xf]  ;;  %v3140_v18 = vld [vmem:[#allocation2 + $0xc] sm:$0xf0]  ;;  %v2517_v24 = vor.u32 %v3240_v15, %v2516_v14  ;;  %1617 = vmatpush.bf16.msra.mxu1 %v2261_v19 }
  0x22   :  { %v2244_v21 = vld [vmem:[#allocation2 + $0x100] sm:$0xf]  ;;  %v3172_v22 = vld [vmem:[#allocation2 + $0x10c] sm:$0xf0]  ;;  %v2117_v31 = vor.u32 %v3140_v18, %v2116_v17  ;;  %1630 = vmatpush.bf16.msra.mxu2 %v2389_v20 }
  0x23   :  { %v2372_v23 = vld [vmem:[#allocation2 + $0x200] sm:$0xf]  ;;  %v3204_v25 = vld [vmem:[#allocation2 + $0x20c] sm:$0xf0]  ;;  %v2245_v35 = vor.u32 %v3172_v22, %v2244_v21  ;;  %1643 = vmatpush.bf16.msra.mxu3 %v2517_v24 }
  0x24   :  { %v2500_v26 = vld [vmem:[#allocation2 + $0x300] sm:$0xf]  ;;  %v3236_v27 = vld [vmem:[#allocation2 + $0x30c] sm:$0xf0]  ;;  %v2373_v36 = vor.u32 %v3204_v25, %v2372_v23  ;;  %1605 = vmatpush.bf16.msra.mxu0 %v2117_v31 }
  0x25   :  { %v2740_v28 = vld [vmem:[#allocation2 + $0x4e0] sm:$0xf]  ;;  %v3296_v29 = vld [vmem:[#allocation2 + $0x4ec] sm:$0xf0]  ;;  %v2501_v39 = vor.u32 %v3236_v27, %v2500_v26  ;;  %1618 = vmatpush.bf16.msra.mxu1 %v2245_v35 }
  0x26   :  { %v2868_v30 = vld [vmem:[#allocation2 + $0x5e0] sm:$0xf]  ;;  %v3328_v32 = vld [vmem:[#allocation2 + $0x5ec] sm:$0xf0]  ;;  %v2741_v40 = vor.u32 %v3296_v29, %v2740_v28  ;;  %1631 = vmatpush.bf16.msra.mxu2 %v2373_v36 }
  0x27   :  { %v2996_v33 = vld [vmem:[#allocation2 + $0x6e0] sm:$0xf]  ;;  %v3360_v34 = vld [vmem:[#allocation2 + $0x6ec] sm:$0xf0]  ;;  %v2869_v41 = vor.u32 %v3328_v32, %v2868_v30  ;;  %1644 = vmatpush.bf16.msra.mxu3 %v2501_v39 }
  0x28   :  { %v3124_v37 = vld [vmem:[#allocation2 + $0x7e0] sm:$0xf]  ;;  %v3392_v38 = vld [vmem:[#allocation2 + $0x7ec] sm:$0xf0]  ;;  %v2997_v42 = vor.u32 %v3360_v34, %v2996_v33  ;;  %1650 = vmatpush.bf16.msrb.mxu0 %v2741_v40 }
  0x29   :  { %v2724_v43 = vld [vmem:[#allocation2 + $0x4c0] sm:$0xf]  ;;  %v3292_v44 = vld [vmem:[#allocation2 + $0x4cc] sm:$0xf0]  ;;  %v3125_v46 = vor.u32 %v3392_v38, %v3124_v37  ;;  %1663 = vmatpush.bf16.msrb.mxu1 %v2869_v41  ;;  %1632 = vmatmul.bf16.vlgmr.msra.gmra.mxu2 %v3457_v1 }
  0x2a   :  { %v2852_v45 = vld [vmem:[#allocation2 + $0x5c0] sm:$0xf]  ;;  %v3324_v47 = vld [vmem:[#allocation2 + $0x5cc] sm:$0xf0]  ;;  %v2725_v53 = vor.u32 %v3292_v44, %v2724_v43  ;;  %1676 = vmatpush.bf16.msrb.mxu2 %v2997_v42  ;;  %1645 = vmatmul.bf16.vlgmr.msra.gmra.mxu3 %v3462_v6 }
  0x2b   :  { %v2980_v48 = vld [vmem:[#allocation2 + $0x6c0] sm:$0xf]  ;;  %v3356_v49 = vld [vmem:[#allocation2 + $0x6cc] sm:$0xf0]  ;;  %v2853_v57 = vor.u32 %v3324_v47, %v2852_v45  ;;  %1689 = vmatpush.bf16.msrb.mxu3 %v3125_v46 }
  0x2c   :  { %v3108_v50 = vld [vmem:[#allocation2 + $0x7c0] sm:$0xf]  ;;  %v3388_v51 = vld [vmem:[#allocation2 + $0x7cc] sm:$0xf0]  ;;  %v2981_v58 = vor.u32 %v3356_v49, %v2980_v48  ;;  %1651 = vmatpush.bf16.msrb.mxu0 %v2725_v53 }
  0x2d   :  { %v2708_v54 = vld [vmem:[#allocation2 + $0x4a0] sm:$0xf]  ;;  %v3288_v59 = vld [vmem:[#allocation2 + $0x4ac] sm:$0xf0]  ;;  %v3109_v62 = vor.u32 %v3388_v51, %v3108_v50  ;;  %1664 = vmatpush.bf16.msrb.mxu1 %v2853_v57 }
  0x2e   :  { %v2836_v60 = vld [vmem:[#allocation2 + $0x5a0] sm:$0xf]  ;;  %v3320_v61 = vld [vmem:[#allocation2 + $0x5ac] sm:$0xf0]  ;;  %v2709_v8 = vor.u32 %v3288_v59, %v2708_v54  ;;  %1677 = vmatpush.bf16.msrb.mxu2 %v2981_v58 }
  0x2f   :  { %v2964_v63 = vld [vmem:[#allocation2 + $0x6a0] sm:$0xf]  ;;  %v3352_v0 = vld [vmem:[#allocation2 + $0x6ac] sm:$0xf0]  ;;  %v2837_v9 = vor.u32 %v3320_v61, %v2836_v60  ;;  %1690 = vmatpush.bf16.msrb.mxu3 %v3109_v62 }
  0x30   :  { %v30_v2 = vld [vmem:[%s3553_s0] sm:$0xff]  ;;  %v3384_v4 = vld [vmem:[#allocation2 + $0x7ac] sm:$0xf0]  ;;  %v2965_v10 = vor.u32 %v3352_v0, %v2964_v63  ;;  %1652 = vmatpush.bf16.msrb.mxu0 %v2709_v8 }
  0x31   :  { %v3092_v3 = vld [vmem:[#allocation2 + $0x7a0] sm:$0xf]  ;;  %v294_v5 = vunpack.c.l.b16 %v30_v2  ;;  %v295_v7 = vunpack.c.h.b16 %v30_v2  ;;  %v3284_v12 = vld [vmem:[#allocation2 + $0x48c] sm:$0xf0]  ;;  %1665 = vmatpush.bf16.msrb.mxu1 %v2837_v9 }
  0x32   :  { %v2692_v11 = vld [vmem:[#allocation2 + $0x480] sm:$0xf]  ;;  %v3093_v16 = vor.u32 %v3384_v4, %v3092_v3  ;;  %v3316_v17 = vld [vmem:[#allocation2 + $0x58c] sm:$0xf0]  ;;  %1678 = vmatpush.bf16.msrb.mxu2 %v2965_v10  ;;  %v33_v4 = vld [vmem:[%s3553_s0 + $0x18] sm:$0xff] }
  0x33   :  { %v2820_v13 = vld [vmem:[#allocation2 + $0x580] sm:$0xf]  ;;  %v3465_v14 = vpack.c.b16 %v294_v5, %v294_v5  ;;  %v3467_v15 = vpack.c.b16 %v295_v7, %v295_v7  ;;  %v3348_v19 = vld [vmem:[#allocation2 + $0x68c] sm:$0xf0]  ;;  %v2693_v22 = vor.u32 %v3284_v12, %v2692_v11  ;;  %v3166_v10 = vld [vmem:[#allocation2 + $0xe4] sm:$0xf] }
  0x34   :  { %v2948_v18 = vld [vmem:[#allocation2 + $0x680] sm:$0xf]  ;;  %v3380_v21 = vld [vmem:[#allocation2 + $0x78c] sm:$0xf0]  ;;  %v2821_v23 = vor.u32 %v3316_v17, %v2820_v13  ;;  %1691 = vmatpush.bf16.msrb.mxu3 %v3093_v16  ;;  %v2230_v11 = vld [vmem:[#allocation2 + $0xf0] sm:$0xf0] }
  0x35   :  { %v3076_v20 = vld [vmem:[#allocation2 + $0x780] sm:$0xf]  ;;  %1606 = vmatmul.bf16.vlgmr.msra.gmra.mxu0 %v3465_v14  ;;  %1619 = vmatmul.bf16.vlgmr.msra.gmra.mxu1 %v3467_v15  ;;  %v2949_v24 = vor.u32 %v3348_v19, %v2948_v18  ;;  %v3280_v26 = vld [vmem:[#allocation2 + $0x46c] sm:$0xf0]  ;;  %v3198_v12 = vld [vmem:[#allocation2 + $0x1e4] sm:$0xf]  ;;  %v300_v19 = vunpack.c.l.b16 %v33_v4 }
  0x36   :  { %v2676_v25 = vld [vmem:[#allocation2 + $0x460] sm:$0xf]  ;;  %v3077_v28 = vor.u32 %v3380_v21, %v3076_v20  ;;  %v3312_v29 = vld [vmem:[#allocation2 + $0x56c] sm:$0xf0]  ;;  %1653 = vmatpush.bf16.msrb.mxu0 %v2693_v22  ;;  %1666 = vmatpush.bf16.msrb.mxu1 %v2821_v23  ;;  %v2358_v16 = vld [vmem:[#allocation2 + $0x1f0] sm:$0xf0] }
  0x37   :  { %v2804_v27 = vld [vmem:[#allocation2 + $0x560] sm:$0xf]  ;;  %v3344_v31 = vld [vmem:[#allocation2 + $0x66c] sm:$0xf0]  ;;  %v2677_v34 = vor.u32 %v3280_v26, %v2676_v25  ;;  %1679 = vmatpush.bf16.msrb.mxu2 %v2949_v24  ;;  %v3230_v17 = vld [vmem:[#allocation2 + $0x2e4] sm:$0xf]  ;;  %v301_v25 = vunpack.c.h.b16 %v33_v4 }
  0x38   :  { %v2932_v30 = vld [vmem:[#allocation2 + $0x660] sm:$0xf]  ;;  %v3376_v33 = vld [vmem:[#allocation2 + $0x76c] sm:$0xf0]  ;;  %v2805_v35 = vor.u32 %v3312_v29, %v2804_v27  ;;  %1692 = vmatpush.bf16.msrb.mxu3 %v3077_v28  ;;  %v2486_v18 = vld [vmem:[#allocation2 + $0x2f0] sm:$0xf0]  ;;  %v2233_v27 = vor.u32 %v3166_v10, %v2230_v11  ;;  %v2361_v29 = vor.u32 %v3198_v12, %v2358_v16 }
  0x39   :  { %v3060_v32 = vld [vmem:[#allocation2 + $0x760] sm:$0xf]  ;;  %v2933_v36 = vor.u32 %v3344_v31, %v2932_v30  ;;  %v3276_v38 = vld [vmem:[#allocation2 + $0x44c] sm:$0xf0]  ;;  %v3262_v22 = vld [vmem:[#allocation2 + $0x3e4] sm:$0xf]  ;;  %v2489_v30 = vor.u32 %v3230_v17, %v2486_v18 }
  0x3a   :  { %v2660_v37 = vld [vmem:[#allocation2 + $0x440] sm:$0xf]  ;;  %v3061_v40 = vor.u32 %v3376_v33, %v3060_v32  ;;  %v3308_v41 = vld [vmem:[#allocation2 + $0x54c] sm:$0xf0]  ;;  %1654 = vmatpush.bf16.msrb.mxu0 %v2677_v34  ;;  %1667 = vmatpush.bf16.msrb.mxu1 %v2805_v35  ;;  %v2614_v23 = vld [vmem:[#allocation2 + $0x3f0] sm:$0xf0]  ;;  %v3478_v35 = vpack.c.b16 %v300_v19, %v300_v19 }
  0x3b   :  { %v2788_v39 = vld [vmem:[#allocation2 + $0x540] sm:$0xf]  ;;  %v3340_v43 = vld [vmem:[#allocation2 + $0x64c] sm:$0xf0]  ;;  %v2661_v46 = vor.u32 %v3276_v38, %v2660_v37  ;;  %1680 = vmatpush.bf16.msrb.mxu2 %v2933_v36  ;;  %v3162_v31 = vld [vmem:[#allocation2 + $0xc4] sm:$0xf]  ;;  %v2617_v34 = vor.u32 %v3262_v22, %v2614_v23 }
  0x3c   :  { %v2916_v42 = vld [vmem:[#allocation2 + $0x640] sm:$0xf]  ;;  %v3372_v45 = vld [vmem:[#allocation2 + $0x74c] sm:$0xf0]  ;;  %v2789_v47 = vor.u32 %v3308_v41, %v2788_v39  ;;  %1693 = vmatpush.bf16.msrb.mxu3 %v3061_v40  ;;  %v2214_v32 = vld [vmem:[#allocation2 + $0xd0] sm:$0xf0]  ;;  %v3482_v40 = vpack.c.b16 %v301_v25, %v301_v25 }
  0x3d   :  { %v3044_v44 = vld [vmem:[#allocation2 + $0x740] sm:$0xf]  ;;  %v2917_v48 = vor.u32 %v3340_v43, %v2916_v42  ;;  %v3272_v50 = vld [vmem:[#allocation2 + $0x42c] sm:$0xf0]  ;;  %v3194_v33 = vld [vmem:[#allocation2 + $0x1c4] sm:$0xf]  ;;  %v2217_v43 = vor.u32 %v3162_v31, %v2214_v32 }
  0x3e   :  { %v2644_v49 = vld [vmem:[#allocation2 + $0x420] sm:$0xf]  ;;  %v3045_v52 = vor.u32 %v3372_v45, %v3044_v44  ;;  %v3304_v53 = vld [vmem:[#allocation2 + $0x52c] sm:$0xf0]  ;;  %1655 = vmatpush.bf16.msrb.mxu0 %v2661_v46  ;;  %1668 = vmatpush.bf16.msrb.mxu1 %v2789_v47  ;;  %v2342_v36 = vld [vmem:[#allocation2 + $0x1d0] sm:$0xf0] }
  0x3f   :  { %v2772_v51 = vld [vmem:[#allocation2 + $0x520] sm:$0xf]  ;;  %v3336_v55 = vld [vmem:[#allocation2 + $0x62c] sm:$0xf0]  ;;  %v2645_v59 = vor.u32 %v3272_v50, %v2644_v49  ;;  %1681 = vmatpush.bf16.msrb.mxu2 %v2917_v48  ;;  %v3226_v37 = vld [vmem:[#allocation2 + $0x2c4] sm:$0xf]  ;;  %v2345_v45 = vor.u32 %v3194_v33, %v2342_v36 }
  0x40   :  { %v2900_v54 = vld [vmem:[#allocation2 + $0x620] sm:$0xf]  ;;  %v3368_v57 = vld [vmem:[#allocation2 + $0x72c] sm:$0xf0]  ;;  %v2773_v63 = vor.u32 %v3304_v53, %v2772_v51  ;;  %1694 = vmatpush.bf16.msrb.mxu3 %v3045_v52  ;;  %v2470_v38 = vld [vmem:[#allocation2 + $0x2d0] sm:$0xf0] }
  0x41   :  { %v3028_v56 = vld [vmem:[#allocation2 + $0x720] sm:$0xf]  ;;  %v3268_v60 = vld [vmem:[#allocation2 + $0x40c] sm:$0xf0]  ;;  %v2901_v0 = vor.u32 %v3336_v55, %v2900_v54  ;;  %v3258_v41 = vld [vmem:[#allocation2 + $0x3c4] sm:$0xf]  ;;  %v2473_v46 = vor.u32 %v3226_v37, %v2470_v38 }
  0x42   :  { %v2628_v58 = vld [vmem:[#allocation2 + $0x400] sm:$0xf]  ;;  %v3300_v62 = vld [vmem:[#allocation2 + $0x50c] sm:$0xf0]  ;;  %v3029_v5 = vor.u32 %v3368_v57, %v3028_v56  ;;  %1656 = vmatpush.bf16.msrb.mxu0 %v2645_v59  ;;  %1669 = vmatpush.bf16.msrb.mxu1 %v2773_v63  ;;  %v2598_v42 = vld [vmem:[#allocation2 + $0x3d0] sm:$0xf0] }
  0x43   :  { %v2756_v61 = vld [vmem:[#allocation2 + $0x500] sm:$0xf]  ;;  %v3332_v3 = vld [vmem:[#allocation2 + $0x60c] sm:$0xf0]  ;;  %v2629_v13 = vor.u32 %v3268_v60, %v2628_v58  ;;  %1682 = vmatpush.bf16.msrb.mxu2 %v2901_v0  ;;  %v3158_v47 = vld [vmem:[#allocation2 + $0xa4] sm:$0xf]  ;;  %v2601_v50 = vor.u32 %v3258_v41, %v2598_v42 }
  0x44   :  { %v2884_v2 = vld [vmem:[#allocation2 + $0x600] sm:$0xf]  ;;  %v3364_v8 = vld [vmem:[#allocation2 + $0x70c] sm:$0xf0]  ;;  %v2757_v20 = vor.u32 %v3300_v62, %v2756_v61  ;;  %1695 = vmatpush.bf16.msrb.mxu3 %v3029_v5  ;;  %v2198_v48 = vld [vmem:[#allocation2 + $0xb0] sm:$0xf0] }
  0x45   :  { %v3012_v7 = vld [vmem:[#allocation2 + $0x700] sm:$0xf]  ;;  %v32_v9 = vld [vmem:[%s3553_s0 + $0x10] sm:$0xff]  ;;  %v2885_v21 = vor.u32 %v3332_v3, %v2884_v2  ;;  %v3190_v49 = vld [vmem:[#allocation2 + $0x1a4] sm:$0xf]  ;;  %v2201_v56 = vor.u32 %v3158_v47, %v2198_v48 }
  0x46   :  { %v298_v24 = vunpack.c.l.b16 %v32_v9  ;;  %v3013_v26 = vor.u32 %v3364_v8, %v3012_v7  ;;  %v299_v28 = vunpack.c.h.b16 %v32_v9  ;;  %1657 = vmatpush.bf16.msrb.mxu0 %v2629_v13  ;;  %1670 = vmatpush.bf16.msrb.mxu1 %v2757_v20  ;;  %v2326_v51 = vld [vmem:[#allocation2 + $0x1b0] sm:$0xf0]  ;;  %v3222_v52 = vld [vmem:[#allocation2 + $0x2a4] sm:$0xf] }
  0x47   :  { %1683 = vmatpush.bf16.msrb.mxu2 %v2885_v21  ;;  %v2454_v53 = vld [vmem:[#allocation2 + $0x2b0] sm:$0xf0]  ;;  %v3254_v54 = vld [vmem:[#allocation2 + $0x3a4] sm:$0xf]  ;;  %v2329_v57 = vor.u32 %v3190_v49, %v2326_v51 }
  0x48   :  { %v3480_v39 = vpack.c.b16 %v298_v24, %v298_v24  ;;  %1696 = vmatpush.bf16.msrb.mxu3 %v3013_v26  ;;  %v3484_v44 = vpack.c.b16 %v299_v28, %v299_v28  ;;  %v2582_v55 = vld [vmem:[#allocation2 + $0x3b0] sm:$0xf0]  ;;  %v2457_v58 = vor.u32 %v3222_v52, %v2454_v53  ;;  %v3154_v59 = vld [vmem:[#allocation2 + $0x84] sm:$0xf] }
  0x49   :  { %v2182_v60 = vld [vmem:[#allocation2 + $0x90] sm:$0xf0]  ;;  %v3186_v61 = vld [vmem:[#allocation2 + $0x184] sm:$0xf]  ;;  %v2585_v62 = vor.u32 %v3254_v54, %v2582_v55 }
  0x4a   :  { %1702 = vmatpush.bf16.msra.mxu0 %v2233_v27  ;;  %1715 = vmatpush.bf16.msra.mxu1 %v2361_v29  ;;  %v2310_v63 = vld [vmem:[#allocation2 + $0x190] sm:$0xf0]  ;;  %v3218_v0 = vld [vmem:[#allocation2 + $0x284] sm:$0xf]  ;;  %v2185_v5 = vor.u32 %v3154_v59, %v2182_v60 }
  0x4b   :  { %1728 = vmatpush.bf16.msra.mxu2 %v2489_v30  ;;  %1658 = vmatmul.bf16.vlgmr.msrb.gmra.mxu0 %v3480_v39  ;;  %v2438_v2 = vld [vmem:[#allocation2 + $0x290] sm:$0xf0]  ;;  %v3250_v3 = vld [vmem:[#allocation2 + $0x384] sm:$0xf]  ;;  %v2313_v7 = vor.u32 %v3186_v61, %v2310_v63 }
  0x4c   :  { %1741 = vmatpush.bf16.msra.mxu3 %v2617_v34  ;;  %1684 = vmatmul.bf16.vlgmr.msrb.gmra.mxu2 %v3478_v35  ;;  %v2566_v4 = vld [vmem:[#allocation2 + $0x390] sm:$0xf0]  ;;  %v2441_v8 = vor.u32 %v3218_v0, %v2438_v2  ;;  %v3150_v9 = vld [vmem:[#allocation2 + $0x64] sm:$0xf] }
  0x4d   :  { %1697 = vmatmul.bf16.vlgmr.msrb.gmra.mxu3 %v3482_v40  ;;  %1671 = vmatmul.bf16.vlgmr.msrb.gmra.mxu1 %v3484_v44  ;;  %v2166_v10 = vld [vmem:[#allocation2 + $0x70] sm:$0xf0]  ;;  %v3182_v11 = vld [vmem:[#allocation2 + $0x164] sm:$0xf]  ;;  %v2569_v12 = vor.u32 %v3250_v3, %v2566_v4 }
  0x4e   :  { %1703 = vmatpush.bf16.msra.mxu0 %v2217_v43  ;;  %1716 = vmatpush.bf16.msra.mxu1 %v2345_v45  ;;  %v2294_v13 = vld [vmem:[#allocation2 + $0x170] sm:$0xf0]  ;;  %v3214_v16 = vld [vmem:[#allocation2 + $0x264] sm:$0xf]  ;;  %v2169_v20 = vor.u32 %v3150_v9, %v2166_v10 }
  0x4f   :  { %1729 = vmatpush.bf16.msra.mxu2 %v2473_v46  ;;  %v2422_v17 = vld [vmem:[#allocation2 + $0x270] sm:$0xf0]  ;;  %v3246_v18 = vld [vmem:[#allocation2 + $0x364] sm:$0xf]  ;;  %v2297_v21 = vor.u32 %v3182_v11, %v2294_v13 }
  0x50   :  { %1742 = vmatpush.bf16.msra.mxu3 %v2601_v50  ;;  %v2550_v19 = vld [vmem:[#allocation2 + $0x370] sm:$0xf0]  ;;  %v2425_v22 = vor.u32 %v3214_v16, %v2422_v17  ;;  %v3146_v23 = vld [vmem:[#allocation2 + $0x44] sm:$0xf] }
  0x51   :  { %v2150_v24 = vld [vmem:[#allocation2 + $0x50] sm:$0xf0]  ;;  %v3178_v25 = vld [vmem:[#allocation2 + $0x144] sm:$0xf]  ;;  %v2553_v26 = vor.u32 %v3246_v18, %v2550_v19 }
  0x52   :  { %1704 = vmatpush.bf16.msra.mxu0 %v2201_v56  ;;  %1717 = vmatpush.bf16.msra.mxu1 %v2329_v57  ;;  %v2278_v27 = vld [vmem:[#allocation2 + $0x150] sm:$0xf0]  ;;  %v3210_v28 = vld [vmem:[#allocation2 + $0x244] sm:$0xf]  ;;  %v2153_v32 = vor.u32 %v3146_v23, %v2150_v24 }
  0x53   :  { %1730 = vmatpush.bf16.msra.mxu2 %v2457_v58  ;;  %v2406_v29 = vld [vmem:[#allocation2 + $0x250] sm:$0xf0]  ;;  %v3242_v30 = vld [vmem:[#allocation2 + $0x344] sm:$0xf]  ;;  %v2281_v33 = vor.u32 %v3178_v25, %v2278_v27 }
  0x54   :  { %1743 = vmatpush.bf16.msra.mxu3 %v2585_v62  ;;  %v2534_v31 = vld [vmem:[#allocation2 + $0x350] sm:$0xf0]  ;;  %v2409_v34 = vor.u32 %v3210_v28, %v2406_v29  ;;  %v3142_v36 = vld [vmem:[#allocation2 + $0x24] sm:$0xf] }
  0x55   :  { %v2134_v37 = vld [vmem:[#allocation2 + $0x30] sm:$0xf0]  ;;  %v3174_v38 = vld [vmem:[#allocation2 + $0x124] sm:$0xf]  ;;  %v2537_v41 = vor.u32 %v3242_v30, %v2534_v31 }
  0x56   :  { %1705 = vmatpush.bf16.msra.mxu0 %v2185_v5  ;;  %1718 = vmatpush.bf16.msra.mxu1 %v2313_v7  ;;  %v2262_v42 = vld [vmem:[#allocation2 + $0x130] sm:$0xf0]  ;;  %v3206_v43 = vld [vmem:[#allocation2 + $0x224] sm:$0xf]  ;;  %v2137_v48 = vor.u32 %v3142_v36, %v2134_v37 }
  0x57   :  { %1731 = vmatpush.bf16.msra.mxu2 %v2441_v8  ;;  %v2390_v45 = vld [vmem:[#allocation2 + $0x230] sm:$0xf0]  ;;  %v3238_v46 = vld [vmem:[#allocation2 + $0x324] sm:$0xf]  ;;  %v2265_v51 = vor.u32 %v3174_v38, %v2262_v42 }
  0x58   :  { %1744 = vmatpush.bf16.msra.mxu3 %v2569_v12  ;;  %v2518_v47 = vld [vmem:[#allocation2 + $0x330] sm:$0xf0]  ;;  %v3138_v49 = vld [vmem:[#allocation2 + $0x4] sm:$0xf]  ;;  %v2393_v52 = vor.u32 %v3206_v43, %v2390_v45 }
  0x59   :  { %v2118_v50 = vld [vmem:[#allocation2 + $0x10] sm:$0xf0]  ;;  %v3170_v53 = vld [vmem:[#allocation2 + $0x104] sm:$0xf]  ;;  %v2521_v56 = vor.u32 %v3238_v46, %v2518_v47 }
  0x5a   :  { %1706 = vmatpush.bf16.msra.mxu0 %v2169_v20  ;;  %1719 = vmatpush.bf16.msra.mxu1 %v2297_v21  ;;  %v2246_v54 = vld [vmem:[#allocation2 + $0x110] sm:$0xf0]  ;;  %v3202_v55 = vld [vmem:[#allocation2 + $0x204] sm:$0xf]  ;;  %v2121_v63 = vor.u32 %v3138_v49, %v2118_v50 }
  0x5b   :  { %1732 = vmatpush.bf16.msra.mxu2 %v2425_v22  ;;  %v2374_v57 = vld [vmem:[#allocation2 + $0x210] sm:$0xf0]  ;;  %v3234_v58 = vld [vmem:[#allocation2 + $0x304] sm:$0xf]  ;;  %v2249_v4 = vor.u32 %v3170_v53, %v2246_v54 }
  0x5c   :  { %1745 = vmatpush.bf16.msra.mxu3 %v2553_v26  ;;  %v2502_v59 = vld [vmem:[#allocation2 + $0x310] sm:$0xf0]  ;;  %v3294_v60 = vld [vmem:[#allocation2 + $0x4e4] sm:$0xf]  ;;  %v2377_v5 = vor.u32 %v3202_v55, %v2374_v57 }
  0x5d   :  { %v2742_v61 = vld [vmem:[#allocation2 + $0x4f0] sm:$0xf0]  ;;  %v3326_v62 = vld [vmem:[#allocation2 + $0x5e4] sm:$0xf]  ;;  %v2505_v9 = vor.u32 %v3234_v58, %v2502_v59 }
  0x5e   :  { %1707 = vmatpush.bf16.msra.mxu0 %v2153_v32  ;;  %1720 = vmatpush.bf16.msra.mxu1 %v2281_v33  ;;  %v2870_v0 = vld [vmem:[#allocation2 + $0x5f0] sm:$0xf0]  ;;  %v3358_v2 = vld [vmem:[#allocation2 + $0x6e4] sm:$0xf]  ;;  %v2745_v10 = vor.u32 %v3294_v60, %v2742_v61 }
  0x5f   :  { %1733 = vmatpush.bf16.msra.mxu2 %v2409_v34  ;;  %v2998_v3 = vld [vmem:[#allocation2 + $0x6f0] sm:$0xf0]  ;;  %v3390_v7 = vld [vmem:[#allocation2 + $0x7e4] sm:$0xf]  ;;  %v2873_v11 = vor.u32 %v3326_v62, %v2870_v0 }
  0x60   :  { %1746 = vmatpush.bf16.msra.mxu3 %v2537_v41  ;;  %v3126_v8 = vld [vmem:[#allocation2 + $0x7f0] sm:$0xf0]  ;;  %v3001_v12 = vor.u32 %v3358_v2, %v2998_v3  ;;  %v3290_v13 = vld [vmem:[#allocation2 + $0x4c4] sm:$0xf] }
  0x61   :  { %v2726_v16 = vld [vmem:[#allocation2 + $0x4d0] sm:$0xf0]  ;;  %v3322_v17 = vld [vmem:[#allocation2 + $0x5c4] sm:$0xf]  ;;  %v3129_v18 = vor.u32 %v3390_v7, %v3126_v8 }
  0x62   :  { %1708 = vmatpush.bf16.msra.mxu0 %v2137_v48  ;;  %1721 = vmatpush.bf16.msra.mxu1 %v2265_v51  ;;  %v2854_v19 = vld [vmem:[#allocation2 + $0x5d0] sm:$0xf0]  ;;  %v3354_v20 = vld [vmem:[#allocation2 + $0x6c4] sm:$0xf]  ;;  %v2729_v24 = vor.u32 %v3290_v13, %v2726_v16 }
  0x63   :  { %1734 = vmatpush.bf16.msra.mxu2 %v2393_v52  ;;  %v2982_v21 = vld [vmem:[#allocation2 + $0x6d0] sm:$0xf0]  ;;  %v3386_v22 = vld [vmem:[#allocation2 + $0x7c4] sm:$0xf]  ;;  %v2857_v25 = vor.u32 %v3322_v17, %v2854_v19 }
  0x64   :  { %1747 = vmatpush.bf16.msra.mxu3 %v2521_v56  ;;  %v3110_v23 = vld [vmem:[#allocation2 + $0x7d0] sm:$0xf0]  ;;  %v2985_v26 = vor.u32 %v3354_v20, %v2982_v21  ;;  %v3286_v27 = vld [vmem:[#allocation2 + $0x4a4] sm:$0xf] }
  0x65   :  { %v2710_v28 = vld [vmem:[#allocation2 + $0x4b0] sm:$0xf0]  ;;  %v3318_v29 = vld [vmem:[#allocation2 + $0x5a4] sm:$0xf]  ;;  %v3113_v30 = vor.u32 %v3386_v22, %v3110_v23 }
  0x66   :  { %1709 = vmatpush.bf16.msra.mxu0 %v2121_v63  ;;  %1722 = vmatpush.bf16.msra.mxu1 %v2249_v4  ;;  %v2838_v31 = vld [vmem:[#allocation2 + $0x5b0] sm:$0xf0]  ;;  %v3350_v32 = vld [vmem:[#allocation2 + $0x6a4] sm:$0xf]  ;;  %v2713_v37 = vor.u32 %v3286_v27, %v2710_v28 }
  0x67   :  { %1735 = vmatpush.bf16.msra.mxu2 %v2377_v5  ;;  %v2966_v33 = vld [vmem:[#allocation2 + $0x6b0] sm:$0xf0]  ;;  %v3382_v34 = vld [vmem:[#allocation2 + $0x7a4] sm:$0xf]  ;;  %v2841_v38 = vor.u32 %v3318_v29, %v2838_v31 }
  0x68   :  { %1748 = vmatpush.bf16.msra.mxu3 %v2505_v9  ;;  %v3094_v36 = vld [vmem:[#allocation2 + $0x7b0] sm:$0xf0]  ;;  %v2969_v41 = vor.u32 %v3350_v32, %v2966_v33  ;;  %v3282_v42 = vld [vmem:[#allocation2 + $0x484] sm:$0xf] }
  0x69   :  { %1710 = vmatmul.bf16.vlgmr.msra.gmra.mxu0 %v3465_v14  ;;  %1723 = vmatmul.bf16.vlgmr.msra.gmra.mxu1 %v3467_v15  ;;  %v2694_v43 = vld [vmem:[#allocation2 + $0x490] sm:$0xf0]  ;;  %v3314_v45 = vld [vmem:[#allocation2 + $0x584] sm:$0xf]  ;;  %v3097_v46 = vor.u32 %v3382_v34, %v3094_v36 }
  0x6a   :  { %1754 = vmatpush.bf16.msrb.mxu0 %v2745_v10  ;;  %1767 = vmatpush.bf16.msrb.mxu1 %v2873_v11  ;;  %v2822_v47 = vld [vmem:[#allocation2 + $0x590] sm:$0xf0]  ;;  %v3346_v48 = vld [vmem:[#allocation2 + $0x684] sm:$0xf]  ;;  %v2697_v52 = vor.u32 %v3282_v42, %v2694_v43  ;;  %v2236_v43 = vld [vmem:[#allocation2 + $0xe8] sm:$0xf] }
  0x6b   :  { %1780 = vmatpush.bf16.msrb.mxu2 %v3001_v12  ;;  %1749 = vmatmul.bf16.vlgmr.msra.gmra.mxu3 %v3462_v6  ;;  %v2950_v49 = vld [vmem:[#allocation2 + $0x690] sm:$0xf0]  ;;  %v3378_v50 = vld [vmem:[#allocation2 + $0x784] sm:$0xf]  ;;  %v2825_v53 = vor.u32 %v3314_v45, %v2822_v47  ;;  %v3169_v45 = vld [vmem:[#allocation2 + $0xf4] sm:$0xf0] }
  0x6c   :  { %1793 = vmatpush.bf16.msrb.mxu3 %v3129_v18  ;;  %1736 = vmatmul.bf16.vlgmr.msra.gmra.mxu2 %v3457_v1  ;;  %v3078_v51 = vld [vmem:[#allocation2 + $0x790] sm:$0xf0]  ;;  %v2953_v54 = vor.u32 %v3346_v48, %v2950_v49  ;;  %v3278_v55 = vld [vmem:[#allocation2 + $0x464] sm:$0xf]  ;;  %v3201_v48 = vld [vmem:[#allocation2 + $0x1f4] sm:$0xf0] }
  0x6d   :  { %v2678_v56 = vld [vmem:[#allocation2 + $0x470] sm:$0xf0]  ;;  %v3310_v57 = vld [vmem:[#allocation2 + $0x564] sm:$0xf]  ;;  %v3081_v58 = vor.u32 %v3378_v50, %v3078_v51  ;;  %v2492_v49 = vld [vmem:[#allocation2 + $0x2e8] sm:$0xf] }
  0x6e   :  { %1755 = vmatpush.bf16.msrb.mxu0 %v2729_v24  ;;  %1768 = vmatpush.bf16.msrb.mxu1 %v2857_v25  ;;  %v2806_v59 = vld [vmem:[#allocation2 + $0x570] sm:$0xf0]  ;;  %v3342_v60 = vld [vmem:[#allocation2 + $0x664] sm:$0xf]  ;;  %v2681_v0 = vor.u32 %v3278_v55, %v2678_v56  ;;  %v3233_v50 = vld [vmem:[#allocation2 + $0x2f4] sm:$0xf0]  ;;  %v2237_v56 = vor.u32 %v3169_v45, %v2236_v43 }
  0x6f   :  { %1781 = vmatpush.bf16.msrb.mxu2 %v2985_v26  ;;  %v2934_v61 = vld [vmem:[#allocation2 + $0x670] sm:$0xf0]  ;;  %v3374_v62 = vld [vmem:[#allocation2 + $0x764] sm:$0xf]  ;;  %v2809_v2 = vor.u32 %v3310_v57, %v2806_v59  ;;  %v2220_v59 = vld [vmem:[#allocation2 + $0xc8] sm:$0xf] }
  0x70   :  { %1794 = vmatpush.bf16.msrb.mxu3 %v3113_v30  ;;  %v3062_v63 = vld [vmem:[#allocation2 + $0x770] sm:$0xf0]  ;;  %v2937_v3 = vor.u32 %v3342_v60, %v2934_v61  ;;  %v3274_v4 = vld [vmem:[#allocation2 + $0x444] sm:$0xf]  ;;  %v3165_v60 = vld [vmem:[#allocation2 + $0xd4] sm:$0xf0] }
  0x71   :  { %v2662_v5 = vld [vmem:[#allocation2 + $0x450] sm:$0xf0]  ;;  %v3306_v7 = vld [vmem:[#allocation2 + $0x544] sm:$0xf]  ;;  %v3065_v8 = vor.u32 %v3374_v62, %v3062_v63  ;;  %v2348_v61 = vld [vmem:[#allocation2 + $0x1c8] sm:$0xf] }
  0x72   :  { %1756 = vmatpush.bf16.msrb.mxu0 %v2713_v37  ;;  %1769 = vmatpush.bf16.msrb.mxu1 %v2841_v38  ;;  %v2790_v9 = vld [vmem:[#allocation2 + $0x550] sm:$0xf0]  ;;  %v3338_v10 = vld [vmem:[#allocation2 + $0x644] sm:$0xf]  ;;  %v2665_v16 = vor.u32 %v3274_v4, %v2662_v5  ;;  %v3197_v63 = vld [vmem:[#allocation2 + $0x1d4] sm:$0xf0]  ;;  %v2221_v5 = vor.u32 %v3165_v60, %v2220_v59 }
  0x73   :  { %1782 = vmatpush.bf16.msrb.mxu2 %v2969_v41  ;;  %v2918_v11 = vld [vmem:[#allocation2 + $0x650] sm:$0xf0]  ;;  %v3370_v12 = vld [vmem:[#allocation2 + $0x744] sm:$0xf]  ;;  %v2793_v17 = vor.u32 %v3306_v7, %v2790_v9  ;;  %v3261_v4 = vld [vmem:[#allocation2 + $0x3d4] sm:$0xf0]  ;;  %v2349_v7 = vor.u32 %v3197_v63, %v2348_v61 }
  0x74   :  { %1795 = vmatpush.bf16.msrb.mxu3 %v3097_v46  ;;  %v3046_v13 = vld [vmem:[#allocation2 + $0x750] sm:$0xf0]  ;;  %v2921_v18 = vor.u32 %v3338_v10, %v2918_v11  ;;  %v3270_v19 = vld [vmem:[#allocation2 + $0x424] sm:$0xf]  ;;  %v2364_v46 = vld [vmem:[#allocation2 + $0x1e8] sm:$0xf] }
  0x75   :  { %v2646_v20 = vld [vmem:[#allocation2 + $0x430] sm:$0xf0]  ;;  %v3302_v21 = vld [vmem:[#allocation2 + $0x524] sm:$0xf]  ;;  %v3049_v22 = vor.u32 %v3370_v12, %v3046_v13  ;;  %v2365_v57 = vor.u32 %v3201_v48, %v2364_v46  ;;  %v2204_v9 = vld [vmem:[#allocation2 + $0xa8] sm:$0xf] }
  0x76   :  { %1757 = vmatpush.bf16.msrb.mxu0 %v2697_v52  ;;  %1770 = vmatpush.bf16.msrb.mxu1 %v2825_v53  ;;  %v2774_v23 = vld [vmem:[#allocation2 + $0x530] sm:$0xf0]  ;;  %v3334_v24 = vld [vmem:[#allocation2 + $0x624] sm:$0xf]  ;;  %v2649_v28 = vor.u32 %v3270_v19, %v2646_v20  ;;  %v2620_v53 = vld [vmem:[#allocation2 + $0x3e8] sm:$0xf] }
  0x77   :  { %1783 = vmatpush.bf16.msrb.mxu2 %v2953_v54  ;;  %v2902_v25 = vld [vmem:[#allocation2 + $0x630] sm:$0xf0]  ;;  %v3366_v26 = vld [vmem:[#allocation2 + $0x724] sm:$0xf]  ;;  %v2777_v31 = vor.u32 %v3302_v21, %v2774_v23  ;;  %v3265_v54 = vld [vmem:[#allocation2 + $0x3f4] sm:$0xf0] }
  0x78   :  { %1796 = vmatpush.bf16.msrb.mxu3 %v3081_v58  ;;  %v3030_v27 = vld [vmem:[#allocation2 + $0x730] sm:$0xf0]  ;;  %v3266_v29 = vld [vmem:[#allocation2 + $0x404] sm:$0xf]  ;;  %v2905_v32 = vor.u32 %v3334_v24, %v2902_v25  ;;  %v2493_v58 = vor.u32 %v3233_v50, %v2492_v49  ;;  %v2621_v62 = vor.u32 %v3265_v54, %v2620_v53  ;;  %v3161_v10 = vld [vmem:[#allocation2 + $0xb4] sm:$0xf0] }
  0x79   :  { %v2630_v30 = vld [vmem:[#allocation2 + $0x410] sm:$0xf0]  ;;  %v3298_v33 = vld [vmem:[#allocation2 + $0x504] sm:$0xf]  ;;  %v3033_v37 = vor.u32 %v3366_v26, %v3030_v27  ;;  %v2332_v11 = vld [vmem:[#allocation2 + $0x1a8] sm:$0xf]  ;;  %v2205_v20 = vor.u32 %v3161_v10, %v2204_v9 }
  0x7a   :  { %1758 = vmatpush.bf16.msrb.mxu0 %v2681_v0  ;;  %1771 = vmatpush.bf16.msrb.mxu1 %v2809_v2  ;;  %v2758_v34 = vld [vmem:[#allocation2 + $0x510] sm:$0xf0]  ;;  %v3330_v36 = vld [vmem:[#allocation2 + $0x604] sm:$0xf]  ;;  %v2633_v47 = vor.u32 %v3266_v29, %v2630_v30  ;;  %v2476_v0 = vld [vmem:[#allocation2 + $0x2c8] sm:$0xf] }
  0x7b   :  { %1784 = vmatpush.bf16.msrb.mxu2 %v2937_v3  ;;  %v2886_v38 = vld [vmem:[#allocation2 + $0x610] sm:$0xf0]  ;;  %v3362_v41 = vld [vmem:[#allocation2 + $0x704] sm:$0xf]  ;;  %v2761_v51 = vor.u32 %v3298_v33, %v2758_v34  ;;  %v3229_v2 = vld [vmem:[#allocation2 + $0x2d4] sm:$0xf0] }
  0x7c   :  { %1797 = vmatpush.bf16.msrb.mxu3 %v3065_v8  ;;  %v3014_v42 = vld [vmem:[#allocation2 + $0x710] sm:$0xf0]  ;;  %v2889_v52 = vor.u32 %v3330_v36, %v2886_v38  ;;  %v2604_v3 = vld [vmem:[#allocation2 + $0x3c8] sm:$0xf]  ;;  %v2477_v8 = vor.u32 %v3229_v2, %v2476_v0  ;;  %v3193_v13 = vld [vmem:[#allocation2 + $0x1b4] sm:$0xf0] }
  0x7d   :  { %v3017_v55 = vor.u32 %v3362_v41, %v3014_v42  ;;  %v2605_v12 = vor.u32 %v3261_v4, %v2604_v3  ;;  %v3257_v19 = vld [vmem:[#allocation2 + $0x3b4] sm:$0xf0]  ;;  %v2333_v21 = vor.u32 %v3193_v13, %v2332_v11  ;;  %v2188_v23 = vld [vmem:[#allocation2 + $0x88] sm:$0xf] }
  0x7e   :  { %1759 = vmatpush.bf16.msrb.mxu0 %v2665_v16  ;;  %1772 = vmatpush.bf16.msrb.mxu1 %v2793_v17  ;;  %v2460_v16 = vld [vmem:[#allocation2 + $0x2a8] sm:$0xf]  ;;  %v3225_v17 = vld [vmem:[#allocation2 + $0x2b4] sm:$0xf0] }
  0x7f   :  { %1785 = vmatpush.bf16.msrb.mxu2 %v2921_v18  ;;  %v2588_v18 = vld [vmem:[#allocation2 + $0x3a8] sm:$0xf]  ;;  %v3157_v24 = vld [vmem:[#allocation2 + $0x94] sm:$0xf0] }
  0x80   :  { %1798 = vmatpush.bf16.msrb.mxu3 %v3049_v22  ;;  %v2461_v22 = vor.u32 %v3225_v17, %v2460_v16  ;;  %v2316_v25 = vld [vmem:[#allocation2 + $0x188] sm:$0xf]  ;;  %v2589_v26 = vor.u32 %v3257_v19, %v2588_v18  ;;  %v3189_v27 = vld [vmem:[#allocation2 + $0x194] sm:$0xf0] }
  0x81   :  { %v3221_v29 = vld [vmem:[#allocation2 + $0x294] sm:$0xf0]  ;;  %v2572_v30 = vld [vmem:[#allocation2 + $0x388] sm:$0xf]  ;;  %v2317_v33 = vor.u32 %v3189_v27, %v2316_v25 }
  0x82   :  { %1760 = vmatpush.bf16.msrb.mxu0 %v2649_v28  ;;  %1773 = vmatpush.bf16.msrb.mxu1 %v2777_v31  ;;  %v2444_v28 = vld [vmem:[#allocation2 + $0x288] sm:$0xf]  ;;  %v3253_v31 = vld [vmem:[#allocation2 + $0x394] sm:$0xf0] }
  0x83   :  { %1786 = vmatpush.bf16.msrb.mxu2 %v2905_v32  ;;  %v2189_v32 = vor.u32 %v3157_v24, %v2188_v23  ;;  %v2445_v34 = vor.u32 %v3221_v29, %v2444_v28  ;;  %v2172_v36 = vld [vmem:[#allocation2 + $0x68] sm:$0xf]  ;;  %v2573_v41 = vor.u32 %v3253_v31, %v2572_v30  ;;  %v3185_v42 = vld [vmem:[#allocation2 + $0x174] sm:$0xf0] }
  0x84   :  { %1799 = vmatpush.bf16.msrb.mxu3 %v3033_v37  ;;  %v3153_v37 = vld [vmem:[#allocation2 + $0x74] sm:$0xf0]  ;;  %v2300_v38 = vld [vmem:[#allocation2 + $0x168] sm:$0xf] }
  0x85   :  { %v2428_v43 = vld [vmem:[#allocation2 + $0x268] sm:$0xf]  ;;  %v3217_v45 = vld [vmem:[#allocation2 + $0x274] sm:$0xf0]  ;;  %v2173_v48 = vor.u32 %v3153_v37, %v2172_v36  ;;  %v2301_v49 = vor.u32 %v3185_v42, %v2300_v38 }
  0x86   :  { %1761 = vmatpush.bf16.msrb.mxu0 %v2633_v47  ;;  %1774 = vmatpush.bf16.msrb.mxu1 %v2761_v51  ;;  %v2556_v46 = vld [vmem:[#allocation2 + $0x368] sm:$0xf]  ;;  %v3249_v47 = vld [vmem:[#allocation2 + $0x374] sm:$0xf0]  ;;  %v2429_v50 = vor.u32 %v3217_v45, %v2428_v43 }
  0x87   :  { %1787 = vmatpush.bf16.msrb.mxu2 %v2889_v52  ;;  %v2156_v51 = vld [vmem:[#allocation2 + $0x48] sm:$0xf]  ;;  %v3149_v52 = vld [vmem:[#allocation2 + $0x54] sm:$0xf0]  ;;  %v2557_v54 = vor.u32 %v3249_v47, %v2556_v46 }
  0x88   :  { %1800 = vmatpush.bf16.msrb.mxu3 %v3017_v55  ;;  %v2284_v53 = vld [vmem:[#allocation2 + $0x148] sm:$0xf]  ;;  %v3181_v55 = vld [vmem:[#allocation2 + $0x154] sm:$0xf0]  ;;  %v2157_v60 = vor.u32 %v3149_v52, %v2156_v51 }
  0x89   :  { %1762 = vmatmul.bf16.vlgmr.msrb.gmra.mxu0 %v3480_v39  ;;  %1775 = vmatmul.bf16.vlgmr.msrb.gmra.mxu1 %v3484_v44  ;;  %v3245_v59 = vld [vmem:[#allocation2 + $0x354] sm:$0xf0]  ;;  %v2285_v61 = vor.u32 %v3181_v55, %v2284_v53  ;;  %v2140_v63 = vld [vmem:[#allocation2 + $0x28] sm:$0xf] }
  0x8a   :  { %1806 = vmatpush.bf16.msra.mxu0 %v2237_v56  ;;  %1819 = vmatpush.bf16.msra.mxu1 %v2365_v57  ;;  %v2412_v56 = vld [vmem:[#allocation2 + $0x248] sm:$0xf]  ;;  %v3213_v57 = vld [vmem:[#allocation2 + $0x254] sm:$0xf0] }
  0x8b   :  { %1832 = vmatpush.bf16.msra.mxu2 %v2493_v58  ;;  %1801 = vmatmul.bf16.vlgmr.msrb.gmra.mxu3 %v3482_v40  ;;  %v2540_v58 = vld [vmem:[#allocation2 + $0x348] sm:$0xf]  ;;  %v3145_v0 = vld [vmem:[#allocation2 + $0x34] sm:$0xf0] }
  0x8c   :  { %1845 = vmatpush.bf16.msra.mxu3 %v2621_v62  ;;  %1788 = vmatmul.bf16.vlgmr.msrb.gmra.mxu2 %v3478_v35  ;;  %v2413_v62 = vor.u32 %v3213_v57, %v2412_v56  ;;  %v2268_v2 = vld [vmem:[#allocation2 + $0x128] sm:$0xf]  ;;  %v2541_v3 = vor.u32 %v3245_v59, %v2540_v58  ;;  %v3177_v4 = vld [vmem:[#allocation2 + $0x134] sm:$0xf0]  ;;  %v2141_v10 = vor.u32 %v3145_v0, %v2140_v63 }
  0x8d   :  { %v3241_v9 = vld [vmem:[#allocation2 + $0x334] sm:$0xf0]  ;;  %v2124_v11 = vld [vmem:[#allocation2 + $0x8] sm:$0xf]  ;;  %v2269_v13 = vor.u32 %v3177_v4, %v2268_v2 }
  0x8e   :  { %1807 = vmatpush.bf16.msra.mxu0 %v2221_v5  ;;  %1820 = vmatpush.bf16.msra.mxu1 %v2349_v7  ;;  %v2396_v5 = vld [vmem:[#allocation2 + $0x228] sm:$0xf]  ;;  %v3209_v7 = vld [vmem:[#allocation2 + $0x234] sm:$0xf0] }
  0x8f   :  { %1833 = vmatpush.bf16.msra.mxu2 %v2477_v8  ;;  %v2524_v8 = vld [vmem:[#allocation2 + $0x328] sm:$0xf]  ;;  %v2397_v16 = vor.u32 %v3209_v7, %v2396_v5  ;;  %v3173_v18 = vld [vmem:[#allocation2 + $0x114] sm:$0xf0] }
  0x90   :  { %1846 = vmatpush.bf16.msra.mxu3 %v2605_v12  ;;  %v3141_v12 = vld [vmem:[#allocation2 + $0x14] sm:$0xf0]  ;;  %v2252_v17 = vld [vmem:[#allocation2 + $0x108] sm:$0xf] }
  0x91   :  { %v2380_v19 = vld [vmem:[#allocation2 + $0x208] sm:$0xf]  ;;  %v3237_v23 = vld [vmem:[#allocation2 + $0x314] sm:$0xf0]  ;;  %v2125_v27 = vor.u32 %v3141_v12, %v2124_v11  ;;  %v2253_v31 = vor.u32 %v3173_v18, %v2252_v17 }
  0x92   :  { %1808 = vmatpush.bf16.msra.mxu0 %v2205_v20  ;;  %1821 = vmatpush.bf16.msra.mxu1 %v2333_v21  ;;  %v2525_v20 = vor.u32 %v3241_v9, %v2524_v8  ;;  %v3205_v21 = vld [vmem:[#allocation2 + $0x214] sm:$0xf0]  ;;  %v2748_v24 = vld [vmem:[#allocation2 + $0x4e8] sm:$0xf] }
  0x93   :  { %1834 = vmatpush.bf16.msra.mxu2 %v2461_v22  ;;  %v2508_v22 = vld [vmem:[#allocation2 + $0x308] sm:$0xf]  ;;  %v3297_v25 = vld [vmem:[#allocation2 + $0x4f4] sm:$0xf0] }
  0x94   :  { %1847 = vmatpush.bf16.msra.mxu3 %v2589_v26  ;;  %v2876_v26 = vld [vmem:[#allocation2 + $0x5e8] sm:$0xf]  ;;  %v3329_v28 = vld [vmem:[#allocation2 + $0x5f4] sm:$0xf0]  ;;  %v2509_v36 = vor.u32 %v3237_v23, %v2508_v22  ;;  %v2749_v37 = vor.u32 %v3297_v25, %v2748_v24 }
  0x95   :  { %v3004_v29 = vld [vmem:[#allocation2 + $0x6e8] sm:$0xf]  ;;  %v3361_v30 = vld [vmem:[#allocation2 + $0x6f4] sm:$0xf0]  ;;  %v2877_v38 = vor.u32 %v3329_v28, %v2876_v26 }
  0x96   :  { %1809 = vmatpush.bf16.msra.mxu0 %v2189_v32  ;;  %1822 = vmatpush.bf16.msra.mxu1 %v2317_v33  ;;  %v2381_v32 = vor.u32 %v3205_v21, %v2380_v19  ;;  %v3132_v33 = vld [vmem:[#allocation2 + $0x7e8] sm:$0xf]  ;;  %v3293_v43 = vld [vmem:[#allocation2 + $0x4d4] sm:$0xf0] }
  0x97   :  { %1835 = vmatpush.bf16.msra.mxu2 %v2445_v34  ;;  %v3393_v34 = vld [vmem:[#allocation2 + $0x7f4] sm:$0xf0]  ;;  %v2732_v42 = vld [vmem:[#allocation2 + $0x4c8] sm:$0xf] }
  0x98   :  { %1848 = vmatpush.bf16.msra.mxu3 %v2573_v41  ;;  %v3005_v41 = vor.u32 %v3361_v30, %v3004_v29  ;;  %v2860_v45 = vld [vmem:[#allocation2 + $0x5c8] sm:$0xf]  ;;  %v3133_v46 = vor.u32 %v3393_v34, %v3132_v33  ;;  %v3325_v47 = vld [vmem:[#allocation2 + $0x5d4] sm:$0xf0]  ;;  %v2733_v52 = vor.u32 %v3293_v43, %v2732_v42 }
  0x99   :  { %v3389_v51 = vld [vmem:[#allocation2 + $0x7d4] sm:$0xf0]  ;;  %v2861_v53 = vor.u32 %v3325_v47, %v2860_v45  ;;  %v2716_v55 = vld [vmem:[#allocation2 + $0x4a8] sm:$0xf] }
  0x9a   :  { %1810 = vmatpush.bf16.msra.mxu0 %v2173_v48  ;;  %1823 = vmatpush.bf16.msra.mxu1 %v2301_v49  ;;  %v2988_v48 = vld [vmem:[#allocation2 + $0x6c8] sm:$0xf]  ;;  %v3357_v49 = vld [vmem:[#allocation2 + $0x6d4] sm:$0xf0] }
  0x9b   :  { %1836 = vmatpush.bf16.msra.mxu2 %v2429_v50  ;;  %v3116_v50 = vld [vmem:[#allocation2 + $0x7c8] sm:$0xf]  ;;  %v3289_v56 = vld [vmem:[#allocation2 + $0x4b4] sm:$0xf0] }
  0x9c   :  { %1849 = vmatpush.bf16.msra.mxu3 %v2557_v54  ;;  %v2989_v54 = vor.u32 %v3357_v49, %v2988_v48  ;;  %v2844_v57 = vld [vmem:[#allocation2 + $0x5a8] sm:$0xf]  ;;  %v3117_v58 = vor.u32 %v3389_v51, %v3116_v50  ;;  %v3321_v59 = vld [vmem:[#allocation2 + $0x5b4] sm:$0xf0]  ;;  %v2717_v0 = vor.u32 %v3289_v56, %v2716_v55 }
  0x9d   :  { %v3385_v63 = vld [vmem:[#allocation2 + $0x7b4] sm:$0xf0]  ;;  %v2845_v2 = vor.u32 %v3321_v59, %v2844_v57  ;;  %v2700_v4 = vld [vmem:[#allocation2 + $0x488] sm:$0xf] }
  0x9e   :  { %1811 = vmatpush.bf16.msra.mxu0 %v2157_v60  ;;  %1824 = vmatpush.bf16.msra.mxu1 %v2285_v61  ;;  %v2972_v60 = vld [vmem:[#allocation2 + $0x6a8] sm:$0xf]  ;;  %v3353_v61 = vld [vmem:[#allocation2 + $0x6b4] sm:$0xf0] }
  0x9f   :  { %1837 = vmatpush.bf16.msra.mxu2 %v2413_v62  ;;  %v3100_v62 = vld [vmem:[#allocation2 + $0x7a8] sm:$0xf]  ;;  %v3285_v5 = vld [vmem:[#allocation2 + $0x494] sm:$0xf0] }
  0xa0   :  { %1850 = vmatpush.bf16.msra.mxu3 %v2541_v3  ;;  %v2973_v3 = vor.u32 %v3353_v61, %v2972_v60  ;;  %v2828_v7 = vld [vmem:[#allocation2 + $0x588] sm:$0xf]  ;;  %v3101_v8 = vor.u32 %v3385_v63, %v3100_v62  ;;  %v3317_v9 = vld [vmem:[#allocation2 + $0x594] sm:$0xf0] }
  0xa1   :  { %v3349_v11 = vld [vmem:[#allocation2 + $0x694] sm:$0xf0]  ;;  %v3084_v12 = vld [vmem:[#allocation2 + $0x788] sm:$0xf]  ;;  %v2829_v17 = vor.u32 %v3317_v9, %v2828_v7 }
  0xa2   :  { %1812 = vmatpush.bf16.msra.mxu0 %v2141_v10  ;;  %1825 = vmatpush.bf16.msra.mxu1 %v2269_v13  ;;  %v2956_v10 = vld [vmem:[#allocation2 + $0x688] sm:$0xf]  ;;  %v3381_v13 = vld [vmem:[#allocation2 + $0x794] sm:$0xf0] }
  0xa3   :  { %1838 = vmatpush.bf16.msra.mxu2 %v2397_v16  ;;  %v2701_v16 = vor.u32 %v3285_v5, %v2700_v4  ;;  %v2957_v18 = vor.u32 %v3349_v11, %v2956_v10  ;;  %v2684_v19 = vld [vmem:[#allocation2 + $0x468] sm:$0xf]  ;;  %v3085_v22 = vor.u32 %v3381_v13, %v3084_v12  ;;  %v3313_v23 = vld [vmem:[#allocation2 + $0x574] sm:$0xf0] }
  0xa4   :  { %1851 = vmatpush.bf16.msra.mxu3 %v2525_v20  ;;  %v3281_v20 = vld [vmem:[#allocation2 + $0x474] sm:$0xf0]  ;;  %v2812_v21 = vld [vmem:[#allocation2 + $0x568] sm:$0xf] }
  0xa5   :  { %v2940_v24 = vld [vmem:[#allocation2 + $0x668] sm:$0xf]  ;;  %v3345_v25 = vld [vmem:[#allocation2 + $0x674] sm:$0xf0]  ;;  %v2685_v28 = vor.u32 %v3281_v20, %v2684_v19  ;;  %v2813_v30 = vor.u32 %v3313_v23, %v2812_v21  ;;  %v3199_v19 = vld [vmem:[#allocation2 + $0x1ec] sm:$0xf] }
  0xa6   :  { %1813 = vmatpush.bf16.msra.mxu0 %v2125_v27  ;;  %1826 = vmatpush.bf16.msra.mxu1 %v2253_v31  ;;  %v3068_v26 = vld [vmem:[#allocation2 + $0x768] sm:$0xf]  ;;  %v3377_v27 = vld [vmem:[#allocation2 + $0x774] sm:$0xf0]  ;;  %v2941_v31 = vor.u32 %v3345_v25, %v2940_v24  ;;  %v3231_v23 = vld [vmem:[#allocation2 + $0x2ec] sm:$0xf] }
  0xa7   :  { %1839 = vmatpush.bf16.msra.mxu2 %v2381_v32  ;;  %v2668_v32 = vld [vmem:[#allocation2 + $0x448] sm:$0xf]  ;;  %v3277_v33 = vld [vmem:[#allocation2 + $0x454] sm:$0xf0]  ;;  %v2494_v24 = vld [vmem:[#allocation2 + $0x2f8] sm:$0xf0] }
  0xa8   :  { %1852 = vmatpush.bf16.msra.mxu3 %v2509_v36  ;;  %v2796_v34 = vld [vmem:[#allocation2 + $0x548] sm:$0xf]  ;;  %v3341_v42 = vld [vmem:[#allocation2 + $0x654] sm:$0xf0]  ;;  %v2669_v48 = vor.u32 %v3277_v33, %v2668_v32  ;;  %v2497_v33 = vor.u32 %v3231_v23, %v2494_v24  ;;  %v2430_v23 = vld [vmem:[#allocation2 + $0x278] sm:$0xf0] }
  0xa9   :  { %1814 = vmatmul.bf16.vlgmr.msra.gmra.mxu0 %v3465_v14  ;;  %1827 = vmatmul.bf16.vlgmr.msra.gmra.mxu1 %v3467_v15  ;;  %v3052_v45 = vld [vmem:[#allocation2 + $0x748] sm:$0xf]  ;;  %v3305_v56 = vld [vmem:[#allocation2 + $0x534] sm:$0xf0]  ;;  %v3247_v24 = vld [vmem:[#allocation2 + $0x36c] sm:$0xf] }
  0xaa   :  { %1858 = vmatpush.bf16.msrb.mxu0 %v2749_v37  ;;  %1871 = vmatpush.bf16.msrb.mxu1 %v2877_v38  ;;  %v3069_v37 = vor.u32 %v3377_v27, %v3068_v26  ;;  %v3309_v38 = vld [vmem:[#allocation2 + $0x554] sm:$0xf0]  ;;  %v2908_v57 = vld [vmem:[#allocation2 + $0x628] sm:$0xf]  ;;  %v3263_v27 = vld [vmem:[#allocation2 + $0x3ec] sm:$0xf] }
  0xab   :  { %1884 = vmatpush.bf16.msrb.mxu2 %v3005_v41  ;;  %1853 = vmatmul.bf16.vlgmr.msra.gmra.mxu3 %v3462_v6  ;;  %v2924_v41 = vld [vmem:[#allocation2 + $0x648] sm:$0xf]  ;;  %v2797_v50 = vor.u32 %v3309_v38, %v2796_v34  ;;  %v3369_v61 = vld [vmem:[#allocation2 + $0x734] sm:$0xf0]  ;;  %v3163_v34 = vld [vmem:[#allocation2 + $0xcc] sm:$0xf] }
  0xac   :  { %1897 = vmatpush.bf16.msrb.mxu3 %v3133_v46  ;;  %1840 = vmatmul.bf16.vlgmr.msra.gmra.mxu2 %v3457_v1  ;;  %v3373_v46 = vld [vmem:[#allocation2 + $0x754] sm:$0xf0]  ;;  %v1633_v47 = vpop.f32.mrf.mxu2  ;;  %v2925_v51 = vor.u32 %v3341_v42, %v2924_v41  ;;  %v3036_v60 = vld [vmem:[#allocation2 + $0x728] sm:$0xf]  ;;  %v2350_v41 = vld [vmem:[#allocation2 + $0x1d8] sm:$0xf0] }
  0xad   :  { %v3053_v55 = vor.u32 %v3373_v46, %v3052_v45  ;;  %v1646_v59 = vpop.f32.mrf.mxu3  ;;  %v2764_v7 = vld [vmem:[#allocation2 + $0x508] sm:$0xf]  ;;  %v3037_v11 = vor.u32 %v3369_v61, %v3036_v60  ;;  %v3333_v12 = vld [vmem:[#allocation2 + $0x614] sm:$0xf0]  ;;  %v3227_v42 = vld [vmem:[#allocation2 + $0x2cc] sm:$0xf] }
  0xae   :  { %1859 = vmatpush.bf16.msrb.mxu0 %v2733_v52  ;;  %1872 = vmatpush.bf16.msrb.mxu1 %v2861_v53  ;;  %v2652_v52 = vld [vmem:[#allocation2 + $0x428] sm:$0xf]  ;;  %v3273_v53 = vld [vmem:[#allocation2 + $0x434] sm:$0xf0]  ;;  %v3259_v45 = vld [vmem:[#allocation2 + $0x3cc] sm:$0xf] }
  0xaf   :  { %1885 = vmatpush.bf16.msrb.mxu2 %v2989_v54  ;;  %v2780_v54 = vld [vmem:[#allocation2 + $0x528] sm:$0xf]  ;;  %v2653_v63 = vor.u32 %v3273_v53, %v2652_v52  ;;  %v2606_v46 = vld [vmem:[#allocation2 + $0x3d8] sm:$0xf0]  ;;  %v3191_v52 = vld [vmem:[#allocation2 + $0x1ac] sm:$0xf] }
  0xb0   :  { %1898 = vmatpush.bf16.msrb.mxu3 %v3117_v58  ;;  %v3337_v58 = vld [vmem:[#allocation2 + $0x634] sm:$0xf0]  ;;  %v2781_v4 = vor.u32 %v3305_v56, %v2780_v54  ;;  %v2892_v9 = vld [vmem:[#allocation2 + $0x608] sm:$0xf]  ;;  %v2609_v53 = vor.u32 %v3259_v45, %v2606_v46  ;;  %v2334_v54 = vld [vmem:[#allocation2 + $0x1b8] sm:$0xf0] }
  0xb1   :  { %v2909_v5 = vor.u32 %v3337_v58, %v2908_v57  ;;  %v3020_v13 = vld [vmem:[#allocation2 + $0x708] sm:$0xf]  ;;  %v2893_v26 = vor.u32 %v3333_v12, %v2892_v9  ;;  %v2462_v56 = vld [vmem:[#allocation2 + $0x2b8] sm:$0xf0]  ;;  %v3255_v57 = vld [vmem:[#allocation2 + $0x3ac] sm:$0xf]  ;;  %v2337_v60 = vor.u32 %v3191_v52, %v2334_v54 }
  0xb2   :  { %1860 = vmatpush.bf16.msrb.mxu0 %v2717_v0  ;;  %1873 = vmatpush.bf16.msrb.mxu1 %v2845_v2  ;;  %v1607_v29 = vpop.f32.mrf.mxu0  ;;  %v1620_v36 = vpop.f32.mrf.mxu1  ;;  %v2636_v0 = vld [vmem:[#allocation2 + $0x408] sm:$0xf]  ;;  %v3269_v2 = vld [vmem:[#allocation2 + $0x414] sm:$0xf0]  ;;  %v2590_v58 = vld [vmem:[#allocation2 + $0x3b8] sm:$0xf0] }
  0xb3   :  { %1886 = vmatpush.bf16.msrb.mxu2 %v2973_v3  ;;  %v1621_v43 = vadd.f32 %v1620_v36, %v1607_v29  ;;  %v2637_v21 = vor.u32 %v3269_v2, %v2636_v0  ;;  %v2222_v36 = vld [vmem:[#allocation2 + $0xd8] sm:$0xf0]  ;;  %v3187_v2 = vld [vmem:[#allocation2 + $0x18c] sm:$0xf] }
  0xb4   :  { %1899 = vmatpush.bf16.msrb.mxu3 %v3101_v8  ;;  %v3301_v8 = vld [vmem:[#allocation2 + $0x514] sm:$0xf0]  ;;  %v1635_v20 = vpop.f32.mrf.mxu2  ;;  %v2190_v0 = vld [vmem:[#allocation2 + $0x98] sm:$0xf0]  ;;  %v3207_v54 = vld [vmem:[#allocation2 + $0x22c] sm:$0xf] }
  0xb5   :  { %v1634_v49 = vadd.f32 %v1633_v47, %v1621_v43  ;;  %v2765_v25 = vor.u32 %v3301_v8, %v2764_v7  ;;  %v2478_v43 = vld [vmem:[#allocation2 + $0x2d8] sm:$0xf0]  ;;  %v2225_v47 = vor.u32 %v3163_v34, %v2222_v36  ;;  %v3251_v8 = vld [vmem:[#allocation2 + $0x38c] sm:$0xf] }
  0xb6   :  { %1861 = vmatpush.bf16.msrb.mxu0 %v2701_v16  ;;  %1874 = vmatpush.bf16.msrb.mxu1 %v2829_v17  ;;  %v3365_v16 = vld [vmem:[#allocation2 + $0x714] sm:$0xf0]  ;;  %v3167_v17 = vld [vmem:[#allocation2 + $0xec] sm:$0xf]  ;;  %v2446_v7 = vld [vmem:[#allocation2 + $0x298] sm:$0xf0] }
  0xb7   :  { %1887 = vmatpush.bf16.msrb.mxu2 %v2957_v18  ;;  %v3502_v62 = vadd.f32 %v1646_v59, %v1634_v49  ;;  %v2238_v18 = vld [vmem:[#allocation2 + $0xf8] sm:$0xf0]  ;;  %v3021_v29 = vor.u32 %v3365_v16, %v3020_v13  ;;  %v2481_v49 = vor.u32 %v3227_v42, %v2478_v43 }
  0xb8   :  { %1900 = vmatpush.bf16.msrb.mxu3 %v3085_v22  ;;  %v2366_v22 = vld [vmem:[#allocation2 + $0x1f8] sm:$0xf0] }
  0xb9   :  { %v2369_v32 = vor.u32 %v3199_v19, %v2366_v22  ;;  %v2574_v9 = vld [vmem:[#allocation2 + $0x398] sm:$0xf0]  ;;  %v3183_v19 = vld [vmem:[#allocation2 + $0x16c] sm:$0xf] }
  0xba   :  { %1862 = vmatpush.bf16.msrb.mxu0 %v2685_v28  ;;  %1875 = vmatpush.bf16.msrb.mxu1 %v2813_v30  ;;  %v1609_v3 = vpop.f32.mrf.mxu0  ;;  %v1622_v10 = vpop.f32.mrf.mxu1  ;;  %v2622_v28 = vld [vmem:[#allocation2 + $0x3f8] sm:$0xf0]  ;;  %v2241_v30 = vor.u32 %v3167_v17, %v2238_v18  ;;  %v3151_v17 = vld [vmem:[#allocation2 + $0x6c] sm:$0xf]  ;;  %v2577_v20 = vor.u32 %v3251_v8, %v2574_v9 }
  0xbb   :  { %1888 = vmatpush.bf16.msrb.mxu2 %v2941_v31  ;;  %v1648_v31 = vpop.f32.mrf.mxu3  ;;  %v2625_v38 = vor.u32 %v3263_v27, %v2622_v28  ;;  %v2593_v3 = vor.u32 %v3255_v57, %v2590_v58  ;;  %v2174_v18 = vld [vmem:[#allocation2 + $0x78] sm:$0xf0]  ;;  %v3215_v22 = vld [vmem:[#allocation2 + $0x26c] sm:$0xf] }
  0xbc   :  { %1901 = vmatpush.bf16.msrb.mxu3 %v3069_v37  ;;  %v3195_v37 = vld [vmem:[#allocation2 + $0x1cc] sm:$0xf]  ;;  %v2433_v28 = vor.u32 %v3215_v22, %v2430_v23  ;;  %v2158_v31 = vld [vmem:[#allocation2 + $0x58] sm:$0xf0] }
  0xbd   :  { %v2286_v36 = vld [vmem:[#allocation2 + $0x158] sm:$0xf0]  ;;  %v3235_v8 = vld [vmem:[#allocation2 + $0x30c] sm:$0xf] }
  0xbe   :  { %1863 = vmatpush.bf16.msrb.mxu0 %v2669_v48  ;;  %1876 = vmatpush.bf16.msrb.mxu1 %v2797_v50  ;;  %v2353_v48 = vor.u32 %v3195_v37, %v2350_v41  ;;  %v3159_v50 = vld [vmem:[#allocation2 + $0xac] sm:$0xf]  ;;  %v2542_v42 = vld [vmem:[#allocation2 + $0x358] sm:$0xf0] }
  0xbf   :  { %1889 = vmatpush.bf16.msrb.mxu2 %v2925_v51  ;;  %v2206_v51 = vld [vmem:[#allocation2 + $0xb8] sm:$0xf0]  ;;  %v3211_v37 = vld [vmem:[#allocation2 + $0x24c] sm:$0xf] }
  0xc0   :  { %1902 = vmatpush.bf16.msrb.mxu3 %v3053_v55  ;;  %v3223_v55 = vld [vmem:[#allocation2 + $0x2ac] sm:$0xf]  ;;  %v2209_v59 = vor.u32 %v3159_v50, %v2206_v51  ;;  %v2526_v57 = vld [vmem:[#allocation2 + $0x338] sm:$0xf0] }
  0xc1   :  { %v2465_v61 = vor.u32 %v3223_v55, %v2462_v56  ;;  %v3243_v41 = vld [vmem:[#allocation2 + $0x34c] sm:$0xf]  ;;  %v2398_v55 = vld [vmem:[#allocation2 + $0x238] sm:$0xf0] }
  0xc2   :  { %1864 = vmatpush.bf16.msrb.mxu0 %v2653_v63  ;;  %1877 = vmatpush.bf16.msrb.mxu1 %v2781_v4  ;;  %v3155_v63 = vld [vmem:[#allocation2 + $0x8c] sm:$0xf]  ;;  %v2318_v4 = vld [vmem:[#allocation2 + $0x198] sm:$0xf0]  ;;  %v2545_v52 = vor.u32 %v3243_v41, %v2542_v42 }
  0xc3   :  { %1890 = vmatpush.bf16.msrb.mxu2 %v2909_v5  ;;  %v3219_v5 = vld [vmem:[#allocation2 + $0x28c] sm:$0xf]  ;;  %v2193_v10 = vor.u32 %v3155_v63, %v2190_v0  ;;  %v2321_v12 = vor.u32 %v3187_v2, %v2318_v4  ;;  %v2401_v63 = vor.u32 %v3207_v54, %v2398_v55  ;;  %v2254_v2 = vld [vmem:[#allocation2 + $0x118] sm:$0xf0] }
  0xc4   :  { %1903 = vmatpush.bf16.msrb.mxu3 %v3037_v11  ;;  %v2449_v13 = vor.u32 %v3219_v5, %v2446_v7  ;;  %v3175_v50 = vld [vmem:[#allocation2 + $0x12c] sm:$0xf]  ;;  %v2382_v7 = vld [vmem:[#allocation2 + $0x218] sm:$0xf0] }
  0xc5   :  { %v3239_v56 = vld [vmem:[#allocation2 + $0x32c] sm:$0xf]  ;;  %v2510_v9 = vld [vmem:[#allocation2 + $0x318] sm:$0xf0] }
  0xc6   :  { %1865 = vmatpush.bf16.msrb.mxu0 %v2637_v21  ;;  %1878 = vmatpush.bf16.msrb.mxu1 %v2765_v25  ;;  %v2302_v21 = vld [vmem:[#allocation2 + $0x178] sm:$0xf0]  ;;  %v3171_v0 = vld [vmem:[#allocation2 + $0x10c] sm:$0xf]  ;;  %v2529_v5 = vor.u32 %v3239_v56, %v2526_v57 }
  0xc7   :  { %1891 = vmatpush.bf16.msrb.mxu2 %v2893_v26  ;;  %v2558_v25 = vld [vmem:[#allocation2 + $0x378] sm:$0xf0]  ;;  %v2177_v26 = vor.u32 %v3151_v17, %v2174_v18  ;;  %v2305_v27 = vor.u32 %v3183_v19, %v2302_v21  ;;  %v3327_v17 = vld [vmem:[#allocation2 + $0x5ec] sm:$0xf]  ;;  %v2257_v22 = vor.u32 %v3171_v0, %v2254_v2 }
  0xc8   :  { %1904 = vmatpush.bf16.msrb.mxu3 %v3021_v29  ;;  %v3508_v11 = vpop.f32.mrf.mxu0  ;;  %v2878_v19 = vld [vmem:[#allocation2 + $0x5f8] sm:$0xf0]  ;;  %v3387_v42 = vld [vmem:[#allocation2 + $0x7cc] sm:$0xf] }
  0xc9   :  { %1866 = vmatmul.bf16.vlgmr.msrb.gmra.mxu0 %v3480_v39  ;;  %1879 = vmatmul.bf16.vlgmr.msrb.gmra.mxu1 %v3484_v44  ;;  %v3006_v21 = vld [vmem:[#allocation2 + $0x6f8] sm:$0xf0]  ;;  %v3383_v55 = vld [vmem:[#allocation2 + $0x7ac] sm:$0xf] }
  0xca   :  { %1910 = vmatpush.bf16.msra.mxu0 %v2241_v30  ;;  %1923 = vmatpush.bf16.msra.mxu1 %v2369_v32  ;;  %v3510_v16 = vpop.f32.mrf.mxu1  ;;  %v3147_v30 = vld [vmem:[#allocation2 + $0x4c] sm:$0xf]  ;;  %v2990_v41 = vld [vmem:[#allocation2 + $0x6d8] sm:$0xf0] }
  0xcb   :  { %1936 = vmatpush.bf16.msra.mxu2 %v2497_v33  ;;  %1905 = vmatmul.bf16.vlgmr.msrb.gmra.mxu3 %v3482_v40  ;;  %v3179_v32 = vld [vmem:[#allocation2 + $0x14c] sm:$0xf]  ;;  %v2561_v33 = vor.u32 %v3247_v24, %v2558_v25  ;;  %v2161_v43 = vor.u32 %v3147_v30, %v2158_v31  ;;  %v3134_v25 = vld [vmem:[#allocation2 + $0x7f8] sm:$0xf0] }
  0xcc   :  { %1949 = vmatpush.bf16.msra.mxu3 %v2625_v38  ;;  %1892 = vmatmul.bf16.vlgmr.msrb.gmra.mxu2 %v3478_v35  ;;  %v2414_v38 = vld [vmem:[#allocation2 + $0x258] sm:$0xf0]  ;;  %v2289_v46 = vor.u32 %v3179_v32, %v2286_v36  ;;  %v3391_v24 = vld [vmem:[#allocation2 + $0x7ec] sm:$0xf] }
  0xcd   :  { %v3291_v31 = vld [vmem:[#allocation2 + $0x4cc] sm:$0xf]  ;;  %v2734_v32 = vld [vmem:[#allocation2 + $0x4d8] sm:$0xf0]  ;;  %v3137_v36 = vor.u32 %v3391_v24, %v3134_v25 }
  0xce   :  { %1911 = vmatpush.bf16.msra.mxu0 %v2225_v47  ;;  %1924 = vmatpush.bf16.msra.mxu1 %v2353_v48  ;;  %v2417_v47 = vor.u32 %v3211_v37, %v2414_v38  ;;  %v3143_v48 = vld [vmem:[#allocation2 + $0x2c] sm:$0xf]  ;;  %v2862_v37 = vld [vmem:[#allocation2 + $0x5d8] sm:$0xf0] }
  0xcf   :  { %1937 = vmatpush.bf16.msra.mxu2 %v2481_v49  ;;  %v3512_v29 = vpop.f32.mrf.mxu2  ;;  %v2142_v49 = vld [vmem:[#allocation2 + $0x38] sm:$0xf0]  ;;  %v3355_v38 = vld [vmem:[#allocation2 + $0x6cc] sm:$0xf] }
  0xd0   :  { %1950 = vmatpush.bf16.msra.mxu3 %v2609_v53  ;;  %v3514_v34 = vpop.f32.mrf.mxu3  ;;  %v1661_v45 = vpop.f32.mrf.mxu0  ;;  %v2270_v53 = vld [vmem:[#allocation2 + $0x138] sm:$0xf0]  ;;  %v2145_v58 = vor.u32 %v3143_v48, %v2142_v49  ;;  %v3287_v48 = vld [vmem:[#allocation2 + $0x4ac] sm:$0xf] }
  0xd1   :  { %v2737_v45 = vor.u32 %v3291_v31, %v2734_v32  ;;  %v2718_v49 = vld [vmem:[#allocation2 + $0x4b8] sm:$0xf0]  ;;  %v3347_v2 = vld [vmem:[#allocation2 + $0x68c] sm:$0xf] }
  0xd2   :  { %1912 = vmatpush.bf16.msra.mxu0 %v2209_v59  ;;  %1925 = vmatpush.bf16.msra.mxu1 %v2337_v60  ;;  %v1674_v51 = vpop.f32.mrf.mxu1  ;;  %v3139_v59 = vld [vmem:[#allocation2 + $0xc] sm:$0xf]  ;;  %v2126_v60 = vld [vmem:[#allocation2 + $0x18] sm:$0xf0]  ;;  %v2721_v57 = vor.u32 %v3287_v48, %v2718_v49 }
  0xd3   :  { %1938 = vmatpush.bf16.msra.mxu2 %v2465_v61  ;;  %v2273_v61 = vor.u32 %v3175_v50, %v2270_v53  ;;  %v2129_v18 = vor.u32 %v3139_v59, %v2126_v60  ;;  %v3319_v50 = vld [vmem:[#allocation2 + $0x5ac] sm:$0xf]  ;;  %v2974_v54 = vld [vmem:[#allocation2 + $0x6b8] sm:$0xf0] }
  0xd4   :  { %1951 = vmatpush.bf16.msra.mxu3 %v2593_v3  ;;  %v3203_v3 = vld [vmem:[#allocation2 + $0x20c] sm:$0xf]  ;;  %v3102_v56 = vld [vmem:[#allocation2 + $0x7b8] sm:$0xf0] }
  0xd5   :  { %v2385_v23 = vor.u32 %v3203_v3, %v2382_v7  ;;  %v3351_v53 = vld [vmem:[#allocation2 + $0x6ac] sm:$0xf]  ;;  %v2830_v0 = vld [vmem:[#allocation2 + $0x598] sm:$0xf0] }
  0xd6   :  { %1913 = vmatpush.bf16.msra.mxu0 %v2193_v10  ;;  %1926 = vmatpush.bf16.msra.mxu1 %v2321_v12  ;;  %v3295_v12 = vld [vmem:[#allocation2 + $0x4ec] sm:$0xf]  ;;  %v2977_v59 = vor.u32 %v3351_v53, %v2974_v54  ;;  %v2958_v3 = vld [vmem:[#allocation2 + $0x698] sm:$0xf0] }
  0xd7   :  { %1939 = vmatpush.bf16.msra.mxu2 %v2449_v13  ;;  %v1687_v4 = vpop.f32.mrf.mxu2  ;;  %v2750_v13 = vld [vmem:[#allocation2 + $0x4f8] sm:$0xf0]  ;;  %v3283_v60 = vld [vmem:[#allocation2 + $0x48c] sm:$0xf]  ;;  %v2961_v7 = vor.u32 %v3347_v2, %v2958_v3 }
  0xd8   :  { %1952 = vmatpush.bf16.msra.mxu3 %v2577_v20  ;;  %v1700_v10 = vpop.f32.mrf.mxu3  ;;  %v3359_v20 = vld [vmem:[#allocation2 + $0x6ec] sm:$0xf]  ;;  %v2798_v31 = vld [vmem:[#allocation2 + $0x558] sm:$0xf0] }
  0xd9   :  { %v3009_v30 = vor.u32 %v3359_v20, %v3006_v21  ;;  %v3379_v4 = vld [vmem:[#allocation2 + $0x78c] sm:$0xf]  ;;  %v3070_v21 = vld [vmem:[#allocation2 + $0x778] sm:$0xf0] }
  0xda   :  { %1914 = vmatpush.bf16.msra.mxu0 %v2177_v26  ;;  %1927 = vmatpush.bf16.msra.mxu1 %v2305_v27  ;;  %v2513_v26 = vor.u32 %v3235_v8, %v2510_v9  ;;  %v2753_v27 = vor.u32 %v3295_v12, %v2750_v13  ;;  %v3279_v8 = vld [vmem:[#allocation2 + $0x46c] sm:$0xf]  ;;  %v2686_v9 = vld [vmem:[#allocation2 + $0x478] sm:$0xf0] }
  0xdb   :  { %1940 = vmatpush.bf16.msra.mxu2 %v2433_v28  ;;  %v2881_v28 = vor.u32 %v3327_v17, %v2878_v19  ;;  %v3311_v10 = vld [vmem:[#allocation2 + $0x56c] sm:$0xf]  ;;  %v2814_v17 = vld [vmem:[#allocation2 + $0x578] sm:$0xf0] }
  0xdc   :  { %1953 = vmatpush.bf16.msra.mxu3 %v2561_v33  ;;  %v3323_v33 = vld [vmem:[#allocation2 + $0x5cc] sm:$0xf]  ;;  %v2942_v19 = vld [vmem:[#allocation2 + $0x678] sm:$0xf0] }
  0xdd   :  { %v3375_v20 = vld [vmem:[#allocation2 + $0x76c] sm:$0xf]  ;;  %v2910_v53 = vld [vmem:[#allocation2 + $0x638] sm:$0xf0] }
  0xde   :  { %1915 = vmatpush.bf16.msra.mxu0 %v2161_v43  ;;  %1928 = vmatpush.bf16.msra.mxu1 %v2289_v46  ;;  %v3118_v43 = vld [vmem:[#allocation2 + $0x7d8] sm:$0xf0]  ;;  %v2865_v46 = vor.u32 %v3323_v33, %v2862_v37  ;;  %v3275_v25 = vld [vmem:[#allocation2 + $0x44c] sm:$0xf] }
  0xdf   :  { %1941 = vmatpush.bf16.msra.mxu2 %v2417_v47  ;;  %v2993_v47 = vor.u32 %v3355_v38, %v2990_v41  ;;  %v3121_v51 = vor.u32 %v3387_v42, %v3118_v43  ;;  %v3339_v32 = vld [vmem:[#allocation2 + $0x64c] sm:$0xf]  ;;  %v2926_v33 = vld [vmem:[#allocation2 + $0x658] sm:$0xf0] }
  0xe0   :  { %1954 = vmatpush.bf16.msra.mxu3 %v2545_v52  ;;  %v2846_v52 = vld [vmem:[#allocation2 + $0x5b8] sm:$0xf0]  ;;  %v3371_v37 = vld [vmem:[#allocation2 + $0x74c] sm:$0xf] }
  0xe1   :  { %v3054_v38 = vld [vmem:[#allocation2 + $0x758] sm:$0xf0]  ;;  %v3303_v48 = vld [vmem:[#allocation2 + $0x52c] sm:$0xf] }
  0xe2   :  { %1916 = vmatpush.bf16.msra.mxu0 %v2145_v58  ;;  %1929 = vmatpush.bf16.msra.mxu1 %v2273_v61  ;;  %v2849_v58 = vor.u32 %v3319_v50, %v2846_v52  ;;  %v2702_v61 = vld [vmem:[#allocation2 + $0x498] sm:$0xf0]  ;;  %v3057_v50 = vor.u32 %v3371_v37, %v3054_v38  ;;  %v3335_v52 = vld [vmem:[#allocation2 + $0x62c] sm:$0xf] }
  0xe3   :  { %1942 = vmatpush.bf16.msra.mxu2 %v2401_v63  ;;  %v3105_v63 = vor.u32 %v3383_v55, %v3102_v56  ;;  %v3367_v54 = vld [vmem:[#allocation2 + $0x72c] sm:$0xf]  ;;  %v3038_v55 = vld [vmem:[#allocation2 + $0x738] sm:$0xf0] }
  0xe4   :  { %1955 = vmatpush.bf16.msra.mxu3 %v2529_v5  ;;  %v2766_v2 = vld [vmem:[#allocation2 + $0x518] sm:$0xf0]  ;;  %v3331_v3 = vld [vmem:[#allocation2 + $0x60c] sm:$0xf] }
  0xe6   :  { %1917 = vmatpush.bf16.msra.mxu0 %v2129_v18  ;;  %1930 = vmatpush.bf16.msra.mxu1 %v2257_v22  ;;  %v3520_v5 = vpop.f32.mrf.mxu0  ;;  %v3522_v12 = vpop.f32.mrf.mxu1  ;;  %v3343_v18 = vld [vmem:[#allocation2 + $0x66c] sm:$0xf]  ;;  %v2689_v22 = vor.u32 %v3279_v8, %v2686_v9 }
  0xe7   :  { %1943 = vmatpush.bf16.msra.mxu2 %v2385_v23  ;;  %v2817_v23 = vor.u32 %v3311_v10, %v2814_v17  ;;  %v2945_v24 = vor.u32 %v3343_v18, %v2942_v19 }
  0xe8   :  { %1956 = vmatpush.bf16.msra.mxu3 %v2513_v26  ;;  %v2670_v26 = vld [vmem:[#allocation2 + $0x458] sm:$0xf0] }
  0xe9   :  { %1918 = vmatmul.bf16.vlgmr.msra.gmra.mxu0 %v3465_v14  ;;  %1931 = vmatmul.bf16.vlgmr.msra.gmra.mxu1 %v3467_v15  ;;  %v3086_v14 = vld [vmem:[#allocation2 + $0x798] sm:$0xf0]  ;;  %v2673_v41 = vor.u32 %v3275_v25, %v2670_v26 }
  0xea   :  { %1962 = vmatpush.bf16.msrb.mxu0 %v2753_v27  ;;  %1975 = vmatpush.bf16.msrb.mxu1 %v2881_v28  ;;  %v3089_v13 = vor.u32 %v3379_v4, %v3086_v14  ;;  %v3307_v27 = vld [vmem:[#allocation2 + $0x54c] sm:$0xf]  ;;  %v2894_v4 = vld [vmem:[#allocation2 + $0x618] sm:$0xf0] }
  0xeb   :  { %1988 = vmatpush.bf16.msrb.mxu2 %v3009_v30  ;;  %1957 = vmatmul.bf16.vlgmr.msra.gmra.mxu3 %v3462_v6  ;;  %v2705_v6 = vor.u32 %v3283_v60, %v2702_v61  ;;  %v3073_v30 = vor.u32 %v3375_v20, %v3070_v21  ;;  %v2801_v43 = vor.u32 %v3307_v27, %v2798_v31  ;;  %v2638_v60 = vld [vmem:[#allocation2 + $0x418] sm:$0xf0]  ;;  %v3299_v61 = vld [vmem:[#allocation2 + $0x50c] sm:$0xf] }
  0xec   :  { %2001 = vmatpush.bf16.msrb.mxu3 %v3137_v36  ;;  %1944 = vmatmul.bf16.vlgmr.msra.gmra.mxu2 %v3457_v1  ;;  %v3315_v1 = vld [vmem:[#allocation2 + $0x58c] sm:$0xf]  ;;  %v2769_v8 = vor.u32 %v3299_v61, %v2766_v2  ;;  %v2897_v9 = vor.u32 %v3331_v3, %v2894_v4 }
  0xed   :  { %v2833_v15 = vor.u32 %v3315_v1, %v2830_v0  ;;  %v3041_v0 = vor.u32 %v3367_v54, %v3038_v55 }
  0xee   :  { %1963 = vmatpush.bf16.msrb.mxu0 %v2737_v45  ;;  %1976 = vmatpush.bf16.msrb.mxu1 %v2865_v46  ;;  %v1750_v36 = vpop.f32.mrf.mxu3  ;;  %v1713_v42 = vpop.f32.mrf.mxu0  ;;  %v2929_v45 = vor.u32 %v3339_v32, %v2926_v33  ;;  %v3271_v46 = vld [vmem:[#allocation2 + $0x42c] sm:$0xf] }
  0xef   :  { %1989 = vmatpush.bf16.msrb.mxu2 %v2993_v47  ;;  %v1737_v28 = vpop.f32.mrf.mxu2  ;;  %v2654_v47 = vld [vmem:[#allocation2 + $0x438] sm:$0xf0]  ;;  %v1726_v49 = vpop.f32.mrf.mxu1 }
  0xf0   :  { %2002 = vmatpush.bf16.msrb.mxu3 %v3121_v51  ;;  %v2782_v51 = vld [vmem:[#allocation2 + $0x538] sm:$0xf0]  ;;  %v2657_v56 = vor.u32 %v3271_v46, %v2654_v47 }
  0xf2   :  { %1964 = vmatpush.bf16.msrb.mxu0 %v2721_v57  ;;  %1977 = vmatpush.bf16.msrb.mxu1 %v2849_v58  ;;  %v2785_v57 = vor.u32 %v3303_v48, %v2782_v51  ;;  %v2913_v58 = vor.u32 %v3335_v52, %v2910_v53 }
  0xf3   :  { %1990 = vmatpush.bf16.msrb.mxu2 %v2977_v59  ;;  %v3267_v59 = vld [vmem:[#allocation2 + $0x40c] sm:$0xf] }
  0xf4   :  { %2003 = vmatpush.bf16.msrb.mxu3 %v3105_v63  ;;  %v1660_v63 = vadd.f32 %v3508_v11, %v3502_v62  ;;  %v1725_v62 = vadd.f32 %v3522_v12, %v3520_v5 }
  0xf6   :  { %1965 = vmatpush.bf16.msrb.mxu0 %v2705_v6  ;;  %1978 = vmatpush.bf16.msrb.mxu1 %v2833_v15  ;;  %v1752_v14 = vpop.f32.mrf.mxu3  ;;  %v3363_v6 = vld [vmem:[#allocation2 + $0x70c] sm:$0xf]  ;;  %v3022_v15 = vld [vmem:[#allocation2 + $0x718] sm:$0xf0]  ;;  %v1673_v10 = vadd.f32 %v3510_v16, %v1660_v63  ;;  %v1738_v17 = vadd.f32 %v1737_v28, %v1725_v62 }
  0xf7   :  { %1991 = vmatpush.bf16.msrb.mxu2 %v2961_v7  ;;  %v1739_v1 = vpop.f32.mrf.mxu2  ;;  %v2641_v7 = vor.u32 %v3267_v59, %v2638_v60 }
  0xf8   :  { %2004 = vmatpush.bf16.msrb.mxu3 %v3089_v13  ;;  %v3025_v13 = vor.u32 %v3363_v6, %v3022_v15  ;;  %v1686_v11 = vadd.f32 %v3512_v29, %v1673_v10  ;;  %v1751_v18 = vadd.f32 %v1750_v36, %v1738_v17 }
  0xfa   :  { %1966 = vmatpush.bf16.msrb.mxu0 %v2689_v22  ;;  %1979 = vmatpush.bf16.msrb.mxu1 %v2817_v23  ;;  %v1699_v16 = vadd.f32 %v3514_v34, %v1686_v11 }
  0xfb   :  { %1992 = vmatpush.bf16.msrb.mxu2 %v2945_v24 }
  0xfc   :  { %2005 = vmatpush.bf16.msrb.mxu3 %v3073_v30  ;;  %v2061_v19 = vmul.f32 %v1699_v16, %v1699_v16  ;;  %v2018_v21 = vrot.slane %v1699_v16, 4 }
  0xfe   :  { %1967 = vmatpush.bf16.msrb.mxu0 %v2673_v41  ;;  %1980 = vmatpush.bf16.msrb.mxu1 %v2801_v43  ;;  %v2065_v29 = vrot.slane %v2061_v19, 4  ;;  %v2019_v24 = vadd.f32 %v2018_v21, %v1699_v16 }
  0xff   :  { %1993 = vmatpush.bf16.msrb.mxu2 %v2929_v45 }
 0x100   :  { %2006 = vmatpush.bf16.msrb.mxu3 %v3057_v50  ;;  %v2066_v26 = vadd.f32 %v2065_v29, %v2061_v19  ;;  %v2020_v28 = vrot.slane %v2019_v24, 2 }
 0x102   :  { %1968 = vmatpush.bf16.msrb.mxu0 %v2657_v56  ;;  %1981 = vmatpush.bf16.msrb.mxu1 %v2785_v57  ;;  %v2067_v31 = vrot.slane %v2066_v26, 2  ;;  %v2021_v37 = vadd.f32 %v2020_v28, %v2019_v24 }
 0x103   :  { %1994 = vmatpush.bf16.msrb.mxu2 %v2913_v58 }
 0x104   :  { %2007 = vmatpush.bf16.msrb.mxu3 %v3041_v0  ;;  %v2068_v43 = vadd.f32 %v2067_v31, %v2066_v26  ;;  %v2022_v47 = vrot.slane %v2021_v37, 1 }
 0x106   :  { %1969 = vmatpush.bf16.msrb.mxu0 %v2641_v7  ;;  %1982 = vmatpush.bf16.msrb.mxu1 %v2769_v8  ;;  %v1763_v5 = vpop.f32.mrf.mxu0  ;;  %v1776_v20 = vpop.f32.mrf.mxu1  ;;  %v2069_v50 = vrot.slane %v2068_v43, 1  ;;  %v2023_v53 = vadd.f32 %v2022_v47, %v2021_v37 }
 0x107   :  { %1995 = vmatpush.bf16.msrb.mxu2 %v2897_v9  ;;  %v1764_v12 = vadd.f32 %v1763_v5, %v1751_v18 }
 0x108   :  { %2008 = vmatpush.bf16.msrb.mxu3 %v3025_v13  ;;  %v2070_v56 = vadd.f32 %v2069_v50, %v2068_v43 }
 0x109   :  { %1970 = vmatmul.bf16.vlgmr.msrb.gmra.mxu0 %v3480_v39  ;;  %1983 = vmatmul.bf16.vlgmr.msrb.gmra.mxu1 %v3484_v44  ;;  %v1777_v22 = vadd.f32 %v1776_v20, %v1764_v12 }
 0x10a   :  { %1996 = vmatmul.bf16.vlgmr.msrb.gmra.mxu2 %v3478_v35 }
 0x10b   :  { %2009 = vmatmul.bf16.vlgmr.msrb.gmra.mxu3 %v3482_v40 }
 0x10e   :  { %v1802_v39 = vpop.f32.mrf.mxu3  ;;  %v1765_v27 = vpop.f32.mrf.mxu0 }
 0x10f   :  { %v1789_v23 = vpop.f32.mrf.mxu2  ;;  %v1778_v35 = vpop.f32.mrf.mxu1 }
 0x110   :  { %v1790_v25 = vadd.f32 %v1789_v23, %v1777_v22 }
 0x112   :  { %v1803_v44 = vadd.f32 %v1802_v39, %v1790_v25 }
 0x114   :  { %v2014_v40 = vpack.c.bf16 %v1803_v44, %v1699_v16  ;;  %v2024_v30 = vrot.slane %v1803_v44, 4  ;;  %v2062_v34 = vmul.f32 %v1803_v44, %v1803_v44 }
 0x116   :  { %2016 = vst [vmem:[%s3555_s2] sm:$0xff] %v2014_v40  ;;  %v2025_v32 = vadd.f32 %v2024_v30, %v1803_v44  ;;  %v2071_v33 = vrot.slane %v2062_v34, 4  ;;  %v1804_v42 = vpop.f32.mrf.mxu3 }
 0x117   :  { %v1791_v36 = vpop.f32.mrf.mxu2 }
 0x118   :  { %v2026_v38 = vrot.slane %v2025_v32, 2  ;;  %v2072_v41 = vadd.f32 %v2071_v33, %v2062_v34 }
 0x11a   :  { %v2027_v45 = vadd.f32 %v2026_v38, %v2025_v32  ;;  %v2073_v46 = vrot.slane %v2072_v41, 2 }
 0x11c   :  { %v2028_v48 = vrot.slane %v2027_v45, 1  ;;  %v2074_v49 = vadd.f32 %v2073_v46, %v2072_v41 }
 0x11e   :  { %v2029_v51 = vadd.f32 %v2028_v48, %v2027_v45  ;;  %v2075_v52 = vrot.slane %v2074_v49, 1 }
 0x120   :  { %v2046_v54 = vrot.slane %v2029_v51, 7  ;;  %v2076_v55 = vadd.f32 %v2075_v52, %v2074_v49 }
 0x122   :  { %v3538_v57 = vsel %vm2049_vm0, %v2023_v53, %v2046_v54  ;;  %v2093_v58 = vrot.slane %v2076_v55, 7 }
 0x124   :  { %v3540_v59 = vsel %vm2049_vm0, %v2070_v56, %v2093_v58 }
 0x126   :  { %v1815_v60 = vpop.f32.mrf.mxu0  ;;  %v1828_v61 = vpop.f32.mrf.mxu1 }
 0x127   :  { %v1829_v1 = vadd.f32 %v1828_v61, %v1815_v60 }
 0x12e   :  { %v1854_v2 = vpop.f32.mrf.mxu3  ;;  %v1817_v4 = vpop.f32.mrf.mxu0 }
 0x12f   :  { %v1841_v63 = vpop.f32.mrf.mxu2  ;;  %v1830_v14 = vpop.f32.mrf.mxu1  ;;  %v2056_v4 = vlaneseq }
 0x130   :  { %v1842_v0 = vadd.f32 %v1841_v63, %v1829_v1 }
 0x131   :  { %vm2058_vm3 = vcmp.lt.s32.totalorder %v2056_v4, 512 }
 0x132   :  { %v1855_v3 = vadd.f32 %v1854_v2, %v1842_v0 }
 0x136   :  { %v1856_v15 = vpop.f32.mrf.mxu3 }
 0x137   :  { %v1843_v6 = vpop.f32.mrf.mxu2 }
 0x146   :  { %v1867_v7 = vpop.f32.mrf.mxu0  ;;  %v1880_v8 = vpop.f32.mrf.mxu1 }
 0x147   :  { %v1868_v21 = vadd.f32 %v1867_v7, %v1855_v3 }
 0x149   :  { %v1881_v29 = vadd.f32 %v1880_v8, %v1868_v21 }
 0x14e   :  { %v1906_v10 = vpop.f32.mrf.mxu3  ;;  %v1869_v13 = vpop.f32.mrf.mxu0 }
 0x14f   :  { %v1893_v9 = vpop.f32.mrf.mxu2  ;;  %v1882_v62 = vpop.f32.mrf.mxu1 }
 0x150   :  { %v1894_v24 = vadd.f32 %v1893_v9, %v1881_v29 }
 0x152   :  { %v1907_v39 = vadd.f32 %v1906_v10, %v1894_v24 }
 0x154   :  { %v2063_v44 = vmul.f32 %v1907_v39, %v1907_v39  ;;  %v2030_v27 = vrot.slane %v1907_v39, 4 }
 0x156   :  { %v1908_v17 = vpop.f32.mrf.mxu3  ;;  %v2077_v30 = vrot.slane %v2063_v44, 4  ;;  %v2031_v31 = vadd.f32 %v2030_v27, %v1907_v39 }
 0x157   :  { %v1895_v11 = vpop.f32.mrf.mxu2 }
 0x158   :  { %v2078_v32 = vadd.f32 %v2077_v30, %v2063_v44  ;;  %v2032_v37 = vrot.slane %v2031_v31, 2 }
 0x15a   :  { %v2079_v45 = vrot.slane %v2078_v32, 2  ;;  %v2033_v47 = vadd.f32 %v2032_v37, %v2031_v31 }
 0x15c   :  { %v2080_v51 = vadd.f32 %v2079_v45, %v2078_v32  ;;  %v2034_v55 = vrot.slane %v2033_v47, 1 }
 0x15e   :  { %v2081_v61 = vrot.slane %v2080_v51, 1  ;;  %v2035_v0 = vadd.f32 %v2034_v55, %v2033_v47 }
 0x160   :  { %v2082_v14 = vadd.f32 %v2081_v61, %v2080_v51  ;;  %v2047_v7 = vrot.slane %v2035_v0, 6 }
 0x162   :  { %v2094_v10 = vrot.slane %v2082_v14, 6 }
 0x166   :  { %v1919_v16 = vpop.f32.mrf.mxu0  ;;  %v1932_v18 = vpop.f32.mrf.mxu1 }
 0x167   :  { %v1933_v25 = vadd.f32 %v1932_v18, %v1919_v16 }
 0x16e   :  { %v1958_v5 = vpop.f32.mrf.mxu3  ;;  %v1921_v12 = vpop.f32.mrf.mxu0 }
 0x16f   :  { %v1945_v19 = vpop.f32.mrf.mxu2  ;;  %v1934_v20 = vpop.f32.mrf.mxu1 }
 0x170   :  { %v1946_v26 = vadd.f32 %v1945_v19, %v1933_v25 }
 0x172   :  { %v1959_v35 = vadd.f32 %v1958_v5, %v1946_v26 }
 0x176   :  { %v1960_v23 = vpop.f32.mrf.mxu3 }
 0x177   :  { %v1947_v22 = vpop.f32.mrf.mxu2 }
 0x186   :  { %v1971_v28 = vpop.f32.mrf.mxu0  ;;  %v1984_v40 = vpop.f32.mrf.mxu1 }
 0x187   :  { %v1972_v34 = vadd.f32 %v1971_v28, %v1959_v35 }
 0x189   :  { %v1985_v33 = vadd.f32 %v1984_v40, %v1972_v34 }
 0x18d   :  { %v1997_v36 = vpop.f32.mrf.mxu2 }
 0x18e   :  { %v1998_v38 = vadd.f32 %v1997_v36, %v1985_v33  ;;  %v2010_v41 = vpop.f32.mrf.mxu3  ;;  %v1973_v42 = vpop.f32.mrf.mxu0 }
 0x18f   :  { %v1986_v43 = vpop.f32.mrf.mxu1 }
 0x190   :  { %v2011_v46 = vadd.f32 %v2010_v41, %v1998_v38 }
 0x192   :  { %v2015_v48 = vpack.c.bf16 %v2011_v46, %v1907_v39  ;;  %v2036_v49 = vrot.slane %v2011_v46, 4  ;;  %v2064_v50 = vmul.f32 %v2011_v46, %v2011_v46 }
 0x194   :  { %2017 = vst [vmem:[%s3555_s2 + $0x8] sm:$0xff] %v2015_v48  ;;  %v2037_v52 = vadd.f32 %v2036_v49, %v2011_v46  ;;  %v2083_v53 = vrot.slane %v2064_v50, 4 }
 0x195   :  { %v1999_v54 = vpop.f32.mrf.mxu2 }
 0x196   :  { %v2038_v56 = vrot.slane %v2037_v52, 2  ;;  %v2084_v58 = vadd.f32 %v2083_v53, %v2064_v50  ;;  %v2012_v60 = vpop.f32.mrf.mxu3 }
 0x198   :  { %v2039_v1 = vadd.f32 %v2038_v56, %v2037_v52  ;;  %v2085_v63 = vrot.slane %v2084_v58, 2 }
 0x19a   :  { %v2040_v2 = vrot.slane %v2039_v1, 1  ;;  %v2086_v3 = vadd.f32 %v2085_v63, %v2084_v58 }
 0x19c   :  { %v2041_v6 = vadd.f32 %v2040_v2, %v2039_v1  ;;  %v2087_v15 = vrot.slane %v2086_v3, 1 }
 0x19e   :  { %v2048_v8 = vrot.slane %v2041_v6, 5  ;;  %v2088_v9 = vadd.f32 %v2087_v15, %v2086_v3 }
 0x1a0   :  { %v2052_v13 = vsel %vm2051_vm1, %v2047_v7, %v2048_v8  ;;  %v2095_v62 = vrot.slane %v2088_v9, 5 }
 0x1a1   :  { %v2054_v11 = vsel %vm2053_vm2, %v3538_v57, %v2052_v13 }
 0x1a2   :  { %2060 = vst.msk [vmem:[%s3556_s3] sm:$0xf] %vm2058_vm3, %v2054_v11  ;;  %v2097_v17 = vsel %vm2051_vm1, %v2094_v10, %v2095_v62 }
 0x1a3   :  { %v2098_v16 = vsel %vm2053_vm2, %v3540_v59, %v2097_v17 }
 0x1a4   :  { %2100 = vst.msk [vmem:[%s3557_s4] sm:$0xf] %vm2058_vm3, %v2098_v16 }
 0x1a5   :  { %2113 = vsyncpa [#allocation3], 1 }

// kernel: tile.58
= control target key start
LH: loop header
LB: loop body
LE: loop exit
PB: predicated region body
PF: predicated region fallthrough
CT: control target
= control target key end

     0   :  { %s22_s0 = inlined_call_operand.vmem [shape: f32[3], index: 0, kind: input, shape index: {}]   ;;  %s23_s1 = inlined_call_operand.vmem [shape: f32[4,3], index: 1, kind: output, shape index: {}]  }
   0x1   :  { %v4_v0 = vld [vmem:[%s22_s0] ss:$0 sm:$0xff] }
   0x2   :  { %5 = vst [vmem:[%s23_s1] sm:$0xf] %v4_v0 }

// kernel: tile.59
= control target key start
LH: loop header
LB: loop body
LE: loop exit
PB: predicated region body
PF: predicated region fallthrough
CT: control target
= control target key end

     0   :  { %s37_s8 = smov 3   ;;  %s38_s9 = smov 6   ;;  %vm7_vm0 = vcmask 23552   ;;  %vm13_vm1 = vcmask 97352   ;;  %vm19_vm2 = vcmask 72752   ;;  %vm25_vm3 = vcmask 48152   ;;  %s55_s0 = inlined_call_operand.vmem [shape: f32[4,3], index: 0, kind: input, shape index: {}]   ;;  %s56_s1 = inlined_call_operand.vmem [shape: f32[12], index: 1, kind: output, shape index: {}]  }
   0x1   :  { %v4_v0 = vld [vmem:[%s55_s0] sm:$0xf]  ;;  %s36_s0 = smov 9  }
   0x2   :  { %5 = vst [vmem:[#allocation1] sm:$0xf] %v4_v0 }
   0x9   :  { %v10_v1 = vld [vmem:[#allocation1 + $0x3] sm:$0x1]   ;;  %v22_v2 = vld [vmem:[#allocation1 + $0x1] sm:$0x1]   ;;  %v16_v3 = vld [vmem:[#allocation1 + $0x2] sm:$0x1]  }
   0xa   :  { %11 = vrot.lane.b32.xlu0 %v10_v1, %s36_s0  ;;  %23 = vrot.lane.b32.xlu1 %v22_v2, %s37_s8  ;;  %v6_v4 = vld [vmem:[#allocation1] sm:$0x1]  }
   0xb   :  { %8 = vst.msk [vmem:[#allocation0] sm:$0x1] %vm7_vm0, %v6_v4  }
  0x12   :  { %17 = vrot.lane.b32.xlu0 %v16_v3, %s38_s9 }
  0x7c   :  { %v12_v5 = vpop.permute.xlu0 %11   ;;  %v24_v6 = vpop.permute.xlu1 %23  }
  0x7d   :  { %14 = vst.msk [vmem:[#allocation0] sm:$0x1] %vm13_vm1, %v12_v5  }
  0x84   :  { %v18_v7 = vpop.permute.xlu0 %17  }
  0x85   :  { %20 = vst.msk [vmem:[#allocation0] sm:$0x1] %vm19_vm2, %v18_v7  }
  0x86   :  { %26 = vst.msk [vmem:[#allocation0] sm:$0x1] %vm25_vm3, %v24_v6  }
  0x8d   :  { %v29_v8 = vld [vmem:[#allocation0] sm:$0x1] }
  0x8e   :  { %32 = vst [vmem:[%s56_s1] sm:$0x1] %v29_v8 }

// kernel: vae_forward.26
= control target key start
LH: loop header
LB: loop body
LE: loop exit
PB: predicated region body
PF: predicated region fallthrough
CT: control target
= control target key end

     0   :  { %s826_s15 = smov 0   ;;  %s930_s0 = inlined_call_operand.vmem [shape: bf16[128,256], index: 0, kind: input, shape index: {}]   ;;  %s931_s1 = inlined_call_operand.vmem [shape: bf16[256,128], index: 1, kind: input, shape index: {}]   ;;  %s932_s2 = inlined_call_operand.vmem [shape: bf16[128,128], index: 2, kind: output, shape index: {0}]   ;;  %s933_s3 = inlined_call_operand.vmem [shape: f32[2,1,128], index: 3, kind: output, shape index: {1}]   ;;  %s934_s4 = inlined_call_operand.vmem [shape: f32[2,1,128], index: 4, kind: output, shape index: {2}]  }
   0x1 LB: > { %s832_s16 = sadd.s32 4294967295, %s799_s15   ;;  %p617_p0 = scmp.ge.s32.totalorder %s799_s15, 1  ;;  %s799_s15 = sphi %s826_s15, %s15_s15  }
   0x2   : > { %p169_p1 = scmp.lt.s32.totalorder %s799_s15, 3 }
   0x4   : > { %p170_p2 = pnand %p617_p0, %p169_p1 }
   0x5   : > { %s618_s29 = sshll.u32 (!%p170_p2), %s832_s16, 3  ;;  %p215_p4 = scmp.lt.s32.totalorder (!%p170_p2), %s832_s16, 1 }
   0x6   : > { %173 = sbr.rel (%p170_p2) target bundleno = 221 (0xdd), region = 28  ;;  %p203_p3 = scmp.lt.s32.totalorder (!%p170_p2), %s618_s29, 15 }
   0xb   : > { %v737_v0 = vld [vmem:[%s931_s1 + $0x38] sm:$0xff]  ;;  %v736_v2 = vld [vmem:[%s931_s1 + $0x30] sm:$0xff]  ;;  %v735_v4 = vld [vmem:[%s931_s1 + $0x28] sm:$0xff]  ;;  %s936_s29 = smov (!%p203_p3, %s618_s29), 15  ;;  %s938_s16 = smov (!%p215_p4, %s832_s16), 1 }
   0xc   : > { %v745_v1 = vld [vmem:[%s931_s1 + $0x78] sm:$0xff]  ;;  %397 = vmatpush.bf16.msra.mxu0 %v737_v0  ;;  %769 = vmatpush.bf16.msra.mxu2 %v737_v0  ;;  %v744_v3 = vld [vmem:[%s931_s1 + $0x70] sm:$0xff]  ;;  %v743_v5 = vld [vmem:[%s931_s1 + $0x68] sm:$0xff]  ;;  %s721_s18 = sshll.u32 %s936_s29, 3  ;;  %s622_s5 = sshll.u32 %s936_s29, 2 }
   0xd   : > { %426 = vmatpush.bf16.msra.mxu1 %v745_v1  ;;  %777 = vmatpush.bf16.msra.mxu3 %v745_v1  ;;  %v734_v6 = vld [vmem:[%s931_s1 + $0x20] sm:$0xff]  ;;  %v733_v8 = vld [vmem:[%s931_s1 + $0x18] sm:$0xff]  ;;  %v732_v10 = vld [vmem:[%s931_s1 + $0x10] sm:$0xff]  ;;  %s882_s23 = scalar_lea.vmem %s930_s0, %s721_s18  ;;  %s913_s8 = scalar_lea.vmem %s932_s2, %s622_s5 }
   0xe   : > { %v742_v7 = vld [vmem:[%s931_s1 + $0x60] sm:$0xff]  ;;  %v741_v9 = vld [vmem:[%s931_s1 + $0x58] sm:$0xff]  ;;  %v740_v11 = vld [vmem:[%s931_s1 + $0x50] sm:$0xff]  ;;  %s217_s10 = scalar_lea.vmem %s933_s3, %s938_s16  ;;  %s220_s13 = scalar_lea.vmem %s934_s4, %s938_s16 }
   0xf   : > { %v731_v12 = vld [vmem:[%s931_s1 + $0x8] sm:$0xff]  ;;  %v730_v14 = vld [vmem:[%s931_s1] sm:$0xff]  ;;  %v633_v28 = vld [vmem:[%s882_s23 + $0x10] sm:$0xf] }
  0x10   : > { %398 = vmatpush.bf16.msra.mxu0 %v736_v2  ;;  %770 = vmatpush.bf16.msra.mxu2 %v736_v2  ;;  %v739_v13 = vld [vmem:[%s931_s1 + $0x48] sm:$0xff]  ;;  %v738_v15 = vld [vmem:[%s931_s1 + $0x40] sm:$0xff]  ;;  %v725_v29 = vld [vmem:[%s882_s23 + $0x14] sm:$0xf0] }
  0x11   : > { %427 = vmatpush.bf16.msra.mxu1 %v744_v3  ;;  %778 = vmatpush.bf16.msra.mxu3 %v744_v3  ;;  %v625_v16 = vld [vmem:[%s882_s23] sm:$0xf]  ;;  %v723_v17 = vld [vmem:[%s882_s23 + $0x4] sm:$0xf0]  ;;  %v722_v20 = vld [vmem:[%s882_s23 + $0x4] sm:$0xf]  ;;  %v634_v36 = vor.u32 %v725_v29, %v633_v28 }
  0x12   : > { %v641_v18 = vld [vmem:[%s882_s23 + $0x20] sm:$0xf]  ;;  %v727_v19 = vld [vmem:[%s882_s23 + $0x24] sm:$0xf0]  ;;  %v627_v21 = vld [vmem:[%s882_s23 + $0x8] sm:$0xf0]  ;;  %v626_v24 = vor.u32 %v723_v17, %v625_v16 }
  0x13   : > { %v726_v22 = vld [vmem:[%s882_s23 + $0x24] sm:$0xf]  ;;  %v643_v23 = vld [vmem:[%s882_s23 + $0x28] sm:$0xf0]  ;;  %v642_v25 = vor.u32 %v727_v19, %v641_v18  ;;  %v630_v26 = vor.u32 %v722_v20, %v627_v21  ;;  %v649_v30 = vld [vmem:[%s882_s23 + $0x30] sm:$0xf] }
  0x14   : > { %399 = vmatpush.bf16.msra.mxu0 %v735_v4  ;;  %771 = vmatpush.bf16.msra.mxu2 %v735_v4  ;;  %v646_v27 = vor.u32 %v726_v22, %v643_v23  ;;  %v729_v31 = vld [vmem:[%s882_s23 + $0x34] sm:$0xf0]  ;;  %v724_v32 = vld [vmem:[%s882_s23 + $0x14] sm:$0xf]  ;;  %v635_v33 = vld [vmem:[%s882_s23 + $0x18] sm:$0xf0] }
  0x15   : > { %428 = vmatpush.bf16.msra.mxu1 %v743_v5  ;;  %779 = vmatpush.bf16.msra.mxu3 %v743_v5  ;;  %v728_v34 = vld [vmem:[%s882_s23 + $0x34] sm:$0xf]  ;;  %v651_v35 = vld [vmem:[%s882_s23 + $0x38] sm:$0xf0]  ;;  %v650_v37 = vor.u32 %v729_v31, %v649_v30  ;;  %v638_v38 = vor.u32 %v724_v32, %v635_v33 }
  0x16   : > { %v654_v39 = vor.u32 %v728_v34, %v651_v35 }
  0x18   : > { %400 = vmatpush.bf16.msra.mxu0 %v734_v6  ;;  %772 = vmatpush.bf16.msra.mxu2 %v734_v6 }
  0x19   : > { %429 = vmatpush.bf16.msra.mxu1 %v742_v7  ;;  %780 = vmatpush.bf16.msra.mxu3 %v742_v7 }
  0x1c   : > { %401 = vmatpush.bf16.msra.mxu0 %v733_v8  ;;  %773 = vmatpush.bf16.msra.mxu2 %v733_v8 }
  0x1d   : > { %430 = vmatpush.bf16.msra.mxu1 %v741_v9  ;;  %781 = vmatpush.bf16.msra.mxu3 %v741_v9 }
  0x20   : > { %402 = vmatpush.bf16.msra.mxu0 %v732_v10  ;;  %774 = vmatpush.bf16.msra.mxu2 %v732_v10 }
  0x21   : > { %431 = vmatpush.bf16.msra.mxu1 %v740_v11  ;;  %782 = vmatpush.bf16.msra.mxu3 %v740_v11 }
  0x24   : > { %403 = vmatpush.bf16.msra.mxu0 %v731_v12  ;;  %775 = vmatpush.bf16.msra.mxu2 %v731_v12 }
  0x25   : > { %432 = vmatpush.bf16.msra.mxu1 %v739_v13  ;;  %783 = vmatpush.bf16.msra.mxu3 %v739_v13 }
  0x28   : > { %404 = vmatpush.bf16.msra.mxu0 %v730_v14  ;;  %776 = vmatpush.bf16.msra.mxu2 %v730_v14 }
  0x29   : > { %433 = vmatpush.bf16.msra.mxu1 %v738_v15  ;;  %784 = vmatpush.bf16.msra.mxu3 %v738_v15 }
  0x2b   : > { %405 = vmatmul.bf16.vlgmr.msra.gmra.mxu0 %v626_v24  ;;  %415 = vmatmul.bf16.vlgmr.msra.gmra.mxu2 %v642_v25 }
  0x2c   : > { %434 = vmatmul.bf16.vlgmr.msra.gmra.mxu1 %v630_v26  ;;  %444 = vmatmul.bf16.vlgmr.msra.gmra.mxu3 %v646_v27 }
  0x3b   : > { %410 = vmatmul.bf16.gmra.mxu0 %v634_v36  ;;  %420 = vmatmul.bf16.gmra.mxu2 %v650_v37 }
  0x3c   : > { %439 = vmatmul.bf16.gmra.mxu1 %v638_v38  ;;  %449 = vmatmul.bf16.gmra.mxu3 %v654_v39 }
  0xa8   : > { %v406_v40 = vpop.f32.mrf.mxu0 }
  0xa9   : > { %v435_v41 = vpop.f32.mrf.mxu1 }
  0xaa   : > { %v436_v46 = vadd.f32 %v435_v41, %v406_v40 }
  0xac   : > { %v485_v60 = vmul.f32 %v436_v46, %v436_v46 }
  0xae   : > { %v416_v42 = vpop.f32.mrf.mxu2 }
  0xaf   : > { %v445_v43 = vpop.f32.mrf.mxu3 }
  0xb0   : > { %v408_v44 = vpop.f32.mrf.mxu0  ;;  %v446_v51 = vadd.f32 %v445_v43, %v416_v42 }
  0xb1   : > { %v437_v45 = vpop.f32.mrf.mxu1 }
  0xb2   : > { %v438_v47 = vadd.f32 %v437_v45, %v408_v44  ;;  %v489_v8 = vmul.f32 %v446_v51, %v446_v51 }
  0xb4   : > { %v749_v48 = vpack.c.bf16 %v438_v47, %v436_v46  ;;  %v486_v57 = vmul.f32 %v438_v47, %v438_v47  ;;  %v471_v61 = vadd.f32 %v438_v47, %v436_v46 }
  0xb6   : > { %750 = vst [vmem:[%s913_s8] sm:$0xff] %v749_v48   ;;  %v418_v49 = vpop.f32.mrf.mxu2  ;;  %v493_v1 = vadd.f32 %v486_v57, %v485_v60 }
  0xb7   : > { %v447_v50 = vpop.f32.mrf.mxu3 }
  0xb8   : > { %v448_v52 = vadd.f32 %v447_v50, %v418_v49  ;;  %v411_v53 = vpop.f32.mrf.mxu0 }
  0xb9   : > { %v440_v54 = vpop.f32.mrf.mxu1 }
  0xba   : > { %v759_v55 = vpack.c.bf16 %v448_v52, %v446_v51  ;;  %v441_v56 = vadd.f32 %v440_v54, %v411_v53  ;;  %v490_v14 = vmul.f32 %v448_v52, %v448_v52 }
  0xbc   : > { %767 = vst [vmem:[%s913_s8 + $0x10] sm:$0xff] %v759_v55   ;;  %v487_v62 = vmul.f32 %v441_v56, %v441_v56  ;;  %v472_v2 = vadd.f32 %v471_v61, %v441_v56 }
  0xbe   : > { %v421_v58 = vpop.f32.mrf.mxu2  ;;  %v494_v4 = vadd.f32 %v493_v1, %v487_v62 }
  0xbf   : > { %v450_v59 = vpop.f32.mrf.mxu3 }
  0xc0   : > { %v413_v63 = vpop.f32.mrf.mxu0  ;;  %v451_v9 = vadd.f32 %v450_v59, %v421_v58 }
  0xc1   : > { %v442_v0 = vpop.f32.mrf.mxu1 }
  0xc2   : > { %v443_v3 = vadd.f32 %v442_v0, %v413_v63  ;;  %v491_v18 = vmul.f32 %v451_v9, %v451_v9 }
  0xc4   : > { %v754_v5 = vpack.c.bf16 %v443_v3, %v441_v56  ;;  %v473_v6 = vadd.f32 %v472_v2, %v443_v3  ;;  %v488_v7 = vmul.f32 %v443_v3, %v443_v3 }
  0xc6   : > { %766 = vst [vmem:[%s913_s8 + $0x8] sm:$0xff] %v754_v5   ;;  %v474_v10 = vadd.f32 %v473_v6, %v446_v51  ;;  %v495_v11 = vadd.f32 %v494_v4, %v488_v7  ;;  %v423_v12 = vpop.f32.mrf.mxu2 }
  0xc7   : > { %v452_v13 = vpop.f32.mrf.mxu3 }
  0xc8   : > { %v496_v15 = vadd.f32 %v495_v11, %v489_v8  ;;  %v453_v16 = vadd.f32 %v452_v13, %v423_v12  ;;  %v475_v17 = vadd.f32 %v474_v10, %v448_v52 }
  0xca   : > { %v764_v19 = vpack.c.bf16 %v453_v16, %v451_v9  ;;  %v476_v20 = vadd.f32 %v475_v17, %v451_v9  ;;  %v497_v21 = vadd.f32 %v496_v15, %v490_v14  ;;  %v492_v23 = vmul.f32 %v453_v16, %v453_v16 }
  0xcc   : > { %768 = vst [vmem:[%s913_s8 + $0x18] sm:$0xff] %v764_v19   ;;  %v477_v22 = vadd.f32 %v476_v20, %v453_v16  ;;  %v498_v24 = vadd.f32 %v497_v21, %v491_v18 }
  0xce   : > { %v478_v25 = vrot.slane %v477_v22, 4  ;;  %v499_v26 = vadd.f32 %v498_v24, %v492_v23 }
  0xd0   : > { %v479_v27 = vadd.f32 %v478_v25, %v477_v22  ;;  %v500_v28 = vrot.slane %v499_v26, 4 }
  0xd2   : > { %v480_v29 = vrot.slane %v479_v27, 2  ;;  %v501_v30 = vadd.f32 %v500_v28, %v499_v26 }
  0xd4   : > { %v481_v31 = vadd.f32 %v480_v29, %v479_v27  ;;  %v502_v32 = vrot.slane %v501_v30, 2 }
  0xd6   : > { %v482_v33 = vrot.slane %v481_v31, 1  ;;  %v503_v34 = vadd.f32 %v502_v32, %v501_v30 }
  0xd8   : > { %v483_v35 = vadd.f32 %v482_v33, %v481_v31  ;;  %v504_v36 = vrot.slane %v503_v34, 1 }
  0xda   : > { %484 = vst [vmem:[%s217_s10] sm:$0x1] %v483_v35  ;;  %v505_v37 = vadd.f32 %v504_v36, %v503_v34 }
  0xdc   : > { %506 = vst [vmem:[%s220_s13] sm:$0x1] %v505_v37 }
  0xdd PF: > { %s15_s15 = sadd.s32 1, %s799_s15  }
  0xde   : > { %p12_p5 = scmp.ge.s32.totalorder %s15_s15, 4  }
  0xe0   :  { %14 = sbr.rel (!%p12_p5) target bundleno = 1 (0x1), region = 82 }

// kernel: vae_forward.27
= control target key start
LH: loop header
LB: loop body
LE: loop exit
PB: predicated region body
PF: predicated region fallthrough
CT: control target
= control target key end

     0   :  { %s425_s12 = smov 0   ;;  %s455_s0 = inlined_call_operand.vmem [shape: bf16[128,128], index: 0, kind: input, shape index: {}]   ;;  %s456_s1 = inlined_call_operand.vmem [shape: f32[1,128], index: 1, kind: input, shape index: {}]   ;;  %s457_s2 = inlined_call_operand.vmem [shape: f32[1,128], index: 2, kind: input, shape index: {}]   ;;  %s458_s3 = inlined_call_operand.vmem [shape: bf16[128,128], index: 3, kind: output, shape index: {}]  }
   0x1 LB: > { %s318_s13 = sadd.s32 4294967295, %s403_s12   ;;  %p322_p0 = scmp.ge.s32.totalorder %s403_s12, 1  ;;  %s403_s12 = sphi %s425_s12, %s13_s12  }
   0x2   : > { %p138_p1 = scmp.lt.s32.totalorder %s403_s12, 3 }
   0x4   : > { %p139_p2 = pnand %p322_p0, %p138_p1 }
   0x5   : > { %s323_s14 = sshll.u32 (!%p139_p2), %s318_s13, 3 }
   0x6   : > { %142 = sbr.rel (%p139_p2) target bundleno = 41 (0x29), region = 32  ;;  %p163_p3 = scmp.lt.s32.totalorder (!%p139_p2), %s323_s14, 15 }
   0xb   : > { %s460_s14 = smov (!%p163_p3, %s323_s14), 15  ;;  %v379_v0 = vld [vmem:[%s456_s1] ss:$0 sm:$0xff] }
   0xc   : > { %s324_s15 = sshll.u32 %s460_s14, 2  ;;  %v380_v9 = vld [vmem:[%s457_s2] ss:$0 sm:$0xff] }
   0xd   : > { %s166_s18 = scalar_lea.vmem %s455_s0, %s324_s15  ;;  %s172_s25 = scalar_lea.vmem %s458_s3, %s324_s15 }
   0xe   : > { %v330_v1 = vld [vmem:[%s166_s18] sm:$0xff]   ;;  %v365_v2 = vld [vmem:[%s166_s18 + $0x8] sm:$0xff]   ;;  %v366_v3 = vld [vmem:[%s166_s18 + $0x10] sm:$0xff]  }
   0xf   : > { %v331_v4 = vunpack.c.l.bf16 %v330_v1  ;;  %v332_v5 = vunpack.c.h.bf16 %v330_v1  ;;  %v335_v6 = vunpack.c.l.bf16 %v365_v2  ;;  %v336_v7 = vunpack.c.h.bf16 %v365_v2  ;;  %v367_v8 = vld [vmem:[%s166_s18 + $0x18] sm:$0xff]  }
  0x10   : > { %v339_v10 = vunpack.c.l.bf16 %v366_v3  ;;  %v340_v11 = vunpack.c.h.bf16 %v366_v3  ;;  %v343_v12 = vunpack.c.l.bf16 %v367_v8  ;;  %v344_v13 = vunpack.c.h.bf16 %v367_v8 }
  0x11   : > { %v194_v14 = vmul.f32 %v379_v0, %v331_v4  ;;  %v195_v15 = vmul.f32 %v379_v0, %v332_v5  ;;  %v196_v16 = vmul.f32 %v379_v0, %v335_v6  ;;  %v197_v17 = vmul.f32 %v379_v0, %v336_v7 }
  0x12   : > { %v198_v18 = vmul.f32 %v379_v0, %v339_v10  ;;  %v199_v19 = vmul.f32 %v379_v0, %v340_v11  ;;  %v200_v20 = vmul.f32 %v379_v0, %v343_v12  ;;  %v201_v21 = vmul.f32 %v379_v0, %v344_v13 }
  0x13   : > { %v206_v22 = vadd.f32 %v380_v9, %v194_v14  ;;  %v207_v23 = vadd.f32 %v380_v9, %v195_v15  ;;  %v208_v24 = vadd.f32 %v380_v9, %v196_v16  ;;  %v209_v25 = vadd.f32 %v380_v9, %v197_v17 }
  0x14   : > { %v210_v26 = vadd.f32 %v380_v9, %v198_v18  ;;  %v211_v27 = vadd.f32 %v380_v9, %v199_v19  ;;  %v212_v28 = vadd.f32 %v380_v9, %v200_v20  ;;  %v213_v29 = vadd.f32 %v380_v9, %v201_v21 }
  0x15   : > { %vm214_vm0 = vcmp.gt.f32.partialorder %v206_v22, 0.0  ;;  %vm215_vm1 = vcmp.gt.f32.partialorder %v207_v23, 0.0  ;;  %v222_v30 = vmul.f32 0.2, %v206_v22  ;;  %v223_v31 = vmul.f32 0.2, %v207_v23 }
  0x16   : > { %vm216_vm2 = vcmp.gt.f32.partialorder %v208_v24, 0.0  ;;  %vm217_vm3 = vcmp.gt.f32.partialorder %v209_v25, 0.0  ;;  %v224_v32 = vmul.f32 0.2, %v208_v24  ;;  %v225_v33 = vmul.f32 0.2, %v209_v25 }
  0x17   : > { %v230_v34 = vsel %vm214_vm0, %v206_v22, %v222_v30  ;;  %v231_v35 = vsel %vm215_vm1, %v207_v23, %v223_v31  ;;  %vm218_vm4 = vcmp.gt.f32.partialorder %v210_v26, 0.0  ;;  %vm219_vm5 = vcmp.gt.f32.partialorder %v211_v27, 0.0 }
  0x18   : > { %381 = vtanh.f32 %v230_v34  ;;  %v232_v36 = vsel %vm216_vm2, %v208_v24, %v224_v32  ;;  %v233_v37 = vsel %vm217_vm3, %v209_v25, %v225_v33  ;;  %v226_v38 = vmul.f32 0.2, %v210_v26 }
  0x19   : > { %383 = vtanh.f32 %v231_v35  ;;  %v227_v39 = vmul.f32 0.2, %v211_v27  ;;  %vm220_vm6 = vcmp.gt.f32.partialorder %v212_v28, 0.0  ;;  %vm221_vm7 = vcmp.gt.f32.partialorder %v213_v29, 0.0 }
  0x1a   : > { %385 = vtanh.f32 %v232_v36  ;;  %v234_v40 = vsel %vm218_vm4, %v210_v26, %v226_v38  ;;  %v228_v41 = vmul.f32 0.2, %v212_v28  ;;  %v229_v42 = vmul.f32 0.2, %v213_v29 }
  0x1b   : > { %387 = vtanh.f32 %v233_v37  ;;  %v235_v43 = vsel %vm219_vm5, %v211_v27, %v227_v39 }
  0x1c   : > { %389 = vtanh.f32 %v234_v40  ;;  %v236_v44 = vsel %vm220_vm6, %v212_v28, %v228_v41  ;;  %v237_v45 = vsel %vm221_vm7, %v213_v29, %v229_v42 }
  0x1d   : > { %391 = vtanh.f32 %v235_v43 }
  0x1e   : > { %v382_v46 = vpop.eup %381  ;;  %393 = vtanh.f32 %v236_v44 }
  0x1f   : > { %v384_v47 = vpop.eup %383  ;;  %395 = vtanh.f32 %v237_v45 }
  0x20   : > { %v386_v48 = vpop.eup %385  ;;  %v348_v49 = vpack.c.bf16 %v384_v47, %v382_v46 }
  0x21   : > { %v388_v50 = vpop.eup %387 }
  0x22   : > { %v390_v51 = vpop.eup %389  ;;  %349 = vst [vmem:[%s172_s25] sm:$0xff] %v348_v49   ;;  %v353_v52 = vpack.c.bf16 %v388_v50, %v386_v48 }
  0x23   : > { %v392_v53 = vpop.eup %391 }
  0x24   : > { %v394_v54 = vpop.eup %393  ;;  %368 = vst [vmem:[%s172_s25 + $0x8] sm:$0xff] %v353_v52   ;;  %v358_v55 = vpack.c.bf16 %v392_v53, %v390_v51 }
  0x25   : > { %v396_v56 = vpop.eup %395 }
  0x26   : > { %369 = vst [vmem:[%s172_s25 + $0x10] sm:$0xff] %v358_v55   ;;  %v363_v57 = vpack.c.bf16 %v396_v56, %v394_v54 }
  0x28   : > { %370 = vst [vmem:[%s172_s25 + $0x18] sm:$0xff] %v363_v57  }
  0x29 PF: > { %s13_s12 = sadd.s32 1, %s403_s12  }
  0x2a   : > { %p10_p4 = scmp.ge.s32.totalorder %s13_s12, 4  }
  0x2c   :  { %12 = sbr.rel (!%p10_p4) target bundleno = 1 (0x1), region = 62 }

</bundles_post_ra>
